<compile_context>
chip_gen: v5e
topology: v5e:2x2
jax: 0.10.0
libtpu: 0.0.40
codegen_flags: <defaults>
</compile_context>

<pallas_src>
import functools

import jax
import jax.numpy as jnp
from jax.experimental import pallas as pl
from jax.experimental.pallas import tpu as pltpu

latent_dim = 30
categorical_dim = 10
LATENT_FLAT = latent_dim * categorical_dim   # 300 (logical)
LAT_PAD = 384                                # 300 padded to 3*128 lanes
IN_FEATURES = 784                            # logical pixel count
IN_PAD = 896                                 # 784 padded to 7*128 lanes

LOGICAL_DIMS = [(784, 512), (512, 256), (256, LATENT_FLAT),
                (LATENT_FLAT, 256), (256, 512), (512, 784)]
PADDED_DIMS = [(IN_PAD, 512), (512, 256), (256, LAT_PAD),
               (LAT_PAD, 256), (256, 512), (512, IN_PAD)]


# ----------------------------------------------------------------------------
# Fused kernel: encoder (784->512->256->300, relu x3), gumbel-softmax sample,
# plain per-group softmax of the logits, decoder (300->256->512->784,
# relu/relu/sigmoid). One grid step processes `tb` batch rows; all weights,
# biases and the group mask are VMEM-resident (constant index_map).
# ----------------------------------------------------------------------------
def _vae_gumbel_kernel(x_ref, u_ref, m_ref,
                       w1_ref, b1_ref, w2_ref, b2_ref, w3_ref, b3_ref,
                       w4_ref, b4_ref, w5_ref, b5_ref, w6_ref, b6_ref,
                       recon_ref, softq_ref, *, temp, eps, den_eps, approx_recip):
    f32 = jnp.float32
    bf16 = jnp.bfloat16

    # ---------------- encoder (bf16 matmuls, f32 accumulation) ----------------
    x = x_ref[...]                                                  # bf16 [tb, 896]
    h = jnp.dot(x, w1_ref[...], preferred_element_type=f32) + b1_ref[...]
    h = jnp.maximum(h, 0.0).astype(bf16)
    h = jnp.dot(h, w2_ref[...], preferred_element_type=f32) + b2_ref[...]
    h = jnp.maximum(h, 0.0).astype(bf16)
    q = jnp.dot(h, w3_ref[...], preferred_element_type=f32) + b3_ref[...]
    q = jnp.maximum(q, 0.0)                                         # [tb, 384] f32 logits

    # ---------------- gumbel noise from wrapper-supplied U ~ [0, 1) -----------
    u = u_ref[...]                                                  # f32 [tb, 384]
    g = -jnp.log(-jnp.log(u + eps) + eps)                           # sample_gumbel

    m = m_ref[...]  # [384, 384] bf16 block-diagonal group mask (1 inside each group of 10)

    # gumbel_softmax_sample: softmax((q + g)/temp) within each group of 10.
    # Subtracting the per-row GLOBAL max is an exact stabiliser for a per-group
    # softmax (the constant cancels inside each group); keeps [tb,384] lane-dense.
    # den_eps guards against a fully-underflowed group turning into 0/0.
    y = (q + g) * (1.0 / temp)
    y = y - jnp.max(y, axis=-1, keepdims=True)
    ey = jnp.exp(y)
    den_z = jnp.dot(ey.astype(bf16), m, preferred_element_type=f32) + den_eps
    if approx_recip:
        z = ey * pl.reciprocal(den_z, approx=True)                  # decoder input only
    else:
        z = ey / den_z

    # F.softmax(q_y, dim=-1) reshaped back to [tb, 384] (second forward output).
    # Exact division here so group sums stay ~1 for the returned tensor.
    qs = q - jnp.max(q, axis=-1, keepdims=True)
    eq = jnp.exp(qs)
    den_q = jnp.dot(eq.astype(bf16), m, preferred_element_type=f32) + den_eps
    softq_ref[...] = eq / den_q

    # TODO(synk): hard=True straight-through (argmax one-hot) path not implemented;
    # the module's global default hard=False is what is reproduced here.

    # ---------------- decoder ----------------
    h = jnp.dot(z.astype(bf16), w4_ref[...], preferred_element_type=f32) + b4_ref[...]
    h = jnp.maximum(h, 0.0).astype(bf16)
    h = jnp.dot(h, w5_ref[...], preferred_element_type=f32) + b5_ref[...]
    h = jnp.maximum(h, 0.0).astype(bf16)
    h = jnp.dot(h, w6_ref[...], preferred_element_type=f32) + b6_ref[...]
    recon_ref[...] = jax.nn.sigmoid(h)


# ----------------------------------------------------------------------------
# Parameter init (PyTorch nn.Linear default U(-1/sqrt(fan_in))), padded to
# lane-aligned shapes with zeros; weights bf16, biases f32; plus the bf16
# block-diagonal group mask used for the per-group softmax sums.
# ----------------------------------------------------------------------------
def init_params(key):
    params = {}
    for idx, ((fi, fo), (pi, po)) in enumerate(zip(LOGICAL_DIMS, PADDED_DIMS), start=1):
        key, kw, kb = jax.random.split(key, 3)
        bound = 1.0 / (fi ** 0.5)
        w = jax.random.uniform(kw, (fi, fo), jnp.float32, -bound, bound)
        b = jax.random.uniform(kb, (1, fo), jnp.float32, -bound, bound)
        w = jnp.pad(w, ((0, pi - fi), (0, po - fo)))     # zero rows/cols for padding
        b = jnp.pad(b, ((0, 0), (0, po - fo)))
        params[f"w{idx}"] = w.astype(jnp.bfloat16)
        params[f"b{idx}"] = b
    gid = jnp.arange(LAT_PAD) // categorical_dim         # padded cols get their own groups
    params["group_mask"] = (gid[:, None] == gid[None, :]).astype(jnp.bfloat16)
    return params


def _round_up(n, m):
    return (n + m - 1) // m * m


# ----------------------------------------------------------------------------
# Full forward pass (mirrors VAE_gumbel.forward with hard=False).
# ----------------------------------------------------------------------------
def vae_gumbel_forward(params, x, noise_key, temp=1.0, block_b=512):
    x2 = x.reshape(-1, IN_FEATURES).astype(jnp.float32)
    batch = x2.shape[0]

    # Cap the batch tile at ceil(batch/2) (rounded to the 8-row sublane granule)
    # so the grid has >= 2 steps whenever batch > 8 -> both v7x TensorCores busy.
    tb = min(block_b, max(8, _round_up(-(-batch // 2), 8)))
    padded = _round_up(batch, tb)
    grid = (padded // tb,)

    # Pad pixels 784 -> 896 and batch to a multiple of tb; DMA x as bf16.
    x2 = jnp.pad(x2, ((0, padded - batch), (0, IN_PAD - IN_FEATURES))).astype(jnp.bfloat16)

    # Uniform noise for sample_gumbel (torch.rand equivalent); padded latent
    # columns get unused draws that never influence the real outputs.
    u = jax.random.uniform(noise_key, (padded, LAT_PAD), jnp.float32)

    const = lambda i: (0, 0)   # weights / biases / mask: VMEM-resident across steps
    row = lambda i: (i, 0)     # activations / outputs: batch-tiled

    in_specs = [
        pl.BlockSpec((tb, IN_PAD), row),             # x (bf16)
        pl.BlockSpec((tb, LAT_PAD), row),            # uniform noise (f32)
        pl.BlockSpec((LAT_PAD, LAT_PAD), const),     # group mask (bf16)
    ]
    operands = [x2, u, params["group_mask"]]
    for idx in range(1, 7):
        w = params[f"w{idx}"]
        b = params[f"b{idx}"]
        in_specs.append(pl.BlockSpec(w.shape, const))
        in_specs.append(pl.BlockSpec(b.shape, const))
        operands.extend([w, b])

    out_specs = (
        pl.BlockSpec((tb, IN_PAD), row),
        pl.BlockSpec((tb, LAT_PAD), row),
    )
    out_shape = (
        jax.ShapeDtypeStruct((padded, IN_PAD), jnp.float32),
        jax.ShapeDtypeStruct((padded, LAT_PAD), jnp.float32),
    )

    matmul_flops = 2 * padded * (IN_PAD * 512 + 512 * 256 + 256 * LAT_PAD
                                 + LAT_PAD * 256 + 256 * 512 + 512 * IN_PAD
                                 + 2 * LAT_PAD * LAT_PAD)
    transcendentals = padded * (4 * LAT_PAD + IN_PAD)
    bytes_accessed = (sum(int(p.size) * p.dtype.itemsize for p in params.values())
                      + int(x2.size) * 2 + int(u.size) * 4
                      + padded * (IN_PAD + LAT_PAD) * 4)

    # approx reciprocal only when actually running on TPU hardware (keeps the
    # CPU-interpret correctness path free of TPU-only lowering rules).
    approx_recip = jax.default_backend() == "tpu"

    recon, soft_q = pl.pallas_call(
        functools.partial(_vae_gumbel_kernel, temp=float(temp), eps=1e-20,
                          den_eps=1e-30, approx_recip=approx_recip),
        out_shape=out_shape,
        grid=grid,
        in_specs=in_specs,
        out_specs=out_specs,
        compiler_params=pltpu.CompilerParams(
            dimension_semantics=("parallel",),
            vmem_limit_bytes=64 * 1024 * 1024,
        ),
        cost_estimate=pl.CostEstimate(
            flops=int(matmul_flops),
            transcendentals=int(transcendentals),
            bytes_accessed=int(bytes_accessed),
        ),
    )(*operands)

    # Strip batch padding and the lane padding (896 -> 784, 384 -> 300).
    recon = recon[:batch, :IN_FEATURES]
    soft_q = soft_q[:batch, :LATENT_FLAT]
    return recon, soft_q


if __name__ == "__main__":
    key = jax.random.PRNGKey(0)
    k_params, k_x, k_noise = jax.random.split(key, 3)

    params = init_params(k_params)

    B = 4
    # MNIST-like NCHW input; forward flattens it to [B, 784]
    x = jax.random.uniform(k_x, (B, 1, 28, 28), jnp.float32)

    fwd = jax.jit(functools.partial(vae_gumbel_forward, temp=1.0))
    recon, soft_q = fwd(params, x, k_noise)
    jax.block_until_ready((recon, soft_q))

    assert recon.shape == (B, IN_FEATURES)
    assert soft_q.shape == (B, LATENT_FLAT)
    # sanity: softmax over each group of 10 categories sums to ~1
    # (tolerance loosened vs f32 reference because the group-sum denominators
    #  are accumulated from bf16-rounded exp values on the MXU, ~2^-9 relative)
    group_sums = soft_q.reshape(B, latent_dim, categorical_dim).sum(-1)
    assert bool(jnp.allclose(group_sums, 1.0, atol=5e-3))
    # sanity: decoder output is in [0, 1] due to sigmoid; softmax is a valid dist
    assert bool(jnp.all((recon >= 0.0) & (recon <= 1.0)))
    assert bool(jnp.all((soft_q >= 0.0) & (soft_q <= 1.0)))

    print("KERNEL_OK")
</pallas_src>

<mosaic_0001>
module attributes {stable_mosaic.version = 11 : i64} {
  func.func @_vae_gumbel_kernel(%arg0: i32, %arg1: memref<8x896xbf16, #tpu.memory_space<vmem>>, %arg2: memref<8x384xf32, #tpu.memory_space<vmem>>, %arg3: memref<384x384xbf16, #tpu.memory_space<vmem>>, %arg4: memref<896x512xbf16, #tpu.memory_space<vmem>>, %arg5: memref<1x512xf32, #tpu.memory_space<vmem>>, %arg6: memref<512x256xbf16, #tpu.memory_space<vmem>>, %arg7: memref<1x256xf32, #tpu.memory_space<vmem>>, %arg8: memref<256x384xbf16, #tpu.memory_space<vmem>>, %arg9: memref<1x384xf32, #tpu.memory_space<vmem>>, %arg10: memref<384x256xbf16, #tpu.memory_space<vmem>>, %arg11: memref<1x256xf32, #tpu.memory_space<vmem>>, %arg12: memref<256x512xbf16, #tpu.memory_space<vmem>>, %arg13: memref<1x512xf32, #tpu.memory_space<vmem>>, %arg14: memref<512x896xbf16, #tpu.memory_space<vmem>>, %arg15: memref<1x896xf32, #tpu.memory_space<vmem>>, %arg16: memref<8x896xf32, #tpu.memory_space<vmem>>, %arg17: memref<8x384xf32, #tpu.memory_space<vmem>>) attributes {dimension_semantics = [#tpu.dimension_semantics<parallel>], iteration_bounds = array<i64: 1>, scalar_prefetch = 0 : i64, scratch_operands = 0 : i64, tpu.core_type = #tpu.core_type<tc>, window_params = [{transform_indices = @transform_0, window_bounds = array<i64: 8, 896>}, {transform_indices = @transform_1, window_bounds = array<i64: 8, 384>}, {pipeline_mode = #tpu.pipeline_mode<synchronous>, transform_indices = @transform_2, window_bounds = array<i64: 384, 384>}, {pipeline_mode = #tpu.pipeline_mode<synchronous>, transform_indices = @transform_3, window_bounds = array<i64: 896, 512>}, {pipeline_mode = #tpu.pipeline_mode<synchronous>, transform_indices = @transform_4, window_bounds = array<i64: 1, 512>}, {pipeline_mode = #tpu.pipeline_mode<synchronous>, transform_indices = @transform_5, window_bounds = array<i64: 512, 256>}, {pipeline_mode = #tpu.pipeline_mode<synchronous>, transform_indices = @transform_6, window_bounds = array<i64: 1, 256>}, {pipeline_mode = #tpu.pipeline_mode<synchronous>, transform_indices = @transform_7, window_bounds = array<i64: 256, 384>}, {pipeline_mode = #tpu.pipeline_mode<synchronous>, transform_indices = @transform_8, window_bounds = array<i64: 1, 384>}, {pipeline_mode = #tpu.pipeline_mode<synchronous>, transform_indices = @transform_9, window_bounds = array<i64: 384, 256>}, {pipeline_mode = #tpu.pipeline_mode<synchronous>, transform_indices = @transform_10, window_bounds = array<i64: 1, 256>}, {pipeline_mode = #tpu.pipeline_mode<synchronous>, transform_indices = @transform_11, window_bounds = array<i64: 256, 512>}, {pipeline_mode = #tpu.pipeline_mode<synchronous>, transform_indices = @transform_12, window_bounds = array<i64: 1, 512>}, {pipeline_mode = #tpu.pipeline_mode<synchronous>, transform_indices = @transform_13, window_bounds = array<i64: 512, 896>}, {pipeline_mode = #tpu.pipeline_mode<synchronous>, transform_indices = @transform_14, window_bounds = array<i64: 1, 896>}, {transform_indices = @transform_15, window_bounds = array<i64: 8, 896>}, {transform_indices = @transform_16, window_bounds = array<i64: 8, 384>}]} {
    %c0 = arith.constant 0 : index
    %c0_0 = arith.constant 0 : index
    %0 = vector.load %arg1[%c0, %c0_0] : memref<8x896xbf16, #tpu.memory_space<vmem>>, vector<8x896xbf16>
    %c0_1 = arith.constant 0 : index
    %c0_2 = arith.constant 0 : index
    %1 = vector.load %arg4[%c0_1, %c0_2] : memref<896x512xbf16, #tpu.memory_space<vmem>>, vector<896x512xbf16>
    %cst = arith.constant dense<0.000000e+00> : vector<8x512xf32>
    %2 = tpu.matmul %0, %1, %cst {dimension_numbers = #tpu.dot_dimension_numbers<[1], [0], [0], [1], [0, 0, 1, 1], [], []>} : vector<8x896xbf16>, vector<896x512xbf16>, vector<8x512xf32> -> vector<8x512xf32>
    %c0_3 = arith.constant 0 : index
    %c0_4 = arith.constant 0 : index
    %3 = vector.load %arg5[%c0_3, %c0_4] : memref<1x512xf32, #tpu.memory_space<vmem>>, vector<1x512xf32>
    %4 = vector.broadcast %3 : vector<1x512xf32> to vector<8x512xf32>
    %5 = arith.addf %2, %4 : vector<8x512xf32>
    %cst_5 = arith.constant 0.000000e+00 : f32
    %6 = vector.broadcast %cst_5 : f32 to vector<8x512xf32>
    %7 = arith.maximumf %5, %6 : vector<8x512xf32>
    %8 = arith.truncf %7 : vector<8x512xf32> to vector<8x512xbf16>
    %c0_6 = arith.constant 0 : index
    %c0_7 = arith.constant 0 : index
    %9 = vector.load %arg6[%c0_6, %c0_7] : memref<512x256xbf16, #tpu.memory_space<vmem>>, vector<512x256xbf16>
    %cst_8 = arith.constant dense<0.000000e+00> : vector<8x256xf32>
    %10 = tpu.matmul %8, %9, %cst_8 {dimension_numbers = #tpu.dot_dimension_numbers<[1], [0], [0], [1], [0, 0, 1, 1], [], []>} : vector<8x512xbf16>, vector<512x256xbf16>, vector<8x256xf32> -> vector<8x256xf32>
    %c0_9 = arith.constant 0 : index
    %c0_10 = arith.constant 0 : index
    %11 = vector.load %arg7[%c0_9, %c0_10] : memref<1x256xf32, #tpu.memory_space<vmem>>, vector<1x256xf32>
    %12 = vector.broadcast %11 : vector<1x256xf32> to vector<8x256xf32>
    %13 = arith.addf %10, %12 : vector<8x256xf32>
    %cst_11 = arith.constant 0.000000e+00 : f32
    %14 = vector.broadcast %cst_11 : f32 to vector<8x256xf32>
    %15 = arith.maximumf %13, %14 : vector<8x256xf32>
    %16 = arith.truncf %15 : vector<8x256xf32> to vector<8x256xbf16>
    %c0_12 = arith.constant 0 : index
    %c0_13 = arith.constant 0 : index
    %17 = vector.load %arg8[%c0_12, %c0_13] : memref<256x384xbf16, #tpu.memory_space<vmem>>, vector<256x384xbf16>
    %cst_14 = arith.constant dense<0.000000e+00> : vector<8x384xf32>
    %18 = tpu.matmul %16, %17, %cst_14 {dimension_numbers = #tpu.dot_dimension_numbers<[1], [0], [0], [1], [0, 0, 1, 1], [], []>} : vector<8x256xbf16>, vector<256x384xbf16>, vector<8x384xf32> -> vector<8x384xf32>
    %c0_15 = arith.constant 0 : index
    %c0_16 = arith.constant 0 : index
    %19 = vector.load %arg9[%c0_15, %c0_16] : memref<1x384xf32, #tpu.memory_space<vmem>>, vector<1x384xf32>
    %20 = vector.broadcast %19 : vector<1x384xf32> to vector<8x384xf32>
    %21 = arith.addf %18, %20 : vector<8x384xf32>
    %cst_17 = arith.constant 0.000000e+00 : f32
    %22 = vector.broadcast %cst_17 : f32 to vector<8x384xf32>
    %23 = arith.maximumf %21, %22 : vector<8x384xf32>
    %c0_18 = arith.constant 0 : index
    %c0_19 = arith.constant 0 : index
    %24 = vector.load %arg2[%c0_18, %c0_19] : memref<8x384xf32, #tpu.memory_space<vmem>>, vector<8x384xf32>
    %cst_20 = arith.constant 9.99999968E-21 : f32
    %25 = vector.broadcast %cst_20 : f32 to vector<8x384xf32>
    %26 = arith.addf %24, %25 : vector<8x384xf32>
    %27 = math.log %26 : vector<8x384xf32>
    %cst_21 = arith.constant 0.000000e+00 : f32
    %28 = vector.broadcast %cst_21 : f32 to vector<8x384xf32>
    %29 = arith.subf %28, %27 : vector<8x384xf32>
    %cst_22 = arith.constant 9.99999968E-21 : f32
    %30 = vector.broadcast %cst_22 : f32 to vector<8x384xf32>
    %31 = arith.addf %29, %30 : vector<8x384xf32>
    %32 = math.log %31 : vector<8x384xf32>
    %cst_23 = arith.constant 0.000000e+00 : f32
    %33 = vector.broadcast %cst_23 : f32 to vector<8x384xf32>
    %34 = arith.subf %33, %32 : vector<8x384xf32>
    %c0_24 = arith.constant 0 : index
    %c0_25 = arith.constant 0 : index
    %35 = vector.load %arg3[%c0_24, %c0_25] : memref<384x384xbf16, #tpu.memory_space<vmem>>, vector<384x384xbf16>
    %36 = arith.addf %23, %34 : vector<8x384xf32>
    %cst_26 = arith.constant 1.000000e+00 : f32
    %37 = vector.broadcast %cst_26 : f32 to vector<8x384xf32>
    %38 = arith.mulf %36, %37 : vector<8x384xf32>
    %cst_27 = arith.constant dense<0xFF800000> : vector<8xf32>
    %39 = vector.multi_reduction <maximumf>, %38, %cst_27 [1] : vector<8x384xf32> to vector<8xf32>
    %40 = vector.shape_cast %39 : vector<8xf32> to vector<8x1xf32>
    %41 = vector.broadcast %40 : vector<8x1xf32> to vector<8x384xf32>
    %42 = arith.subf %38, %41 : vector<8x384xf32>
    %43 = math.exp %42 : vector<8x384xf32>
    %44 = arith.truncf %43 : vector<8x384xf32> to vector<8x384xbf16>
    %cst_28 = arith.constant dense<0.000000e+00> : vector<8x384xf32>
    %45 = tpu.matmul %44, %35, %cst_28 {dimension_numbers = #tpu.dot_dimension_numbers<[1], [0], [0], [1], [0, 0, 1, 1], [], []>} : vector<8x384xbf16>, vector<384x384xbf16>, vector<8x384xf32> -> vector<8x384xf32>
    %cst_29 = arith.constant 1.000000e-30 : f32
    %46 = vector.broadcast %cst_29 : f32 to vector<8x384xf32>
    %47 = arith.addf %45, %46 : vector<8x384xf32>
    %48 = arith.divf %43, %47 : vector<8x384xf32>
    %cst_30 = arith.constant dense<0xFF800000> : vector<8xf32>
    %49 = vector.multi_reduction <maximumf>, %23, %cst_30 [1] : vector<8x384xf32> to vector<8xf32>
    %50 = vector.shape_cast %49 : vector<8xf32> to vector<8x1xf32>
    %51 = vector.broadcast %50 : vector<8x1xf32> to vector<8x384xf32>
    %52 = arith.subf %23, %51 : vector<8x384xf32>
    %53 = math.exp %52 : vector<8x384xf32>
    %54 = arith.truncf %53 : vector<8x384xf32> to vector<8x384xbf16>
    %cst_31 = arith.constant dense<0.000000e+00> : vector<8x384xf32>
    %55 = tpu.matmul %54, %35, %cst_31 {dimension_numbers = #tpu.dot_dimension_numbers<[1], [0], [0], [1], [0, 0, 1, 1], [], []>} : vector<8x384xbf16>, vector<384x384xbf16>, vector<8x384xf32> -> vector<8x384xf32>
    %cst_32 = arith.constant 1.000000e-30 : f32
    %56 = vector.broadcast %cst_32 : f32 to vector<8x384xf32>
    %57 = arith.addf %55, %56 : vector<8x384xf32>
    %58 = arith.divf %53, %57 : vector<8x384xf32>
    %c0_33 = arith.constant 0 : index
    %c0_34 = arith.constant 0 : index
    %59 = vector.load %arg17[%c0_33, %c0_34] : memref<8x384xf32, #tpu.memory_space<vmem>>, vector<8x384xf32>
    tpu.vector_store %arg17[%c0_33, %c0_34], %58 {strides = array<i32>} : memref<8x384xf32, #tpu.memory_space<vmem>>, vector<8x384xf32>,
    %60 = arith.truncf %48 : vector<8x384xf32> to vector<8x384xbf16>
    %c0_35 = arith.constant 0 : index
    %c0_36 = arith.constant 0 : index
    %61 = vector.load %arg10[%c0_35, %c0_36] : memref<384x256xbf16, #tpu.memory_space<vmem>>, vector<384x256xbf16>
    %cst_37 = arith.constant dense<0.000000e+00> : vector<8x256xf32>
    %62 = tpu.matmul %60, %61, %cst_37 {dimension_numbers = #tpu.dot_dimension_numbers<[1], [0], [0], [1], [0, 0, 1, 1], [], []>} : vector<8x384xbf16>, vector<384x256xbf16>, vector<8x256xf32> -> vector<8x256xf32>
    %c0_38 = arith.constant 0 : index
    %c0_39 = arith.constant 0 : index
    %63 = vector.load %arg11[%c0_38, %c0_39] : memref<1x256xf32, #tpu.memory_space<vmem>>, vector<1x256xf32>
    %64 = vector.broadcast %63 : vector<1x256xf32> to vector<8x256xf32>
    %65 = arith.addf %62, %64 : vector<8x256xf32>
    %cst_40 = arith.constant 0.000000e+00 : f32
    %66 = vector.broadcast %cst_40 : f32 to vector<8x256xf32>
    %67 = arith.maximumf %65, %66 : vector<8x256xf32>
    %68 = arith.truncf %67 : vector<8x256xf32> to vector<8x256xbf16>
    %c0_41 = arith.constant 0 : index
    %c0_42 = arith.constant 0 : index
    %69 = vector.load %arg12[%c0_41, %c0_42] : memref<256x512xbf16, #tpu.memory_space<vmem>>, vector<256x512xbf16>
    %cst_43 = arith.constant dense<0.000000e+00> : vector<8x512xf32>
    %70 = tpu.matmul %68, %69, %cst_43 {dimension_numbers = #tpu.dot_dimension_numbers<[1], [0], [0], [1], [0, 0, 1, 1], [], []>} : vector<8x256xbf16>, vector<256x512xbf16>, vector<8x512xf32> -> vector<8x512xf32>
    %c0_44 = arith.constant 0 : index
    %c0_45 = arith.constant 0 : index
    %71 = vector.load %arg13[%c0_44, %c0_45] : memref<1x512xf32, #tpu.memory_space<vmem>>, vector<1x512xf32>
    %72 = vector.broadcast %71 : vector<1x512xf32> to vector<8x512xf32>
    %73 = arith.addf %70, %72 : vector<8x512xf32>
    %cst_46 = arith.constant 0.000000e+00 : f32
    %74 = vector.broadcast %cst_46 : f32 to vector<8x512xf32>
    %75 = arith.maximumf %73, %74 : vector<8x512xf32>
    %76 = arith.truncf %75 : vector<8x512xf32> to vector<8x512xbf16>
    %c0_47 = arith.constant 0 : index
    %c0_48 = arith.constant 0 : index
    %77 = vector.load %arg14[%c0_47, %c0_48] : memref<512x896xbf16, #tpu.memory_space<vmem>>, vector<512x896xbf16>
    %cst_49 = arith.constant dense<0.000000e+00> : vector<8x896xf32>
    %78 = tpu.matmul %76, %77, %cst_49 {dimension_numbers = #tpu.dot_dimension_numbers<[1], [0], [0], [1], [0, 0, 1, 1], [], []>} : vector<8x512xbf16>, vector<512x896xbf16>, vector<8x896xf32> -> vector<8x896xf32>
    %c0_50 = arith.constant 0 : index
    %c0_51 = arith.constant 0 : index
    %79 = vector.load %arg15[%c0_50, %c0_51] : memref<1x896xf32, #tpu.memory_space<vmem>>, vector<1x896xf32>
    %80 = vector.broadcast %79 : vector<1x896xf32> to vector<8x896xf32>
    %81 = arith.addf %78, %80 : vector<8x896xf32>
    %82 = arith.negf %81 : vector<8x896xf32>
    %83 = math.exp %82 : vector<8x896xf32>
    %cst_52 = arith.constant 1.000000e+00 : f32
    %84 = vector.broadcast %cst_52 : f32 to vector<8x896xf32>
    %85 = arith.addf %84, %83 : vector<8x896xf32>
    %86 = arith.divf %84, %85 : vector<8x896xf32>
    %c0_53 = arith.constant 0 : index
    %c0_54 = arith.constant 0 : index
    %87 = vector.load %arg16[%c0_53, %c0_54] : memref<8x896xf32, #tpu.memory_space<vmem>>, vector<8x896xf32>
    tpu.vector_store %arg16[%c0_53, %c0_54], %86 {strides = array<i32>} : memref<8x896xf32, #tpu.memory_space<vmem>>, vector<8x896xf32>,
    return
  }
  func.func @transform_0(%arg0: i32) -> (i32, i32) {
    %c0_i32 = arith.constant 0 : i32
    %c0_i32_0 = arith.constant 0 : i32
    return %arg0, %c0_i32 : i32, i32
  }
  func.func @transform_1(%arg0: i32) -> (i32, i32) {
    %c0_i32 = arith.constant 0 : i32
    %c0_i32_0 = arith.constant 0 : i32
    return %arg0, %c0_i32 : i32, i32
  }
  func.func @transform_2(%arg0: i32) -> (i32, i32) {
    %c0_i32 = arith.constant 0 : i32
    %c0_i32_0 = arith.constant 0 : i32
    %c0_i32_1 = arith.constant 0 : i32
    return %c0_i32, %c0_i32_0 : i32, i32
  }
  func.func @transform_3(%arg0: i32) -> (i32, i32) {
    %c0_i32 = arith.constant 0 : i32
    %c0_i32_0 = arith.constant 0 : i32
    %c0_i32_1 = arith.constant 0 : i32
    return %c0_i32, %c0_i32_0 : i32, i32
  }
  func.func @transform_4(%arg0: i32) -> (i32, i32) {
    %c0_i32 = arith.constant 0 : i32
    %c0_i32_0 = arith.constant 0 : i32
    %c0_i32_1 = arith.constant 0 : i32
    return %c0_i32, %c0_i32_0 : i32, i32
  }
  func.func @transform_5(%arg0: i32) -> (i32, i32) {
    %c0_i32 = arith.constant 0 : i32
    %c0_i32_0 = arith.constant 0 : i32
    %c0_i32_1 = arith.constant 0 : i32
    return %c0_i32, %c0_i32_0 : i32, i32
  }
  func.func @transform_6(%arg0: i32) -> (i32, i32) {
    %c0_i32 = arith.constant 0 : i32
    %c0_i32_0 = arith.constant 0 : i32
    %c0_i32_1 = arith.constant 0 : i32
    return %c0_i32, %c0_i32_0 : i32, i32
  }
  func.func @transform_7(%arg0: i32) -> (i32, i32) {
    %c0_i32 = arith.constant 0 : i32
    %c0_i32_0 = arith.constant 0 : i32
    %c0_i32_1 = arith.constant 0 : i32
    return %c0_i32, %c0_i32_0 : i32, i32
  }
  func.func @transform_8(%arg0: i32) -> (i32, i32) {
    %c0_i32 = arith.constant 0 : i32
    %c0_i32_0 = arith.constant 0 : i32
    %c0_i32_1 = arith.constant 0 : i32
    return %c0_i32, %c0_i32_0 : i32, i32
  }
  func.func @transform_9(%arg0: i32) -> (i32, i32) {
    %c0_i32 = arith.constant 0 : i32
    %c0_i32_0 = arith.constant 0 : i32
    %c0_i32_1 = arith.constant 0 : i32
    return %c0_i32, %c0_i32_0 : i32, i32
  }
  func.func @transform_10(%arg0: i32) -> (i32, i32) {
    %c0_i32 = arith.constant 0 : i32
    %c0_i32_0 = arith.constant 0 : i32
    %c0_i32_1 = arith.constant 0 : i32
    return %c0_i32, %c0_i32_0 : i32, i32
  }
  func.func @transform_11(%arg0: i32) -> (i32, i32) {
    %c0_i32 = arith.constant 0 : i32
    %c0_i32_0 = arith.constant 0 : i32
    %c0_i32_1 = arith.constant 0 : i32
    return %c0_i32, %c0_i32_0 : i32, i32
  }
  func.func @transform_12(%arg0: i32) -> (i32, i32) {
    %c0_i32 = arith.constant 0 : i32
    %c0_i32_0 = arith.constant 0 : i32
    %c0_i32_1 = arith.constant 0 : i32
    return %c0_i32, %c0_i32_0 : i32, i32
  }
  func.func @transform_13(%arg0: i32) -> (i32, i32) {
    %c0_i32 = arith.constant 0 : i32
    %c0_i32_0 = arith.constant 0 : i32
    %c0_i32_1 = arith.constant 0 : i32
    return %c0_i32, %c0_i32_0 : i32, i32
  }
  func.func @transform_14(%arg0: i32) -> (i32, i32) {
    %c0_i32 = arith.constant 0 : i32
    %c0_i32_0 = arith.constant 0 : i32
    %c0_i32_1 = arith.constant 0 : i32
    return %c0_i32, %c0_i32_0 : i32, i32
  }
  func.func @transform_15(%arg0: i32) -> (i32, i32) {
    %c0_i32 = arith.constant 0 : i32
    %c0_i32_0 = arith.constant 0 : i32
    return %arg0, %c0_i32 : i32, i32
  }
  func.func @transform_16(%arg0: i32) -> (i32, i32) {
    %c0_i32 = arith.constant 0 : i32
    %c0_i32_0 = arith.constant 0 : i32
    return %arg0, %c0_i32 : i32, i32
  }
}

</mosaic_0001>

<bundles_post_ra>
// kernel: vae_gumbel_forward.1
= control target key start
LH: loop header
LB: loop body
LE: loop exit
PB: predicated region body
PF: predicated region fallthrough
CT: control target
= control target key end

     0   :  { %s11250_s0 = inlined_call_operand.vmem [shape: bf16[8,896], index: 0, kind: input, shape index: {}]   ;;  %s11251_s1 = inlined_call_operand.vmem [shape: f32[8,384], index: 1, kind: input, shape index: {}]   ;;  %s11252_s2 = inlined_call_operand.hbm [shape: bf16[384,384], index: 2, kind: input, shape index: {}]   ;;  %s11253_s3 = inlined_call_operand.hbm [shape: bf16[896,512], index: 3, kind: input, shape index: {}]   ;;  %s11254_s4 = inlined_call_operand.vmem [shape: f32[1,512], index: 4, kind: input, shape index: {}]   ;;  %s11255_s5 = inlined_call_operand.hbm [shape: bf16[512,256], index: 5, kind: input, shape index: {}]   ;;  %s11256_s6 = inlined_call_operand.vmem [shape: f32[1,256], index: 6, kind: input, shape index: {}]   ;;  %s11257_s7 = inlined_call_operand.hbm [shape: bf16[256,384], index: 7, kind: input, shape index: {}]   ;;  %s11258_s8 = inlined_call_operand.vmem [shape: f32[1,384], index: 8, kind: input, shape index: {}]   ;;  %s11259_s9 = inlined_call_operand.hbm [shape: bf16[384,256], index: 9, kind: input, shape index: {}]   ;;  %s11260_s10 = inlined_call_operand.vmem [shape: f32[1,256], index: 10, kind: input, shape index: {}]   ;;  %s11261_s11 = inlined_call_operand.hbm [shape: bf16[256,512], index: 11, kind: input, shape index: {}]   ;;  %s11262_s12 = inlined_call_operand.vmem [shape: f32[1,512], index: 12, kind: input, shape index: {}]   ;;  %s11263_s13 = inlined_call_operand.hbm [shape: bf16[512,896], index: 13, kind: input, shape index: {}]   ;;  %s11264_s14 = inlined_call_operand.vmem [shape: f32[1,896], index: 14, kind: input, shape index: {}]   ;;  %s11265_s15 = inlined_call_operand.vmem [shape: f32[8,896], index: 15, kind: output, shape index: {0}]   ;;  %s11266_s16 = inlined_call_operand.vmem [shape: f32[8,384], index: 16, kind: output, shape index: {1}]  }
   0x1   :  { %11288 = sst [smem:[#allocation36_spill]] %s11250_s0 }
   0x2   :  { %11289 = sst [smem:[#allocation37_spill]] %s11265_s15 }
   0x3   :  { %22 = vsyncpa [#allocation3], 0 }
   0x4   :  { %23 = vsyncpa [#allocation5], 0 }
   0x5   :  { %24 = vsyncpa [#allocation8], 0  ;;  %s47_s23 = sshll.u32 %s11253_s3, 4  ;;  %s48_s23 = int_to_ptr.hbm [resolvable:$true] %s47_s23 }
   0x6   :  { %25 = vsyncpa [#allocation11], 0  ;;  %s10499_s24 = smov [#allocation4]   ;;  %s10500_s26 = smov 256  }
   0x7   :  { %s49_s25 = sshll.u32 %s10499_s24, 4  ;;  %s10501_s27 = smov 16   ;;  %s50_s25 = int_to_ptr.vmem [resolvable:$true] %s49_s25 }
   0x8   :  { %55 = dma.hbm_to_vmem [thread:$0]  %s48_s23, 28672, %s50_s25, [#allocation5], %s10500_s26, %s10500_s26, %s10501_s27  }
   0x9   :  { %s77_s30 = sshll.u32 %s11257_s7, 4  ;;  %s10502_s0 = smov [#allocation7]   ;;  %s78_s30 = int_to_ptr.hbm [resolvable:$true] %s77_s30 }
   0xa   :  { %s79_s17 = sshll.u32 %s10502_s0, 4  ;;  %s107_s20 = sshll.u32 %s11261_s11, 4  ;;  %s80_s17 = int_to_ptr.vmem [resolvable:$true] %s79_s17  ;;  %s108_s20 = int_to_ptr.hbm [resolvable:$true] %s107_s20 }
   0xb   :  { %s10503_s3 = smov 192   ;;  %s10504_s21 = smov 12  }
   0xc   :  { %85 = dma.hbm_to_vmem [thread:$0]  %s78_s30, 6144, %s80_s17, [#allocation8], %s10503_s3, %s10503_s3, %s10504_s21  }
   0xd   :  { %s34_s23 = sshll.u32 %s11252_s2, 4  ;;  %s10505_s25 = smov [#allocation10]   ;;  %s35_s23 = int_to_ptr.hbm [resolvable:$true] %s34_s23 }
   0xe   :  { %s109_s15 = sshll.u32 %s10505_s25, 4  ;;  %s10506_s7 = smov [#allocation2]   ;;  %s110_s15 = int_to_ptr.vmem [resolvable:$true] %s109_s15 }
   0xf   :  { %115 = dma.hbm_to_vmem [thread:$0]  %s108_s20, 8192, %s110_s15, [#allocation11], %s10500_s26, %s10500_s26, %s10501_s27  }
  0x10   :  { %s36_s28 = sshll.u32 %s10506_s7, 4  ;;  %s62_s11 = sshll.u32 %s11255_s5, 4  ;;  %s37_s28 = int_to_ptr.vmem [resolvable:$true] %s36_s28  ;;  %s63_s11 = int_to_ptr.hbm [resolvable:$true] %s62_s11 }
  0x11   :  { %42 = dma.hbm_to_vmem [thread:$0]  %s35_s23, 9216, %s37_s28, [#allocation3], %s10503_s3, %s10503_s3, %s10504_s21  }
  0x12   :  { %s10507_s18 = smov [#allocation6]   ;;  %s92_s2 = sshll.u32 %s11259_s9, 4  ;;  %s93_s2 = int_to_ptr.hbm [resolvable:$true] %s92_s2 }
  0x13   :  { %s64_s30 = sshll.u32 %s10507_s18, 4  ;;  %s10508_s22 = smov 128   ;;  %s65_s30 = int_to_ptr.vmem [resolvable:$true] %s64_s30 }
  0x14   :  { %s10509_s24 = smov 8   ;;  %s10510_s15 = smov [#allocation9]  }
  0x15   :  { %70 = dma.hbm_to_vmem [thread:$0]  %s63_s11, 8192, %s65_s30, [#allocation5], %s10508_s22, %s10508_s22, %s10509_s24  }
  0x16   :  { %s94_s26 = sshll.u32 %s10510_s15, 4  ;;  %s122_s5 = sshll.u32 %s11263_s13, 4  ;;  %s95_s26 = int_to_ptr.vmem [resolvable:$true] %s94_s26  ;;  %s123_s5 = int_to_ptr.hbm [resolvable:$true] %s122_s5 }
  0x17   :  { %100 = dma.hbm_to_vmem [thread:$0]  %s93_s2, 6144, %s95_s26, [#allocation8], %s10508_s22, %s10508_s22, %s10509_s24  }
  0x18   :  { %s10511_s3 = smov [#allocation12]   ;;  %s10512_s23 = smov 448  }
  0x19   :  { %s124_s21 = sshll.u32 %s10511_s3, 4  ;;  %s10513_s25 = smov 28   ;;  %s125_s21 = int_to_ptr.vmem [resolvable:$true] %s124_s21 }
  0x1a   :  { %130 = dma.hbm_to_vmem [thread:$0]  %s123_s5, 28672, %s125_s21, [#allocation11], %s10512_s23, %s10512_s23, %s10513_s25  }
  0x1b   :  { %10491 = dma.done.wait [#allocation3], 9216  }
  0x1c   :  { %10492 = vsyncadd [#allocation3], 4294958080 }
  0x1d   :  { %10493 = dma.done.wait [#allocation5], 36864  }
  0x1e   :  { %10494 = vsyncadd [#allocation5], 4294930432 }
  0x1f   :  { %10495 = dma.done.wait [#allocation8], 12288  }
  0x20   :  { %10496 = vsyncadd [#allocation8], 4294955008 }
  0x21   :  { %10497 = dma.done.wait [#allocation11], 36864  }
  0x22   :  { %10498 = vsyncadd [#allocation11], 4294930432  ;;  %v6631_v0 = vld [vmem:[#allocation4 + $0xe0] sm:$0xf]  ;;  %v9530_v1 = vld [vmem:[#allocation4 + $0xec] sm:$0xf0] }
  0x23   :  { %v6759_v2 = vld [vmem:[#allocation4 + $0x1e0] sm:$0xf]  ;;  %v6632_v3 = vor.u32 %v9530_v1, %v6631_v0  ;;  %v9562_v4 = vld [vmem:[#allocation4 + $0x1ec] sm:$0xf0]  ;;  %s11290_s7 = sld [smem:[#allocation36_spill]] }
  0x24   :  { %v6887_v5 = vld [vmem:[#allocation4 + $0x2e0] sm:$0xf]  ;;  %v9594_v6 = vld [vmem:[#allocation4 + $0x2ec] sm:$0xf0]  ;;  %v6760_v7 = vor.u32 %v9562_v4, %v6759_v2  ;;  %s11329_s29 = sld [smem:[#allocation37_spill]] }
  0x25   :  { %v6888_v8 = vor.u32 %v9594_v6, %v6887_v5  ;;  %v7015_v9 = vld [vmem:[#allocation4 + $0x3e0] sm:$0xf]  ;;  %v9626_v10 = vld [vmem:[#allocation4 + $0x3ec] sm:$0xf0]  ;;  %1544 = vmatpush.bf16.msra.mxu0 %v6632_v3 }
  0x26   :  { %v6615_v11 = vld [vmem:[#allocation4 + $0xc0] sm:$0xf]  ;;  %v7016_v12 = vor.u32 %v9626_v10, %v7015_v9  ;;  %v9526_v13 = vld [vmem:[#allocation4 + $0xcc] sm:$0xf0]  ;;  %1557 = vmatpush.bf16.msra.mxu1 %v6760_v7 }
  0x27   :  { %v6743_v14 = vld [vmem:[#allocation4 + $0x1c0] sm:$0xf]  ;;  %v9558_v15 = vld [vmem:[#allocation4 + $0x1cc] sm:$0xf0]  ;;  %1570 = vmatpush.bf16.msra.mxu2 %v6888_v8  ;;  %v6616_v16 = vor.u32 %v9526_v13, %v6615_v11 }
  0x28   :  { %v6744_v17 = vor.u32 %v9558_v15, %v6743_v14  ;;  %v6871_v18 = vld [vmem:[#allocation4 + $0x2c0] sm:$0xf]  ;;  %v9590_v19 = vld [vmem:[#allocation4 + $0x2cc] sm:$0xf0]  ;;  %1583 = vmatpush.bf16.msra.mxu3 %v7016_v12 }
  0x29   :  { %v6999_v20 = vld [vmem:[#allocation4 + $0x3c0] sm:$0xf]  ;;  %v6872_v21 = vor.u32 %v9590_v19, %v6871_v18  ;;  %v9622_v22 = vld [vmem:[#allocation4 + $0x3cc] sm:$0xf0]  ;;  %1545 = vmatpush.bf16.msra.mxu0 %v6616_v16 }
  0x2a   :  { %v6599_v23 = vld [vmem:[#allocation4 + $0xa0] sm:$0xf]  ;;  %v9522_v24 = vld [vmem:[#allocation4 + $0xac] sm:$0xf0]  ;;  %v7000_v25 = vor.u32 %v9622_v22, %v6999_v20  ;;  %1558 = vmatpush.bf16.msra.mxu1 %v6744_v17 }
  0x2b   :  { %v6727_v26 = vld [vmem:[#allocation4 + $0x1a0] sm:$0xf]  ;;  %v9554_v27 = vld [vmem:[#allocation4 + $0x1ac] sm:$0xf0]  ;;  %v6600_v29 = vor.u32 %v9522_v24, %v6599_v23  ;;  %1571 = vmatpush.bf16.msra.mxu2 %v6872_v21 }
  0x2c   :  { %v6855_v28 = vld [vmem:[#allocation4 + $0x2a0] sm:$0xf]  ;;  %v9586_v30 = vld [vmem:[#allocation4 + $0x2ac] sm:$0xf0]  ;;  %v6728_v33 = vor.u32 %v9554_v27, %v6727_v26  ;;  %1584 = vmatpush.bf16.msra.mxu3 %v7000_v25 }
  0x2d   :  { %v6983_v31 = vld [vmem:[#allocation4 + $0x3a0] sm:$0xf]  ;;  %v9618_v32 = vld [vmem:[#allocation4 + $0x3ac] sm:$0xf0]  ;;  %v6856_v34 = vor.u32 %v9586_v30, %v6855_v28  ;;  %1546 = vmatpush.bf16.msra.mxu0 %v6600_v29 }
  0x2e   :  { %v6583_v35 = vld [vmem:[#allocation4 + $0x80] sm:$0xf]  ;;  %v9518_v36 = vld [vmem:[#allocation4 + $0x8c] sm:$0xf0]  ;;  %v6984_v38 = vor.u32 %v9618_v32, %v6983_v31  ;;  %1559 = vmatpush.bf16.msra.mxu1 %v6728_v33 }
  0x2f   :  { %v6711_v37 = vld [vmem:[#allocation4 + $0x180] sm:$0xf]  ;;  %v9550_v39 = vld [vmem:[#allocation4 + $0x18c] sm:$0xf0]  ;;  %v6584_v44 = vor.u32 %v9518_v36, %v6583_v35  ;;  %1572 = vmatpush.bf16.msra.mxu2 %v6856_v34 }
  0x30   :  { %v6839_v40 = vld [vmem:[#allocation4 + $0x280] sm:$0xf]  ;;  %v9582_v41 = vld [vmem:[#allocation4 + $0x28c] sm:$0xf0]  ;;  %v6712_v45 = vor.u32 %v9550_v39, %v6711_v37  ;;  %1585 = vmatpush.bf16.msra.mxu3 %v6984_v38  ;;  %v9528_v37 = vld [vmem:[#allocation4 + $0xe4] sm:$0xf] }
  0x31   :  { %v6967_v42 = vld [vmem:[#allocation4 + $0x380] sm:$0xf]  ;;  %v9614_v43 = vld [vmem:[#allocation4 + $0x38c] sm:$0xf0]  ;;  %v6840_v46 = vor.u32 %v9582_v41, %v6839_v40  ;;  %1547 = vmatpush.bf16.msra.mxu0 %v6584_v44  ;;  %v6633_v38 = vld [vmem:[#allocation4 + $0xf0] sm:$0xf0] }
  0x32   :  { %v6567_v47 = vld [vmem:[#allocation4 + $0x60] sm:$0xf]  ;;  %v9514_v48 = vld [vmem:[#allocation4 + $0x6c] sm:$0xf0]  ;;  %v6968_v50 = vor.u32 %v9614_v43, %v6967_v42  ;;  %1560 = vmatpush.bf16.msra.mxu1 %v6712_v45 }
  0x33   :  { %v6695_v49 = vld [vmem:[#allocation4 + $0x160] sm:$0xf]  ;;  %v9546_v51 = vld [vmem:[#allocation4 + $0x16c] sm:$0xf0]  ;;  %v6568_v56 = vor.u32 %v9514_v48, %v6567_v47  ;;  %1573 = vmatpush.bf16.msra.mxu2 %v6840_v46  ;;  %v6636_v46 = vor.u32 %v9528_v37, %v6633_v38 }
  0x34   :  { %v6823_v52 = vld [vmem:[#allocation4 + $0x260] sm:$0xf]  ;;  %v9578_v53 = vld [vmem:[#allocation4 + $0x26c] sm:$0xf0]  ;;  %v6696_v57 = vor.u32 %v9546_v51, %v6695_v49  ;;  %1586 = vmatpush.bf16.msra.mxu3 %v6968_v50  ;;  %v9524_v50 = vld [vmem:[#allocation4 + $0xc4] sm:$0xf] }
  0x35   :  { %v6951_v54 = vld [vmem:[#allocation4 + $0x360] sm:$0xf]  ;;  %v9610_v55 = vld [vmem:[#allocation4 + $0x36c] sm:$0xf0]  ;;  %v6824_v58 = vor.u32 %v9578_v53, %v6823_v52  ;;  %1548 = vmatpush.bf16.msra.mxu0 %v6568_v56  ;;  %v6617_v51 = vld [vmem:[#allocation4 + $0xd0] sm:$0xf0] }
  0x36   :  { %v6551_v59 = vld [vmem:[#allocation4 + $0x40] sm:$0xf]  ;;  %v9510_v60 = vld [vmem:[#allocation4 + $0x4c] sm:$0xf0]  ;;  %v6952_v62 = vor.u32 %v9610_v55, %v6951_v54  ;;  %1561 = vmatpush.bf16.msra.mxu1 %v6696_v57 }
  0x37   :  { %v6679_v61 = vld [vmem:[#allocation4 + $0x140] sm:$0xf]  ;;  %v9542_v63 = vld [vmem:[#allocation4 + $0x14c] sm:$0xf0]  ;;  %v6552_v4 = vor.u32 %v9510_v60, %v6551_v59  ;;  %1574 = vmatpush.bf16.msra.mxu2 %v6824_v58  ;;  %v6620_v59 = vor.u32 %v9524_v50, %v6617_v51 }
  0x38   :  { %v6807_v0 = vld [vmem:[#allocation4 + $0x240] sm:$0xf]  ;;  %v9574_v1 = vld [vmem:[#allocation4 + $0x24c] sm:$0xf0]  ;;  %v6680_v5 = vor.u32 %v9542_v63, %v6679_v61  ;;  %1587 = vmatpush.bf16.msra.mxu3 %v6952_v62  ;;  %v9520_v62 = vld [vmem:[#allocation4 + $0xa4] sm:$0xf] }
  0x39   :  { %v6935_v2 = vld [vmem:[#allocation4 + $0x340] sm:$0xf]  ;;  %v9606_v3 = vld [vmem:[#allocation4 + $0x34c] sm:$0xf0]  ;;  %v6808_v6 = vor.u32 %v9574_v1, %v6807_v0  ;;  %1549 = vmatpush.bf16.msra.mxu0 %v6552_v4  ;;  %v6601_v63 = vld [vmem:[#allocation4 + $0xb0] sm:$0xf0] }
  0x3a   :  { %v6535_v7 = vld [vmem:[#allocation4 + $0x20] sm:$0xf]  ;;  %v9506_v8 = vld [vmem:[#allocation4 + $0x2c] sm:$0xf0]  ;;  %v6936_v10 = vor.u32 %v9606_v3, %v6935_v2  ;;  %1562 = vmatpush.bf16.msra.mxu1 %v6680_v5  ;;  %v162_v2 = vld [vmem:[%s11290_s7 + $0x8] sm:$0xff] }
  0x3b   :  { %v6663_v9 = vld [vmem:[#allocation4 + $0x120] sm:$0xf]  ;;  %v9538_v11 = vld [vmem:[#allocation4 + $0x12c] sm:$0xf0]  ;;  %v6536_v16 = vor.u32 %v9506_v8, %v6535_v7  ;;  %1575 = vmatpush.bf16.msra.mxu2 %v6808_v6  ;;  %v405_v8 = vunpack.c.l.b16 %v162_v2 }
  0x3c   :  { %v6791_v12 = vld [vmem:[#allocation4 + $0x220] sm:$0xf]  ;;  %v9570_v13 = vld [vmem:[#allocation4 + $0x22c] sm:$0xf0]  ;;  %v6664_v19 = vor.u32 %v9538_v11, %v6663_v9  ;;  %1588 = vmatpush.bf16.msra.mxu3 %v6936_v10  ;;  %v406_v10 = vunpack.c.h.b16 %v162_v2  ;;  %v6604_v11 = vor.u32 %v9520_v62, %v6601_v63 }
  0x3d   :  { %v6919_v14 = vld [vmem:[#allocation4 + $0x320] sm:$0xf]  ;;  %v9602_v15 = vld [vmem:[#allocation4 + $0x32c] sm:$0xf0]  ;;  %v6792_v20 = vor.u32 %v9570_v13, %v6791_v12  ;;  %1550 = vmatpush.bf16.msra.mxu0 %v6536_v16  ;;  %v9516_v16 = vld [vmem:[#allocation4 + $0x84] sm:$0xf] }
  0x3e   :  { %v6519_v17 = vld [vmem:[#allocation4] sm:$0xf]  ;;  %v9502_v18 = vld [vmem:[#allocation4 + $0xc] sm:$0xf0]  ;;  %v6920_v24 = vor.u32 %v9602_v15, %v6919_v14  ;;  %1563 = vmatpush.bf16.msra.mxu1 %v6664_v19 }
  0x3f   :  { %v6647_v21 = vld [vmem:[#allocation4 + $0x100] sm:$0xf]  ;;  %v9534_v22 = vld [vmem:[#allocation4 + $0x10c] sm:$0xf0]  ;;  %v6520_v31 = vor.u32 %v9502_v18, %v6519_v17  ;;  %1576 = vmatpush.bf16.msra.mxu2 %v6792_v20  ;;  %v6585_v17 = vld [vmem:[#allocation4 + $0x90] sm:$0xf0]  ;;  %v10626_v18 = vpack.c.b16 %v405_v8, %v405_v8  ;;  %v10630_v20 = vpack.c.b16 %v406_v10, %v406_v10 }
  0x40   :  { %v6775_v23 = vld [vmem:[#allocation4 + $0x200] sm:$0xf]  ;;  %v9566_v25 = vld [vmem:[#allocation4 + $0x20c] sm:$0xf0]  ;;  %v6648_v35 = vor.u32 %v9534_v22, %v6647_v21  ;;  %1589 = vmatpush.bf16.msra.mxu3 %v6920_v24  ;;  %v9560_v8 = vld [vmem:[#allocation4 + $0x1e4] sm:$0xf] }
  0x41   :  { %v6903_v26 = vld [vmem:[#allocation4 + $0x300] sm:$0xf]  ;;  %v9598_v27 = vld [vmem:[#allocation4 + $0x30c] sm:$0xf0]  ;;  %v6776_v36 = vor.u32 %v9566_v25, %v6775_v23  ;;  %1551 = vmatpush.bf16.msra.mxu0 %v6520_v31  ;;  %v9592_v10 = vld [vmem:[#allocation4 + $0x2e4] sm:$0xf] }
  0x42   :  { %v7143_v28 = vld [vmem:[#allocation4 + $0x4e0] sm:$0xf]  ;;  %v9658_v29 = vld [vmem:[#allocation4 + $0x4ec] sm:$0xf0]  ;;  %v6904_v39 = vor.u32 %v9598_v27, %v6903_v26  ;;  %1564 = vmatpush.bf16.msra.mxu1 %v6648_v35 }
  0x43   :  { %v7271_v30 = vld [vmem:[#allocation4 + $0x5e0] sm:$0xf]  ;;  %v9690_v32 = vld [vmem:[#allocation4 + $0x5ec] sm:$0xf0]  ;;  %v7144_v40 = vor.u32 %v9658_v29, %v7143_v28  ;;  %1577 = vmatpush.bf16.msra.mxu2 %v6776_v36  ;;  %v6588_v28 = vor.u32 %v9516_v16, %v6585_v17 }
  0x44   :  { %v7399_v33 = vld [vmem:[#allocation4 + $0x6e0] sm:$0xf]  ;;  %v9722_v34 = vld [vmem:[#allocation4 + $0x6ec] sm:$0xf0]  ;;  %v7272_v41 = vor.u32 %v9690_v32, %v7271_v30  ;;  %1590 = vmatpush.bf16.msra.mxu3 %v6904_v39  ;;  %v9512_v32 = vld [vmem:[#allocation4 + $0x64] sm:$0xf] }
  0x45   :  { %v7400_v42 = vor.u32 %v9722_v34, %v7399_v33  ;;  %v7127_v43 = vld [vmem:[#allocation4 + $0x4c0] sm:$0xf]  ;;  %v9654_v44 = vld [vmem:[#allocation4 + $0x4cc] sm:$0xf0]  ;;  %1596 = vmatpush.bf16.msrb.mxu0 %v7144_v40  ;;  %v6569_v33 = vld [vmem:[#allocation4 + $0x70] sm:$0xf0] }
  0x46   :  { %v7255_v45 = vld [vmem:[#allocation4 + $0x5c0] sm:$0xf]  ;;  %v9686_v47 = vld [vmem:[#allocation4 + $0x5cc] sm:$0xf0]  ;;  %v7128_v52 = vor.u32 %v9654_v44, %v7127_v43  ;;  %1609 = vmatpush.bf16.msrb.mxu1 %v7272_v41  ;;  %1578 = vmatmul.bf16.vlgmr.msra.gmra.mxu2 %v10626_v18  ;;  %v6572_v40 = vor.u32 %v9512_v32, %v6569_v33  ;;  %v9508_v44 = vld [vmem:[#allocation4 + $0x44] sm:$0xf] }
  0x47   :  { %v7383_v48 = vld [vmem:[#allocation4 + $0x6c0] sm:$0xf]  ;;  %v9718_v49 = vld [vmem:[#allocation4 + $0x6cc] sm:$0xf0]  ;;  %1622 = vmatpush.bf16.msrb.mxu2 %v7400_v42  ;;  %v7256_v54 = vor.u32 %v9686_v47, %v7255_v45  ;;  %1591 = vmatmul.bf16.vlgmr.msra.gmra.mxu3 %v10630_v20  ;;  %v6553_v45 = vld [vmem:[#allocation4 + $0x50] sm:$0xf0] }
  0x48   :  { %v7111_v53 = vld [vmem:[#allocation4 + $0x4a0] sm:$0xf]  ;;  %v7384_v55 = vor.u32 %v9718_v49, %v7383_v48  ;;  %v9650_v56 = vld [vmem:[#allocation4 + $0x4ac] sm:$0xf0]  ;;  %1635 = vmatpush.bf16.msrb.mxu3 %v6636_v46  ;;  %v9588_v32 = vld [vmem:[#allocation4 + $0x2c4] sm:$0xf] }
  0x49   :  { %v7239_v57 = vld [vmem:[#allocation4 + $0x5a0] sm:$0xf]  ;;  %v9682_v58 = vld [vmem:[#allocation4 + $0x5ac] sm:$0xf0]  ;;  %1597 = vmatpush.bf16.msrb.mxu0 %v7128_v52  ;;  %v7112_v0 = vor.u32 %v9650_v56, %v7111_v53  ;;  %v6556_v52 = vor.u32 %v9508_v44, %v6553_v45  ;;  %v9504_v56 = vld [vmem:[#allocation4 + $0x24] sm:$0xf] }
  0x4a   :  { %v7367_v60 = vld [vmem:[#allocation4 + $0x6a0] sm:$0xf]  ;;  %v9714_v61 = vld [vmem:[#allocation4 + $0x6ac] sm:$0xf0]  ;;  %v7240_v1 = vor.u32 %v9682_v58, %v7239_v57  ;;  %1610 = vmatpush.bf16.msrb.mxu1 %v7256_v54  ;;  %v6537_v57 = vld [vmem:[#allocation4 + $0x30] sm:$0xf0] }
  0x4b   :  { %v161_v3 = vld [vmem:[%s11290_s7] sm:$0xff]  ;;  %1623 = vmatpush.bf16.msrb.mxu2 %v7384_v55  ;;  %v7368_v4 = vor.u32 %v9714_v61, %v7367_v60  ;;  %v9646_v6 = vld [vmem:[#allocation4 + $0x48c] sm:$0xf0] }
  0x4c   :  { %v7095_v5 = vld [vmem:[#allocation4 + $0x480] sm:$0xf]  ;;  %v403_v9 = vunpack.c.l.b16 %v161_v3  ;;  %1636 = vmatpush.bf16.msrb.mxu3 %v6620_v59  ;;  %v9678_v12 = vld [vmem:[#allocation4 + $0x58c] sm:$0xf0]  ;;  %v404_v15 = vunpack.c.h.b16 %v161_v3  ;;  %v164_v3 = vld [vmem:[%s11290_s7 + $0x18] sm:$0xf] }
  0x4d   :  { %v7223_v7 = vld [vmem:[#allocation4 + $0x580] sm:$0xf]  ;;  %v9710_v14 = vld [vmem:[#allocation4 + $0x68c] sm:$0xf0]  ;;  %1598 = vmatpush.bf16.msrb.mxu0 %v7112_v0  ;;  %v7096_v21 = vor.u32 %v9646_v6, %v7095_v5  ;;  %v9500_v5 = vld [vmem:[#allocation4 + $0x4] sm:$0xf] }
  0x4e   :  { %v7351_v13 = vld [vmem:[#allocation4 + $0x680] sm:$0xf]  ;;  %v10628_v19 = vpack.c.b16 %v403_v9, %v403_v9  ;;  %v10632_v22 = vpack.c.b16 %v404_v15, %v404_v15  ;;  %1611 = vmatpush.bf16.msrb.mxu1 %v7240_v1  ;;  %v7224_v23 = vor.u32 %v9678_v12, %v7223_v7  ;;  %v9642_v26 = vld [vmem:[#allocation4 + $0x46c] sm:$0xf0]  ;;  %v6521_v6 = vld [vmem:[#allocation4 + $0x10] sm:$0xf0]  ;;  %v409_v15 = vunpack.c.l.b16 %v164_v3 }
  0x4f   :  { %1624 = vmatpush.bf16.msrb.mxu2 %v7368_v4  ;;  %v7352_v24 = vor.u32 %v9710_v14, %v7351_v13  ;;  %v7079_v25 = vld [vmem:[#allocation4 + $0x460] sm:$0xf]  ;;  %v9674_v29 = vld [vmem:[#allocation4 + $0x56c] sm:$0xf0]  ;;  %v6540_v4 = vor.u32 %v9504_v56, %v6537_v57  ;;  %v6761_v9 = vld [vmem:[#allocation4 + $0x1f0] sm:$0xf0] }
  0x50   :  { %v7207_v27 = vld [vmem:[#allocation4 + $0x560] sm:$0xf]  ;;  %1637 = vmatpush.bf16.msrb.mxu3 %v6604_v11  ;;  %v9706_v31 = vld [vmem:[#allocation4 + $0x66c] sm:$0xf0]  ;;  %1552 = vmatmul.bf16.vlgmr.msra.gmra.mxu0 %v10628_v19  ;;  %v7080_v34 = vor.u32 %v9642_v26, %v7079_v25  ;;  %v6889_v12 = vld [vmem:[#allocation4 + $0x2f0] sm:$0xf0]  ;;  %v6524_v26 = vor.u32 %v9500_v5, %v6521_v6 }
  0x51   :  { %v7335_v30 = vld [vmem:[#allocation4 + $0x660] sm:$0xf]  ;;  %1599 = vmatpush.bf16.msrb.mxu0 %v7096_v21  ;;  %1565 = vmatmul.bf16.vlgmr.msra.gmra.mxu1 %v10632_v22  ;;  %v7208_v35 = vor.u32 %v9674_v29, %v7207_v27  ;;  %v9638_v38 = vld [vmem:[#allocation4 + $0x44c] sm:$0xf0]  ;;  %v9624_v13 = vld [vmem:[#allocation4 + $0x3e4] sm:$0xf]  ;;  %v6764_v27 = vor.u32 %v9560_v8, %v6761_v9 }
  0x52   :  { %1612 = vmatpush.bf16.msrb.mxu1 %v7224_v23  ;;  %v7336_v36 = vor.u32 %v9706_v31, %v7335_v30  ;;  %v7063_v37 = vld [vmem:[#allocation4 + $0x440] sm:$0xf]  ;;  %v9670_v41 = vld [vmem:[#allocation4 + $0x54c] sm:$0xf0]  ;;  %v7017_v14 = vld [vmem:[#allocation4 + $0x3f0] sm:$0xf0] }
  0x53   :  { %1625 = vmatpush.bf16.msrb.mxu2 %v7352_v24  ;;  %v7191_v39 = vld [vmem:[#allocation4 + $0x540] sm:$0xf]  ;;  %v9702_v43 = vld [vmem:[#allocation4 + $0x64c] sm:$0xf0]  ;;  %v7064_v46 = vor.u32 %v9638_v38, %v7063_v37  ;;  %v9656_v21 = vld [vmem:[#allocation4 + $0x4e4] sm:$0xf]  ;;  %v7020_v29 = vor.u32 %v9624_v13, %v7017_v14  ;;  %v10644_v37 = vpack.c.b16 %v409_v15, %v409_v15 }
  0x54   :  { %1638 = vmatpush.bf16.msrb.mxu3 %v6588_v28  ;;  %v7319_v42 = vld [vmem:[#allocation4 + $0x640] sm:$0xf]  ;;  %v7192_v47 = vor.u32 %v9670_v41, %v7191_v39  ;;  %v9634_v50 = vld [vmem:[#allocation4 + $0x42c] sm:$0xf0]  ;;  %v7145_v23 = vld [vmem:[#allocation4 + $0x4f0] sm:$0xf0]  ;;  %v6892_v28 = vor.u32 %v9592_v10, %v6889_v12 }
  0x55   :  { %1600 = vmatpush.bf16.msrb.mxu0 %v7080_v34  ;;  %v7320_v48 = vor.u32 %v9702_v43, %v7319_v42  ;;  %v7047_v49 = vld [vmem:[#allocation4 + $0x420] sm:$0xf]  ;;  %v9666_v53 = vld [vmem:[#allocation4 + $0x52c] sm:$0xf0]  ;;  %v9556_v30 = vld [vmem:[#allocation4 + $0x1c4] sm:$0xf]  ;;  %v7148_v33 = vor.u32 %v9656_v21, %v7145_v23 }
  0x56   :  { %1613 = vmatpush.bf16.msrb.mxu1 %v7208_v35  ;;  %v7175_v51 = vld [vmem:[#allocation4 + $0x520] sm:$0xf]  ;;  %v9698_v55 = vld [vmem:[#allocation4 + $0x62c] sm:$0xf0]  ;;  %v7048_v59 = vor.u32 %v9634_v50, %v7047_v49  ;;  %v6745_v31 = vld [vmem:[#allocation4 + $0x1d0] sm:$0xf0] }
  0x57   :  { %1626 = vmatpush.bf16.msrb.mxu2 %v7336_v36  ;;  %v7303_v54 = vld [vmem:[#allocation4 + $0x620] sm:$0xf]  ;;  %v9630_v60 = vld [vmem:[#allocation4 + $0x40c] sm:$0xf0]  ;;  %v7176_v63 = vor.u32 %v9666_v53, %v7175_v51  ;;  %v6873_v34 = vld [vmem:[#allocation4 + $0x2d0] sm:$0xf0]  ;;  %v6748_v42 = vor.u32 %v9556_v30, %v6745_v31 }
  0x58   :  { %1639 = vmatpush.bf16.msrb.mxu3 %v6572_v40  ;;  %v7031_v58 = vld [vmem:[#allocation4 + $0x400] sm:$0xf]  ;;  %v9662_v62 = vld [vmem:[#allocation4 + $0x50c] sm:$0xf0]  ;;  %v7304_v0 = vor.u32 %v9698_v55, %v7303_v54  ;;  %v9620_v35 = vld [vmem:[#allocation4 + $0x3c4] sm:$0xf]  ;;  %v6876_v43 = vor.u32 %v9588_v32, %v6873_v34 }
  0x59   :  { %1601 = vmatpush.bf16.msrb.mxu0 %v7064_v46  ;;  %v7159_v61 = vld [vmem:[#allocation4 + $0x500] sm:$0xf]  ;;  %v9694_v2 = vld [vmem:[#allocation4 + $0x60c] sm:$0xf0]  ;;  %v7032_v11 = vor.u32 %v9630_v60, %v7031_v58  ;;  %v7001_v36 = vld [vmem:[#allocation4 + $0x3d0] sm:$0xf0] }
  0x5a   :  { %1614 = vmatpush.bf16.msrb.mxu1 %v7192_v47  ;;  %v7287_v1 = vld [vmem:[#allocation4 + $0x600] sm:$0xf]  ;;  %v163_v7 = vld [vmem:[%s11290_s7 + $0x10] sm:$0xff]  ;;  %v7160_v16 = vor.u32 %v9662_v62, %v7159_v61  ;;  %v9652_v38 = vld [vmem:[#allocation4 + $0x4c4] sm:$0xf]  ;;  %v7004_v44 = vor.u32 %v9620_v35, %v7001_v36 }
  0x5b   :  { %1627 = vmatpush.bf16.msrb.mxu2 %v7320_v48  ;;  %v7288_v17 = vor.u32 %v9694_v2, %v7287_v1  ;;  %v407_v24 = vunpack.c.l.b16 %v163_v7  ;;  %v408_v25 = vunpack.c.h.b16 %v163_v7  ;;  %v7129_v39 = vld [vmem:[#allocation4 + $0x4d0] sm:$0xf0]  ;;  %v9552_v45 = vld [vmem:[#allocation4 + $0x1a4] sm:$0xf] }
  0x5c   :  { %1640 = vmatpush.bf16.msrb.mxu3 %v6556_v52  ;;  %v6729_v46 = vld [vmem:[#allocation4 + $0x1b0] sm:$0xf0]  ;;  %v9584_v47 = vld [vmem:[#allocation4 + $0x2a4] sm:$0xf]  ;;  %v7132_v48 = vor.u32 %v9652_v38, %v7129_v39 }
  0x5d   :  { %1602 = vmatpush.bf16.msrb.mxu0 %v7048_v59  ;;  %v10646_v40 = vpack.c.b16 %v407_v24, %v407_v24  ;;  %v10648_v41 = vpack.c.b16 %v408_v25, %v408_v25  ;;  %v6857_v49 = vld [vmem:[#allocation4 + $0x2b0] sm:$0xf0]  ;;  %v9616_v50 = vld [vmem:[#allocation4 + $0x3a4] sm:$0xf]  ;;  %v6732_v54 = vor.u32 %v9552_v45, %v6729_v46 }
  0x5e   :  { %1615 = vmatpush.bf16.msrb.mxu1 %v7176_v63  ;;  %v6985_v51 = vld [vmem:[#allocation4 + $0x3b0] sm:$0xf0]  ;;  %v9648_v52 = vld [vmem:[#allocation4 + $0x4a4] sm:$0xf]  ;;  %v6860_v55 = vor.u32 %v9584_v47, %v6857_v49 }
  0x5f   :  { %1628 = vmatpush.bf16.msrb.mxu2 %v7304_v0  ;;  %v7113_v53 = vld [vmem:[#allocation4 + $0x4b0] sm:$0xf0]  ;;  %v6988_v56 = vor.u32 %v9616_v50, %v6985_v51  ;;  %v9548_v57 = vld [vmem:[#allocation4 + $0x184] sm:$0xf] }
  0x60   :  { %1641 = vmatpush.bf16.msrb.mxu3 %v6540_v4  ;;  %v6713_v58 = vld [vmem:[#allocation4 + $0x190] sm:$0xf0]  ;;  %v9580_v59 = vld [vmem:[#allocation4 + $0x284] sm:$0xf]  ;;  %v7116_v60 = vor.u32 %v9648_v52, %v7113_v53 }
  0x61   :  { %1603 = vmatpush.bf16.msrb.mxu0 %v7032_v11  ;;  %v6841_v61 = vld [vmem:[#allocation4 + $0x290] sm:$0xf0]  ;;  %v9612_v62 = vld [vmem:[#allocation4 + $0x384] sm:$0xf]  ;;  %v6716_v2 = vor.u32 %v9548_v57, %v6713_v58 }
  0x62   :  { %1616 = vmatpush.bf16.msrb.mxu1 %v7160_v16  ;;  %v6969_v63 = vld [vmem:[#allocation4 + $0x390] sm:$0xf0]  ;;  %v9644_v0 = vld [vmem:[#allocation4 + $0x484] sm:$0xf]  ;;  %v6844_v3 = vor.u32 %v9580_v59, %v6841_v61 }
  0x63   :  { %1629 = vmatpush.bf16.msrb.mxu2 %v7288_v17  ;;  %v7097_v1 = vld [vmem:[#allocation4 + $0x490] sm:$0xf0]  ;;  %v6972_v4 = vor.u32 %v9612_v62, %v6969_v63  ;;  %v9544_v5 = vld [vmem:[#allocation4 + $0x164] sm:$0xf]  ;;  %v6639_v62 = vld [vmem:[#allocation4 + $0xe8] sm:$0xf] }
  0x64   :  { %1642 = vmatpush.bf16.msrb.mxu3 %v6524_v26  ;;  %1604 = vmatmul.bf16.vlgmr.msrb.gmra.mxu0 %v10646_v40  ;;  %v6697_v6 = vld [vmem:[#allocation4 + $0x170] sm:$0xf0]  ;;  %v9576_v7 = vld [vmem:[#allocation4 + $0x264] sm:$0xf]  ;;  %v7100_v8 = vor.u32 %v9644_v0, %v7097_v1  ;;  %v9531_v63 = vld [vmem:[#allocation4 + $0xf4] sm:$0xf0] }
  0x65   :  { %1648 = vmatpush.bf16.msra.mxu0 %v6764_v27  ;;  %1617 = vmatmul.bf16.vlgmr.msrb.gmra.mxu1 %v10648_v41  ;;  %v6825_v9 = vld [vmem:[#allocation4 + $0x270] sm:$0xf0]  ;;  %v9608_v10 = vld [vmem:[#allocation4 + $0x364] sm:$0xf]  ;;  %v6700_v14 = vor.u32 %v9544_v5, %v6697_v6 }
  0x66   :  { %1661 = vmatpush.bf16.msra.mxu1 %v6892_v28  ;;  %1630 = vmatmul.bf16.vlgmr.msrb.gmra.mxu2 %v10644_v37  ;;  %v6953_v11 = vld [vmem:[#allocation4 + $0x370] sm:$0xf0]  ;;  %v9640_v12 = vld [vmem:[#allocation4 + $0x464] sm:$0xf]  ;;  %v6828_v15 = vor.u32 %v9576_v7, %v6825_v9  ;;  %v6640_v7 = vor.u32 %v9531_v63, %v6639_v62 }
  0x67   :  { %1674 = vmatpush.bf16.msra.mxu2 %v7020_v29  ;;  %1643 = vmatmul.bf16.vlgmr.msrb.gmra.mxu3 %v10628_v19  ;;  %v7081_v13 = vld [vmem:[#allocation4 + $0x470] sm:$0xf0]  ;;  %v6956_v16 = vor.u32 %v9608_v10, %v6953_v11  ;;  %v9540_v17 = vld [vmem:[#allocation4 + $0x144] sm:$0xf] }
  0x68   :  { %1687 = vmatpush.bf16.msra.mxu3 %v7148_v33  ;;  %v6681_v21 = vld [vmem:[#allocation4 + $0x150] sm:$0xf0]  ;;  %v9572_v23 = vld [vmem:[#allocation4 + $0x244] sm:$0xf]  ;;  %v7084_v24 = vor.u32 %v9640_v12, %v7081_v13  ;;  %v6623_v13 = vld [vmem:[#allocation4 + $0xc8] sm:$0xf] }
  0x69   :  { %1649 = vmatpush.bf16.msra.mxu0 %v6748_v42  ;;  %v6809_v25 = vld [vmem:[#allocation4 + $0x250] sm:$0xf0]  ;;  %v9604_v26 = vld [vmem:[#allocation4 + $0x344] sm:$0xf]  ;;  %v6684_v30 = vor.u32 %v9540_v17, %v6681_v21 }
  0x6a   :  { %1662 = vmatpush.bf16.msra.mxu1 %v6876_v43  ;;  %v6937_v27 = vld [vmem:[#allocation4 + $0x350] sm:$0xf0]  ;;  %v9636_v28 = vld [vmem:[#allocation4 + $0x444] sm:$0xf]  ;;  %v6812_v31 = vor.u32 %v9572_v23, %v6809_v25 }
  0x6b   :  { %1675 = vmatpush.bf16.msra.mxu2 %v7004_v44  ;;  %v7065_v29 = vld [vmem:[#allocation4 + $0x450] sm:$0xf0]  ;;  %v6940_v32 = vor.u32 %v9604_v26, %v6937_v27  ;;  %v9536_v33 = vld [vmem:[#allocation4 + $0x124] sm:$0xf] }
  0x6c   :  { %1688 = vmatpush.bf16.msra.mxu3 %v7132_v48  ;;  %v6665_v34 = vld [vmem:[#allocation4 + $0x130] sm:$0xf0]  ;;  %v9568_v35 = vld [vmem:[#allocation4 + $0x224] sm:$0xf]  ;;  %v7068_v36 = vor.u32 %v9636_v28, %v7065_v29  ;;  %v6607_v29 = vld [vmem:[#allocation4 + $0xa8] sm:$0xf] }
  0x6d   :  { %1650 = vmatpush.bf16.msra.mxu0 %v6732_v54  ;;  %v6793_v38 = vld [vmem:[#allocation4 + $0x230] sm:$0xf0]  ;;  %v9600_v39 = vld [vmem:[#allocation4 + $0x324] sm:$0xf]  ;;  %v6668_v45 = vor.u32 %v9536_v33, %v6665_v34 }
  0x6e   :  { %1663 = vmatpush.bf16.msra.mxu1 %v6860_v55  ;;  %v6921_v42 = vld [vmem:[#allocation4 + $0x330] sm:$0xf0]  ;;  %v9632_v43 = vld [vmem:[#allocation4 + $0x424] sm:$0xf]  ;;  %v6796_v48 = vor.u32 %v9568_v35, %v6793_v38 }
  0x6f   :  { %1676 = vmatpush.bf16.msra.mxu2 %v6988_v56  ;;  %v7049_v44 = vld [vmem:[#allocation4 + $0x430] sm:$0xf0]  ;;  %v9532_v46 = vld [vmem:[#allocation4 + $0x104] sm:$0xf]  ;;  %v6924_v49 = vor.u32 %v9600_v39, %v6921_v42 }
  0x70   :  { %1689 = vmatpush.bf16.msra.mxu3 %v7116_v60  ;;  %v6649_v47 = vld [vmem:[#allocation4 + $0x110] sm:$0xf0]  ;;  %v9564_v50 = vld [vmem:[#allocation4 + $0x204] sm:$0xf]  ;;  %v7052_v53 = vor.u32 %v9632_v43, %v7049_v44  ;;  %v6591_v44 = vld [vmem:[#allocation4 + $0x88] sm:$0xf] }
  0x71   :  { %1651 = vmatpush.bf16.msra.mxu0 %v6716_v2  ;;  %v6777_v51 = vld [vmem:[#allocation4 + $0x210] sm:$0xf0]  ;;  %v9596_v52 = vld [vmem:[#allocation4 + $0x304] sm:$0xf]  ;;  %v6652_v60 = vor.u32 %v9532_v46, %v6649_v47  ;;  %v6767_v2 = vld [vmem:[#allocation4 + $0x1e8] sm:$0xf] }
  0x72   :  { %1664 = vmatpush.bf16.msra.mxu1 %v6844_v3  ;;  %v6905_v54 = vld [vmem:[#allocation4 + $0x310] sm:$0xf0]  ;;  %v9628_v55 = vld [vmem:[#allocation4 + $0x404] sm:$0xf]  ;;  %v6780_v0 = vor.u32 %v9564_v50, %v6777_v51  ;;  %v9563_v3 = vld [vmem:[#allocation4 + $0x1f4] sm:$0xf0] }
  0x73   :  { %1677 = vmatpush.bf16.msra.mxu2 %v6972_v4  ;;  %v7033_v56 = vld [vmem:[#allocation4 + $0x410] sm:$0xf0]  ;;  %v9688_v57 = vld [vmem:[#allocation4 + $0x5e4] sm:$0xf]  ;;  %v6908_v1 = vor.u32 %v9596_v52, %v6905_v54  ;;  %v6768_v11 = vor.u32 %v9563_v3, %v6767_v2  ;;  %v6719_v46 = vld [vmem:[#allocation4 + $0x188] sm:$0xf] }
  0x74   :  { %1690 = vmatpush.bf16.msra.mxu3 %v7100_v8  ;;  %v7273_v58 = vld [vmem:[#allocation4 + $0x5f0] sm:$0xf0]  ;;  %v9720_v59 = vld [vmem:[#allocation4 + $0x6e4] sm:$0xf]  ;;  %v7036_v4 = vor.u32 %v9628_v55, %v7033_v56  ;;  %v9551_v47 = vld [vmem:[#allocation4 + $0x194] sm:$0xf0] }
  0x75   :  { %1652 = vmatpush.bf16.msra.mxu0 %v6700_v14  ;;  %v7401_v61 = vld [vmem:[#allocation4 + $0x6f0] sm:$0xf0]  ;;  %v7276_v5 = vor.u32 %v9688_v57, %v7273_v58  ;;  %v9684_v8 = vld [vmem:[#allocation4 + $0x5c4] sm:$0xf]  ;;  %v9527_v14 = vld [vmem:[#allocation4 + $0xd4] sm:$0xf0]  ;;  %v6720_v54 = vor.u32 %v9551_v47, %v6719_v46 }
  0x76   :  { %1665 = vmatpush.bf16.msra.mxu1 %v6828_v15  ;;  %v7404_v6 = vor.u32 %v9720_v59, %v7401_v61  ;;  %v7257_v9 = vld [vmem:[#allocation4 + $0x5d0] sm:$0xf0]  ;;  %v9716_v10 = vld [vmem:[#allocation4 + $0x6c4] sm:$0xf]  ;;  %v6751_v15 = vld [vmem:[#allocation4 + $0x1c8] sm:$0xf]  ;;  %v6624_v23 = vor.u32 %v9527_v14, %v6623_v13 }
  0x77   :  { %1678 = vmatpush.bf16.msra.mxu2 %v6956_v16  ;;  %v7385_v12 = vld [vmem:[#allocation4 + $0x6d0] sm:$0xf0]  ;;  %v9559_v16 = vld [vmem:[#allocation4 + $0x1d4] sm:$0xf0]  ;;  %v7260_v17 = vor.u32 %v9684_v8, %v7257_v9  ;;  %v9712_v26 = vld [vmem:[#allocation4 + $0x6a4] sm:$0xf] }
  0x78   :  { %1691 = vmatpush.bf16.msra.mxu3 %v7084_v24  ;;  %v7388_v21 = vor.u32 %v9716_v10, %v7385_v12  ;;  %v9680_v24 = vld [vmem:[#allocation4 + $0x5a4] sm:$0xf]  ;;  %v7241_v25 = vld [vmem:[#allocation4 + $0x5b0] sm:$0xf0]  ;;  %v6752_v27 = vor.u32 %v9559_v16, %v6751_v15  ;;  %v6575_v56 = vld [vmem:[#allocation4 + $0x68] sm:$0xf] }
  0x79   :  { %1653 = vmatpush.bf16.msra.mxu0 %v6684_v30  ;;  %v7369_v28 = vld [vmem:[#allocation4 + $0x6b0] sm:$0xf0]  ;;  %v9523_v30 = vld [vmem:[#allocation4 + $0xb4] sm:$0xf0]  ;;  %v7244_v33 = vor.u32 %v9680_v24, %v7241_v25  ;;  %v9708_v39 = vld [vmem:[#allocation4 + $0x684] sm:$0xf] }
  0x7a   :  { %1666 = vmatpush.bf16.msra.mxu1 %v6812_v31  ;;  %v6735_v31 = vld [vmem:[#allocation4 + $0x1a8] sm:$0xf]  ;;  %v7372_v34 = vor.u32 %v9712_v26, %v7369_v28  ;;  %v6608_v35 = vor.u32 %v9523_v30, %v6607_v29  ;;  %v7225_v38 = vld [vmem:[#allocation4 + $0x590] sm:$0xf0]  ;;  %v9672_v51 = vld [vmem:[#allocation4 + $0x564] sm:$0xf] }
  0x7b   :  { %1679 = vmatpush.bf16.msra.mxu2 %v6940_v32  ;;  %v9555_v32 = vld [vmem:[#allocation4 + $0x1b4] sm:$0xf0]  ;;  %v7353_v43 = vld [vmem:[#allocation4 + $0x690] sm:$0xf0]  ;;  %v6703_v58 = vld [vmem:[#allocation4 + $0x168] sm:$0xf] }
  0x7c   :  { %1692 = vmatpush.bf16.msra.mxu3 %v7068_v36  ;;  %v9676_v36 = vld [vmem:[#allocation4 + $0x584] sm:$0xf]  ;;  %v6736_v42 = vor.u32 %v9555_v32, %v6735_v31  ;;  %v7209_v52 = vld [vmem:[#allocation4 + $0x570] sm:$0xf0]  ;;  %v9515_v57 = vld [vmem:[#allocation4 + $0x74] sm:$0xf0] }
  0x7d   :  { %1654 = vmatpush.bf16.msra.mxu0 %v6668_v45  ;;  %v9519_v45 = vld [vmem:[#allocation4 + $0x94] sm:$0xf0]  ;;  %v7337_v55 = vld [vmem:[#allocation4 + $0x670] sm:$0xf0]  ;;  %v6576_v62 = vor.u32 %v9515_v57, %v6575_v56  ;;  %v9668_v63 = vld [vmem:[#allocation4 + $0x544] sm:$0xf] }
  0x7e   :  { %1667 = vmatpush.bf16.msra.mxu1 %v6796_v48  ;;  %v7228_v48 = vor.u32 %v9676_v36, %v7225_v38  ;;  %v6592_v50 = vor.u32 %v9519_v45, %v6591_v44  ;;  %v9547_v59 = vld [vmem:[#allocation4 + $0x174] sm:$0xf0]  ;;  %v7321_v3 = vld [vmem:[#allocation4 + $0x650] sm:$0xf0]  ;;  %v9696_v13 = vld [vmem:[#allocation4 + $0x624] sm:$0xf] }
  0x7f   :  { %1680 = vmatpush.bf16.msra.mxu2 %v6924_v49  ;;  %v7356_v49 = vor.u32 %v9708_v39, %v7353_v43  ;;  %v6704_v2 = vor.u32 %v9547_v59, %v6703_v58  ;;  %v7177_v12 = vld [vmem:[#allocation4 + $0x530] sm:$0xf0]  ;;  %v6543_v16 = vld [vmem:[#allocation4 + $0x28] sm:$0xf]  ;;  %v9660_v25 = vld [vmem:[#allocation4 + $0x504] sm:$0xf] }
  0x80   :  { %1693 = vmatpush.bf16.msra.mxu3 %v7052_v53  ;;  %v9704_v53 = vld [vmem:[#allocation4 + $0x664] sm:$0xf]  ;;  %v7305_v15 = vld [vmem:[#allocation4 + $0x630] sm:$0xf0]  ;;  %v6527_v31 = vld [vmem:[#allocation4 + $0x8] sm:$0xf] }
  0x81   :  { %1655 = vmatpush.bf16.msra.mxu0 %v6652_v60  ;;  %v7212_v60 = vor.u32 %v9672_v51, %v7209_v52  ;;  %v7340_v61 = vor.u32 %v9704_v53, %v7337_v55  ;;  %v7161_v26 = vld [vmem:[#allocation4 + $0x510] sm:$0xf0]  ;;  %v9692_v29 = vld [vmem:[#allocation4 + $0x604] sm:$0xf]  ;;  %v6895_v36 = vld [vmem:[#allocation4 + $0x2e8] sm:$0xf] }
  0x82   :  { %1668 = vmatpush.bf16.msra.mxu1 %v6780_v0  ;;  %v7193_v0 = vld [vmem:[#allocation4 + $0x550] sm:$0xf0]  ;;  %v9595_v38 = vld [vmem:[#allocation4 + $0x2f4] sm:$0xf0]  ;;  %v7023_v39 = vld [vmem:[#allocation4 + $0x3e8] sm:$0xf] }
  0x83   :  { %1681 = vmatpush.bf16.msra.mxu2 %v6908_v1  ;;  %v9700_v1 = vld [vmem:[#allocation4 + $0x644] sm:$0xf]  ;;  %v7196_v8 = vor.u32 %v9668_v63, %v7193_v0  ;;  %v7289_v30 = vld [vmem:[#allocation4 + $0x610] sm:$0xf0]  ;;  %v9627_v43 = vld [vmem:[#allocation4 + $0x3f4] sm:$0xf0]  ;;  %v6896_v51 = vor.u32 %v9595_v38, %v6895_v36 }
  0x84   :  { %1694 = vmatpush.bf16.msra.mxu3 %v7036_v4  ;;  %1656 = vmatmul.bf16.vlgmr.msra.gmra.mxu0 %v10632_v22  ;;  %v6559_v4 = vld [vmem:[#allocation4 + $0x48] sm:$0xf]  ;;  %v7324_v9 = vor.u32 %v9700_v1, %v7321_v3  ;;  %v9659_v45 = vld [vmem:[#allocation4 + $0x4f4] sm:$0xf0]  ;;  %v7292_v46 = vor.u32 %v9692_v29, %v7289_v30  ;;  %v7024_v52 = vor.u32 %v9627_v43, %v7023_v39 }
  0x85   :  { %1700 = vmatpush.bf16.msrb.mxu0 %v7276_v5  ;;  %1669 = vmatmul.bf16.vlgmr.msra.gmra.mxu1 %v10626_v18  ;;  %v9511_v5 = vld [vmem:[#allocation4 + $0x54] sm:$0xf0]  ;;  %v7151_v44 = vld [vmem:[#allocation4 + $0x4e8] sm:$0xf] }
  0x86   :  { %1713 = vmatpush.bf16.msrb.mxu1 %v7404_v6  ;;  %1682 = vmatmul.bf16.vlgmr.msra.gmra.mxu2 %v10630_v20  ;;  %v6687_v6 = vld [vmem:[#allocation4 + $0x148] sm:$0xf]  ;;  %v6560_v10 = vor.u32 %v9511_v5, %v6559_v4  ;;  %v7152_v53 = vor.u32 %v9659_v45, %v7151_v44  ;;  %v9591_v55 = vld [vmem:[#allocation4 + $0x2d4] sm:$0xf0] }
  0x87   :  { %1726 = vmatpush.bf16.msrb.mxu2 %v6640_v7  ;;  %1695 = vmatmul.bf16.vlgmr.msra.gmra.mxu3 %v10646_v40  ;;  %v9543_v7 = vld [vmem:[#allocation4 + $0x154] sm:$0xf0]  ;;  %v7007_v56 = vld [vmem:[#allocation4 + $0x3c8] sm:$0xf] }
  0x88   :  { %1739 = vmatpush.bf16.msrb.mxu3 %v6768_v11  ;;  %v9664_v11 = vld [vmem:[#allocation4 + $0x524] sm:$0xf]  ;;  %v6688_v14 = vor.u32 %v9543_v7, %v6687_v6  ;;  %v9623_v58 = vld [vmem:[#allocation4 + $0x3d4] sm:$0xf0]  ;;  %v7135_v59 = vld [vmem:[#allocation4 + $0x4c8] sm:$0xf] }
  0x89   :  { %1701 = vmatpush.bf16.msrb.mxu0 %v7260_v17  ;;  %v9507_v17 = vld [vmem:[#allocation4 + $0x34] sm:$0xf0]  ;;  %v7180_v24 = vor.u32 %v9664_v11, %v7177_v12  ;;  %v7008_v0 = vor.u32 %v9623_v58, %v7007_v56  ;;  %v6991_v4 = vld [vmem:[#allocation4 + $0x3a8] sm:$0xf] }
  0x8a   :  { %1714 = vmatpush.bf16.msrb.mxu1 %v7388_v21  ;;  %v6671_v21 = vld [vmem:[#allocation4 + $0x128] sm:$0xf]  ;;  %v6544_v28 = vor.u32 %v9507_v17, %v6543_v16  ;;  %v9587_v3 = vld [vmem:[#allocation4 + $0x2b4] sm:$0xf0] }
  0x8b   :  { %1727 = vmatpush.bf16.msrb.mxu2 %v6624_v23  ;;  %v9539_v23 = vld [vmem:[#allocation4 + $0x134] sm:$0xf0]  ;;  %v7119_v7 = vld [vmem:[#allocation4 + $0x4a8] sm:$0xf] }
  0x8c   :  { %1740 = vmatpush.bf16.msrb.mxu3 %v6752_v27  ;;  %v7308_v27 = vor.u32 %v9696_v13, %v7305_v15  ;;  %v6672_v32 = vor.u32 %v9539_v23, %v6671_v21  ;;  %v9619_v6 = vld [vmem:[#allocation4 + $0x3b4] sm:$0xf0]  ;;  %v6975_v16 = vld [vmem:[#allocation4 + $0x388] sm:$0xf] }
  0x8d   :  { %1702 = vmatpush.bf16.msrb.mxu0 %v7244_v33  ;;  %v9503_v33 = vld [vmem:[#allocation4 + $0x14] sm:$0xf0]  ;;  %v6992_v12 = vor.u32 %v9619_v6, %v6991_v4  ;;  %v7103_v23 = vld [vmem:[#allocation4 + $0x488] sm:$0xf] }
  0x8e   :  { %1715 = vmatpush.bf16.msrb.mxu1 %v7372_v34  ;;  %v6655_v34 = vld [vmem:[#allocation4 + $0x108] sm:$0xf]  ;;  %v6528_v47 = vor.u32 %v9503_v33, %v6527_v31  ;;  %v9583_v15 = vld [vmem:[#allocation4 + $0x294] sm:$0xf0] }
  0x8f   :  { %1728 = vmatpush.bf16.msrb.mxu2 %v6608_v35  ;;  %v9535_v35 = vld [vmem:[#allocation4 + $0x114] sm:$0xf0]  ;;  %v6831_v30 = vld [vmem:[#allocation4 + $0x268] sm:$0xf] }
  0x90   :  { %1741 = vmatpush.bf16.msrb.mxu3 %v6736_v42  ;;  %v7164_v42 = vor.u32 %v9660_v25, %v7161_v26  ;;  %v9615_v21 = vld [vmem:[#allocation4 + $0x394] sm:$0xf0]  ;;  %v7231_v25 = vld [vmem:[#allocation4 + $0x588] sm:$0xf] }
  0x91   :  { %1703 = vmatpush.bf16.msrb.mxu0 %v7228_v48  ;;  %v7279_v48 = vld [vmem:[#allocation4 + $0x5e8] sm:$0xf]  ;;  %v9679_v26 = vld [vmem:[#allocation4 + $0x594] sm:$0xf0] }
  0x92   :  { %1716 = vmatpush.bf16.msrb.mxu1 %v7356_v49  ;;  %v9691_v49 = vld [vmem:[#allocation4 + $0x5f4] sm:$0xf0]  ;;  %v7232_v33 = vor.u32 %v9679_v26, %v7231_v25  ;;  %v7215_v38 = vld [vmem:[#allocation4 + $0x568] sm:$0xf] }
  0x93   :  { %1729 = vmatpush.bf16.msrb.mxu2 %v6592_v50  ;;  %v6656_v50 = vor.u32 %v9535_v35, %v6655_v34  ;;  %v7280_v57 = vor.u32 %v9691_v49, %v7279_v48  ;;  %v9579_v31 = vld [vmem:[#allocation4 + $0x274] sm:$0xf0]  ;;  %v7087_v35 = vld [vmem:[#allocation4 + $0x468] sm:$0xf] }
  0x94   :  { %1742 = vmatpush.bf16.msrb.mxu3 %v6720_v54  ;;  %v6879_v54 = vld [vmem:[#allocation4 + $0x2c8] sm:$0xf]  ;;  %v9611_v34 = vld [vmem:[#allocation4 + $0x374] sm:$0xf0] }
  0x95   :  { %1704 = vmatpush.bf16.msrb.mxu0 %v7212_v60  ;;  %v9655_v60 = vld [vmem:[#allocation4 + $0x4d4] sm:$0xf0]  ;;  %v6880_v63 = vor.u32 %v9591_v55, %v6879_v54  ;;  %v6815_v45 = vld [vmem:[#allocation4 + $0x248] sm:$0xf] }
  0x96   :  { %1717 = vmatpush.bf16.msrb.mxu1 %v7340_v61  ;;  %v7263_v61 = vld [vmem:[#allocation4 + $0x5c8] sm:$0xf]  ;;  %v7136_v1 = vor.u32 %v9655_v60, %v7135_v59  ;;  %v9643_v36 = vld [vmem:[#allocation4 + $0x474] sm:$0xf0] }
  0x97   :  { %1730 = vmatpush.bf16.msrb.mxu2 %v6576_v62  ;;  %v9687_v62 = vld [vmem:[#allocation4 + $0x5d4] sm:$0xf0]  ;;  %v7088_v44 = vor.u32 %v9643_v36, %v7087_v35  ;;  %v6927_v59 = vld [vmem:[#allocation4 + $0x328] sm:$0xf]  ;;  %v9525_v35 = vld [vmem:[#allocation4 + $0xcc] sm:$0xf] }
  0x98   :  { %1743 = vmatpush.bf16.msrb.mxu3 %v6704_v2  ;;  %v6863_v2 = vld [vmem:[#allocation4 + $0x2a8] sm:$0xf]  ;;  %v7264_v5 = vor.u32 %v9687_v62, %v7263_v61  ;;  %v9675_v39 = vld [vmem:[#allocation4 + $0x574] sm:$0xf0] }
  0x99   :  { %1705 = vmatpush.bf16.msrb.mxu0 %v7196_v8  ;;  %v9651_v8 = vld [vmem:[#allocation4 + $0x4b4] sm:$0xf0]  ;;  %v6864_v11 = vor.u32 %v9587_v3, %v6863_v2  ;;  %v7216_v48 = vor.u32 %v9675_v39, %v7215_v38  ;;  %v7055_v62 = vld [vmem:[#allocation4 + $0x428] sm:$0xf]  ;;  %v6625_v38 = vld [vmem:[#allocation4 + $0xd8] sm:$0xf0] }
  0x9a   :  { %1718 = vmatpush.bf16.msrb.mxu1 %v7324_v9  ;;  %v7247_v9 = vld [vmem:[#allocation4 + $0x5a8] sm:$0xf]  ;;  %v7120_v13 = vor.u32 %v9651_v8, %v7119_v7  ;;  %v9607_v49 = vld [vmem:[#allocation4 + $0x354] sm:$0xf0]  ;;  %v9557_v39 = vld [vmem:[#allocation4 + $0x1cc] sm:$0xf] }
  0x9b   :  { %1731 = vmatpush.bf16.msrb.mxu2 %v6560_v10  ;;  %v9683_v10 = vld [vmem:[#allocation4 + $0x5b4] sm:$0xf0]  ;;  %v6783_v3 = vld [vmem:[#allocation4 + $0x208] sm:$0xf] }
  0x9c   :  { %1744 = vmatpush.bf16.msrb.mxu3 %v6688_v14  ;;  %v6847_v14 = vld [vmem:[#allocation4 + $0x288] sm:$0xf]  ;;  %v7248_v17 = vor.u32 %v9683_v10, %v7247_v9  ;;  %v9571_v58 = vld [vmem:[#allocation4 + $0x234] sm:$0xf0] }
  0x9d   :  { %1706 = vmatpush.bf16.msrb.mxu0 %v7180_v24  ;;  %v9647_v24 = vld [vmem:[#allocation4 + $0x494] sm:$0xf0]  ;;  %v6911_v7 = vld [vmem:[#allocation4 + $0x308] sm:$0xf] }
  0x9e   :  { %1719 = vmatpush.bf16.msrb.mxu1 %v7308_v27  ;;  %v6848_v27 = vor.u32 %v9583_v15, %v6847_v14  ;;  %v7104_v29 = vor.u32 %v9647_v24, %v7103_v23  ;;  %v9603_v61 = vld [vmem:[#allocation4 + $0x334] sm:$0xf0]  ;;  %v7039_v9 = vld [vmem:[#allocation4 + $0x408] sm:$0xf]  ;;  %v9561_v23 = vld [vmem:[#allocation4 + $0x1ec] sm:$0xf] }
  0x9f   :  { %1732 = vmatpush.bf16.msrb.mxu2 %v6544_v28  ;;  %v6976_v28 = vor.u32 %v9615_v21, %v6975_v16  ;;  %v9567_v4 = vld [vmem:[#allocation4 + $0x214] sm:$0xf0]  ;;  %v7407_v14 = vld [vmem:[#allocation4 + $0x6e8] sm:$0xf]  ;;  %v9529_v16 = vld [vmem:[#allocation4 + $0xec] sm:$0xf] }
  0xa0   :  { %1745 = vmatpush.bf16.msrb.mxu3 %v6672_v32  ;;  %v6959_v32 = vld [vmem:[#allocation4 + $0x368] sm:$0xf]  ;;  %v9599_v8 = vld [vmem:[#allocation4 + $0x314] sm:$0xf0]  ;;  %v6641_v21 = vld [vmem:[#allocation4 + $0xf8] sm:$0xf0] }
  0xa1   :  { %1707 = vmatpush.bf16.msrb.mxu0 %v7164_v42  ;;  %v6832_v42 = vor.u32 %v9579_v31, %v6831_v30  ;;  %v6960_v43 = vor.u32 %v9611_v34, %v6959_v32  ;;  %v9723_v15 = vld [vmem:[#allocation4 + $0x6f4] sm:$0xf0]  ;;  %v6769_v24 = vld [vmem:[#allocation4 + $0x1f8] sm:$0xf0]  ;;  %v6912_v25 = vor.u32 %v9599_v8, %v6911_v7  ;;  %v6644_v31 = vor.u32 %v9529_v16, %v6641_v21  ;;  %v7343_v8 = vld [vmem:[#allocation4 + $0x668] sm:$0xf] }
  0xa2   :  { %1720 = vmatpush.bf16.msrb.mxu1 %v7292_v46  ;;  %v9575_v46 = vld [vmem:[#allocation4 + $0x254] sm:$0xf0]  ;;  %v7408_v30 = vor.u32 %v9723_v15, %v7407_v14  ;;  %v6772_v32 = vor.u32 %v9561_v23, %v6769_v24  ;;  %v6705_v14 = vld [vmem:[#allocation4 + $0x178] sm:$0xf0]  ;;  %v9577_v15 = vld [vmem:[#allocation4 + $0x26c] sm:$0xf] }
  0xa3   :  { %1733 = vmatpush.bf16.msrb.mxu2 %v6528_v47  ;;  %v6943_v47 = vld [vmem:[#allocation4 + $0x348] sm:$0xf]  ;;  %v6816_v54 = vor.u32 %v9575_v46, %v6815_v45  ;;  %v9719_v34 = vld [vmem:[#allocation4 + $0x6d4] sm:$0xf0]  ;;  %v6628_v46 = vor.u32 %v9525_v35, %v6625_v38  ;;  %v6833_v16 = vld [vmem:[#allocation4 + $0x278] sm:$0xf0] }
  0xa4   :  { %1746 = vmatpush.bf16.msrb.mxu3 %v6656_v50  ;;  %1708 = vmatmul.bf16.vlgmr.msrb.gmra.mxu0 %v10648_v41  ;;  %v7071_v50 = vld [vmem:[#allocation4 + $0x448] sm:$0xf]  ;;  %v6944_v55 = vor.u32 %v9607_v49, %v6943_v47  ;;  %v9715_v49 = vld [vmem:[#allocation4 + $0x6b4] sm:$0xf0] }
  0xa5   :  { %1752 = vmatpush.bf16.msra.mxu0 %v6896_v51  ;;  %1721 = vmatmul.bf16.vlgmr.msrb.gmra.mxu1 %v10644_v37  ;;  %v9639_v51 = vld [vmem:[#allocation4 + $0x454] sm:$0xf0]  ;;  %v7327_v24 = vld [vmem:[#allocation4 + $0x648] sm:$0xf] }
  0xa6   :  { %1765 = vmatpush.bf16.msra.mxu1 %v7024_v52  ;;  %1734 = vmatmul.bf16.vlgmr.msrb.gmra.mxu2 %v10628_v19  ;;  %v7199_v52 = vld [vmem:[#allocation4 + $0x548] sm:$0xf]  ;;  %v7072_v56 = vor.u32 %v9639_v51, %v7071_v50  ;;  %v9521_v50 = vld [vmem:[#allocation4 + $0xac] sm:$0xf] }
  0xa7   :  { %1778 = vmatpush.bf16.msra.mxu2 %v7152_v53  ;;  %1747 = vmatmul.bf16.vlgmr.msrb.gmra.mxu3 %v10632_v22  ;;  %v9671_v53 = vld [vmem:[#allocation4 + $0x554] sm:$0xf0]  ;;  %v7311_v38 = vld [vmem:[#allocation4 + $0x628] sm:$0xf] }
  0xa8   :  { %1791 = vmatpush.bf16.msra.mxu3 %v7280_v57  ;;  %v6799_v57 = vld [vmem:[#allocation4 + $0x228] sm:$0xf]  ;;  %v7200_v60 = vor.u32 %v9671_v53, %v7199_v52  ;;  %v6609_v52 = vld [vmem:[#allocation4 + $0xb8] sm:$0xf0]  ;;  %v9553_v53 = vld [vmem:[#allocation4 + $0x1ac] sm:$0xf] }
  0xa9   :  { %1753 = vmatpush.bf16.msra.mxu0 %v6880_v63  ;;  %v9635_v63 = vld [vmem:[#allocation4 + $0x434] sm:$0xf0]  ;;  %v6800_v2 = vor.u32 %v9571_v58, %v6799_v57  ;;  %v6612_v58 = vor.u32 %v9521_v50, %v6609_v52 }
  0xaa   :  { %1766 = vmatpush.bf16.msra.mxu1 %v7008_v0  ;;  %v7183_v0 = vld [vmem:[#allocation4 + $0x528] sm:$0xf]  ;;  %v7056_v6 = vor.u32 %v9635_v63, %v7055_v62  ;;  %v9517_v62 = vld [vmem:[#allocation4 + $0x8c] sm:$0xf]  ;;  %v9695_v52 = vld [vmem:[#allocation4 + $0x614] sm:$0xf0] }
  0xab   :  { %1779 = vmatpush.bf16.msra.mxu2 %v7136_v1  ;;  %v9667_v1 = vld [vmem:[#allocation4 + $0x534] sm:$0xf0] }
  0xac   :  { %1792 = vmatpush.bf16.msra.mxu3 %v7264_v5  ;;  %v6928_v5 = vor.u32 %v9603_v61, %v6927_v59  ;;  %v7184_v10 = vor.u32 %v9667_v1, %v7183_v0  ;;  %v9711_v61 = vld [vmem:[#allocation4 + $0x694] sm:$0xf0]  ;;  %v6593_v0 = vld [vmem:[#allocation4 + $0x98] sm:$0xf0]  ;;  %v9549_v1 = vld [vmem:[#allocation4 + $0x18c] sm:$0xf] }
  0xad   :  { %1754 = vmatpush.bf16.msra.mxu0 %v6864_v11  ;;  %v9631_v11 = vld [vmem:[#allocation4 + $0x414] sm:$0xf0] }
  0xae   :  { %1767 = vmatpush.bf16.msra.mxu1 %v6992_v12  ;;  %v7167_v12 = vld [vmem:[#allocation4 + $0x508] sm:$0xf]  ;;  %v7040_v26 = vor.u32 %v9631_v11, %v7039_v9  ;;  %v9707_v9 = vld [vmem:[#allocation4 + $0x674] sm:$0xf0] }
  0xaf   :  { %1780 = vmatpush.bf16.msra.mxu2 %v7120_v13  ;;  %v9663_v13 = vld [vmem:[#allocation4 + $0x514] sm:$0xf0] }
  0xb0   :  { %1793 = vmatpush.bf16.msra.mxu3 %v7248_v17  ;;  %v6784_v17 = vor.u32 %v9567_v4, %v6783_v3  ;;  %v9581_v3 = vld [vmem:[#allocation4 + $0x28c] sm:$0xf]  ;;  %v6849_v4 = vld [vmem:[#allocation4 + $0x298] sm:$0xf0] }
  0xb1   :  { %1755 = vmatpush.bf16.msra.mxu0 %v6848_v27  ;;  %v9593_v27 = vld [vmem:[#allocation4 + $0x2ec] sm:$0xf]  ;;  %v6852_v11 = vor.u32 %v9581_v3, %v6849_v4  ;;  %v7153_v4 = vld [vmem:[#allocation4 + $0x4f8] sm:$0xf0] }
  0xb2   :  { %1768 = vmatpush.bf16.msra.mxu1 %v6976_v28  ;;  %v6897_v28 = vld [vmem:[#allocation4 + $0x2f8] sm:$0xf0] }
  0xb3   :  { %1781 = vmatpush.bf16.msra.mxu2 %v7104_v29  ;;  %v7168_v29 = vor.u32 %v9663_v13, %v7167_v12  ;;  %v6900_v36 = vor.u32 %v9593_v27, %v6897_v28  ;;  %v6577_v12 = vld [vmem:[#allocation4 + $0x78] sm:$0xf0]  ;;  %v9545_v13 = vld [vmem:[#allocation4 + $0x16c] sm:$0xf]  ;;  %v6836_v27 = vor.u32 %v9577_v15, %v6833_v16 }
  0xb4   :  { %1794 = vmatpush.bf16.msra.mxu3 %v7232_v33  ;;  %v7391_v33 = vld [vmem:[#allocation4 + $0x6c8] sm:$0xf]  ;;  %v6708_v23 = vor.u32 %v9545_v13, %v6705_v14  ;;  %v6561_v28 = vld [vmem:[#allocation4 + $0x58] sm:$0xf0] }
  0xb5   :  { %1756 = vmatpush.bf16.msra.mxu0 %v6832_v42  ;;  %v6753_v42 = vld [vmem:[#allocation4 + $0x1d8] sm:$0xf0]  ;;  %v7392_v45 = vor.u32 %v9719_v34, %v7391_v33 }
  0xb6   :  { %1769 = vmatpush.bf16.msra.mxu1 %v6960_v43  ;;  %v9589_v43 = vld [vmem:[#allocation4 + $0x2cc] sm:$0xf]  ;;  %v6756_v47 = vor.u32 %v9557_v39, %v6753_v42  ;;  %v9699_v39 = vld [vmem:[#allocation4 + $0x634] sm:$0xf0] }
  0xb7   :  { %1782 = vmatpush.bf16.msra.mxu2 %v7088_v44  ;;  %v6881_v44 = vld [vmem:[#allocation4 + $0x2d8] sm:$0xf0]  ;;  %v9505_v42 = vld [vmem:[#allocation4 + $0x2c] sm:$0xf]  ;;  %v7312_v50 = vor.u32 %v9699_v39, %v7311_v38 }
  0xb8   :  { %1795 = vmatpush.bf16.msra.mxu3 %v7216_v48  ;;  %v7375_v48 = vld [vmem:[#allocation4 + $0x6a8] sm:$0xf]  ;;  %v6884_v51 = vor.u32 %v9589_v43, %v6881_v44  ;;  %v6993_v38 = vld [vmem:[#allocation4 + $0x3b8] sm:$0xf0]  ;;  %v9649_v39 = vld [vmem:[#allocation4 + $0x4ac] sm:$0xf] }
  0xb9   :  { %1757 = vmatpush.bf16.msra.mxu0 %v6816_v54  ;;  %v6737_v54 = vld [vmem:[#allocation4 + $0x1b8] sm:$0xf0]  ;;  %v7376_v57 = vor.u32 %v9715_v49, %v7375_v48  ;;  %v9569_v48 = vld [vmem:[#allocation4 + $0x22c] sm:$0xf] }
  0xba   :  { %1770 = vmatpush.bf16.msra.mxu1 %v6944_v55  ;;  %v9585_v55 = vld [vmem:[#allocation4 + $0x2ac] sm:$0xf]  ;;  %v6740_v59 = vor.u32 %v9553_v53, %v6737_v54  ;;  %v6801_v49 = vld [vmem:[#allocation4 + $0x238] sm:$0xf0] }
  0xbb   :  { %1783 = vmatpush.bf16.msra.mxu2 %v7072_v56  ;;  %v6865_v56 = vld [vmem:[#allocation4 + $0x2b8] sm:$0xf0] }
  0xbc   :  { %1796 = vmatpush.bf16.msra.mxu3 %v7200_v60  ;;  %v7359_v60 = vld [vmem:[#allocation4 + $0x688] sm:$0xf]  ;;  %v6868_v63 = vor.u32 %v9585_v55, %v6865_v56  ;;  %v9501_v55 = vld [vmem:[#allocation4 + $0xc] sm:$0xf]  ;;  %v6529_v56 = vld [vmem:[#allocation4 + $0x18] sm:$0xf0] }
  0xbd   :  { %1758 = vmatpush.bf16.msra.mxu0 %v6800_v2  ;;  %v6721_v2 = vld [vmem:[#allocation4 + $0x198] sm:$0xf0] }
  0xbe   :  { %1771 = vmatpush.bf16.msra.mxu1 %v6928_v5  ;;  %v7360_v5 = vor.u32 %v9711_v61, %v7359_v60  ;;  %v6724_v7 = vor.u32 %v9549_v1, %v6721_v2  ;;  %v6657_v60 = vld [vmem:[#allocation4 + $0x118] sm:$0xf0]  ;;  %v9565_v61 = vld [vmem:[#allocation4 + $0x20c] sm:$0xf] }
  0xbf   :  { %1784 = vmatpush.bf16.msra.mxu2 %v7056_v6  ;;  %v6596_v6 = vor.u32 %v9517_v62, %v6593_v0  ;;  %v6785_v62 = vld [vmem:[#allocation4 + $0x218] sm:$0xf0]  ;;  %v9625_v0 = vld [vmem:[#allocation4 + $0x3ec] sm:$0xf] }
  0xc0   :  { %1797 = vmatpush.bf16.msra.mxu3 %v7184_v10  ;;  %v9513_v10 = vld [vmem:[#allocation4 + $0x6c] sm:$0xf]  ;;  %v7025_v1 = vld [vmem:[#allocation4 + $0x3f8] sm:$0xf0]  ;;  %v6788_v13 = vor.u32 %v9565_v61, %v6785_v62 }
  0xc1   :  { %1759 = vmatpush.bf16.msra.mxu0 %v6784_v17  ;;  %v7344_v17 = vor.u32 %v9707_v9, %v7343_v8  ;;  %v6580_v21 = vor.u32 %v9513_v10, %v6577_v12  ;;  %v9657_v2 = vld [vmem:[#allocation4 + $0x4ec] sm:$0xf]  ;;  %v6532_v8 = vor.u32 %v9501_v55, %v6529_v56  ;;  %v7028_v14 = vor.u32 %v9625_v0, %v7025_v1  ;;  %v7105_v56 = vld [vmem:[#allocation4 + $0x498] sm:$0xf0] }
  0xc2   :  { %1772 = vmatpush.bf16.msra.mxu1 %v6912_v25  ;;  %v9703_v25 = vld [vmem:[#allocation4 + $0x654] sm:$0xf0]  ;;  %v9721_v10 = vld [vmem:[#allocation4 + $0x6ec] sm:$0xf]  ;;  %v7156_v15 = vor.u32 %v9657_v2, %v7153_v4  ;;  %v6961_v2 = vld [vmem:[#allocation4 + $0x378] sm:$0xf0] }
  0xc3   :  { %1785 = vmatpush.bf16.msra.mxu2 %v7040_v26  ;;  %v9509_v26 = vld [vmem:[#allocation4 + $0x4c] sm:$0xf]  ;;  %v7328_v33 = vor.u32 %v9703_v25, %v7327_v24  ;;  %v7137_v25 = vld [vmem:[#allocation4 + $0x4d8] sm:$0xf0] }
  0xc4   :  { %1798 = vmatpush.bf16.msra.mxu3 %v7168_v29  ;;  %1760 = vmatmul.bf16.vlgmr.msra.gmra.mxu0 %v10626_v18  ;;  %v9541_v29 = vld [vmem:[#allocation4 + $0x14c] sm:$0xf]  ;;  %v6564_v35 = vor.u32 %v9509_v26, %v6561_v28 }
  0xc5   :  { %1804 = vmatpush.bf16.msrb.mxu0 %v7408_v30  ;;  %1773 = vmatmul.bf16.vlgmr.msra.gmra.mxu1 %v10630_v20  ;;  %v6689_v30 = vld [vmem:[#allocation4 + $0x158] sm:$0xf0]  ;;  %v9685_v26 = vld [vmem:[#allocation4 + $0x5cc] sm:$0xf] }
  0xc6   :  { %1817 = vmatpush.bf16.msrb.mxu1 %v6644_v31  ;;  %1786 = vmatmul.bf16.vlgmr.msra.gmra.mxu2 %v10646_v40  ;;  %v9573_v31 = vld [vmem:[#allocation4 + $0x24c] sm:$0xf] }
  0xc7   :  { %1830 = vmatpush.bf16.msrb.mxu2 %v6772_v32  ;;  %1799 = vmatmul.bf16.vlgmr.msra.gmra.mxu3 %v10648_v41  ;;  %v6817_v32 = vld [vmem:[#allocation4 + $0x258] sm:$0xf0]  ;;  %v9717_v28 = vld [vmem:[#allocation4 + $0x6cc] sm:$0xf] }
  0xc8   :  { %1843 = vmatpush.bf16.msrb.mxu3 %v6900_v36  ;;  %v6692_v36 = vor.u32 %v9541_v29, %v6689_v30  ;;  %v6820_v44 = vor.u32 %v9573_v31, %v6817_v32  ;;  %v7393_v29 = vld [vmem:[#allocation4 + $0x6d8] sm:$0xf0]  ;;  %v9609_v1 = vld [vmem:[#allocation4 + $0x36c] sm:$0xf] }
  0xc9   :  { %1805 = vmatpush.bf16.msrb.mxu0 %v7392_v45  ;;  %v6545_v45 = vld [vmem:[#allocation4 + $0x38] sm:$0xf0] }
  0xca   :  { %1818 = vmatpush.bf16.msrb.mxu1 %v6628_v46  ;;  %v9537_v46 = vld [vmem:[#allocation4 + $0x12c] sm:$0xf]  ;;  %v6548_v53 = vor.u32 %v9505_v42, %v6545_v45  ;;  %v7396_v42 = vor.u32 %v9717_v28, %v7393_v29  ;;  %v10689_v28 = vld [vmem:[%s11254_s4] sm:$0xf] }
  0xcb   :  { %1831 = vmatpush.bf16.msrb.mxu2 %v6756_v47  ;;  %v6673_v47 = vld [vmem:[#allocation4 + $0x138] sm:$0xf0]  ;;  %v9681_v45 = vld [vmem:[#allocation4 + $0x5ac] sm:$0xf] }
  0xcc   :  { %1844 = vmatpush.bf16.msrb.mxu3 %v6884_v51  ;;  %v7295_v51 = vld [vmem:[#allocation4 + $0x608] sm:$0xf]  ;;  %v6676_v54 = vor.u32 %v9537_v46, %v6673_v47  ;;  %v7249_v46 = vld [vmem:[#allocation4 + $0x5b8] sm:$0xf0]  ;;  %v9713_v47 = vld [vmem:[#allocation4 + $0x6ac] sm:$0xf] }
  0xcd   :  { %1806 = vmatpush.bf16.msrb.mxu0 %v7376_v57  ;;  %v10666_v34 = vpop.f32.mrf.mxu0  ;;  %v9533_v57 = vld [vmem:[#allocation4 + $0x10c] sm:$0xf]  ;;  %v7296_v3 = vor.u32 %v9695_v52, %v7295_v51  ;;  %v7252_v51 = vor.u32 %v9681_v45, %v7249_v46  ;;  %v7185_v45 = vld [vmem:[#allocation4 + $0x538] sm:$0xf0] }
  0xce   :  { %1819 = vmatpush.bf16.msrb.mxu1 %v6612_v58  ;;  %v10668_v43 = vpop.f32.mrf.mxu1  ;;  %v10670_v58 = vpop.f32.mrf.mxu2  ;;  %v6660_v9 = vor.u32 %v9533_v57, %v6657_v60  ;;  %v9613_v52 = vld [vmem:[#allocation4 + $0x38c] sm:$0xf]  ;;  %v7361_v60 = vld [vmem:[#allocation4 + $0x698] sm:$0xf0] }
  0xcf   :  { %1832 = vmatpush.bf16.msrb.mxu2 %v6740_v59  ;;  %v6804_v59 = vor.u32 %v9569_v48, %v6801_v49  ;;  %v7377_v48 = vld [vmem:[#allocation4 + $0x6b8] sm:$0xf0]  ;;  %v9677_v57 = vld [vmem:[#allocation4 + $0x58c] sm:$0xf] }
  0xd0   :  { %1845 = vmatpush.bf16.msrb.mxu3 %v6868_v63  ;;  %v10672_v63 = vpop.f32.mrf.mxu3  ;;  %v7380_v55 = vor.u32 %v9713_v47, %v7377_v48  ;;  %v9697_v46 = vld [vmem:[#allocation4 + $0x62c] sm:$0xf]  ;;  %v7313_v47 = vld [vmem:[#allocation4 + $0x638] sm:$0xf0]  ;;  %v391_v48 = vperm.slane %v10689_v28, 0 }
  0xd1   :  { %1807 = vmatpush.bf16.msrb.mxu0 %v7360_v5  ;;  %v9689_v5 = vld [vmem:[#allocation4 + $0x5ec] sm:$0xf] }
  0xd2   :  { %1820 = vmatpush.bf16.msrb.mxu1 %v6596_v6  ;;  %v7281_v6 = vld [vmem:[#allocation4 + $0x5f8] sm:$0xf0] }
  0xd3   :  { %1833 = vmatpush.bf16.msrb.mxu2 %v6724_v7  ;;  %v7284_v16 = vor.u32 %v9689_v5, %v7281_v6  ;;  %v7089_v5 = vld [vmem:[#allocation4 + $0x478] sm:$0xf0]  ;;  %v9673_v6 = vld [vmem:[#allocation4 + $0x56c] sm:$0xf] }
  0xd4   :  { %1846 = vmatpush.bf16.msrb.mxu3 %v6852_v11  ;;  %v7409_v11 = vld [vmem:[#allocation4 + $0x6f8] sm:$0xf0] }
  0xd5   :  { %1808 = vmatpush.bf16.msrb.mxu0 %v7344_v17  ;;  %v1555_v7 = vpop.f32.mrf.mxu0  ;;  %v9621_v17 = vld [vmem:[#allocation4 + $0x3cc] sm:$0xf]  ;;  %v7412_v24 = vor.u32 %v9721_v10, %v7409_v11  ;;  %v6964_v10 = vor.u32 %v9609_v1, %v6961_v2 }
  0xd6   :  { %1821 = vmatpush.bf16.msrb.mxu1 %v6580_v21  ;;  %v1568_v12 = vpop.f32.mrf.mxu1  ;;  %v7009_v21 = vld [vmem:[#allocation4 + $0x3d8] sm:$0xf0]  ;;  %v1581_v30 = vpop.f32.mrf.mxu2 }
  0xd7   :  { %1834 = vmatpush.bf16.msrb.mxu2 %v6708_v23  ;;  %v9653_v23 = vld [vmem:[#allocation4 + $0x4cc] sm:$0xf]  ;;  %v7012_v31 = vor.u32 %v9621_v17, %v7009_v21  ;;  %v7217_v7 = vld [vmem:[#allocation4 + $0x578] sm:$0xf0] }
  0xd8   :  { %1847 = vmatpush.bf16.msrb.mxu3 %v6836_v27  ;;  %v7265_v27 = vld [vmem:[#allocation4 + $0x5d8] sm:$0xf0]  ;;  %v1594_v32 = vpop.f32.mrf.mxu3  ;;  %v7220_v12 = vor.u32 %v9673_v6, %v7217_v7 }
  0xd9   :  { %1809 = vmatpush.bf16.msrb.mxu0 %v7328_v33  ;;  %v7140_v33 = vor.u32 %v9653_v23, %v7137_v25  ;;  %v7073_v21 = vld [vmem:[#allocation4 + $0x458] sm:$0xf0]  ;;  %v9669_v23 = vld [vmem:[#allocation4 + $0x54c] sm:$0xf] }
  0xda   :  { %1822 = vmatpush.bf16.msrb.mxu1 %v6564_v35  ;;  %v7268_v35 = vor.u32 %v9685_v26, %v7265_v27  ;;  %v9701_v25 = vld [vmem:[#allocation4 + $0x64c] sm:$0xf]  ;;  %v7329_v26 = vld [vmem:[#allocation4 + $0x658] sm:$0xf0] }
  0xdb   :  { %1835 = vmatpush.bf16.msrb.mxu2 %v6692_v36  ;;  %v9617_v36 = vld [vmem:[#allocation4 + $0x3ac] sm:$0xf] }
  0xdc   :  { %1848 = vmatpush.bf16.msrb.mxu3 %v6820_v44  ;;  %v7121_v44 = vld [vmem:[#allocation4 + $0x4b8] sm:$0xf0]  ;;  %v6996_v49 = vor.u32 %v9617_v36, %v6993_v38  ;;  %v9633_v38 = vld [vmem:[#allocation4 + $0x42c] sm:$0xf] }
  0xdd   :  { %1810 = vmatpush.bf16.msrb.mxu0 %v7312_v50  ;;  %v7124_v50 = vor.u32 %v9649_v39, %v7121_v44  ;;  %v6929_v36 = vld [vmem:[#allocation4 + $0x338] sm:$0xf0]  ;;  %v7332_v39 = vor.u32 %v9701_v25, %v7329_v26  ;;  %v9665_v44 = vld [vmem:[#allocation4 + $0x52c] sm:$0xf]  ;;  %v9751_v25 = vld [vmem:[#allocation6 + $0xd4] sm:$0xf0] }
  0xde   :  { %1823 = vmatpush.bf16.msrb.mxu1 %v6548_v53  ;;  %v6977_v53 = vld [vmem:[#allocation4 + $0x398] sm:$0xf0] }
  0xdf   :  { %1836 = vmatpush.bf16.msrb.mxu2 %v6676_v54  ;;  %v9645_v54 = vld [vmem:[#allocation4 + $0x48c] sm:$0xf] }
  0xe0   :  { %1849 = vmatpush.bf16.msrb.mxu3 %v6804_v59  ;;  %v9709_v59 = vld [vmem:[#allocation4 + $0x68c] sm:$0xf] }
  0xe1   :  { %1811 = vmatpush.bf16.msrb.mxu0 %v7296_v3  ;;  %v10678_v61 = vpop.f32.mrf.mxu0  ;;  %v9641_v3 = vld [vmem:[#allocation4 + $0x46c] sm:$0xf]  ;;  %v7364_v4 = vor.u32 %v9709_v59, %v7361_v60  ;;  %v7169_v59 = vld [vmem:[#allocation4 + $0x518] sm:$0xf0] }
  0xe2   :  { %1824 = vmatpush.bf16.msrb.mxu1 %v6532_v8  ;;  %v10680_v62 = vpop.f32.mrf.mxu1  ;;  %v9705_v8 = vld [vmem:[#allocation4 + $0x66c] sm:$0xf]  ;;  %v7092_v11 = vor.u32 %v9641_v3, %v7089_v5  ;;  %v7535_v3 = vld [vmem:[#allocation6 + $0xf0] sm:$0xf] }
  0xe3   :  { %1837 = vmatpush.bf16.msrb.mxu2 %v6660_v9  ;;  %v7345_v9 = vld [vmem:[#allocation4 + $0x678] sm:$0xf0]  ;;  %v9693_v60 = vld [vmem:[#allocation4 + $0x60c] sm:$0xf] }
  0xe4   :  { %1850 = vmatpush.bf16.msrb.mxu3 %v6788_v13  ;;  %1812 = vmatmul.bf16.vlgmr.msrb.gmra.mxu0 %v10644_v37  ;;  %v9605_v13 = vld [vmem:[#allocation4 + $0x34c] sm:$0xf]  ;;  %v7348_v17 = vor.u32 %v9705_v8, %v7345_v9  ;;  %v1554_v9 = vadd.f32 %v10666_v34, %v391_v48  ;;  %v7519_v34 = vld [vmem:[#allocation6 + $0xd0] sm:$0xf] }
  0xe5   :  { %1856 = vmatpush.bf16.msra.mxu0 %v7028_v14  ;;  %1825 = vmatmul.bf16.vlgmr.msrb.gmra.mxu1 %v10628_v19  ;;  %v7108_v19 = vor.u32 %v9645_v54, %v7105_v56  ;;  %v6945_v14 = vld [vmem:[#allocation4 + $0x358] sm:$0xf0]  ;;  %v9629_v54 = vld [vmem:[#allocation4 + $0x40c] sm:$0xf] }
  0xe6   :  { %1869 = vmatpush.bf16.msra.mxu1 %v7156_v15  ;;  %1838 = vmatmul.bf16.vlgmr.msrb.gmra.mxu2 %v10632_v22  ;;  %v7233_v22 = vld [vmem:[#allocation4 + $0x598] sm:$0xf0]  ;;  %v9637_v15 = vld [vmem:[#allocation4 + $0x44c] sm:$0xf]  ;;  %v6948_v29 = vor.u32 %v9605_v13, %v6945_v14  ;;  %v7527_v13 = vld [vmem:[#allocation6 + $0xe0] sm:$0xf] }
  0xe7   :  { %1882 = vmatpush.bf16.msra.mxu2 %v7284_v16  ;;  %1851 = vmatmul.bf16.vlgmr.msrb.gmra.mxu3 %v10626_v18  ;;  %v6980_v18 = vor.u32 %v9613_v52, %v6977_v53  ;;  %v7236_v0 = vor.u32 %v9677_v57, %v7233_v22  ;;  %v7076_v32 = vor.u32 %v9637_v15, %v7073_v21  ;;  %v6913_v53 = vld [vmem:[#allocation4 + $0x318] sm:$0xf0]  ;;  %v9661_v22 = vld [vmem:[#allocation4 + $0x50c] sm:$0xf]  ;;  %v9753_v14 = vld [vmem:[#allocation6 + $0xe4] sm:$0xf0] }
  0xe8   :  { %1895 = vmatpush.bf16.msra.mxu3 %v7412_v24  ;;  %v7201_v24 = vld [vmem:[#allocation4 + $0x558] sm:$0xf0]  ;;  %v7188_v52 = vor.u32 %v9665_v44, %v7185_v45  ;;  %v7316_v57 = vor.u32 %v9697_v46, %v7313_v47  ;;  %v7172_v6 = vor.u32 %v9661_v22, %v7169_v59  ;;  %v7455_v21 = vld [vmem:[#allocation6 + $0x50] sm:$0xf]  ;;  %v7431_v45 = vld [vmem:[#allocation6 + $0x20] sm:$0xf] }
  0xe9   :  { %1857 = vmatpush.bf16.msra.mxu0 %v7012_v31  ;;  %v10682_v16 = vpop.f32.mrf.mxu2  ;;  %v1607_v30 = vpop.f32.mrf.mxu0  ;;  %v9729_v46 = vld [vmem:[#allocation6 + $0x24] sm:$0xf0]  ;;  %v7487_v22 = vld [vmem:[#allocation6 + $0x90] sm:$0xf]  ;;  %v9743_v59 = vld [vmem:[#allocation6 + $0x94] sm:$0xf0] }
  0xea   :  { %1870 = vmatpush.bf16.msra.mxu1 %v7140_v33  ;;  %v10684_v27 = vpop.f32.mrf.mxu3  ;;  %v1620_v31 = vpop.f32.mrf.mxu1  ;;  %v7204_v33 = vor.u32 %v9669_v23, %v7201_v24  ;;  %v9735_v23 = vld [vmem:[#allocation6 + $0x54] sm:$0xf0]  ;;  %v7528_v24 = vor.u32 %v9753_v14, %v7527_v13  ;;  %v9733_v30 = vld [vmem:[#allocation6 + $0x44] sm:$0xf0]  ;;  %v7465_v14 = vld [vmem:[#allocation6 + $0x68] sm:$0xf0] }
  0xeb   :  { %1883 = vmatpush.bf16.msra.mxu2 %v7268_v35  ;;  %v9601_v35 = vld [vmem:[#allocation4 + $0x32c] sm:$0xf]  ;;  %v7456_v26 = vor.u32 %v9735_v23, %v7455_v21  ;;  %v7511_v31 = vld [vmem:[#allocation6 + $0xc0] sm:$0xf]  ;;  %v7599_v23 = vld [vmem:[#allocation6 + $0x170] sm:$0xf] }
  0xec   :  { %1896 = vmatpush.bf16.msra.mxu3 %v7396_v42  ;;  %v7057_v42 = vld [vmem:[#allocation4 + $0x438] sm:$0xf0]  ;;  %v7529_v21 = vld [vmem:[#allocation6 + $0xe8] sm:$0xf0] }
  0xed   :  { %1858 = vmatpush.bf16.msra.mxu0 %v6996_v49  ;;  %v6932_v49 = vor.u32 %v9601_v35, %v6929_v36  ;;  %v9731_v36 = vld [vmem:[#allocation6 + $0x34] sm:$0xf0] }
  0xee   :  { %1871 = vmatpush.bf16.msra.mxu1 %v7124_v50  ;;  %v9597_v50 = vld [vmem:[#allocation4 + $0x30c] sm:$0xf] }
  0xef   :  { %1884 = vmatpush.bf16.msra.mxu2 %v7252_v51  ;;  %v7060_v51 = vor.u32 %v9633_v38, %v7057_v42  ;;  %v6916_v2 = vor.u32 %v9597_v50, %v6913_v53  ;;  %v9747_v42 = vld [vmem:[#allocation6 + $0xb4] sm:$0xf0]  ;;  %v9745_v50 = vld [vmem:[#allocation6 + $0xa4] sm:$0xf0] }
  0xf0   :  { %1897 = vmatpush.bf16.msra.mxu3 %v7380_v55  ;;  %v7041_v55 = vld [vmem:[#allocation4 + $0x418] sm:$0xf0] }
  0xf1   :  { %1859 = vmatpush.bf16.msra.mxu0 %v6980_v18  ;;  %v1633_v56 = vpop.f32.mrf.mxu2  ;;  %v7297_v18 = vld [vmem:[#allocation4 + $0x618] sm:$0xf0]  ;;  %v7044_v5 = vor.u32 %v9629_v54, %v7041_v55  ;;  %v7423_v55 = vld [vmem:[#allocation6 + $0x10] sm:$0xf] }
  0xf2   :  { %1872 = vmatpush.bf16.msra.mxu1 %v7108_v19  ;;  %v7471_v19 = vld [vmem:[#allocation6 + $0x70] sm:$0xf]  ;;  %v1646_v1 = vpop.f32.mrf.mxu3  ;;  %v7300_v7 = vor.u32 %v9693_v60, %v7297_v18 }
  0xf3   :  { %1885 = vmatpush.bf16.msra.mxu2 %v7236_v0  ;;  %v9739_v0 = vld [vmem:[#allocation6 + $0x74] sm:$0xf0]  ;;  %v9725_v1 = vld [vmem:[#allocation6 + $0x4] sm:$0xf0] }
  0xf4   :  { %1898 = vmatpush.bf16.msra.mxu3 %v7364_v4  ;;  %v9755_v4 = vld [vmem:[#allocation6 + $0xf4] sm:$0xf0]  ;;  %v7472_v8 = vor.u32 %v9739_v0, %v7471_v19  ;;  %v7415_v0 = vld [vmem:[#allocation6] sm:$0xf] }
  0xf5   :  { %1860 = vmatpush.bf16.msra.mxu0 %v6964_v10  ;;  %v7463_v10 = vld [vmem:[#allocation6 + $0x60] sm:$0xf] }
  0xf6   :  { %1873 = vmatpush.bf16.msra.mxu1 %v7092_v11  ;;  %v9737_v11 = vld [vmem:[#allocation6 + $0x64] sm:$0xf0] }
  0xf7   :  { %1886 = vmatpush.bf16.msra.mxu2 %v7220_v12  ;;  %v7536_v12 = vor.u32 %v9755_v4, %v7535_v3  ;;  %v7464_v15 = vor.u32 %v9737_v11, %v7463_v10  ;;  %v9738_v3 = vld [vmem:[#allocation6 + $0x74] sm:$0xf]  ;;  %v7416_v11 = vor.u32 %v9725_v1, %v7415_v0  ;;  %v7433_v1 = vld [vmem:[#allocation6 + $0x28] sm:$0xf0] }
  0xf8   :  { %1899 = vmatpush.bf16.msra.mxu3 %v7348_v17  ;;  %v1567_v17 = vadd.f32 %v10668_v43, %v1554_v9  ;;  %v7447_v43 = vld [vmem:[#allocation6 + $0x40] sm:$0xf]  ;;  %v7537_v9 = vld [vmem:[#allocation6 + $0xf8] sm:$0xf0] }
  0xf9   :  { %1861 = vmatpush.bf16.msra.mxu0 %v6948_v29 }
  0xfa   :  { %1874 = vmatpush.bf16.msra.mxu1 %v7076_v32  ;;  %v1580_v29 = vadd.f32 %v10670_v58, %v1567_v17  ;;  %v9749_v32 = vld [vmem:[#allocation6 + $0xc4] sm:$0xf0]  ;;  %v9752_v17 = vld [vmem:[#allocation6 + $0xe4] sm:$0xf] }
  0xfb   :  { %1887 = vmatpush.bf16.msra.mxu2 %v7204_v33  ;;  %v7448_v33 = vor.u32 %v9733_v30, %v7447_v43  ;;  %v7512_v38 = vor.u32 %v9749_v32, %v7511_v31  ;;  %v7591_v43 = vld [vmem:[#allocation6 + $0x160] sm:$0xf]  ;;  %v9769_v30 = vld [vmem:[#allocation6 + $0x164] sm:$0xf0]  ;;  %v7457_v31 = vld [vmem:[#allocation6 + $0x58] sm:$0xf0]  ;;  %v7532_v32 = vor.u32 %v9752_v17, %v7529_v21 }
  0xfc   :  { %1900 = vmatpush.bf16.msra.mxu3 %v7332_v39  ;;  %v7503_v39 = vld [vmem:[#allocation6 + $0xb0] sm:$0xf]  ;;  %v9759_v17 = vld [vmem:[#allocation6 + $0x114] sm:$0xf0]  ;;  %v9742_v21 = vld [vmem:[#allocation6 + $0x94] sm:$0xf] }
  0xfd   :  { %1862 = vmatpush.bf16.msra.mxu0 %v6932_v49  ;;  %v7504_v47 = vor.u32 %v9747_v42, %v7503_v39  ;;  %v9732_v39 = vld [vmem:[#allocation6 + $0x44] sm:$0xf]  ;;  %v7449_v42 = vld [vmem:[#allocation6 + $0x48] sm:$0xf0] }
  0xfe   :  { %1875 = vmatpush.bf16.msra.mxu1 %v7060_v51  ;;  %v392_v51 = vperm.slane %v10689_v28, 1 }
  0xff   :  { %1888 = vmatpush.bf16.msra.mxu2 %v7188_v52  ;;  %v7432_v52 = vor.u32 %v9729_v46, %v7431_v45  ;;  %v7513_v46 = vld [vmem:[#allocation6 + $0xc8] sm:$0xf0] }
 0x100   :  { %1901 = vmatpush.bf16.msra.mxu3 %v7316_v57  ;;  %v1645_v60 = vadd.f32 %v10684_v27, %v392_v51 }
 0x101   :  { %1863 = vmatpush.bf16.msra.mxu0 %v6916_v2  ;;  %v1657_v35 = vpop.f32.mrf.mxu0  ;;  %v7488_v2 = vor.u32 %v9743_v59, %v7487_v22  ;;  %v9763_v22 = vld [vmem:[#allocation6 + $0x134] sm:$0xf0] }
 0x102   :  { %1876 = vmatpush.bf16.msra.mxu1 %v7044_v5  ;;  %v7479_v5 = vld [vmem:[#allocation6 + $0x80] sm:$0xf]  ;;  %v1658_v10 = vadd.f32 %v1657_v35, %v1645_v60  ;;  %v7592_v35 = vor.u32 %v9769_v30, %v7591_v43  ;;  %v9746_v60 = vld [vmem:[#allocation6 + $0xb4] sm:$0xf]  ;;  %v9740_v30 = vld [vmem:[#allocation6 + $0x84] sm:$0xf] }
 0x103   :  { %1889 = vmatpush.bf16.msra.mxu2 %v7172_v6  ;;  %v9741_v6 = vld [vmem:[#allocation6 + $0x84] sm:$0xf0] }
 0x104   :  { %1902 = vmatpush.bf16.msra.mxu3 %v7300_v7  ;;  %1864 = vmatmul.bf16.vlgmr.msra.gmra.mxu0 %v10630_v20  ;;  %v7520_v20 = vor.u32 %v9751_v25, %v7519_v34  ;;  %v7480_v13 = vor.u32 %v9741_v6, %v7479_v5  ;;  %v9744_v6 = vld [vmem:[#allocation6 + $0xa4] sm:$0xf] }
 0x105   :  { %2306 = vmatpush.bf16.msrb.mxu0 %v7472_v8  ;;  %1877 = vmatmul.bf16.vlgmr.msra.gmra.mxu1 %v10646_v40  ;;  %v1593_v40 = vadd.f32 %v10672_v63, %v1580_v29  ;;  %v7495_v63 = vld [vmem:[#allocation6 + $0xa0] sm:$0xf]  ;;  %v9754_v8 = vld [vmem:[#allocation6 + $0xf4] sm:$0xf] }
 0x106   :  { %2319 = vmatpush.bf16.msrb.mxu1 %v7536_v12  ;;  %1890 = vmatmul.bf16.vlgmr.msra.gmra.mxu2 %v10648_v41  ;;  %v7439_v41 = vld [vmem:[#allocation6 + $0x30] sm:$0xf]  ;;  %v7496_v56 = vor.u32 %v9745_v50, %v7495_v63  ;;  %v9765_v63 = vld [vmem:[#allocation6 + $0x144] sm:$0xf0] }
 0x107   :  { %1903 = vmatmul.bf16.vlgmr.msra.gmra.mxu3 %v10644_v37  ;;  %v1670_v37 = vpop.f32.mrf.mxu1  ;;  %v7440_v58 = vor.u32 %v9731_v36, %v7439_v41  ;;  %v1606_v44 = vadd.f32 %v10678_v61, %v1593_v40  ;;  %v9727_v61 = vld [vmem:[#allocation6 + $0x14] sm:$0xf0]  ;;  %v7521_v40 = vld [vmem:[#allocation6 + $0xd8] sm:$0xf0]  ;;  %v7583_v41 = vld [vmem:[#allocation6 + $0x150] sm:$0xf] }
 0x108   :  { %v7424_v18 = vor.u32 %v9727_v61, %v7423_v55  ;;  %v1671_v34 = vadd.f32 %v1670_v37, %v1658_v10  ;;  %v9767_v36 = vld [vmem:[#allocation6 + $0x154] sm:$0xf0]  ;;  %v7441_v55 = vld [vmem:[#allocation6 + $0x38] sm:$0xf0] }
 0x109   :  { %2307 = vmatpush.bf16.msrb.mxu0 %v7464_v15  ;;  %v10701_v48 = vpop.f32.mrf.mxu2  ;;  %v1659_v53 = vpop.f32.mrf.mxu0  ;;  %v1619_v54 = vadd.f32 %v10680_v62, %v1606_v44  ;;  %v7473_v62 = vld [vmem:[#allocation6 + $0x78] sm:$0xf0]  ;;  %v7540_v15 = vor.u32 %v9754_v8, %v7537_v9  ;;  %v9748_v44 = vld [vmem:[#allocation6 + $0xc4] sm:$0xf]  ;;  %v7584_v45 = vor.u32 %v9767_v36, %v7583_v41 }
 0x10a   :  { %2320 = vmatpush.bf16.msrb.mxu1 %v7528_v24  ;;  %v10703_v49 = vpop.f32.mrf.mxu3  ;;  %v7476_v12 = vor.u32 %v9738_v3, %v7473_v62  ;;  %v9771_v24 = vld [vmem:[#allocation6 + $0x174] sm:$0xf0]  ;;  %v7516_v61 = vor.u32 %v9748_v44, %v7513_v46  ;;  %v9761_v62 = vld [vmem:[#allocation6 + $0x124] sm:$0xf0] }
 0x10b   :  { %v1632_v19 = vadd.f32 %v10682_v16, %v1619_v54  ;;  %v9736_v16 = vld [vmem:[#allocation6 + $0x64] sm:$0xf]  ;;  %v7600_v25 = vor.u32 %v9771_v24, %v7599_v23  ;;  %v7489_v23 = vld [vmem:[#allocation6 + $0x98] sm:$0xf0]  ;;  %v9787_v46 = vld [vmem:[#allocation6 + $0x1f4] sm:$0xf0] }
 0x10c   :  { %v7468_v29 = vor.u32 %v9736_v16, %v7465_v14  ;;  %v7492_v43 = vor.u32 %v9742_v21, %v7489_v23  ;;  %v7623_v21 = vld [vmem:[#allocation6 + $0x1a0] sm:$0xf]  ;;  %v9777_v23 = vld [vmem:[#allocation6 + $0x1a4] sm:$0xf0] }
 0x10d   :  { %2308 = vmatpush.bf16.msrb.mxu0 %v7456_v26  ;;  %v1908_v27 = vmax.f32 %v1632_v19, 0.0  ;;  %2332 = vmatpush.bf16.msrb.mxu2 %v7600_v25  ;;  %v7417_v25 = vld [vmem:[#allocation6 + $0x8] sm:$0xf0] }
 0x10e   :  { %2321 = vmatpush.bf16.msrb.mxu1 %v7520_v20  ;;  %v9734_v20 = vld [vmem:[#allocation6 + $0x54] sm:$0xf] }
 0x10f   :  { %v1672_v57 = vpop.f32.mrf.mxu1  ;;  %v10709_v26 = vpack.c.bf16 %v1908_v27, %v1908_v27  ;;  %v7460_v37 = vor.u32 %v9734_v20, %v7457_v31  ;;  %v9726_v27 = vld [vmem:[#allocation6 + $0x14] sm:$0xf]  ;;  %v7543_v20 = vld [vmem:[#allocation6 + $0x100] sm:$0xf]  ;;  %v9757_v31 = vld [vmem:[#allocation6 + $0x104] sm:$0xf0] }
 0x110   :  { %v7567_v57 = vld [vmem:[#allocation6 + $0x130] sm:$0xf] }
 0x111   :  { %2309 = vmatpush.bf16.msrb.mxu0 %v7448_v33  ;;  %v1685_v4 = vpop.f32.mrf.mxu2  ;;  %v9750_v33 = vld [vmem:[#allocation6 + $0xd4] sm:$0xf]  ;;  %2333 = vmatpush.bf16.msrb.mxu2 %v7592_v35 }
 0x112   :  { %2322 = vmatpush.bf16.msrb.mxu1 %v7512_v38  ;;  %v1698_v7 = vpop.f32.mrf.mxu3  ;;  %v1684_v38 = vadd.f32 %v10701_v48, %v1671_v34  ;;  %v9730_v48 = vld [vmem:[#allocation6 + $0x34] sm:$0xf]  ;;  %v7559_v4 = vld [vmem:[#allocation6 + $0x120] sm:$0xf]  ;;  %v9724_v34 = vld [vmem:[#allocation6 + $0x4] sm:$0xf] }
 0x113   :  { %v7444_v19 = vor.u32 %v9730_v48, %v7441_v55  ;;  %v7497_v7 = vld [vmem:[#allocation6 + $0xa8] sm:$0xf0]  ;;  %v7560_v16 = vor.u32 %v9761_v62, %v7559_v4  ;;  %v9770_v35 = vld [vmem:[#allocation6 + $0x174] sm:$0xf]  ;;  %v7420_v41 = vor.u32 %v9724_v34, %v7417_v25  ;;  %v9764_v48 = vld [vmem:[#allocation6 + $0x144] sm:$0xf] }
 0x114   :  { %v1697_v50 = vadd.f32 %v10703_v49, %v1684_v38  ;;  %v9728_v49 = vld [vmem:[#allocation6 + $0x24] sm:$0xf]  ;;  %v7500_v14 = vor.u32 %v9744_v6, %v7497_v7  ;;  %v7544_v38 = vor.u32 %v9757_v31, %v7543_v20  ;;  %v7561_v62 = vld [vmem:[#allocation6 + $0x128] sm:$0xf0]  ;;  %v7615_v31 = vld [vmem:[#allocation6 + $0x190] sm:$0xf] }
 0x115   :  { %2310 = vmatpush.bf16.msrb.mxu0 %v7440_v58  ;;  %v7524_v58 = vor.u32 %v9750_v33, %v7521_v40  ;;  %2334 = vmatpush.bf16.msrb.mxu2 %v7584_v45  ;;  %v7436_v9 = vor.u32 %v9728_v49, %v7433_v1  ;;  %v7601_v40 = vld [vmem:[#allocation6 + $0x178] sm:$0xf0]  ;;  %v7663_v45 = vld [vmem:[#allocation6 + $0x1f0] sm:$0xf]  ;;  %v7639_v49 = vld [vmem:[#allocation6 + $0x1c0] sm:$0xf] }
 0x116   :  { %2323 = vmatpush.bf16.msrb.mxu1 %v7504_v47  ;;  %v7575_v47 = vld [vmem:[#allocation6 + $0x140] sm:$0xf]  ;;  %v9760_v4 = vld [vmem:[#allocation6 + $0x124] sm:$0xf]  ;;  %v7545_v25 = vld [vmem:[#allocation6 + $0x108] sm:$0xf0] }
 0x117   :  { %v9756_v34 = vld [vmem:[#allocation6 + $0x104] sm:$0xf] }
 0x119   :  { %2311 = vmatpush.bf16.msrb.mxu0 %v7432_v52  ;;  %v7452_v52 = vor.u32 %v9732_v39, %v7449_v42  ;;  %v7604_v39 = vor.u32 %v9770_v35, %v7601_v40  ;;  %v9768_v42 = vld [vmem:[#allocation6 + $0x164] sm:$0xf]  ;;  %v9773_v35 = vld [vmem:[#allocation6 + $0x184] sm:$0xf0] }
 0x11a   :  { %2324 = vmatpush.bf16.msrb.mxu1 %v7496_v56  ;;  %v7576_v56 = vor.u32 %v9765_v63, %v7575_v47  ;;  %v9766_v47 = vld [vmem:[#allocation6 + $0x154] sm:$0xf]  ;;  %v7664_v63 = vor.u32 %v9787_v46, %v7663_v45 }
 0x11c   :  { %2335 = vmatpush.bf16.msrb.mxu2 %v7576_v56  ;;  %2345 = vmatpush.bf16.msrb.mxu3 %v7664_v63  ;;  %v7577_v56 = vld [vmem:[#allocation6 + $0x148] sm:$0xf0] }
 0x11d   :  { %2312 = vmatpush.bf16.msrb.mxu0 %v7424_v18  ;;  %v7505_v18 = vld [vmem:[#allocation6 + $0xb8] sm:$0xf0] }
 0x11e   :  { %2325 = vmatpush.bf16.msrb.mxu1 %v7488_v2  ;;  %v7568_v2 = vor.u32 %v9763_v22, %v7567_v57  ;;  %v7508_v3 = vor.u32 %v9746_v60, %v7505_v18  ;;  %v7580_v57 = vor.u32 %v9764_v48, %v7577_v56  ;;  %v7647_v22 = vld [vmem:[#allocation6 + $0x1d0] sm:$0xf]  ;;  %v9762_v60 = vld [vmem:[#allocation6 + $0x134] sm:$0xf]  ;;  %v7641_v56 = vld [vmem:[#allocation6 + $0x1c8] sm:$0xf0] }
 0x120   :  { %2336 = vmatpush.bf16.msrb.mxu2 %v7568_v2 }
 0x121   :  { %2313 = vmatpush.bf16.msrb.mxu0 %v7416_v11  ;;  %v1709_v51 = vpop.f32.mrf.mxu0 }
 0x122   :  { %2326 = vmatpush.bf16.msrb.mxu1 %v7480_v13  ;;  %v1710_v53 = vadd.f32 %v1709_v51, %v1697_v50  ;;  %v1722_v54 = vpop.f32.mrf.mxu1  ;;  %v7585_v50 = vld [vmem:[#allocation6 + $0x158] sm:$0xf0] }
 0x123   :  { %v7588_v51 = vor.u32 %v9766_v47, %v7585_v50  ;;  %v9782_v50 = vld [vmem:[#allocation6 + $0x1d4] sm:$0xf] }
 0x124   :  { %2314 = vmatmul.bf16.vlgmr.msrb.gmra.mxu0 %v10709_v26  ;;  %v1723_v59 = vadd.f32 %v1722_v54, %v1710_v53  ;;  %2337 = vmatpush.bf16.msrb.mxu2 %v7560_v16  ;;  %v7655_v53 = vld [vmem:[#allocation6 + $0x1e0] sm:$0xf]  ;;  %v9785_v54 = vld [vmem:[#allocation6 + $0x1e4] sm:$0xf0]  ;;  %v7553_v16 = vld [vmem:[#allocation6 + $0x118] sm:$0xf0] }
 0x125   :  { %2358 = vmatpush.bf16.msra.mxu0 %v7476_v12  ;;  %v7425_v12 = vld [vmem:[#allocation6 + $0x18] sm:$0xf0] }
 0x126   :  { %2371 = vmatpush.bf16.msra.mxu1 %v7540_v15  ;;  %v1909_v0 = vmax.f32 %v1723_v59, 0.0  ;;  %v7551_v15 = vld [vmem:[#allocation6 + $0x110] sm:$0xf]  ;;  %v7428_v24 = vor.u32 %v9726_v27, %v7425_v12  ;;  %v9783_v59 = vld [vmem:[#allocation6 + $0x1d4] sm:$0xf0] }
 0x127   :  { %v9779_v27 = vld [vmem:[#allocation6 + $0x1b4] sm:$0xf0] }
 0x128   :  { %v1913_v5 = vpack.c.bf16 %v1909_v0, %v1909_v0  ;;  %v7569_v0 = vld [vmem:[#allocation6 + $0x138] sm:$0xf0] }
 0x129   :  { %2359 = vmatpush.bf16.msra.mxu0 %v7468_v29  ;;  %v10714_v8 = vpop.f32.mrf.mxu2  ;;  %v1711_v11 = vpop.f32.mrf.mxu0  ;;  %v7552_v29 = vor.u32 %v9759_v17, %v7551_v15  ;;  %v7572_v2 = vor.u32 %v9762_v60, %v7569_v0 }
 0x12a   :  { %2372 = vmatpush.bf16.msra.mxu1 %v7532_v32  ;;  %v10716_v10 = vpop.f32.mrf.mxu3  ;;  %v1724_v13 = vpop.f32.mrf.mxu1  ;;  %v7481_v32 = vld [vmem:[#allocation6 + $0x88] sm:$0xf0]  ;;  %v7631_v11 = vld [vmem:[#allocation6 + $0x1b0] sm:$0xf] }
 0x12b   :  { %2327 = vmatmul.bf16.vlgmr.msrb.gmra.mxu1 %v1913_v5  ;;  %2338 = vmatpush.bf16.msrb.mxu2 %v7552_v29  ;;  %v9758_v13 = vld [vmem:[#allocation6 + $0x114] sm:$0xf]  ;;  %v7624_v29 = vor.u32 %v9777_v23, %v7623_v21 }
 0x12c   :  { %v7556_v17 = vor.u32 %v9758_v13, %v7553_v16 }
 0x12d   :  { %2360 = vmatpush.bf16.msra.mxu0 %v7460_v37  ;;  %v7484_v37 = vor.u32 %v9740_v30, %v7481_v32  ;;  %v7548_v30 = vor.u32 %v9756_v34, %v7545_v25  ;;  %v9775_v32 = vld [vmem:[#allocation6 + $0x194] sm:$0xf0] }
 0x12e   :  { %2373 = vmatpush.bf16.msra.mxu1 %v7524_v58  ;;  %v7593_v58 = vld [vmem:[#allocation6 + $0x168] sm:$0xf0] }
 0x12f   :  { %2339 = vmatpush.bf16.msrb.mxu2 %v7544_v38  ;;  %v7596_v44 = vor.u32 %v9768_v42, %v7593_v58  ;;  %v7665_v38 = vld [vmem:[#allocation6 + $0x1f8] sm:$0xf0]  ;;  %v9784_v58 = vld [vmem:[#allocation6 + $0x1e4] sm:$0xf] }
 0x131   :  { %2361 = vmatpush.bf16.msra.mxu0 %v7452_v52  ;;  %v1737_v33 = vpop.f32.mrf.mxu2 }
 0x132   :  { %2374 = vmatpush.bf16.msra.mxu1 %v7516_v61  ;;  %v1750_v36 = vpop.f32.mrf.mxu3  ;;  %v7656_v61 = vor.u32 %v9785_v54, %v7655_v53  ;;  %v7607_v33 = vld [vmem:[#allocation6 + $0x180] sm:$0xf] }
 0x133   :  { %2384 = vmatpush.bf16.msra.mxu2 %v7604_v39  ;;  %v7608_v40 = vor.u32 %v9773_v35, %v7607_v33  ;;  %v9786_v36 = vld [vmem:[#allocation6 + $0x1f4] sm:$0xf] }
 0x134   :  { %2346 = vmatpush.bf16.msrb.mxu3 %v7656_v61  ;;  %v9780_v61 = vld [vmem:[#allocation6 + $0x1c4] sm:$0xf] }
 0x135   :  { %2362 = vmatpush.bf16.msra.mxu0 %v7444_v19  ;;  %v7648_v19 = vor.u32 %v9783_v59, %v7647_v22  ;;  %v9778_v22 = vld [vmem:[#allocation6 + $0x1b4] sm:$0xf]  ;;  %v7633_v59 = vld [vmem:[#allocation6 + $0x1b8] sm:$0xf0] }
 0x136   :  { %2375 = vmatpush.bf16.msra.mxu1 %v7508_v3  ;;  %v9781_v3 = vld [vmem:[#allocation6 + $0x1c4] sm:$0xf0]  ;;  %v7636_v60 = vor.u32 %v9778_v22, %v7633_v59 }
 0x137   :  { %2385 = vmatpush.bf16.msra.mxu2 %v7596_v44  ;;  %v7657_v44 = vld [vmem:[#allocation6 + $0x1e8] sm:$0xf0]  ;;  %v7851_v22 = vld [vmem:[#allocation7 + $0x168] sm:$0xf] }
 0x138   :  { %2347 = vmatpush.bf16.msrb.mxu3 %v7648_v19  ;;  %v7660_v46 = vor.u32 %v9784_v58, %v7657_v44  ;;  %v7625_v19 = vld [vmem:[#allocation6 + $0x1a8] sm:$0xf0]  ;;  %v7755_v58 = vld [vmem:[#allocation7 + $0xa8] sm:$0xf]  ;;  %v9810_v44 = vld [vmem:[#allocation7 + $0xb0] sm:$0xf0] }
 0x139   :  { %2363 = vmatpush.bf16.msra.mxu0 %v7436_v9  ;;  %v7564_v9 = vor.u32 %v9760_v4, %v7561_v62  ;;  %v394_v4 = vperm.slane %v10689_v28, 3 }
 0x13a   :  { %2376 = vmatpush.bf16.msra.mxu1 %v7500_v14  ;;  %v7632_v14 = vor.u32 %v9779_v27, %v7631_v11 }
 0x13b   :  { %2386 = vmatpush.bf16.msra.mxu2 %v7588_v51  ;;  %v7649_v51 = vld [vmem:[#allocation6 + $0x1d8] sm:$0xf0] }
 0x13c   :  { %v7652_v53 = vor.u32 %v9782_v50, %v7649_v51  ;;  %v7731_v50 = vld [vmem:[#allocation7 + $0x78] sm:$0xf]  ;;  %v9804_v51 = vld [vmem:[#allocation7 + $0x80] sm:$0xf0] }
 0x13d   :  { %2364 = vmatpush.bf16.msra.mxu0 %v7428_v24 }
 0x13e   :  { %2377 = vmatpush.bf16.msra.mxu1 %v7492_v43 }
 0x13f   :  { %2387 = vmatpush.bf16.msra.mxu2 %v7580_v57  ;;  %v7644_v57 = vor.u32 %v9780_v61, %v7641_v56 }
 0x141   :  { %2365 = vmatpush.bf16.msra.mxu0 %v7420_v41  ;;  %v1761_v52 = vpop.f32.mrf.mxu0 }
 0x142   :  { %2378 = vmatpush.bf16.msra.mxu1 %v7484_v37  ;;  %v1774_v55 = vpop.f32.mrf.mxu1  ;;  %v7668_v37 = vor.u32 %v9786_v36, %v7665_v38 }
 0x143   :  { %2388 = vmatpush.bf16.msra.mxu2 %v7572_v2  ;;  %v9774_v2 = vld [vmem:[#allocation6 + $0x194] sm:$0xf] }
 0x144   :  { %2366 = vmatmul.bf16.vlgmr.msra.gmra.mxu0 %v10709_v26  ;;  %v393_v26 = vperm.slane %v10689_v28, 2 }
 0x145   :  { %2379 = vmatmul.bf16.vlgmr.msra.gmra.mxu1 %v1913_v5  ;;  %v7640_v5 = vor.u32 %v9781_v3, %v7639_v49  ;;  %v7617_v3 = vld [vmem:[#allocation6 + $0x198] sm:$0xf0] }
 0x146   :  { %v1736_v6 = vadd.f32 %v10714_v8, %v393_v26  ;;  %v7620_v62 = vor.u32 %v9774_v2, %v7617_v3  ;;  %v9795_v2 = vld [vmem:[#allocation7 + $0x38] sm:$0xf0]  ;;  %v7839_v3 = vld [vmem:[#allocation7 + $0x150] sm:$0xf] }
 0x147   :  { %2348 = vmatpush.bf16.msrb.mxu3 %v7640_v5  ;;  %2389 = vmatpush.bf16.msra.mxu2 %v7564_v9  ;;  %v9772_v5 = vld [vmem:[#allocation6 + $0x184] sm:$0xf] }
 0x148   :  { %v1749_v15 = vadd.f32 %v10716_v10, %v1736_v6  ;;  %v7616_v10 = vor.u32 %v9775_v32, %v7615_v31  ;;  %v7609_v6 = vld [vmem:[#allocation6 + $0x188] sm:$0xf0] }
 0x149   :  { %v1787_v18 = vpop.f32.mrf.mxu2  ;;  %v1763_v7 = vpop.f32.mrf.mxu0  ;;  %v7612_v9 = vor.u32 %v9772_v5, %v7609_v6  ;;  %v9803_v5 = vld [vmem:[#allocation7 + $0x7c] sm:$0xf]  ;;  %v7733_v6 = vld [vmem:[#allocation7 + $0x84] sm:$0xf0] }
 0x14a   :  { %v1800_v1 = vpop.f32.mrf.mxu3  ;;  %v1776_v12 = vpop.f32.mrf.mxu1  ;;  %v1762_v43 = vadd.f32 %v1761_v52, %v1749_v15 }
 0x14b   :  { %2349 = vmatpush.bf16.msrb.mxu3 %v7632_v14  ;;  %2390 = vmatpush.bf16.msra.mxu2 %v7556_v17 }
 0x14c   :  { %v1775_v20 = vadd.f32 %v1774_v55, %v1762_v43 }
 0x14e   :  { %v1788_v41 = vadd.f32 %v1787_v18, %v1775_v20  ;;  %v9776_v18 = vld [vmem:[#allocation6 + $0x1a4] sm:$0xf] }
 0x14f   :  { %2350 = vmatpush.bf16.msrb.mxu3 %v7624_v29  ;;  %2391 = vmatpush.bf16.msra.mxu2 %v7548_v30  ;;  %v1980_v30 = vld [vmem:[%s11256_s6] sm:$0x3] }
 0x150   :  { %v1801_v39 = vadd.f32 %v1800_v1, %v1788_v41  ;;  %v7628_v1 = vor.u32 %v9776_v18, %v7625_v19  ;;  %v1982_v31 = vperm.slane %v1980_v30, 0  ;;  %v9806_v18 = vld [vmem:[#allocation7 + $0x94] sm:$0xf]  ;;  %v7745_v19 = vld [vmem:[#allocation7 + $0x9c] sm:$0xf0] }
 0x151   :  { %v1789_v24 = vpop.f32.mrf.mxu2 }
 0x152   :  { %v1802_v8 = vpop.f32.mrf.mxu3 }
 0x153   :  { %2351 = vmatpush.bf16.msrb.mxu3 %v7616_v10 }
 0x157   :  { %2352 = vmatpush.bf16.msrb.mxu3 %v7608_v40  ;;  %v1983_v40 = vperm.slane %v1980_v30, 1 }
 0x15b   :  { %2397 = vmatpush.bf16.msra.mxu3 %v7668_v37 }
 0x15f   :  { %2398 = vmatpush.bf16.msra.mxu3 %v7660_v46  ;;  %v7743_v46 = vld [vmem:[#allocation7 + $0x90] sm:$0xf] }
 0x161   :  { %v1813_v42 = vpop.f32.mrf.mxu0 }
 0x162   :  { %v1814_v45 = vadd.f32 %v1813_v42, %v1801_v39  ;;  %v1826_v47 = vpop.f32.mrf.mxu1 }
 0x163   :  { %2399 = vmatpush.bf16.msra.mxu3 %v7652_v53  ;;  %v1827_v7 = vadd.f32 %v1826_v47, %v394_v4  ;;  %v9807_v47 = vld [vmem:[#allocation7 + $0x98] sm:$0xf0]  ;;  %v7719_v53 = vld [vmem:[#allocation7 + $0x60] sm:$0xf] }
 0x164   :  { %v1910_v63 = vmax.f32 %v1814_v45, 0.0  ;;  %v7756_v45 = vor.u32 %v9810_v44, %v7755_v58  ;;  %v7841_v58 = vld [vmem:[#allocation7 + $0x15c] sm:$0xf0]  ;;  %v7751_v44 = vld [vmem:[#allocation7 + $0x98] sm:$0xf] }
 0x166   :  { %v1914_v52 = vpack.c.bf16 %v1910_v63, %v1910_v63  ;;  %2742 = vmatpush.bf16.msrb.mxu0 %v7756_v45  ;;  %v7744_v63 = vor.u32 %v9807_v47, %v7743_v46  ;;  %v9808_v45 = vld [vmem:[#allocation7 + $0xa0] sm:$0xf0] }
 0x167   :  { %2400 = vmatpush.bf16.msra.mxu3 %v7644_v57  ;;  %v7707_v57 = vld [vmem:[#allocation7 + $0x48] sm:$0xf] }
 0x168   :  { %2340 = vmatmul.bf16.vlgmr.msrb.gmra.mxu2 %v1914_v52 }
 0x169   :  { %v1839_v54 = vpop.f32.mrf.mxu2  ;;  %v1815_v55 = vpop.f32.mrf.mxu0 }
 0x16a   :  { %v1852_v48 = vpop.f32.mrf.mxu3  ;;  %v1828_v26 = vpop.f32.mrf.mxu1  ;;  %v1840_v11 = vadd.f32 %v1839_v54, %v1827_v7  ;;  %2743 = vmatpush.bf16.msrb.mxu0 %v7744_v63  ;;  %v9801_v54 = vld [vmem:[#allocation7 + $0x68] sm:$0xf0]  ;;  %v7757_v55 = vld [vmem:[#allocation7 + $0xb4] sm:$0xf0] }
 0x16b   :  { %2401 = vmatpush.bf16.msra.mxu3 %v7636_v60  ;;  %v7720_v61 = vor.u32 %v9801_v54, %v7719_v53  ;;  %v9798_v26 = vld [vmem:[#allocation7 + $0x50] sm:$0xf0]  ;;  %v9819_v53 = vld [vmem:[#allocation7 + $0xf8] sm:$0xf0] }
 0x16c   :  { %v1853_v27 = vadd.f32 %v1852_v48, %v1840_v11  ;;  %v9809_v48 = vld [vmem:[#allocation7 + $0xac] sm:$0xf]  ;;  %v7708_v59 = vor.u32 %v9798_v26, %v7707_v57  ;;  %v9834_v60 = vld [vmem:[#allocation7 + $0x170] sm:$0xf0]  ;;  %v7683_v11 = vld [vmem:[#allocation7 + $0x18] sm:$0xf] }
 0x16d   :  { %v7760_v56 = vor.u32 %v9809_v48, %v7757_v55  ;;  %v9791_v48 = vld [vmem:[#allocation7 + $0x1c] sm:$0xf]  ;;  %v7685_v55 = vld [vmem:[#allocation7 + $0x24] sm:$0xf0]  ;;  %v7739_v26 = vld [vmem:[#allocation7 + $0x80] sm:$0xf] }
 0x16e   :  { %v7829_v57 = vld [vmem:[#allocation7 + $0x144] sm:$0xf0] }
 0x16f   :  { %2402 = vmatpush.bf16.msra.mxu3 %v7628_v1  ;;  %2768 = vmatpush.bf16.msrb.mxu2 %v7760_v56  ;;  %v7695_v1 = vld [vmem:[#allocation7 + $0x30] sm:$0xf]  ;;  %v7688_v56 = vor.u32 %v9791_v48, %v7685_v55 }
 0x170   :  { %v7696_v4 = vor.u32 %v9795_v2, %v7695_v1  ;;  %v9788_v1 = vld [vmem:[#allocation7 + $0x4] sm:$0xf]  ;;  %v7673_v2 = vld [vmem:[#allocation7 + $0xc] sm:$0xf0] }
 0x171   :  { %v1841_v0 = vpop.f32.mrf.mxu2 }
 0x172   :  { %v1854_v49 = vpop.f32.mrf.mxu3  ;;  %v7852_v0 = vor.u32 %v9834_v60, %v7851_v22  ;;  %v9805_v22 = vld [vmem:[#allocation7 + $0x88] sm:$0xf0] }
 0x173   :  { %2403 = vmatpush.bf16.msra.mxu3 %v7620_v62  ;;  %v7748_v49 = vor.u32 %v9806_v18, %v7745_v19  ;;  %v9831_v62 = vld [vmem:[#allocation7 + $0x158] sm:$0xf0]  ;;  %v7740_v60 = vor.u32 %v9805_v22, %v7739_v26  ;;  %v7779_v18 = vld [vmem:[#allocation7 + $0xd8] sm:$0xf]  ;;  %v9816_v19 = vld [vmem:[#allocation7 + $0xe0] sm:$0xf0] }
 0x174   :  { %2755 = vmatpush.bf16.msrb.mxu1 %v7852_v0  ;;  %v7840_v7 = vor.u32 %v9831_v62, %v7839_v3  ;;  %v9824_v3 = vld [vmem:[#allocation7 + $0x124] sm:$0xf]  ;;  %v7817_v62 = vld [vmem:[#allocation7 + $0x12c] sm:$0xf0]  ;;  %v7799_v26 = vld [vmem:[#allocation7 + $0xf8] sm:$0xf] }
 0x175   :  { %2769 = vmatpush.bf16.msrb.mxu2 %v7748_v49  ;;  %v7780_v49 = vor.u32 %v9816_v19, %v7779_v18  ;;  %v9820_v22 = vld [vmem:[#allocation7 + $0x100] sm:$0xf0]  ;;  %v9817_v18 = vld [vmem:[#allocation7 + $0xe8] sm:$0xf0] }
 0x177   :  { %2404 = vmatpush.bf16.msra.mxu3 %v7612_v9  ;;  %v7736_v9 = vor.u32 %v9803_v5, %v7733_v6  ;;  %v7727_v5 = vld [vmem:[#allocation7 + $0x68] sm:$0xf]  ;;  %v9802_v6 = vld [vmem:[#allocation7 + $0x70] sm:$0xf0] }
 0x178   :  { %2392 = vmatmul.bf16.vlgmr.msra.gmra.mxu2 %v1914_v52  ;;  %v7732_v52 = vor.u32 %v9804_v51, %v7731_v50  ;;  %2756 = vmatpush.bf16.msrb.mxu1 %v7840_v7  ;;  %v7752_v51 = vor.u32 %v9808_v45, %v7751_v44  ;;  %v7820_v7 = vor.u32 %v9824_v3, %v7817_v62  ;;  %v9814_v3 = vld [vmem:[#allocation7 + $0xd0] sm:$0xf0] }
 0x179   :  { %2770 = vmatpush.bf16.msrb.mxu2 %v7736_v9  ;;  %v7728_v9 = vor.u32 %v9802_v6, %v7727_v5 }
 0x17a   :  { %2744 = vmatpush.bf16.msrb.mxu0 %v7732_v52  ;;  %v7791_v52 = vld [vmem:[#allocation7 + $0xf0] sm:$0xf] }
 0x17b   :  { %v7792_v54 = vor.u32 %v9819_v53, %v7791_v52  ;;  %v9790_v52 = vld [vmem:[#allocation7 + $0x10] sm:$0xf0]  ;;  %v7823_v53 = vld [vmem:[#allocation7 + $0x128] sm:$0xf] }
 0x17e   :  { %2745 = vmatpush.bf16.msrb.mxu0 %v7720_v61  ;;  %v9827_v61 = vld [vmem:[#allocation7 + $0x13c] sm:$0xf] }
 0x181   :  { %v1865_v12 = vpop.f32.mrf.mxu0 }
 0x182   :  { %v1878_v13 = vpop.f32.mrf.mxu1  ;;  %v1866_v16 = vadd.f32 %v1865_v12, %v1853_v27  ;;  %2746 = vmatpush.bf16.msrb.mxu0 %v7708_v59  ;;  %v9792_v27 = vld [vmem:[#allocation7 + $0x20] sm:$0xf0]  ;;  %v7827_v12 = vld [vmem:[#allocation7 + $0x138] sm:$0xf]  ;;  %v7832_v59 = vor.u32 %v9827_v61, %v7829_v57  ;;  %v7811_v61 = vld [vmem:[#allocation7 + $0x110] sm:$0xf] }
 0x184   :  { %v1879_v14 = vadd.f32 %v1878_v13, %v1866_v16  ;;  %v7684_v13 = vor.u32 %v9792_v27, %v7683_v11  ;;  %v9828_v16 = vld [vmem:[#allocation7 + $0x140] sm:$0xf0]  ;;  %v7767_v11 = vld [vmem:[#allocation7 + $0xc0] sm:$0xf]  ;;  %v9813_v27 = vld [vmem:[#allocation7 + $0xc8] sm:$0xf0] }
 0x186   :  { %2747 = vmatpush.bf16.msrb.mxu0 %v7696_v4  ;;  %v7676_v4 = vor.u32 %v9788_v1, %v7673_v2  ;;  %v7775_v2 = vld [vmem:[#allocation7 + $0xc8] sm:$0xf] }
 0x187   :  { %v7776_v62 = vor.u32 %v9814_v3, %v7775_v2 }
 0x189   :  { %v1891_v15 = vpop.f32.mrf.mxu2  ;;  %v1867_v23 = vpop.f32.mrf.mxu0 }
 0x18a   :  { %v1892_v17 = vadd.f32 %v1891_v15, %v1879_v14  ;;  %v1904_v21 = vpop.f32.mrf.mxu3  ;;  %v1880_v28 = vpop.f32.mrf.mxu1  ;;  %v9800_v14 = vld [vmem:[#allocation7 + $0x64] sm:$0xf]  ;;  %v7721_v15 = vld [vmem:[#allocation7 + $0x6c] sm:$0xf0]  ;;  %v7671_v23 = vld [vmem:[#allocation7] sm:$0xf]  ;;  %2748 = vmatpush.bf16.msrb.mxu0 %v7684_v13 }
 0x18b   :  { %v9789_v28 = vld [vmem:[#allocation7 + $0x8] sm:$0xf0] }
 0x18c   :  { %v1905_v24 = vadd.f32 %v1904_v21, %v1892_v17  ;;  %v7828_v17 = vor.u32 %v9828_v16, %v7827_v12  ;;  %v7724_v21 = vor.u32 %v9800_v14, %v7721_v15  ;;  %v7768_v12 = vor.u32 %v9813_v27, %v7767_v11  ;;  %v9821_v13 = vld [vmem:[#allocation7 + $0x10c] sm:$0xf]  ;;  %v7805_v16 = vld [vmem:[#allocation7 + $0x114] sm:$0xf0]  ;;  %v7715_v14 = vld [vmem:[#allocation7 + $0x50] sm:$0xf] }
 0x18d   :  { %v7808_v15 = vor.u32 %v9821_v13, %v7805_v16  ;;  %v2823_v16 = vld [vmem:[%s11251_s1] sm:$0xff] }
 0x18e   :  { %v1911_v34 = vmax.f32 %v1905_v24, 0.0  ;;  %v7815_v24 = vld [vmem:[#allocation7 + $0x120] sm:$0xf]  ;;  %2757 = vmatpush.bf16.msrb.mxu1 %v7828_v17  ;;  %2771 = vmatpush.bf16.msrb.mxu2 %v7724_v21  ;;  %v9799_v17 = vld [vmem:[#allocation7 + $0x58] sm:$0xf0] }
 0x18f   :  { %v7859_v21 = vld [vmem:[#allocation7 + $0x170] sm:$0xf] }
 0x190   :  { %v1915_v25 = vpack.c.bf16 %v1911_v34, %v1911_v34  ;;  %v7672_v34 = vor.u32 %v9789_v28, %v7671_v23  ;;  %v9835_v23 = vld [vmem:[#allocation7 + $0x178] sm:$0xf0]  ;;  %v7716_v28 = vor.u32 %v9799_v17, %v7715_v14  ;;  %v2826_v14 = vadd.f32 1e-20, %v2823_v16 }
 0x191   :  { %v1893_v8 = vpop.f32.mrf.mxu2  ;;  %v9851_v16 = vld [vmem:[#allocation2 + $0x7c] sm:$0xf] }
 0x192   :  { %v1906_v29 = vpop.f32.mrf.mxu3  ;;  %2353 = vmatmul.bf16.vlgmr.msrb.gmra.mxu3 %v1915_v25  ;;  %v9797_v8 = vld [vmem:[#allocation7 + $0x4c] sm:$0xf]  ;;  %2749 = vmatpush.bf16.msrb.mxu0 %v7672_v34  ;;  %v9818_v34 = vld [vmem:[#allocation7 + $0xf4] sm:$0xf] }
 0x193   :  { %v7709_v29 = vld [vmem:[#allocation7 + $0x54] sm:$0xf0] }
 0x194   :  { %v7712_v30 = vor.u32 %v9797_v8, %v7709_v29  ;;  %v7703_v8 = vld [vmem:[#allocation7 + $0x38] sm:$0xf]  ;;  %v9796_v29 = vld [vmem:[#allocation7 + $0x40] sm:$0xf0] }
 0x196   :  { %2772 = vmatpush.bf16.msrb.mxu2 %v7712_v30  ;;  %v9832_v30 = vld [vmem:[#allocation7 + $0x160] sm:$0xf0] }
 0x1a1   :  { %v2315_v43 = vpop.f32.mrf.mxu0 }
 0x1a2   :  { %2405 = vmatmul.bf16.vlgmr.msra.gmra.mxu3 %v1915_v25  ;;  %v2316_v32 = vadd.f32 %v2315_v43, %v1982_v31  ;;  %v9825_v25 = vld [vmem:[#allocation7 + $0x128] sm:$0xf0]  ;;  %v7853_v31 = vld [vmem:[#allocation7 + $0x174] sm:$0xf0] }
 0x1a3   :  { %v7816_v43 = vor.u32 %v9825_v25, %v7815_v24  ;;  %v7860_v24 = vor.u32 %v9835_v23, %v7859_v21  ;;  %v7793_v25 = vld [vmem:[#allocation7 + $0xfc] sm:$0xf0] }
 0x1a5   :  { %2758 = vmatpush.bf16.msrb.mxu1 %v7816_v43  ;;  %v7847_v43 = vld [vmem:[#allocation7 + $0x158] sm:$0xf] }
 0x1a8   :  { %v2328_v33 = vpop.f32.mrf.mxu1 }
 0x1a9   :  { %v2317_v20 = vpop.f32.mrf.mxu0  ;;  %v10726_v10 = vadd.f32 %v2328_v33, %v2316_v32  ;;  %v7763_v32 = vld [vmem:[#allocation7 + $0xb0] sm:$0xf] }
 0x1aa   :  { %v9833_v20 = vld [vmem:[#allocation7 + $0x16c] sm:$0xf] }
 0x1ab   :  { %v7856_v33 = vor.u32 %v9833_v20, %v7853_v31  ;;  %v7796_v31 = vor.u32 %v9818_v34, %v7793_v25 }
 0x1ad   :  { %2781 = vmatpush.bf16.msrb.mxu3 %v7856_v33  ;;  %v7848_v33 = vor.u32 %v9832_v30, %v7847_v43 }
 0x1b0   :  { %v2330_v35 = vpop.f32.mrf.mxu1 }
 0x1b1   :  { %v9811_v35 = vld [vmem:[#allocation7 + $0xb8] sm:$0xf0] }
 0x1c1   :  { %v2367_v41 = vpop.f32.mrf.mxu0 }
 0x1c2   :  { %v2368_v36 = vadd.f32 %v2367_v41, %v1983_v40  ;;  %v2380_v38 = vpop.f32.mrf.mxu1  ;;  %v7803_v40 = vld [vmem:[#allocation7 + $0x108] sm:$0xf]  ;;  %v9822_v41 = vld [vmem:[#allocation7 + $0x110] sm:$0xf0] }
 0x1c3   :  { %v7804_v46 = vor.u32 %v9822_v41, %v7803_v40  ;;  %v7781_v40 = vld [vmem:[#allocation7 + $0xe4] sm:$0xf0]  ;;  %v7691_v41 = vld [vmem:[#allocation7 + $0x20] sm:$0xf] }
 0x1c4   :  { %v10728_v37 = vadd.f32 %v2380_v38, %v2368_v36  ;;  %v7764_v36 = vor.u32 %v9811_v35, %v7763_v32  ;;  %v9794_v38 = vld [vmem:[#allocation7 + $0x34] sm:$0xf]  ;;  %v7704_v32 = vor.u32 %v9796_v29, %v7703_v8  ;;  %v9815_v35 = vld [vmem:[#allocation7 + $0xdc] sm:$0xf] }
 0x1c5   :  { %2759 = vmatpush.bf16.msrb.mxu1 %v7804_v46  ;;  %v9812_v46 = vld [vmem:[#allocation7 + $0xc4] sm:$0xf] }
 0x1c6   :  { %2794 = vmatpush.bf16.msra.mxu0 %v7764_v36  ;;  %v7784_v36 = vor.u32 %v9815_v35, %v7781_v40 }
 0x1c9   :  { %v2369_v39 = vpop.f32.mrf.mxu0  ;;  %2760 = vmatpush.bf16.msrb.mxu1 %v7792_v54  ;;  %v9826_v54 = vld [vmem:[#allocation7 + $0x130] sm:$0xf0] }
 0x1ca   :  { %v2382_v42 = vpop.f32.mrf.mxu1  ;;  %v7697_v39 = vld [vmem:[#allocation7 + $0x3c] sm:$0xf0]  ;;  %2795 = vmatpush.bf16.msra.mxu0 %v7752_v51  ;;  %v7824_v55 = vor.u32 %v9826_v54, %v7823_v53 }
 0x1cb   :  { %v9830_v42 = vld [vmem:[#allocation7 + $0x154] sm:$0xf]  ;;  %v7700_v47 = vor.u32 %v9794_v38, %v7697_v39  ;;  %v9793_v38 = vld [vmem:[#allocation7 + $0x28] sm:$0xf0]  ;;  %v7835_v39 = vld [vmem:[#allocation7 + $0x140] sm:$0xf] }
 0x1cc   :  { %v7844_v63 = vor.u32 %v9830_v42, %v7841_v58  ;;  %v9829_v42 = vld [vmem:[#allocation7 + $0x148] sm:$0xf0]  ;;  %v7692_v58 = vor.u32 %v9793_v38, %v7691_v41 }
 0x1cd   :  { %2773 = vmatpush.bf16.msrb.mxu2 %v7700_v47  ;;  %2761 = vmatpush.bf16.msrb.mxu1 %v7780_v49  ;;  %v7836_v44 = vor.u32 %v9829_v42, %v7835_v39  ;;  %v7769_v47 = vld [vmem:[#allocation7 + $0xcc] sm:$0xf0] }
 0x1ce   :  { %2782 = vmatpush.bf16.msrb.mxu3 %v7844_v63  ;;  %2796 = vmatpush.bf16.msra.mxu0 %v7740_v60  ;;  %v7679_v63 = vld [vmem:[#allocation7 + $0x8] sm:$0xf]  ;;  %v7772_v51 = vor.u32 %v9812_v46, %v7769_v47  ;;  %v7787_v60 = vld [vmem:[#allocation7 + $0xe0] sm:$0xf] }
 0x1cf   :  { %v7680_v48 = vor.u32 %v9790_v52, %v7679_v63  ;;  %v8043_v46 = vld [vmem:[#allocation2 + $0x168] sm:$0xf]  ;;  %v9882_v63 = vld [vmem:[#allocation2 + $0x170] sm:$0xf0] }
 0x1d0   :  { %v9906_v52 = vld [vmem:[#allocation2 + $0x230] sm:$0xf0]  ;;  %v10762_v54 = vor.u32 %v9882_v63, %v8043_v46  ;;  %v7995_v46 = vld [vmem:[#allocation2 + $0x108] sm:$0xf] }
 0x1d1   :  { %2774 = vmatpush.bf16.msrb.mxu2 %v7688_v56  ;;  %2762 = vmatpush.bf16.msrb.mxu1 %v7768_v12  ;;  %v9823_v56 = vld [vmem:[#allocation7 + $0x118] sm:$0xf0]  ;;  %v2824_v12 = vld [vmem:[%s11251_s1 + $0x8] sm:$0xff] }
 0x1d2   :  { %2783 = vmatpush.bf16.msrb.mxu3 %v7832_v59  ;;  %2797 = vmatpush.bf16.msra.mxu0 %v7728_v9  ;;  %v7812_v57 = vor.u32 %v9823_v56, %v7811_v61  ;;  %v7800_v59 = vor.u32 %v9820_v22, %v7799_v26  ;;  %v2827_v13 = vadd.f32 1e-20, %v2824_v12  ;;  %v7949_v61 = vld [vmem:[#allocation2 + $0xb4] sm:$0xf0]  ;;  %v9855_v26 = vld [vmem:[#allocation2 + $0x98] sm:$0xf0] }
 0x1d3   :  { %v8031_v22 = vld [vmem:[#allocation2 + $0x150] sm:$0xf]  ;;  %v8115_v12 = vld [vmem:[#allocation2 + $0x1f8] sm:$0xf] }
 0x1d4   :  { %10259 = vlog2.f32 %v2827_v13  ;;  %v9900_v13 = vld [vmem:[#allocation2 + $0x200] sm:$0xf0] }
 0x1d5   :  { %2775 = vmatpush.bf16.msrb.mxu2 %v7676_v4  ;;  %2807 = vmatpush.bf16.msra.mxu1 %v7860_v24  ;;  %10261 = vlog2.f32 %v2826_v14 }
 0x1d6   :  { %2784 = vmatpush.bf16.msrb.mxu3 %v7820_v7  ;;  %2798 = vmatpush.bf16.msra.mxu0 %v7716_v28 }
 0x1d9   :  { %2808 = vmatpush.bf16.msra.mxu1 %v7848_v33  ;;  %v10749_v33 = vld [vmem:[%s11258_s8] sm:$0x7] }
 0x1da   :  { %2785 = vmatpush.bf16.msrb.mxu3 %v7808_v15  ;;  %2799 = vmatpush.bf16.msra.mxu0 %v7704_v32  ;;  %v10260_v17 = vpop.eup %10259  ;;  %v2481_v38 = vperm.slane %v10749_v33, 1  ;;  %v2482_v42 = vperm.slane %v10749_v33, 2 }
 0x1db   :  { %v2832_v21 = vmul.f32 0.6931472, %v10260_v17  ;;  %v10262_v28 = vpop.eup %10261 }
 0x1dc   :  { %v2830_v25 = vmul.f32 0.6931472, %v10262_v28  ;;  %v10788_v28 = vor.u32 %v9900_v13, %v8115_v12  ;;  %v9842_v12 = vld [vmem:[#allocation2 + $0x34] sm:$0xf]  ;;  %v7889_v13 = vld [vmem:[#allocation2 + $0x3c] sm:$0xf0] }
 0x1dd   :  { %2809 = vmatpush.bf16.msra.mxu1 %v7836_v44  ;;  %v2836_v24 = vsub.f32 0.0, %v2832_v21  ;;  %v7947_v44 = vld [vmem:[#allocation2 + $0xa8] sm:$0xf] }
 0x1de   :  { %2786 = vmatpush.bf16.msrb.mxu3 %v7796_v31  ;;  %2800 = vmatpush.bf16.msra.mxu0 %v7692_v58 }
 0x1df   :  { %v2839_v29 = vadd.f32 1e-20, %v2836_v24  ;;  %v7925_v24 = vld [vmem:[#allocation2 + $0x84] sm:$0xf0] }
 0x1e1   :  { %2810 = vmatpush.bf16.msra.mxu1 %v7824_v55  ;;  %v9857_v55 = vld [vmem:[#allocation2 + $0xac] sm:$0xf] }
 0x1e2   :  { %2787 = vmatpush.bf16.msrb.mxu3 %v7784_v36  ;;  %2801 = vmatpush.bf16.msra.mxu0 %v7680_v48  ;;  %v2480_v36 = vperm.slane %v10749_v33, 0  ;;  %v10767_v56 = vor.u32 %v9857_v55, %v7949_v61  ;;  %v9894_v55 = vld [vmem:[#allocation2 + $0x1d0] sm:$0xf0] }
 0x1e5   :  { %2811 = vmatpush.bf16.msra.mxu1 %v7812_v57  ;;  %v7935_v57 = vld [vmem:[#allocation2 + $0x90] sm:$0xf] }
 0x1e6   :  { %2788 = vmatpush.bf16.msrb.mxu3 %v7772_v51  ;;  %v8139_v51 = vld [vmem:[#allocation2 + $0x228] sm:$0xf] }
 0x1e7   :  { %v10764_v48 = vor.u32 %v9906_v52, %v8139_v51  ;;  %v9870_v52 = vld [vmem:[#allocation2 + $0x110] sm:$0xf0] }
 0x1e8   :  { %v10822_v33 = vor.u32 %v9870_v52, %v7995_v46  ;;  %v9837_v46 = vld [vmem:[#allocation2 + $0x8] sm:$0xf0] }
 0x1e9   :  { %2812 = vmatpush.bf16.msra.mxu1 %v7800_v59  ;;  %v10771_v59 = vor.u32 %v9855_v26, %v7935_v57  ;;  %v9861_v52 = vld [vmem:[#allocation2 + $0xc8] sm:$0xf0] }
 0x1ea   :  { %3362 = vmatpush.bf16.msra.mxu3 %v10762_v54 }
 0x1eb   :  { %v10730_v50 = vpop.f32.mrf.mxu2 }
 0x1ec   :  { %v2342_v19 = vadd.f32 %v10730_v50, %v10726_v10 }
 0x1f3   :  { %v2343_v0 = vpop.f32.mrf.mxu2 }
 0x1f4   :  { %v7788_v0 = vor.u32 %v9817_v18, %v7787_v60  ;;  %v9879_v60 = vld [vmem:[#allocation2 + $0x158] sm:$0xf0]  ;;  %v8127_v18 = vld [vmem:[#allocation2 + $0x210] sm:$0xf] }
 0x1f5   :  { %v10774_v2 = vor.u32 %v9879_v60, %v8031_v22  ;;  %v9845_v22 = vld [vmem:[#allocation2 + $0x4c] sm:$0xf]  ;;  %v7901_v60 = vld [vmem:[#allocation2 + $0x54] sm:$0xf0] }
 0x1f6   :  { %2813 = vmatpush.bf16.msra.mxu1 %v7788_v0 }
 0x1f7   :  { %3363 = vmatpush.bf16.msra.mxu3 %v10774_v2 }
 0x1fa   :  { %2814 = vmatpush.bf16.msra.mxu1 %v7776_v62  ;;  %v7937_v62 = vld [vmem:[#allocation2 + $0x9c] sm:$0xf0] }
 0x1fb   :  { %v2393_v20 = vpop.f32.mrf.mxu2 }
 0x1fc   :  { %v2394_v7 = vadd.f32 %v2393_v20, %v10728_v37  ;;  %v2825_v37 = vld [vmem:[%s11251_s1 + $0x10] sm:$0xff]  ;;  %v2835_v20 = vsub.f32 0.0, %v2830_v25  ;;  %v10791_v25 = vor.u32 %v9851_v16, %v7925_v24  ;;  %v9840_v24 = vld [vmem:[#allocation2 + $0x20] sm:$0xf0] }
 0x1fd   :  { %v2828_v15 = vadd.f32 1e-20, %v2825_v37 }
 0x1fe   :  { %v2838_v32 = vadd.f32 1e-20, %v2835_v20  ;;  %v9897_v20 = vld [vmem:[#allocation2 + $0x1e8] sm:$0xf0] }
 0x1ff   :  { %10263 = vlog2.f32 %v2828_v15 }
 0x200   :  { %10265 = vlog2.f32 %v2839_v29  ;;  %v8007_v29 = vld [vmem:[#allocation2 + $0x120] sm:$0xf] }
 0x201   :  { %10267 = vlog2.f32 %v2838_v32 }
 0x203   :  { %v2395_v45 = vpop.f32.mrf.mxu2 }
 0x204   :  { %v9858_v45 = vld [vmem:[#allocation2 + $0xb0] sm:$0xf0] }
 0x205   :  { %v10264_v34 = vpop.eup %10263  ;;  %v10758_v47 = vor.u32 %v9858_v45, %v7947_v44  ;;  %v7899_v44 = vld [vmem:[#allocation2 + $0x48] sm:$0xf]  ;;  %v9846_v45 = vld [vmem:[#allocation2 + $0x50] sm:$0xf0] }
 0x206   :  { %v2834_v43 = vmul.f32 0.6931472, %v10264_v34  ;;  %v10266_v41 = vpop.eup %10265  ;;  %v7911_v34 = vld [vmem:[#allocation2 + $0x60] sm:$0xf] }
 0x207   :  { %v10760_v53 = vmul.f32 0.6931472, %v10266_v41  ;;  %3349 = vmatpush.bf16.msra.mxu2 %v10758_v47  ;;  %v10268_v0 = vpop.eup %10267 }
 0x208   :  { %v2837_v31 = vsub.f32 0.0, %v2834_v43  ;;  %v2842_v17 = vmul.f32 0.6931472, %v10268_v0  ;;  %v9873_v43 = vld [vmem:[#allocation2 + $0x128] sm:$0xf0] }
 0x20a   :  { %v2840_v40 = vadd.f32 1e-20, %v2837_v31  ;;  %v9848_v31 = vld [vmem:[#allocation2 + $0x64] sm:$0xf]  ;;  %v2847_v26 = vsub.f32 0.0, %v2842_v17 }
 0x20b   :  { %3350 = vmatpush.bf16.msra.mxu2 %v10771_v59  ;;  %v7875_v17 = vld [vmem:[#allocation2 + $0x18] sm:$0xf] }
 0x20c   :  { %10269 = vlog2.f32 %v2840_v40  ;;  %v2848_v40 = vsub.f32 0.0, %v10760_v53  ;;  %v8091_v53 = vld [vmem:[#allocation2 + $0x1c8] sm:$0xf] }
 0x212   :  { %v10270_v37 = vpop.eup %10269 }
 0x215   :  { %v2354_v49 = vpop.f32.mrf.mxu3 }
 0x216   :  { %v2355_v1 = vadd.f32 %v2354_v49, %v2342_v19  ;;  %v9903_v19 = vld [vmem:[#allocation2 + $0x218] sm:$0xf0] }
 0x217   :  { %v10776_v3 = vor.u32 %v9903_v19, %v8127_v18 }
 0x218   :  { %v2410_v4 = vmax.f32 %v2355_v1, 0.0 }
 0x21a   :  { %v2412_v5 = vpack.c.bf16 %v2410_v4, %v2410_v4  ;;  %v9854_v4 = vld [vmem:[#allocation2 + $0x94] sm:$0xf] }
 0x21c   :  { %2750 = vmatmul.bf16.vlgmr.msrb.gmra.mxu0 %v2412_v5  ;;  %2776 = vmatmul.bf16.vlgmr.msrb.gmra.mxu2 %v2412_v5 }
 0x21d   :  { %v2356_v6 = vpop.f32.mrf.mxu3  ;;  %3375 = vmatpush.bf16.msrb.mxu0 %v10764_v48 }
 0x21e   :  { %v10778_v6 = vor.u32 %v9854_v4, %v7937_v62  ;;  %v9843_v4 = vld [vmem:[#allocation2 + $0x38] sm:$0xf0]  ;;  %v7983_v62 = vld [vmem:[#allocation2 + $0xf0] sm:$0xf] }
 0x221   :  { %3376 = vmatpush.bf16.msrb.mxu0 %v10776_v3 }
 0x225   :  { %v2406_v9 = vpop.f32.mrf.mxu3  ;;  %3377 = vmatpush.bf16.msrb.mxu0 %v10788_v28 }
 0x226   :  { %v2407_v11 = vadd.f32 %v2406_v9, %v2394_v7  ;;  %v9852_v7 = vld [vmem:[#allocation2 + $0x80] sm:$0xf0]  ;;  %v8019_v9 = vld [vmem:[#allocation2 + $0x138] sm:$0xf] }
 0x228   :  { %v2411_v27 = vmax.f32 %v2407_v11, 0.0  ;;  %v9876_v11 = vld [vmem:[#allocation2 + $0x140] sm:$0xf0] }
 0x229   :  { %v10786_v21 = vor.u32 %v9876_v11, %v8019_v9  ;;  %v8079_v9 = vld [vmem:[#allocation2 + $0x1b0] sm:$0xf]  ;;  %v9891_v11 = vld [vmem:[#allocation2 + $0x1b8] sm:$0xf0] }
 0x22a   :  { %v2413_v10 = vpack.c.bf16 %v2411_v27, %v2411_v27 }
 0x22b   :  { %3364 = vmatpush.bf16.msra.mxu3 %v10786_v21 }
 0x22c   :  { %2763 = vmatmul.bf16.vlgmr.msrb.gmra.mxu1 %v2413_v10  ;;  %2789 = vmatmul.bf16.vlgmr.msrb.gmra.mxu3 %v2413_v10 }
 0x22d   :  { %2802 = vmatmul.bf16.vlgmr.msra.gmra.mxu0 %v2412_v5  ;;  %v2408_v50 = vpop.f32.mrf.mxu3  ;;  %3388 = vmatpush.bf16.msrb.mxu1 %v10767_v56  ;;  %v7923_v5 = vld [vmem:[#allocation2 + $0x78] sm:$0xf] }
 0x22e   :  { %v10781_v50 = vor.u32 %v9852_v7, %v7923_v5  ;;  %v10827_v5 = vor.u32 %v9845_v22, %v7901_v60  ;;  %v9867_v7 = vld [vmem:[#allocation2 + $0xf8] sm:$0xf0]  ;;  %v9836_v22 = vld [vmem:[#allocation2 + $0x4] sm:$0xf]  ;;  %v7865_v60 = vld [vmem:[#allocation2 + $0xc] sm:$0xf0] }
 0x230   :  { %3351 = vmatpush.bf16.msra.mxu2 %v10781_v50 }
 0x231   :  { %3389 = vmatpush.bf16.msrb.mxu1 %v10778_v6 }
 0x235   :  { %3390 = vmatpush.bf16.msrb.mxu1 %v10791_v25 }
 0x23c   :  { %2815 = vmatmul.bf16.vlgmr.msra.gmra.mxu1 %v2413_v10 }
 0x299   :  { %v10744_v23 = vpop.f32.mrf.mxu0 }
 0x29a   :  { %v2752_v14 = vadd.f32 %v10744_v23, %v2480_v36  ;;  %v7913_v36 = vld [vmem:[#allocation2 + $0x6c] sm:$0xf0] }
 0x29b   :  { %v10807_v51 = vor.u32 %v9848_v31, %v7913_v36  ;;  %v9839_v31 = vld [vmem:[#allocation2 + $0x1c] sm:$0xf]  ;;  %v10853_v36 = vor.u32 %v9840_v24, %v7875_v17  ;;  %v10876_v17 = vor.u32 %v9836_v22, %v7865_v60  ;;  %v8021_v60 = vld [vmem:[#allocation2 + $0x144] sm:$0xf0] }
 0x29c   :  { %v9875_v22 = vld [vmem:[#allocation2 + $0x13c] sm:$0xf] }
 0x29d   :  { %3391 = vmatpush.bf16.msrb.mxu1 %v10807_v51  ;;  %11293 = vst [vmem:[#allocation19_spill] sm:$0xff] %v10876_v17 }
 0x29f   :  { %v2777_v8 = vpop.f32.mrf.mxu2 }
 0x2a0   :  { %v2778_v49 = vadd.f32 %v2777_v8, %v2481_v38  ;;  %v9849_v8 = vld [vmem:[#allocation2 + $0x68] sm:$0xf0]  ;;  %v10802_v38 = vor.u32 %v9873_v43, %v8007_v29  ;;  %v7971_v29 = vld [vmem:[#allocation2 + $0xd8] sm:$0xf]  ;;  %v9864_v43 = vld [vmem:[#allocation2 + $0xe0] sm:$0xf0] }
 0x2a1   :  { %v2753_v30 = vpop.f32.mrf.mxu0  ;;  %v10798_v41 = vor.u32 %v9849_v8, %v7911_v34  ;;  %3392 = vmatpush.bf16.msrb.mxu1 %v10827_v5  ;;  %v10847_v34 = vor.u32 %v9891_v11, %v8079_v9  ;;  %v10849_v8 = vor.u32 %v9842_v12, %v7889_v13  ;;  %v9859_v11 = vld [vmem:[#allocation2 + $0xb8] sm:$0xf0]  ;;  %v8051_v12 = vld [vmem:[#allocation2 + $0x170] sm:$0xf] }
 0x2a2   :  { %v8103_v30 = vld [vmem:[#allocation2 + $0x1e0] sm:$0xf]  ;;  %3365 = vmatpush.bf16.msra.mxu3 %v10802_v38  ;;  %v9883_v13 = vld [vmem:[#allocation2 + $0x178] sm:$0xf0] }
 0x2a3   :  { %3352 = vmatpush.bf16.msra.mxu2 %v10798_v41  ;;  %11291 = vst [vmem:[#allocation17_spill] sm:$0xff] %v10849_v8 }
 0x2a5   :  { %3393 = vmatpush.bf16.msrb.mxu1 %v10849_v8 }
 0x2a6   :  { %3366 = vmatpush.bf16.msra.mxu3 %v10822_v33 }
 0x2a7   :  { %v2779_v35 = vpop.f32.mrf.mxu2 }
 0x2a8   :  { %v2846_v35 = vmul.f32 0.6931472, %v10270_v37 }
 0x2a9   :  { %v10753_v39 = vpop.f32.mrf.mxu1 }
 0x2aa   :  { %v10756_v58 = vpop.f32.mrf.mxu0  ;;  %v2765_v23 = vadd.f32 %v10753_v39, %v2752_v14  ;;  %v10804_v39 = vor.u32 %v9897_v20, %v8103_v30  ;;  %v2849_v19 = vsub.f32 0.0, %v2846_v35  ;;  %v9888_v20 = vld [vmem:[#allocation2 + $0x1a0] sm:$0xf0]  ;;  %v7877_v35 = vld [vmem:[#allocation2 + $0x24] sm:$0xf0] }
 0x2ab   :  { %v2804_v57 = vadd.f32 %v10756_v58, %v2482_v42  ;;  %v10824_v42 = vor.u32 %v9894_v55, %v8091_v53  ;;  %v7887_v58 = vld [vmem:[#allocation2 + $0x30] sm:$0xf]  ;;  %v10862_v55 = vor.u32 %v9839_v31, %v7877_v35  ;;  %v10886_v31 = vor.u32 %v9883_v13, %v8051_v12  ;;  %v9902_v35 = vld [vmem:[#allocation2 + $0x214] sm:$0xf]  ;;  %v9877_v12 = vld [vmem:[#allocation2 + $0x148] sm:$0xf0] }
 0x2ac   :  { %v10809_v61 = vmax.f32 %v2765_v23, 0.0  ;;  %3378 = vmatpush.bf16.msrb.mxu0 %v10804_v39  ;;  %v10835_v16 = vor.u32 %v9843_v4, %v7887_v58  ;;  %v8067_v23 = vld [vmem:[#allocation2 + $0x198] sm:$0xf]  ;;  %v9905_v58 = vld [vmem:[#allocation2 + $0x22c] sm:$0xf]  ;;  %v10905_v13 = vor.u32 %v9875_v22, %v8021_v60 }
 0x2ad   :  { %v10860_v53 = vor.u32 %v9888_v20, %v8067_v23  ;;  %11292 = vst [vmem:[#allocation18_spill] sm:$0xff] %v10862_v55  ;;  %v8141_v4 = vld [vmem:[#allocation2 + $0x234] sm:$0xf0]  ;;  %3394 = vmatpush.bf16.msrb.mxu1 %v10862_v55  ;;  %v9878_v23 = vld [vmem:[#allocation2 + $0x154] sm:$0xf] }
 0x2ae   :  { %11294 = vst [vmem:[#allocation20_spill] sm:$0xff] %v10886_v31 }
 0x2af   :  { %v2790_v1 = vpop.f32.mrf.mxu3 }
 0x2b0   :  { %v2791_v27 = vadd.f32 %v2790_v1, %v2778_v49  ;;  %v10818_v49 = vor.u32 %v9846_v45, %v7899_v44  ;;  %3379 = vmatpush.bf16.msrb.mxu0 %v10824_v42  ;;  %v7863_v44 = vld [vmem:[#allocation2] sm:$0xf]  ;;  %v10856_v45 = vor.u32 %v9864_v43, %v7971_v29  ;;  %v10881_v43 = vor.u32 %v9905_v58, %v8141_v4  ;;  %v9899_v58 = vld [vmem:[#allocation2 + $0x1fc] sm:$0xf]  ;;  %v8117_v4 = vld [vmem:[#allocation2 + $0x204] sm:$0xf0] }
 0x2b1   :  { %v2766_v10 = vpop.f32.mrf.mxu1  ;;  %3395 = vmatpush.bf16.msrb.mxu1 %v10876_v17  ;;  %v9874_v17 = vld [vmem:[#allocation2 + $0x130] sm:$0xf0] }
 0x2b2   :  { %v2805_v15 = vpop.f32.mrf.mxu0  ;;  %v10794_v32 = vmax.f32 %v2791_v27, 0.0  ;;  %v10832_v10 = vadd.f32 %v2847_v26, %v10809_v61  ;;  %3353 = vmatpush.bf16.msra.mxu2 %v10818_v49  ;;  %v9885_v26 = vld [vmem:[#allocation2 + $0x188] sm:$0xf0] }
 0x2b3   :  { %v10844_v15 = vor.u32 %v9867_v7, %v7983_v62  ;;  %v7955_v62 = vld [vmem:[#allocation2 + $0xb0] sm:$0xf] }
 0x2b4   :  { %v10815_v0 = vadd.f32 %v2848_v40, %v10794_v32  ;;  %3380 = vmatpush.bf16.msrb.mxu0 %v10847_v34  ;;  %v3511_v7 = vmax.f32 %v10809_v61, %v10794_v32  ;;  %v10884_v20 = vor.u32 %v9859_v11, %v7955_v62  ;;  %v7931_v62 = vld [vmem:[#allocation2 + $0x80] sm:$0xf] }
 0x2b5   :  { %3367 = vmatpush.bf16.msra.mxu3 %v10844_v15  ;;  %3440 = vmatpush.bf16.msra.mxu1 %v10886_v31  ;;  %v8027_v11 = vld [vmem:[#allocation2 + $0x140] sm:$0xf]  ;;  %v8015_v31 = vld [vmem:[#allocation2 + $0x128] sm:$0xf] }
 0x2b6   :  { %v2949_v14 = vmax.f32 %v10832_v10, %v10815_v0  ;;  %3354 = vmatpush.bf16.msra.mxu2 %v10835_v16 }
 0x2b7   :  { %v2792_v63 = vpop.f32.mrf.mxu3 }
 0x2b8   :  { %v7959_v63 = vld [vmem:[#allocation2 + $0xc0] sm:$0xf]  ;;  %3381 = vmatpush.bf16.msrb.mxu0 %v10860_v53 }
 0x2b9   :  { %v2816_v18 = vpop.f32.mrf.mxu1  ;;  %3368 = vmatpush.bf16.msra.mxu3 %v10856_v45  ;;  %v10870_v9 = vor.u32 %v9861_v52, %v7959_v63  ;;  %v8039_v63 = vld [vmem:[#allocation2 + $0x158] sm:$0xf]  ;;  %v9880_v52 = vld [vmem:[#allocation2 + $0x160] sm:$0xf0] }
 0x2ba   :  { %v2817_v1 = vadd.f32 %v2816_v18, %v2804_v57  ;;  %v8055_v57 = vld [vmem:[#allocation2 + $0x180] sm:$0xf]  ;;  %v9881_v18 = vld [vmem:[#allocation2 + $0x16c] sm:$0xf]  ;;  %3355 = vmatpush.bf16.msra.mxu2 %v10853_v36 }
 0x2bc   :  { %v10829_v27 = vmax.f32 %v2817_v1, 0.0  ;;  %v10865_v1 = vor.u32 %v9837_v46, %v7863_v44  ;;  %v7943_v44 = vld [vmem:[#allocation2 + $0x98] sm:$0xf]  ;;  %v9856_v46 = vld [vmem:[#allocation2 + $0xa0] sm:$0xf0] }
 0x2bd   :  { %3369 = vmatpush.bf16.msra.mxu3 %v10870_v9 }
 0x2be   :  { %v10838_v37 = vadd.f32 %v2849_v19, %v10829_v27  ;;  %v8045_v19 = vld [vmem:[#allocation2 + $0x174] sm:$0xf0]  ;;  %v3512_v24 = vmax.f32 %v3511_v7, %v10829_v27  ;;  %3356 = vmatpush.bf16.msra.mxu2 %v10865_v1  ;;  %v9853_v7 = vld [vmem:[#allocation2 + $0x88] sm:$0xf0] }
 0x2bf   :  { %v10879_v29 = vor.u32 %v9881_v18, %v8045_v19  ;;  %v10899_v18 = vor.u32 %v9856_v46, %v7943_v44  ;;  %v10901_v19 = vor.u32 %v9880_v52, %v8039_v63  ;;  %v9896_v44 = vld [vmem:[#allocation2 + $0x1e4] sm:$0xf]  ;;  %v8105_v46 = vld [vmem:[#allocation2 + $0x1ec] sm:$0xf0]  ;;  %v7919_v63 = vld [vmem:[#allocation2 + $0x68] sm:$0xf] }
 0x2c0   :  { %v2950_v30 = vmax.f32 %v2949_v14, %v10838_v37  ;;  %v10874_v14 = vor.u32 %v9885_v26, %v8055_v57  ;;  %v9850_v52 = vld [vmem:[#allocation2 + $0x70] sm:$0xf0]  ;;  %v10919_v60 = vor.u32 %v9896_v44, %v8105_v46  ;;  %v9847_v44 = vld [vmem:[#allocation2 + $0x58] sm:$0xf0] }
 0x2c1   :  { %v2818_v40 = vpop.f32.mrf.mxu1  ;;  %3414 = vmatpush.bf16.msrb.mxu3 %v10881_v43  ;;  %11295 = vst [vmem:[#allocation21_spill] sm:$0xff] %v10901_v19  ;;  %3441 = vmatpush.bf16.msra.mxu1 %v10901_v19 }
 0x2c2   :  { %2951 = vmax.xlane.f32.xlu0 %v2950_v30  ;;  %v8033_v30 = vld [vmem:[#allocation2 + $0x15c] sm:$0xf0]  ;;  %3382 = vmatpush.bf16.msrb.mxu0 %v10874_v14 }
 0x2c3   :  { %v8129_v40 = vld [vmem:[#allocation2 + $0x21c] sm:$0xf0]  ;;  %3401 = vmatpush.bf16.msrb.mxu2 %v10879_v29  ;;  %v10893_v57 = vor.u32 %v9878_v23, %v8033_v30  ;;  %v9872_v23 = vld [vmem:[#allocation2 + $0x124] sm:$0xf]  ;;  %v8009_v30 = vld [vmem:[#allocation2 + $0x12c] sm:$0xf0] }
 0x2c4   :  { %v10895_v26 = vor.u32 %v9902_v35, %v8129_v40  ;;  %v10911_v35 = vor.u32 %v9853_v7, %v7931_v62  ;;  %v10913_v40 = vor.u32 %v9877_v12, %v8027_v11  ;;  %v10917_v22 = vor.u32 %v9872_v23, %v8009_v30  ;;  %v9869_v62 = vld [vmem:[#allocation2 + $0x10c] sm:$0xf]  ;;  %v7997_v7 = vld [vmem:[#allocation2 + $0x114] sm:$0xf0]  ;;  %v7907_v30 = vld [vmem:[#allocation2 + $0x50] sm:$0xf] }
 0x2c5   :  { %v9893_v11 = vld [vmem:[#allocation2 + $0x1cc] sm:$0xf]  ;;  %v10931_v12 = vor.u32 %v9869_v62, %v7997_v7  ;;  %v8093_v23 = vld [vmem:[#allocation2 + $0x1d4] sm:$0xf0]  ;;  %v7985_v62 = vld [vmem:[#allocation2 + $0xfc] sm:$0xf0] }
 0x2c6   :  { %3427 = vmatpush.bf16.msra.mxu0 %v10884_v20  ;;  %3415 = vmatpush.bf16.msrb.mxu3 %v10895_v26  ;;  %11296 = vst [vmem:[#allocation22_spill] sm:$0xff] %v10913_v40  ;;  %v10933_v46 = vor.u32 %v9893_v11, %v8093_v23  ;;  %v9890_v7 = vld [vmem:[#allocation2 + $0x1b4] sm:$0xf]  ;;  %v8081_v11 = vld [vmem:[#allocation2 + $0x1bc] sm:$0xf0] }
 0x2c7   :  { %3402 = vmatpush.bf16.msrb.mxu2 %v10893_v57  ;;  %3442 = vmatpush.bf16.msra.mxu1 %v10913_v40  ;;  %v7895_v23 = vld [vmem:[#allocation2 + $0x38] sm:$0xf] }
 0x2ca   :  { %3513 = vmax.xlane.f32.xlu0 %v3512_v24  ;;  %v10907_v24 = vor.u32 %v9899_v58, %v8117_v4  ;;  %3428 = vmatpush.bf16.msra.mxu0 %v10899_v18  ;;  %v10923_v58 = vor.u32 %v9850_v52, %v7919_v63  ;;  %v10925_v4 = vor.u32 %v9874_v17, %v8015_v31  ;;  %v8003_v31 = vld [vmem:[#allocation2 + $0x110] sm:$0xf]  ;;  %v9871_v63 = vld [vmem:[#allocation2 + $0x118] sm:$0xf0] }
 0x2cb   :  { %3403 = vmatpush.bf16.msrb.mxu2 %v10905_v13  ;;  %v10935_v17 = vor.u32 %v9847_v44, %v7907_v30  ;;  %v10938_v52 = vor.u32 %v9871_v63, %v8003_v31  ;;  %v9844_v30 = vld [vmem:[#allocation2 + $0x40] sm:$0xf0]  ;;  %v10945_v44 = vor.u32 %v9890_v7, %v8081_v11  ;;  %v7991_v31 = vld [vmem:[#allocation2 + $0xf8] sm:$0xf]  ;;  %v8069_v7 = vld [vmem:[#allocation2 + $0x1a4] sm:$0xf0] }
 0x2cc   :  { %3416 = vmatpush.bf16.msrb.mxu3 %v10907_v24  ;;  %11297 = vst [vmem:[#allocation23_spill] sm:$0xff] %v10925_v4  ;;  %3443 = vmatpush.bf16.msra.mxu1 %v10925_v4  ;;  %v9866_v4 = vld [vmem:[#allocation2 + $0xf4] sm:$0xf]  ;;  %v10947_v19 = vor.u32 %v9844_v30, %v7895_v23  ;;  %v9868_v63 = vld [vmem:[#allocation2 + $0x100] sm:$0xf0] }
 0x2cd   :  { %11298 = vst [vmem:[#allocation24_spill] sm:$0xff] %v10935_v17  ;;  %v10943_v40 = vor.u32 %v9866_v4, %v7985_v62  ;;  %v10950_v55 = vor.u32 %v9868_v63, %v7991_v31  ;;  %v7973_v4 = vld [vmem:[#allocation2 + $0xe4] sm:$0xf0]  ;;  %v9887_v62 = vld [vmem:[#allocation2 + $0x19c] sm:$0xf] }
 0x2ce   :  { %3429 = vmatpush.bf16.msra.mxu0 %v10911_v35  ;;  %11299 = vst [vmem:[#allocation25_spill] sm:$0xff] %v10938_v52  ;;  %v7883_v11 = vld [vmem:[#allocation2 + $0x20] sm:$0xf]  ;;  %v9841_v23 = vld [vmem:[#allocation2 + $0x28] sm:$0xf0]  ;;  %v10957_v30 = vor.u32 %v9887_v62, %v8069_v7 }
 0x2cf   :  { %3404 = vmatpush.bf16.msrb.mxu2 %v10917_v22  ;;  %11300 = vst [vmem:[#allocation26_spill] sm:$0xff] %v10943_v40  ;;  %v7979_v31 = vld [vmem:[#allocation2 + $0xe0] sm:$0xf]  ;;  %v9865_v63 = vld [vmem:[#allocation2 + $0xe8] sm:$0xf0] }
 0x2d0   :  { %3417 = vmatpush.bf16.msrb.mxu3 %v10919_v60  ;;  %3444 = vmatpush.bf16.msra.mxu1 %v10938_v52  ;;  %11301 = vst [vmem:[#allocation27_spill] sm:$0xff] %v10945_v44  ;;  %v9863_v52 = vld [vmem:[#allocation2 + $0xdc] sm:$0xf]  ;;  %v8057_v62 = vld [vmem:[#allocation2 + $0x18c] sm:$0xf0] }
 0x2d1   :  { %11302 = vst [vmem:[#allocation28_spill] sm:$0xff] %v10947_v19  ;;  %v10955_v8 = vor.u32 %v9863_v52, %v7973_v4  ;;  %v7961_v52 = vld [vmem:[#allocation2 + $0xcc] sm:$0xf0]  ;;  %v9884_v4 = vld [vmem:[#allocation2 + $0x184] sm:$0xf] }
 0x2d2   :  { %3430 = vmatpush.bf16.msra.mxu0 %v10923_v58  ;;  %11303 = vst [vmem:[#allocation29_spill] sm:$0xff] %v10950_v55  ;;  %v7871_v7 = vld [vmem:[#allocation2 + $0x8] sm:$0xf] }
 0x2d3   :  { %3405 = vmatpush.bf16.msrb.mxu2 %v10931_v12  ;;  %11304 = vst [vmem:[#allocation30_spill] sm:$0xff] %v10957_v30 }
 0x2d4   :  { %3418 = vmatpush.bf16.msrb.mxu3 %v10933_v46  ;;  %3445 = vmatpush.bf16.msra.mxu1 %v10950_v55  ;;  %v9860_v55 = vld [vmem:[#allocation2 + $0xc4] sm:$0xf] }
 0x2d6   :  { %3431 = vmatpush.bf16.msra.mxu0 %v10935_v17  ;;  %v10959_v17 = vor.u32 %v9841_v23, %v7883_v11  ;;  %v9838_v11 = vld [vmem:[#allocation2 + $0x10] sm:$0xf0]  ;;  %v10969_v23 = vor.u32 %v9884_v4, %v8057_v62 }
 0x2d7   :  { %3406 = vmatpush.bf16.msrb.mxu2 %v10943_v40  ;;  %v10971_v40 = vor.u32 %v9838_v11, %v7871_v7 }
 0x2d8   :  { %3419 = vmatpush.bf16.msrb.mxu3 %v10945_v44  ;;  %v10962_v44 = vor.u32 %v9865_v63, %v7979_v31  ;;  %11307 = vst [vmem:[#allocation33_spill] sm:$0xff] %v10969_v23  ;;  %v7967_v31 = vld [vmem:[#allocation2 + $0xc8] sm:$0xf]  ;;  %v9862_v63 = vld [vmem:[#allocation2 + $0xd0] sm:$0xf0] }
 0x2d9   :  { %11308 = vst [vmem:[#allocation34_spill] sm:$0xff] %v10971_v40 }
 0x2da   :  { %3432 = vmatpush.bf16.msra.mxu0 %v10947_v19  ;;  %11305 = vst [vmem:[#allocation31_spill] sm:$0xff] %v10962_v44  ;;  %3446 = vmatpush.bf16.msra.mxu1 %v10962_v44  ;;  %v10967_v19 = vor.u32 %v9860_v55, %v7961_v52 }
 0x2db   :  { %3407 = vmatpush.bf16.msrb.mxu2 %v10955_v8 }
 0x2dc   :  { %3420 = vmatpush.bf16.msrb.mxu3 %v10957_v30  ;;  %11306 = vst [vmem:[#allocation32_spill] sm:$0xff] %v10967_v19  ;;  %v10974_v30 = vor.u32 %v9862_v63, %v7967_v31  ;;  %v8147_v31 = vld [vmem:[#allocation2 + $0x230] sm:$0xf]  ;;  %v9907_v63 = vld [vmem:[#allocation2 + $0x238] sm:$0xf0] }
 0x2de   :  { %3433 = vmatpush.bf16.msra.mxu0 %v10959_v17  ;;  %11309 = vst [vmem:[#allocation35_spill] sm:$0xff] %v10974_v30  ;;  %3447 = vmatpush.bf16.msra.mxu1 %v10974_v30 }
 0x2df   :  { %3408 = vmatpush.bf16.msrb.mxu2 %v10967_v19  ;;  %v9904_v19 = vld [vmem:[#allocation2 + $0x220] sm:$0xf0] }
 0x2e0   :  { %3421 = vmatpush.bf16.msrb.mxu3 %v10969_v23 }
 0x2e2   :  { %3434 = vmatpush.bf16.msra.mxu0 %v10971_v40  ;;  %v10984_v40 = vor.u32 %v9907_v63, %v8147_v31  ;;  %v9898_v31 = vld [vmem:[#allocation2 + $0x1f0] sm:$0xf0]  ;;  %v9892_v63 = vld [vmem:[#allocation2 + $0x1c0] sm:$0xf0] }
 0x335   :  { %v2952_v55 = vpop.xlane.xlu0 %2951 }
 0x336   :  { %v2953_v52 = vsub.f32 %v10832_v10, %v2952_v55  ;;  %v2954_v4 = vsub.f32 %v10815_v0, %v2952_v55  ;;  %v2955_v62 = vsub.f32 %v10838_v37, %v2952_v55  ;;  %v8135_v0 = vld [vmem:[#allocation2 + $0x218] sm:$0xf] }
 0x338   :  { %v2956_v7 = vmul.f32 1.442695, %v2953_v52  ;;  %v2958_v11 = vmul.f32 1.442695, %v2954_v4  ;;  %v2960_v44 = vmul.f32 1.442695, %v2955_v62  ;;  %v10999_v52 = vor.u32 %v9904_v19, %v8135_v0 }
 0x339   :  { %v8123_v4 = vld [vmem:[#allocation2 + $0x200] sm:$0xf]  ;;  %v9901_v62 = vld [vmem:[#allocation2 + $0x208] sm:$0xf0] }
 0x33a   :  { %10271 = vpow2.f32 %v2956_v7  ;;  %v11006_v7 = vor.u32 %v9901_v62, %v8123_v4  ;;  %v9922_v4 = vld [vmem:[#allocation9 + $0x74] sm:$0xf] }
 0x33b   :  { %10273 = vpow2.f32 %v2958_v11  ;;  %v8111_v11 = vld [vmem:[#allocation2 + $0x1e8] sm:$0xf] }
 0x33c   :  { %10275 = vpow2.f32 %v2960_v44 }
 0x33d   :  { %v3514_v19 = vpop.xlane.xlu0 %3513 }
 0x33e   :  { %v3516_v0 = vsub.f32 %v10794_v32, %v3514_v19  ;;  %v9889_v32 = vld [vmem:[#allocation2 + $0x1a8] sm:$0xf0] }
 0x340   :  { %v10982_v23 = vpop.eup %10271 }
 0x341   :  { %v10986_v30 = vpop.eup %10273  ;;  %v2962_v10 = vpack.c.bf16 %v10982_v23, %v10982_v23 }
 0x342   :  { %v10990_v37 = vpop.eup %10275  ;;  %v2963_v55 = vpack.c.bf16 %v10986_v30, %v10986_v30 }
 0x343   :  { %3357 = vmatmul.bf16.vlgmr.msra.gmra.mxu2 %v2962_v10  ;;  %v10996_v44 = vpack.c.bf16 %v10990_v37, %v10990_v37  ;;  %3396 = vmatmul.bf16.vlgmr.msrb.gmra.mxu1 %v2962_v10 }
 0x344   :  { %3370 = vmatmul.bf16.vlgmr.msra.gmra.mxu3 %v2963_v55  ;;  %3453 = vmatpush.bf16.msra.mxu2 %v10984_v40 }
 0x345   :  { %3383 = vmatmul.bf16.vlgmr.msrb.gmra.mxu0 %v10996_v44  ;;  %3527 = vmatpush.bf16.msra.mxu3 %v10758_v47  ;;  %v11012_v47 = vor.u32 %v9898_v31, %v8111_v11  ;;  %v8271_v11 = vld [vmem:[#allocation9 + $0xf0] sm:$0xf]  ;;  %v9939_v31 = vld [vmem:[#allocation9 + $0xf4] sm:$0xf0] }
 0x346   :  { %3540 = vmatpush.bf16.msrb.mxu0 %v10762_v54  ;;  %3553 = vmatpush.bf16.msrb.mxu1 %v10764_v48  ;;  %v8099_v54 = vld [vmem:[#allocation2 + $0x1d0] sm:$0xf]  ;;  %v9895_v48 = vld [vmem:[#allocation2 + $0x1d8] sm:$0xf0] }
 0x348   :  { %3454 = vmatpush.bf16.msra.mxu2 %v10999_v52 }
 0x349   :  { %3528 = vmatpush.bf16.msra.mxu3 %v10771_v59  ;;  %v11018_v59 = vor.u32 %v9895_v48, %v8099_v54  ;;  %v8272_v54 = vor.u32 %v9939_v31, %v8271_v11  ;;  %v8175_v48 = vld [vmem:[#allocation9 + $0x30] sm:$0xf]  ;;  %v9927_v11 = vld [vmem:[#allocation9 + $0x94] sm:$0xf0] }
 0x34a   :  { %3541 = vmatpush.bf16.msrb.mxu0 %v10774_v2  ;;  %3554 = vmatpush.bf16.msrb.mxu1 %v10776_v3  ;;  %v3515_v2 = vsub.f32 %v10809_v61, %v3514_v19  ;;  %v8087_v3 = vld [vmem:[#allocation2 + $0x1b8] sm:$0xf]  ;;  %v3520_v61 = vmul.f32 1.442695, %v3516_v0  ;;  %v8263_v0 = vld [vmem:[#allocation9 + $0xe0] sm:$0xf] }
 0x34c   :  { %3455 = vmatpush.bf16.msra.mxu2 %v11006_v7 }
 0x34d   :  { %3529 = vmatpush.bf16.msra.mxu3 %v10781_v50  ;;  %v3517_v50 = vsub.f32 %v10829_v27, %v3514_v19  ;;  %v8063_v27 = vld [vmem:[#allocation2 + $0x188] sm:$0xf]  ;;  %v9915_v19 = vld [vmem:[#allocation9 + $0x34] sm:$0xf0] }
 0x34e   :  { %3542 = vmatpush.bf16.msrb.mxu0 %v10786_v21  ;;  %3555 = vmatpush.bf16.msrb.mxu1 %v10788_v28  ;;  %v11028_v21 = vor.u32 %v9892_v63, %v8087_v3  ;;  %v3518_v28 = vmul.f32 1.442695, %v3515_v2  ;;  %v9920_v2 = vld [vmem:[#allocation9 + $0x64] sm:$0xf]  ;;  %v8201_v3 = vld [vmem:[#allocation9 + $0x68] sm:$0xf0] }
 0x34f   :  { %v8204_v63 = vor.u32 %v9920_v2, %v8201_v3  ;;  %v8153_v3 = vld [vmem:[#allocation9 + $0x8] sm:$0xf0] }
 0x350   :  { %3456 = vmatpush.bf16.msra.mxu2 %v11012_v47  ;;  %10277 = vpow2.f32 %v3518_v28  ;;  %v8167_v28 = vld [vmem:[#allocation9 + $0x20] sm:$0xf] }
 0x351   :  { %3530 = vmatpush.bf16.msra.mxu3 %v10798_v41  ;;  %v8075_v41 = vld [vmem:[#allocation2 + $0x1a0] sm:$0xf]  ;;  %10279 = vpow2.f32 %v3520_v61  ;;  %v9918_v61 = vld [vmem:[#allocation9 + $0x54] sm:$0xf] }
 0x352   :  { %3543 = vmatpush.bf16.msrb.mxu0 %v10802_v38  ;;  %3556 = vmatpush.bf16.msrb.mxu1 %v10804_v39  ;;  %v3522_v38 = vmul.f32 1.442695, %v3517_v50  ;;  %v11034_v39 = vor.u32 %v9889_v32, %v8075_v41  ;;  %v9937_v50 = vld [vmem:[#allocation9 + $0xe4] sm:$0xf0] }
 0x353   :  { %3409 = vmatmul.bf16.vlgmr.msrb.gmra.mxu2 %v2963_v55  ;;  %3448 = vmatmul.bf16.vlgmr.msra.gmra.mxu1 %v2963_v55  ;;  %v9886_v55 = vld [vmem:[#allocation2 + $0x190] sm:$0xf0]  ;;  %v9913_v41 = vld [vmem:[#allocation9 + $0x24] sm:$0xf0] }
 0x354   :  { %3422 = vmatmul.bf16.vlgmr.msrb.gmra.mxu3 %v10996_v44  ;;  %3457 = vmatpush.bf16.msra.mxu2 %v11018_v59  ;;  %10281 = vpow2.f32 %v3522_v38  ;;  %v8168_v32 = vor.u32 %v9913_v41, %v8167_v28  ;;  %v8193_v38 = vld [vmem:[#allocation9 + $0x58] sm:$0xf0]  ;;  %v8215_v28 = vld [vmem:[#allocation9 + $0x80] sm:$0xf]  ;;  %v9925_v41 = vld [vmem:[#allocation9 + $0x84] sm:$0xf0] }
 0x355   :  { %3435 = vmatmul.bf16.vlgmr.msra.gmra.mxu0 %v2962_v10  ;;  %3531 = vmatpush.bf16.msra.mxu3 %v10818_v49  ;;  %v11040_v49 = vor.u32 %v9886_v55, %v8063_v27  ;;  %v11328_v10 = vld [vmem:[#allocation35_spill] sm:$0xff]  ;;  %v9935_v55 = vld [vmem:[#allocation9 + $0xd4] sm:$0xf0] }
 0x356   :  { %3544 = vmatpush.bf16.msrb.mxu0 %v10822_v33  ;;  %3557 = vmatpush.bf16.msrb.mxu1 %v10824_v42  ;;  %v11045_v33 = vpop.eup %10277  ;;  %v8255_v27 = vld [vmem:[#allocation9 + $0xd0] sm:$0xf] }
 0x357   :  { %v11047_v42 = vpop.eup %10279 }
 0x358   :  { %3458 = vmatpush.bf16.msra.mxu2 %v11028_v21 }
 0x359   :  { %3532 = vmatpush.bf16.msra.mxu3 %v10835_v16 }
 0x35a   :  { %3545 = vmatpush.bf16.msrb.mxu0 %v10844_v15  ;;  %3558 = vmatpush.bf16.msrb.mxu1 %v10847_v34  ;;  %v11050_v16 = vpop.eup %10281  ;;  %v3524_v15 = vpack.c.bf16 %v11045_v33, %v11045_v33  ;;  %v11060_v34 = vpack.c.bf16 %v11047_v42, %v11047_v42 }
 0x35c   :  { %3459 = vmatpush.bf16.msra.mxu2 %v11034_v39 }
 0x35d   :  { %3533 = vmatpush.bf16.msra.mxu3 %v10853_v36  ;;  %v11066_v36 = vpack.c.bf16 %v11050_v16, %v11050_v16 }
 0x35e   :  { %3546 = vmatpush.bf16.msrb.mxu0 %v10856_v45  ;;  %3559 = vmatpush.bf16.msrb.mxu1 %v10860_v53  ;;  %v11313_v45 = vld [vmem:[#allocation27_spill] sm:$0xff]  ;;  %v11315_v53 = vld [vmem:[#allocation18_spill] sm:$0xff] }
 0x360   :  { %3460 = vmatpush.bf16.msra.mxu2 %v11040_v49 }
 0x361   :  { %3534 = vmatpush.bf16.msra.mxu3 %v10865_v1  ;;  %v11316_v1 = vld [vmem:[#allocation30_spill] sm:$0xff] }
 0x362   :  { %3547 = vmatpush.bf16.msrb.mxu0 %v10870_v9  ;;  %3560 = vmatpush.bf16.msrb.mxu1 %v10874_v14  ;;  %v11318_v9 = vld [vmem:[#allocation32_spill] sm:$0xff]  ;;  %v11319_v14 = vld [vmem:[#allocation33_spill] sm:$0xff] }
 0x363   :  { %3461 = vmatmul.bf16.vlgmr.msra.gmra.mxu2 %v10996_v44  ;;  %v8183_v44 = vld [vmem:[#allocation9 + $0x40] sm:$0xf] }
 0x364   :  { %3566 = vmatpush.bf16.msrb.mxu2 %v10767_v56  ;;  %3535 = vmatmul.bf16.vlgmr.msra.gmra.mxu3 %v3524_v15  ;;  %v11310_v56 = vld [vmem:[#allocation24_spill] sm:$0xff] }
 0x365   :  { %3579 = vmatpush.bf16.msrb.mxu3 %v10879_v29  ;;  %3548 = vmatmul.bf16.vlgmr.msrb.gmra.mxu0 %v11060_v34  ;;  %v11320_v29 = vld [vmem:[#allocation34_spill] sm:$0xff] }
 0x366   :  { %3592 = vmatpush.bf16.msra.mxu0 %v10881_v43  ;;  %3605 = vmatpush.bf16.msra.mxu1 %v10884_v20  ;;  %v11321_v43 = vld [vmem:[#allocation20_spill] sm:$0xff]  ;;  %v8207_v20 = vld [vmem:[#allocation9 + $0x70] sm:$0xf] }
 0x367   :  { %3561 = vmatmul.bf16.vlgmr.msrb.gmra.mxu1 %v11066_v36 }
 0x368   :  { %3567 = vmatpush.bf16.msrb.mxu2 %v10778_v6  ;;  %v11311_v6 = vld [vmem:[#allocation17_spill] sm:$0xff] }
 0x369   :  { %3580 = vmatpush.bf16.msrb.mxu3 %v10893_v57  ;;  %v9923_v57 = vld [vmem:[#allocation9 + $0x74] sm:$0xf0] }
 0x36a   :  { %3593 = vmatpush.bf16.msra.mxu0 %v10895_v26  ;;  %3606 = vmatpush.bf16.msra.mxu1 %v10899_v18  ;;  %v8199_v26 = vld [vmem:[#allocation9 + $0x60] sm:$0xf]  ;;  %v9921_v18 = vld [vmem:[#allocation9 + $0x64] sm:$0xf0] }
 0x36c   :  { %3568 = vmatpush.bf16.msrb.mxu2 %v10791_v25  ;;  %v11312_v25 = vld [vmem:[#allocation26_spill] sm:$0xff] }
 0x36d   :  { %3581 = vmatpush.bf16.msrb.mxu3 %v10905_v13  ;;  %v8200_v13 = vor.u32 %v9921_v18, %v8199_v26  ;;  %v8239_v26 = vld [vmem:[#allocation9 + $0xb0] sm:$0xf] }
 0x36e   :  { %3594 = vmatpush.bf16.msra.mxu0 %v10907_v24  ;;  %3607 = vmatpush.bf16.msra.mxu1 %v10911_v35  ;;  %v11322_v24 = vld [vmem:[#allocation21_spill] sm:$0xff]  ;;  %v8191_v35 = vld [vmem:[#allocation9 + $0x50] sm:$0xf] }
 0x370   :  { %3569 = vmatpush.bf16.msrb.mxu2 %v10807_v51  ;;  %v11314_v51 = vld [vmem:[#allocation28_spill] sm:$0xff] }
 0x371   :  { %3582 = vmatpush.bf16.msrb.mxu3 %v10917_v22  ;;  %v9919_v22 = vld [vmem:[#allocation9 + $0x54] sm:$0xf0] }
 0x372   :  { %3595 = vmatpush.bf16.msra.mxu0 %v10919_v60  ;;  %3608 = vmatpush.bf16.msra.mxu1 %v10923_v58  ;;  %v8192_v60 = vor.u32 %v9919_v22, %v8191_v35  ;;  %v11323_v58 = vld [vmem:[#allocation22_spill] sm:$0xff]  ;;  %v9936_v22 = vld [vmem:[#allocation9 + $0xe4] sm:$0xf] }
 0x373   :  { %v8169_v35 = vld [vmem:[#allocation9 + $0x28] sm:$0xf0] }
 0x374   :  { %3570 = vmatpush.bf16.msrb.mxu2 %v10827_v5  ;;  %v11317_v5 = vld [vmem:[#allocation19_spill] sm:$0xff] }
 0x375   :  { %3583 = vmatpush.bf16.msrb.mxu3 %v10931_v12  ;;  %v11325_v12 = vld [vmem:[#allocation25_spill] sm:$0xff] }
 0x376   :  { %3596 = vmatpush.bf16.msra.mxu0 %v10933_v46  ;;  %3609 = vmatpush.bf16.msra.mxu1 %v11310_v56  ;;  %v11326_v46 = vld [vmem:[#allocation29_spill] sm:$0xff] }
 0x377   :  { %v9916_v56 = vld [vmem:[#allocation9 + $0x44] sm:$0xf] }
 0x378   :  { %3571 = vmatpush.bf16.msrb.mxu2 %v11311_v6  ;;  %v8185_v6 = vld [vmem:[#allocation9 + $0x48] sm:$0xf0] }
 0x379   :  { %3584 = vmatpush.bf16.msrb.mxu3 %v11312_v25  ;;  %v8188_v25 = vor.u32 %v9916_v56, %v8185_v6 }
 0x37a   :  { %3597 = vmatpush.bf16.msra.mxu0 %v11313_v45  ;;  %3610 = vmatpush.bf16.msra.mxu1 %v11314_v51  ;;  %v8247_v45 = vld [vmem:[#allocation9 + $0xc0] sm:$0xf]  ;;  %v9933_v51 = vld [vmem:[#allocation9 + $0xc4] sm:$0xf0] }
 0x37c   :  { %3572 = vmatpush.bf16.msrb.mxu2 %v11315_v53  ;;  %v8248_v53 = vor.u32 %v9933_v51, %v8247_v45  ;;  %v8329_v45 = vld [vmem:[#allocation9 + $0x168] sm:$0xf0] }
 0x37d   :  { %3585 = vmatpush.bf16.msrb.mxu3 %v10955_v8  ;;  %v8208_v8 = vor.u32 %v9923_v57, %v8207_v20  ;;  %v8273_v57 = vld [vmem:[#allocation9 + $0xf8] sm:$0xf0] }
 0x37e   :  { %3598 = vmatpush.bf16.msra.mxu0 %v11316_v1  ;;  %3611 = vmatpush.bf16.msra.mxu1 %v10959_v17  ;;  %v11327_v17 = vld [vmem:[#allocation31_spill] sm:$0xff]  ;;  %v8151_v1 = vld [vmem:[#allocation9] sm:$0xf] }
 0x380   :  { %3573 = vmatpush.bf16.msrb.mxu2 %v11317_v5  ;;  %v9909_v5 = vld [vmem:[#allocation9 + $0x4] sm:$0xf0] }
 0x381   :  { %3586 = vmatpush.bf16.msrb.mxu3 %v11318_v9  ;;  %v8152_v9 = vor.u32 %v9909_v5, %v8151_v1 }
 0x382   :  { %3599 = vmatpush.bf16.msra.mxu0 %v11319_v14  ;;  %3612 = vmatpush.bf16.msra.mxu1 %v11320_v29  ;;  %v9914_v14 = vld [vmem:[#allocation9 + $0x34] sm:$0xf]  ;;  %v8177_v29 = vld [vmem:[#allocation9 + $0x38] sm:$0xf0] }
 0x383   :  { %3574 = vmatmul.bf16.vlgmr.msrb.gmra.mxu2 %v3524_v15  ;;  %v8180_v20 = vor.u32 %v9914_v14, %v8177_v29  ;;  %v9951_v14 = vld [vmem:[#allocation9 + $0x154] sm:$0xf0]  ;;  %v9928_v29 = vld [vmem:[#allocation9 + $0xa4] sm:$0xf] }
 0x384   :  { %3618 = vmatpush.bf16.msra.mxu2 %v11321_v43  ;;  %3587 = vmatmul.bf16.vlgmr.msrb.gmra.mxu3 %v11060_v34  ;;  %v9938_v43 = vld [vmem:[#allocation9 + $0xf4] sm:$0xf] }
 0x385   :  { %3631 = vmatpush.bf16.msra.mxu3 %v10984_v40  ;;  %3600 = vmatmul.bf16.vlgmr.msra.gmra.mxu0 %v11066_v36  ;;  %v11324_v40 = vld [vmem:[#allocation23_spill] sm:$0xff]  ;;  %v8276_v18 = vor.u32 %v9938_v43, %v8273_v57  ;;  %v8233_v57 = vld [vmem:[#allocation9 + $0xa8] sm:$0xf0] }
 0x386   :  { %3613 = vmatmul.bf16.vlgmr.msra.gmra.mxu1 %v3524_v15  ;;  %3989 = vmatpush.bf16.msrb.mxu0 %v8208_v8  ;;  %v8159_v15 = vld [vmem:[#allocation9 + $0x10] sm:$0xf]  ;;  %v9931_v8 = vld [vmem:[#allocation9 + $0xb4] sm:$0xf0] }
 0x387   :  { %4002 = vmatpush.bf16.msrb.mxu1 %v8272_v54 }
 0x388   :  { %3619 = vmatpush.bf16.msra.mxu2 %v11322_v24  ;;  %v9912_v24 = vld [vmem:[#allocation9 + $0x24] sm:$0xf] }
 0x389   :  { %3632 = vmatpush.bf16.msra.mxu3 %v10999_v52  ;;  %v9917_v52 = vld [vmem:[#allocation9 + $0x44] sm:$0xf0] }
 0x38a   :  { %3990 = vmatpush.bf16.msrb.mxu0 %v8200_v13  ;;  %v8184_v62 = vor.u32 %v9917_v52, %v8183_v44  ;;  %v8240_v13 = vor.u32 %v9931_v8, %v8239_v26  ;;  %v8161_v44 = vld [vmem:[#allocation9 + $0x18] sm:$0xf0]  ;;  %v9934_v52 = vld [vmem:[#allocation9 + $0xd4] sm:$0xf]  ;;  %v8236_v8 = vor.u32 %v9928_v29, %v8233_v57  ;;  %v9941_v57 = vld [vmem:[#allocation9 + $0x104] sm:$0xf0] }
 0x38c   :  { %3620 = vmatpush.bf16.msra.mxu2 %v11323_v58  ;;  %v8265_v58 = vld [vmem:[#allocation9 + $0xe8] sm:$0xf0] }
 0x38d   :  { %3633 = vmatpush.bf16.msra.mxu3 %v11006_v7  ;;  %v8209_v7 = vld [vmem:[#allocation9 + $0x78] sm:$0xf0] }
 0x38e   :  { %3991 = vmatpush.bf16.msrb.mxu0 %v8192_v60  ;;  %v8172_v60 = vor.u32 %v9912_v24, %v8169_v35 }
 0x390   :  { %3621 = vmatpush.bf16.msra.mxu2 %v11324_v40  ;;  %v8231_v40 = vld [vmem:[#allocation9 + $0xa0] sm:$0xf] }
 0x391   :  { %3634 = vmatpush.bf16.msra.mxu3 %v11012_v47  ;;  %v8212_v47 = vor.u32 %v9922_v4, %v8209_v7  ;;  %v8223_v7 = vld [vmem:[#allocation9 + $0x90] sm:$0xf] }
 0x392   :  { %3992 = vmatpush.bf16.msrb.mxu0 %v8184_v62  ;;  %v8257_v62 = vld [vmem:[#allocation9 + $0xd8] sm:$0xf0] }
 0x393   :  { %v8260_v31 = vor.u32 %v9934_v52, %v8257_v62 }
 0x394   :  { %3622 = vmatpush.bf16.msra.mxu2 %v11325_v12  ;;  %v9929_v12 = vld [vmem:[#allocation9 + $0xa4] sm:$0xf0] }
 0x395   :  { %3635 = vmatpush.bf16.msra.mxu3 %v11018_v59  ;;  %v8176_v59 = vor.u32 %v9915_v19, %v8175_v48  ;;  %v8335_v48 = vld [vmem:[#allocation9 + $0x170] sm:$0xf]  ;;  %v9955_v19 = vld [vmem:[#allocation9 + $0x174] sm:$0xf0] }
 0x396   :  { %v8336_v2 = vor.u32 %v9955_v19, %v8335_v48  ;;  %v8217_v48 = vld [vmem:[#allocation9 + $0x88] sm:$0xf0] }
 0x397   :  { %3993 = vmatpush.bf16.msrb.mxu0 %v8176_v59  ;;  %v9908_v59 = vld [vmem:[#allocation9 + $0x4] sm:$0xf] }
 0x398   :  { %3623 = vmatpush.bf16.msra.mxu2 %v11326_v46  ;;  %v8268_v46 = vor.u32 %v9936_v22, %v8265_v58  ;;  %v8311_v22 = vld [vmem:[#allocation9 + $0x140] sm:$0xf]  ;;  %v9926_v58 = vld [vmem:[#allocation9 + $0x94] sm:$0xf] }
 0x399   :  { %3636 = vmatpush.bf16.msra.mxu3 %v11028_v21  ;;  %v8264_v21 = vor.u32 %v9937_v50, %v8263_v0  ;;  %v8156_v50 = vor.u32 %v9908_v59, %v8153_v3  ;;  %v8305_v3 = vld [vmem:[#allocation9 + $0x138] sm:$0xf0] }
 0x39b   :  { %4003 = vmatpush.bf16.msrb.mxu1 %v8264_v21  ;;  %3994 = vmatpush.bf16.msrb.mxu0 %v8168_v32  ;;  %v8249_v21 = vld [vmem:[#allocation9 + $0xc8] sm:$0xf0] }
 0x39c   :  { %3624 = vmatpush.bf16.msra.mxu2 %v11327_v17  ;;  %v8232_v17 = vor.u32 %v9929_v12, %v8231_v40  ;;  %v8225_v40 = vld [vmem:[#allocation9 + $0x98] sm:$0xf0] }
 0x39d   :  { %3637 = vmatpush.bf16.msra.mxu3 %v11034_v39  ;;  %v8196_v39 = vor.u32 %v9918_v61, %v8193_v38  ;;  %v8216_v61 = vor.u32 %v9925_v41, %v8215_v28  ;;  %v9954_v38 = vld [vmem:[#allocation9 + $0x174] sm:$0xf]  ;;  %v9945_v28 = vld [vmem:[#allocation9 + $0x124] sm:$0xf0] }
 0x3a0   :  { %3625 = vmatpush.bf16.msra.mxu2 %v11328_v10  ;;  %v9910_v10 = vld [vmem:[#allocation9 + $0x14] sm:$0xf] }
 0x3a1   :  { %3638 = vmatpush.bf16.msra.mxu3 %v11040_v49  ;;  %v8256_v49 = vor.u32 %v9935_v55, %v8255_v27  ;;  %v8164_v4 = vor.u32 %v9910_v10, %v8161_v44  ;;  %v8327_v55 = vld [vmem:[#allocation9 + $0x160] sm:$0xf]  ;;  %v9948_v10 = vld [vmem:[#allocation9 + $0x144] sm:$0xf]  ;;  %v8313_v44 = vld [vmem:[#allocation9 + $0x148] sm:$0xf0] }
 0x3a3   :  { %3626 = vmatmul.bf16.vlgmr.msra.gmra.mxu2 %v11060_v34  ;;  %v9911_v34 = vld [vmem:[#allocation9 + $0x14] sm:$0xf0]  ;;  %4004 = vmatpush.bf16.msrb.mxu1 %v8256_v49  ;;  %v9953_v49 = vld [vmem:[#allocation9 + $0x164] sm:$0xf0] }
 0x3a4   :  { %3639 = vmatmul.bf16.vlgmr.msra.gmra.mxu3 %v11066_v36  ;;  %v8160_v36 = vor.u32 %v9911_v34, %v8159_v15  ;;  %4015 = vmatpush.bf16.msrb.mxu2 %v8336_v2  ;;  %v9930_v15 = vld [vmem:[#allocation9 + $0xb4] sm:$0xf]  ;;  %v8328_v34 = vor.u32 %v9953_v49, %v8327_v55 }
 0x3a5   :  { %4028 = vmatpush.bf16.msrb.mxu3 %v8212_v47  ;;  %v8224_v47 = vor.u32 %v9927_v11, %v8223_v7  ;;  %v8303_v7 = vld [vmem:[#allocation9 + $0x130] sm:$0xf]  ;;  %v9947_v11 = vld [vmem:[#allocation9 + $0x134] sm:$0xf0]  ;;  %v9946_v2 = vld [vmem:[#allocation9 + $0x134] sm:$0xf] }
 0x3a6   :  { %3995 = vmatpush.bf16.msrb.mxu0 %v8160_v36  ;;  %v8241_v36 = vld [vmem:[#allocation9 + $0xb8] sm:$0xf0] }
 0x3a7   :  { %4005 = vmatpush.bf16.msrb.mxu1 %v8248_v53  ;;  %v8244_v6 = vor.u32 %v9930_v15, %v8241_v36 }
 0x3a8   :  { %4016 = vmatpush.bf16.msrb.mxu2 %v8328_v34 }
 0x3a9   :  { %4029 = vmatpush.bf16.msrb.mxu3 %v8204_v63  ;;  %v9932_v63 = vld [vmem:[#allocation9 + $0xc4] sm:$0xf] }
 0x3aa   :  { %3996 = vmatpush.bf16.msrb.mxu0 %v8152_v9  ;;  %v8252_v32 = vor.u32 %v9932_v63, %v8249_v21  ;;  %v8319_v9 = vld [vmem:[#allocation9 + $0x150] sm:$0xf]  ;;  %v8295_v21 = vld [vmem:[#allocation9 + $0x120] sm:$0xf] }
 0x3ab   :  { %4006 = vmatpush.bf16.msrb.mxu1 %v8240_v13  ;;  %v8321_v13 = vld [vmem:[#allocation9 + $0x158] sm:$0xf0] }
 0x3ad   :  { %4030 = vmatpush.bf16.msrb.mxu3 %v8196_v39  ;;  %v8337_v39 = vld [vmem:[#allocation9 + $0x178] sm:$0xf0] }
 0x3ae   :  { %4041 = vmatpush.bf16.msra.mxu0 %v8276_v18  ;;  %v8340_v27 = vor.u32 %v9954_v38, %v8337_v39  ;;  %v9950_v18 = vld [vmem:[#allocation9 + $0x154] sm:$0xf]  ;;  %v9944_v39 = vld [vmem:[#allocation9 + $0x124] sm:$0xf] }
 0x3af   :  { %4007 = vmatpush.bf16.msrb.mxu1 %v8232_v17  ;;  %v8324_v35 = vor.u32 %v9950_v18, %v8321_v13  ;;  %v8228_v17 = vor.u32 %v9926_v58, %v8225_v40 }
 0x3b1   :  { %4031 = vmatpush.bf16.msrb.mxu3 %v8188_v25  ;;  %v9952_v25 = vld [vmem:[#allocation9 + $0x164] sm:$0xf] }
 0x3b2   :  { %4042 = vmatpush.bf16.msra.mxu0 %v8268_v46  ;;  %v8332_v1 = vor.u32 %v9952_v25, %v8329_v45  ;;  %v8287_v25 = vld [vmem:[#allocation9 + $0x110] sm:$0xf] }
 0x3b3   :  { %4008 = vmatpush.bf16.msrb.mxu1 %v8224_v47  ;;  %v8304_v47 = vor.u32 %v9947_v11, %v8303_v7 }
 0x3b5   :  { %4032 = vmatpush.bf16.msrb.mxu3 %v8180_v20  ;;  %v8320_v20 = vor.u32 %v9951_v14, %v8319_v9  ;;  %v8289_v9 = vld [vmem:[#allocation9 + $0x118] sm:$0xf0] }
 0x3b6   :  { %4043 = vmatpush.bf16.msra.mxu0 %v8260_v31  ;;  %v9924_v31 = vld [vmem:[#allocation9 + $0x84] sm:$0xf] }
 0x3b7   :  { %4009 = vmatpush.bf16.msrb.mxu1 %v8216_v61  ;;  %4017 = vmatpush.bf16.msrb.mxu2 %v8320_v20  ;;  %v8220_v59 = vor.u32 %v9924_v31, %v8217_v48  ;;  %v8279_v20 = vld [vmem:[#allocation9 + $0x100] sm:$0xf] }
 0x3b9   :  { %4033 = vmatpush.bf16.msrb.mxu3 %v8172_v60  ;;  %v9949_v60 = vld [vmem:[#allocation9 + $0x144] sm:$0xf0] }
 0x3ba   :  { %4044 = vmatpush.bf16.msra.mxu0 %v8252_v32  ;;  %v8312_v46 = vor.u32 %v9949_v60, %v8311_v22  ;;  %v8296_v32 = vor.u32 %v9945_v28, %v8295_v21 }
 0x3bb   :  { %4054 = vmatpush.bf16.msra.mxu1 %v8340_v27  ;;  %v8297_v27 = vld [vmem:[#allocation9 + $0x128] sm:$0xf0] }
 0x3bc   :  { %4018 = vmatpush.bf16.msrb.mxu2 %v8312_v46  ;;  %v8300_v34 = vor.u32 %v9944_v39, %v8297_v27 }
 0x3bd   :  { %4034 = vmatpush.bf16.msrb.mxu3 %v8164_v4  ;;  %v8316_v4 = vor.u32 %v9948_v10, %v8313_v44 }
 0x3be   :  { %4045 = vmatpush.bf16.msra.mxu0 %v8244_v6 }
 0x3bf   :  { %4055 = vmatpush.bf16.msra.mxu1 %v8332_v1 }
 0x3c0   :  { %v11120_v54 = vpop.f32.mrf.mxu1  ;;  %4019 = vmatpush.bf16.msrb.mxu2 %v8304_v47 }
 0x3c1   :  { %4035 = vmatpush.bf16.msrb.mxu3 %v8156_v50  ;;  %v3398_v41 = vadd.f32 1e-30, %v11120_v54  ;;  %v9943_v54 = vld [vmem:[#allocation9 + $0x114] sm:$0xf0] }
 0x3c2   :  { %v3384_v0 = vpop.f32.mrf.mxu0  ;;  %4046 = vmatpush.bf16.msra.mxu0 %v8236_v8  ;;  %v8280_v8 = vor.u32 %v9941_v57, %v8279_v20 }
 0x3c3   :  { %4056 = vmatpush.bf16.msra.mxu1 %v8324_v35  ;;  %v8281_v35 = vld [vmem:[#allocation9 + $0x108] sm:$0xf0] }
 0x3c4   :  { %4020 = vmatpush.bf16.msrb.mxu2 %v8296_v32 }
 0x3c6   :  { %v3358_v56 = vpop.f32.mrf.mxu2  ;;  %4047 = vmatpush.bf16.msra.mxu0 %v8228_v17 }
 0x3c7   :  { %v3359_v51 = vadd.f32 1e-30, %v3358_v56  ;;  %v3371_v53 = vpop.f32.mrf.mxu3  ;;  %4057 = vmatpush.bf16.msra.mxu1 %v8316_v4 }
 0x3c8   :  { %v3399_v5 = vpop.f32.mrf.mxu1 }
 0x3c9   :  { %v3372_v43 = vadd.f32 %v3371_v53, %v3359_v51  ;;  %v8288_v51 = vor.u32 %v9943_v54, %v8287_v25  ;;  %v9942_v5 = vld [vmem:[#allocation9 + $0x114] sm:$0xf] }
 0x3ca   :  { %v3386_v26 = vpop.f32.mrf.mxu0  ;;  %4048 = vmatpush.bf16.msra.mxu0 %v8220_v59 }
 0x3cb   :  { %v11122_v24 = vadd.f32 %v3384_v0, %v3372_v43  ;;  %v8308_v0 = vor.u32 %v9946_v2, %v8305_v3  ;;  %4021 = vmatpush.bf16.msrb.mxu2 %v8288_v51  ;;  %v8292_v43 = vor.u32 %v9942_v5, %v8289_v9 }
 0x3cd   :  { %10283 = vrcp.f32 %v11122_v24  ;;  %4058 = vmatpush.bf16.msra.mxu1 %v8308_v0  ;;  %v3477_v55 = vand.u32 2147483648, %v11122_v24  ;;  %v3475_v56 = vand.u32 2147483647, %v11122_v24  ;;  %vm3471_vm1 = vweird.f32 %v11122_v24 }
 0x3ce   :  { %v3360_v12 = vpop.f32.mrf.mxu2 }
 0x3cf   :  { %v3373_v52 = vpop.f32.mrf.mxu3  ;;  %v3478_v14 = vor.u32 1.1754944e-38, %v3477_v55  ;;  %vm3476_vm3 = vcmp.eq.f32.partialorder %v3475_v56, 8.507059e+37  ;;  %4022 = vmatpush.bf16.msrb.mxu2 %v8280_v8 }
 0x3d0   :  { %v11125_v62 = vpop.f32.mrf.mxu1 }
 0x3d1   :  { %4059 = vmatpush.bf16.msra.mxu1 %v8300_v34 }
 0x3d2   :  { %v3436_v19 = vpop.f32.mrf.mxu0 }
 0x3d3   :  { %v10284_v63 = vpop.eup %10283  ;;  %v3437_v12 = vadd.f32 1e-30, %v3436_v19 }
 0x3d4   :  { %v3467_v50 = vmul.f32 %v10284_v63, %v11122_v24  ;;  %vm3472_vm0 = vweird.f32 %v10284_v63  ;;  %v9940_v24 = vld [vmem:[#allocation9 + $0x104] sm:$0xf] }
 0x3d5   :  { %vm3473_vm2 = vmor %vm3471_vm1, %vm3472_vm0  ;;  %4060 = vmatpush.bf16.msra.mxu1 %v8292_v43  ;;  %v8284_v60 = vor.u32 %v9940_v24, %v8281_v35  ;;  %v3450_v52 = vadd.f32 %v11125_v62, %v3437_v12 }
 0x3d6   :  { %v3468_v61 = vsub.f32 1.0, %v3467_v50  ;;  %v3410_v38 = vpop.f32.mrf.mxu2 }
 0x3d7   :  { %v3411_v49 = vadd.f32 %v3410_v38, %v3398_v41  ;;  %v3423_v15 = vpop.f32.mrf.mxu3 }
 0x3d8   :  { %v3469_v36 = vmul.f32 %v10284_v63, %v3468_v61  ;;  %v3451_v6 = vpop.f32.mrf.mxu1 }
 0x3d9   :  { %v3424_v45 = vadd.f32 %v3423_v15, %v3411_v49  ;;  %4061 = vmatpush.bf16.msra.mxu1 %v8284_v60 }
 0x3da   :  { %v3470_v53 = vadd.f32 %v10284_v63, %v3469_v36  ;;  %v3438_v1 = vpop.f32.mrf.mxu0 }
 0x3db   :  { %10285 = vrcp.f32 %v3424_v45  ;;  %v3490_v7 = vand.u32 2147483647, %v3424_v45  ;;  %vm3486_vm5 = vweird.f32 %v3424_v45 }
 0x3dc   :  { %v3474_v29 = vsel %vm3473_vm2, %v10284_v63, %v3470_v53 }
 0x3dd   :  { %v3479_v26 = vsel %vm3476_vm3, %v3478_v14, %v3474_v29  ;;  %vm3491_vm7 = vcmp.eq.f32.partialorder %v3490_v7, 8.507059e+37  ;;  %v10016_v7 = vld [vmem:[#allocation10 + $0x1e4] sm:$0xf] }
 0x3de   :  { %v3412_v18 = vpop.f32.mrf.mxu2  ;;  %v3480_v13 = vmul.f32 %v10982_v23, %v3479_v26  ;;  %v3492_v23 = vand.u32 2147483648, %v3424_v45 }
 0x3df   :  { %v3425_v22 = vpop.f32.mrf.mxu3 }
 0x3e0   :  { %v3692_v58 = vpack.c.bf16 %v3480_v13, %v3480_v13  ;;  %v3493_v19 = vor.u32 1.1754944e-38, %v3492_v23  ;;  %v10018_v23 = vld [vmem:[#allocation10 + $0x1ec] sm:$0xf0] }
 0x3e1   :  { %v10286_v40 = vpop.eup %10285 }
 0x3e2   :  { %v3482_v46 = vmul.f32 %v10286_v40, %v3424_v45  ;;  %v3549_v17 = vpop.f32.mrf.mxu0  ;;  %3997 = vmatmul.bf16.vlgmr.msrb.gmra.mxu0 %v3692_v58  ;;  %4036 = vmatmul.bf16.vlgmr.msrb.gmra.mxu3 %v3692_v58  ;;  %vm3487_vm4 = vweird.f32 %v10286_v40 }
 0x3e3   :  { %vm3488_vm6 = vmor %vm3486_vm5, %vm3487_vm4 }
 0x3e4   :  { %v3562_v10 = vpop.f32.mrf.mxu1  ;;  %v3483_v44 = vsub.f32 1.0, %v3482_v46 }
 0x3e6   :  { %v3484_v4 = vmul.f32 %v10286_v40, %v3483_v44  ;;  %v3462_v11 = vpop.f32.mrf.mxu2 }
 0x3e7   :  { %v3463_v47 = vadd.f32 %v3462_v11, %v3450_v52  ;;  %v3536_v48 = vpop.f32.mrf.mxu3 }
 0x3e8   :  { %v3485_v31 = vadd.f32 %v10286_v40, %v3484_v4  ;;  %v3537_v59 = vadd.f32 1e-30, %v3536_v48  ;;  %v8583_v4 = vld [vmem:[#allocation10 + $0x1e0] sm:$0xf] }
 0x3e9   :  { %10287 = vrcp.f32 %v3463_v47  ;;  %v3507_v27 = vand.u32 2147483648, %v3463_v47  ;;  %v3505_v15 = vand.u32 2147483647, %v3463_v47  ;;  %vm3501_vm9 = vweird.f32 %v3463_v47  ;;  %v8455_v48 = vld [vmem:[#allocation10 + $0xe0] sm:$0xf] }
 0x3ea   :  { %v3551_v2 = vpop.f32.mrf.mxu0  ;;  %v3550_v3 = vadd.f32 %v3549_v17, %v3537_v59  ;;  %v3489_v0 = vsel %vm3488_vm6, %v10286_v40, %v3485_v31  ;;  %v8584_v31 = vor.u32 %v10018_v23, %v8583_v4  ;;  %v9986_v59 = vld [vmem:[#allocation10 + $0xec] sm:$0xf0]  ;;  %v8519_v4 = vld [vmem:[#allocation10 + $0x160] sm:$0xf] }
 0x3eb   :  { %v3494_v50 = vsel %vm3491_vm7, %v3493_v19, %v3489_v0  ;;  %v3508_v56 = vor.u32 1.1754944e-38, %v3507_v27  ;;  %vm3506_vm11 = vcmp.eq.f32.partialorder %v3505_v15, 8.507059e+37  ;;  %v10014_v0 = vld [vmem:[#allocation10 + $0x1cc] sm:$0xf0] }
 0x3ec   :  { %v3564_v63 = vpop.f32.mrf.mxu1  ;;  %v3563_v62 = vadd.f32 %v3562_v10, %v3550_v3  ;;  %v3495_v21 = vmul.f32 %v10986_v30, %v3494_v50  ;;  %v8456_v3 = vor.u32 %v9986_v59, %v8455_v48  ;;  %v9984_v50 = vld [vmem:[#allocation10 + $0xe4] sm:$0xf]  ;;  %4478 = vmatpush.bf16.msra.mxu3 %v8584_v31  ;;  %v8409_v31 = vld [vmem:[#allocation10 + $0x90] sm:$0xf0] }
 0x3ed   :  { %v8567_v63 = vld [vmem:[#allocation10 + $0x1c0] sm:$0xf]  ;;  %v10000_v59 = vld [vmem:[#allocation10 + $0x164] sm:$0xf] }
 0x3ee   :  { %10289 = vrcp.f32 %v3563_v62  ;;  %v3464_v28 = vpop.f32.mrf.mxu2  ;;  %v3693_v61 = vpack.c.bf16 %v3495_v21, %v3495_v21  ;;  %v3655_v6 = vand.u32 2147483648, %v3563_v62  ;;  %v3653_v45 = vand.u32 2147483647, %v3563_v62  ;;  %v8457_v21 = vld [vmem:[#allocation10 + $0xf0] sm:$0xf0]  ;;  %4465 = vmatpush.bf16.msra.mxu2 %v8456_v3 }
 0x3ef   :  { %v10288_v41 = vpop.eup %10287  ;;  %v3538_v32 = vpop.f32.mrf.mxu3  ;;  %vm3649_vm13 = vweird.f32 %v3563_v62  ;;  %v10012_v28 = vld [vmem:[#allocation10 + $0x1c4] sm:$0xf] }
 0x3f0   :  { %v3497_v38 = vmul.f32 %v10288_v41, %v3463_v47  ;;  %4010 = vmatmul.bf16.vlgmr.msrb.gmra.mxu1 %v3693_v61  ;;  %vm3502_vm8 = vweird.f32 %v10288_v41  ;;  %v3656_v5 = vor.u32 1.1754944e-38, %v3655_v6  ;;  %vm3654_vm15 = vcmp.eq.f32.partialorder %v3653_v45, 8.507059e+37  ;;  %v8585_v47 = vld [vmem:[#allocation10 + $0x1f0] sm:$0xf0] }
 0x3f1   :  { %vm3503_vm10 = vmor %vm3501_vm9, %vm3502_vm8  ;;  %v8588_v2 = vor.u32 %v10016_v7, %v8585_v47  ;;  %v8460_v32 = vor.u32 %v9984_v50, %v8457_v21  ;;  %v10002_v7 = vld [vmem:[#allocation10 + $0x16c] sm:$0xf0]  ;;  %v9968_v21 = vld [vmem:[#allocation10 + $0x64] sm:$0xf] }
 0x3f2   :  { %4049 = vmatmul.bf16.vlgmr.msra.gmra.mxu0 %v3693_v61  ;;  %v3498_v39 = vsub.f32 1.0, %v3497_v38  ;;  %v8520_v47 = vor.u32 %v10002_v7, %v8519_v4  ;;  %v9998_v50 = vld [vmem:[#allocation10 + $0x14c] sm:$0xf0]  ;;  %v9985_v4 = vld [vmem:[#allocation10 + $0xec] sm:$0xf] }
 0x3f3   :  { %4504 = vmatpush.bf16.msrb.mxu1 %v8588_v2  ;;  %4491 = vmatpush.bf16.msrb.mxu0 %v8460_v32  ;;  %v8391_v2 = vld [vmem:[#allocation10 + $0x60] sm:$0xf]  ;;  %v10013_v7 = vld [vmem:[#allocation10 + $0x1cc] sm:$0xf] }
 0x3f4   :  { %v10290_v55 = vpop.eup %10289  ;;  %v3499_v49 = vmul.f32 %v10288_v41, %v3498_v39 }
 0x3f5   :  { %v3645_v34 = vmul.f32 %v10290_v55, %v3563_v62  ;;  %vm3650_vm12 = vweird.f32 %v10290_v55  ;;  %v8568_v62 = vor.u32 %v10014_v0, %v8567_v63  ;;  %v9970_v63 = vld [vmem:[#allocation10 + $0x6c] sm:$0xf0]  ;;  %v8503_v0 = vld [vmem:[#allocation10 + $0x140] sm:$0xf] }
 0x3f6   :  { %v3500_v36 = vadd.f32 %v10288_v41, %v3499_v49  ;;  %vm3651_vm14 = vmor %vm3649_vm13, %vm3650_vm12  ;;  %v8504_v32 = vor.u32 %v9998_v50, %v8503_v0  ;;  %v9981_v0 = vld [vmem:[#allocation10 + $0xcc] sm:$0xf]  ;;  %v8449_v50 = vld [vmem:[#allocation10 + $0xd8] sm:$0xf0] }
 0x3f7   :  { %v3646_v30 = vsub.f32 1.0, %v3645_v34  ;;  %4479 = vmatpush.bf16.msra.mxu3 %v8568_v62  ;;  %v8392_v62 = vor.u32 %v9970_v63, %v8391_v2  ;;  %v10011_v63 = vld [vmem:[#allocation10 + $0x1b4] sm:$0xf0] }
 0x3f8   :  { %v3504_v25 = vsel %vm3503_vm10, %v10288_v41, %v3500_v36  ;;  %v8569_v41 = vld [vmem:[#allocation10 + $0x1d0] sm:$0xf0] }
 0x3f9   :  { %v3647_v54 = vmul.f32 %v10290_v55, %v3646_v30  ;;  %v3509_v51 = vsel %vm3506_vm11, %v3508_v56, %v3504_v25  ;;  %v8572_v61 = vor.u32 %v10012_v28, %v8569_v41  ;;  %v8393_v28 = vld [vmem:[#allocation10 + $0x70] sm:$0xf0]  ;;  %v9996_v41 = vld [vmem:[#allocation10 + $0x144] sm:$0xf] }
 0x3fa   :  { %v3510_v53 = vmul.f32 %v10990_v37, %v3509_v51 }
 0x3fb   :  { %v3648_v1 = vadd.f32 %v10290_v55, %v3647_v54  ;;  %4505 = vmatpush.bf16.msrb.mxu1 %v8572_v61  ;;  %v8396_v61 = vor.u32 %v9968_v21, %v8393_v28  ;;  %v8452_v21 = vor.u32 %v9981_v0, %v8449_v50  ;;  %v10009_v28 = vld [vmem:[#allocation10 + $0x1ac] sm:$0xf]  ;;  %v9991_v0 = vld [vmem:[#allocation10 + $0x114] sm:$0xf0] }
 0x3fc   :  { %v3694_v9 = vpack.c.bf16 %v3510_v53, %v3510_v53  ;;  %v9961_v50 = vld [vmem:[#allocation10 + $0x2c] sm:$0xf] }
 0x3fd   :  { %v3652_v14 = vsel %vm3651_vm14, %v10290_v55, %v3648_v1 }
 0x3fe   :  { %v3657_v29 = vsel %vm3654_vm15, %v3656_v5, %v3652_v14  ;;  %4023 = vmatmul.bf16.vlgmr.msrb.gmra.mxu2 %v3694_v9  ;;  %v8439_v5 = vld [vmem:[#allocation10 + $0xc0] sm:$0xf] }
 0x3ff   :  { %v3658_v20 = vmul.f32 %v11045_v33, %v3657_v29  ;;  %v8551_v14 = vld [vmem:[#allocation10 + $0x1a0] sm:$0xf] }
 0x400   :  { %4062 = vmatmul.bf16.vlgmr.msra.gmra.mxu1 %v3694_v9  ;;  %v9982_v9 = vld [vmem:[#allocation10 + $0xcc] sm:$0xf0] }
 0x401   :  { %3689 = vst [vmem:[%s11266_s16] sm:$0xff] %v3658_v20  ;;  %v8440_v29 = vor.u32 %v9982_v9, %v8439_v5  ;;  %v9980_v20 = vld [vmem:[#allocation10 + $0xc4] sm:$0xf] }
 0x402   :  { %v3601_v43 = vpop.f32.mrf.mxu0 }
 0x403   :  { %v3614_v57 = vpop.f32.mrf.mxu1  ;;  %4466 = vmatpush.bf16.msra.mxu2 %v8440_v29  ;;  %v8361_v29 = vld [vmem:[#allocation10 + $0x30] sm:$0xf0] }
 0x406   :  { %v3575_v26 = vpop.f32.mrf.mxu2 }
 0x407   :  { %v3576_v37 = vadd.f32 1e-30, %v3575_v26  ;;  %v3588_v8 = vpop.f32.mrf.mxu3 }
 0x409   :  { %v3589_v18 = vadd.f32 %v3588_v8, %v3576_v37  ;;  %v10008_v8 = vld [vmem:[#allocation10 + $0x1a4] sm:$0xf] }
 0x40a   :  { %v3603_v13 = vpop.f32.mrf.mxu0 }
 0x40b   :  { %v3616_v24 = vpop.f32.mrf.mxu1  ;;  %v3602_v35 = vadd.f32 %v3601_v43, %v3589_v18  ;;  %v10010_v43 = vld [vmem:[#allocation10 + $0x1ac] sm:$0xf0]  ;;  %v8553_v18 = vld [vmem:[#allocation10 + $0x1b0] sm:$0xf0]  ;;  %v8423_v13 = vld [vmem:[#allocation10 + $0xa0] sm:$0xf] }
 0x40c   :  { %v8552_v26 = vor.u32 %v10010_v43, %v8551_v14  ;;  %v8556_v24 = vor.u32 %v10008_v8, %v8553_v18  ;;  %v9960_v14 = vld [vmem:[#allocation10 + $0x24] sm:$0xf]  ;;  %v10019_v8 = vld [vmem:[#allocation10 + $0x1f4] sm:$0xf0]  ;;  %v10017_v18 = vld [vmem:[#allocation10 + $0x1ec] sm:$0xf] }
 0x40d   :  { %10291 = vrcp.f32 %v3602_v35  ;;  %v3668_v33 = vand.u32 2147483647, %v3602_v35  ;;  %v3670_v46 = vand.u32 2147483648, %v3602_v35  ;;  %vm3664_vm1 = vweird.f32 %v3602_v35  ;;  %v9988_v43 = vld [vmem:[#allocation10 + $0x104] sm:$0xf] }
 0x40e   :  { %v3577_v22 = vpop.f32.mrf.mxu2  ;;  %4480 = vmatpush.bf16.msra.mxu3 %v8552_v26  ;;  %4506 = vmatpush.bf16.msrb.mxu1 %v8556_v24  ;;  %v8593_v24 = vld [vmem:[#allocation10 + $0x1f8] sm:$0xf0] }
 0x40f   :  { %v3590_v60 = vpop.f32.mrf.mxu3  ;;  %vm3669_vm3 = vcmp.eq.f32.partialorder %v3668_v33, 8.507059e+37  ;;  %v3671_v44 = vor.u32 1.1754944e-38, %v3670_v46  ;;  %v10006_v22 = vld [vmem:[#allocation10 + $0x18c] sm:$0xf0]  ;;  %v10004_v33 = vld [vmem:[#allocation10 + $0x184] sm:$0xf] }
 0x413   :  { %v10292_v58 = vpop.eup %10291 }
 0x414   :  { %v3660_v40 = vmul.f32 %v10292_v58, %v3602_v35  ;;  %vm3665_vm0 = vweird.f32 %v10292_v58  ;;  %v9978_v35 = vld [vmem:[#allocation10 + $0xac] sm:$0xf0] }
 0x415   :  { %vm3666_vm2 = vmor %vm3664_vm1, %vm3665_vm0  ;;  %v8424_v60 = vor.u32 %v9978_v35, %v8423_v13  ;;  %v8343_v35 = vld [vmem:[#allocation10] sm:$0xf] }
 0x416   :  { %v3661_v12 = vsub.f32 1.0, %v3660_v40  ;;  %v9976_v40 = vld [vmem:[#allocation10 + $0xa4] sm:$0xf] }
 0x417   :  { %4467 = vmatpush.bf16.msra.mxu2 %v8424_v60 }
 0x418   :  { %v3662_v17 = vmul.f32 %v10292_v58, %v3661_v12  ;;  %v8425_v12 = vld [vmem:[#allocation10 + $0xb0] sm:$0xf0] }
 0x419   :  { %v8428_v46 = vor.u32 %v9976_v40, %v8425_v12  ;;  %v8345_v40 = vld [vmem:[#allocation10 + $0x10] sm:$0xf0]  ;;  %v8463_v12 = vld [vmem:[#allocation10 + $0xe8] sm:$0xf] }
 0x41a   :  { %v3663_v10 = vadd.f32 %v10292_v58, %v3662_v17  ;;  %v8537_v17 = vld [vmem:[#allocation10 + $0x190] sm:$0xf0] }
 0x41c   :  { %v3667_v52 = vsel %vm3666_vm2, %v10292_v58, %v3663_v10  ;;  %v8540_v10 = vor.u32 %v10004_v33, %v8537_v17  ;;  %v8575_v17 = vld [vmem:[#allocation10 + $0x1c8] sm:$0xf] }
 0x41d   :  { %v3672_v11 = vsel %vm3669_vm3, %v3671_v44, %v3667_v52  ;;  %v8407_v44 = vld [vmem:[#allocation10 + $0x80] sm:$0xf]  ;;  %v9974_v52 = vld [vmem:[#allocation10 + $0x8c] sm:$0xf0] }
 0x41e   :  { %v3673_v19 = vmul.f32 %v11047_v42, %v3672_v11  ;;  %v3615_v42 = vadd.f32 1e-30, %v3614_v57  ;;  %v8441_v57 = vld [vmem:[#allocation10 + $0xd0] sm:$0xf0]  ;;  %v8408_v23 = vor.u32 %v9974_v52, %v8407_v44  ;;  %v9972_v11 = vld [vmem:[#allocation10 + $0x84] sm:$0xf]  ;;  %4507 = vmatpush.bf16.msrb.mxu1 %v8540_v10 }
 0x41f   :  { %v8444_v37 = vor.u32 %v9980_v20, %v8441_v57  ;;  %v8412_v48 = vor.u32 %v9972_v11, %v8409_v31  ;;  %v8364_v20 = vor.u32 %v9960_v14, %v8361_v29  ;;  %v8473_v57 = vld [vmem:[#allocation10 + $0x110] sm:$0xf0]  ;;  %v10015_v10 = vld [vmem:[#allocation10 + $0x1d4] sm:$0xf0]  ;;  %v8577_v31 = vld [vmem:[#allocation10 + $0x1d8] sm:$0xf0] }
 0x420   :  { %3690 = vst [vmem:[%s11266_s16 + $0x8] sm:$0xff] %v3673_v19  ;;  %v8521_v19 = vld [vmem:[#allocation10 + $0x170] sm:$0xf0]  ;;  %4468 = vmatpush.bf16.msra.mxu2 %v8408_v23  ;;  %v8476_v26 = vor.u32 %v9988_v43, %v8473_v57  ;;  %v8576_v52 = vor.u32 %v10015_v10, %v8575_v17  ;;  %v8465_v23 = vld [vmem:[#allocation10 + $0xf8] sm:$0xf0] }
 0x421   :  { %4492 = vmatpush.bf16.msrb.mxu0 %v8444_v37  ;;  %v8524_v3 = vor.u32 %v10000_v59, %v8521_v19  ;;  %v8591_v37 = vld [vmem:[#allocation10 + $0x1e8] sm:$0xf]  ;;  %v8468_v11 = vor.u32 %v9985_v4, %v8465_v23  ;;  %v9983_v59 = vld [vmem:[#allocation10 + $0xd4] sm:$0xf0]  ;;  %v10001_v43 = vld [vmem:[#allocation10 + $0x16c] sm:$0xf] }
 0x422   :  { %v8592_v13 = vor.u32 %v10019_v8, %v8591_v37  ;;  %v8559_v19 = vld [vmem:[#allocation10 + $0x1a8] sm:$0xf]  ;;  %v9971_v37 = vld [vmem:[#allocation10 + $0x74] sm:$0xf0]  ;;  %v9965_v4 = vld [vmem:[#allocation10 + $0x4c] sm:$0xf] }
 0x423   :  { %4508 = vmatpush.bf16.msrb.mxu1 %v8524_v3  ;;  %v8511_v8 = vld [vmem:[#allocation10 + $0x148] sm:$0xf]  ;;  %v9995_v10 = vld [vmem:[#allocation10 + $0x134] sm:$0xf0]  ;;  %v8385_v23 = vld [vmem:[#allocation10 + $0x58] sm:$0xf0] }
 0x424   :  { %4469 = vmatpush.bf16.msra.mxu2 %v8392_v62  ;;  %v8560_v62 = vor.u32 %v10011_v63, %v8559_v19  ;;  %v8495_v17 = vld [vmem:[#allocation10 + $0x128] sm:$0xf]  ;;  %v9963_v19 = vld [vmem:[#allocation10 + $0x34] sm:$0xf0] }
 0x425   :  { %4493 = vmatpush.bf16.msrb.mxu0 %v8428_v46  ;;  %v9987_v46 = vld [vmem:[#allocation10 + $0xf4] sm:$0xf0]  ;;  %v8479_v63 = vld [vmem:[#allocation10 + $0x108] sm:$0xf] }
 0x426   :  { %v3627_v38 = vpop.f32.mrf.mxu2  ;;  %v8464_v44 = vor.u32 %v9987_v46, %v8463_v12  ;;  %v9967_v46 = vld [vmem:[#allocation10 + $0x54] sm:$0xf0] }
 0x427   :  { %v3628_v39 = vadd.f32 %v3627_v38, %v3615_v42  ;;  %v3640_v27 = vpop.f32.mrf.mxu3  ;;  %v8505_v42 = vld [vmem:[#allocation10 + $0x150] sm:$0xf0] }
 0x428   :  { %v8508_v38 = vor.u32 %v9996_v41, %v8505_v42  ;;  %v8561_v41 = vld [vmem:[#allocation10 + $0x1b8] sm:$0xf0]  ;;  %v9979_v42 = vld [vmem:[#allocation10 + $0xb4] sm:$0xf0] }
 0x429   :  { %v3641_v55 = vadd.f32 %v3640_v27, %v3628_v39  ;;  %4494 = vmatpush.bf16.msrb.mxu0 %v8412_v48  ;;  %v8375_v39 = vld [vmem:[#allocation10 + $0x40] sm:$0xf]  ;;  %v9966_v27 = vld [vmem:[#allocation10 + $0x4c] sm:$0xf0]  ;;  %v8447_v48 = vld [vmem:[#allocation10 + $0xc8] sm:$0xf] }
 0x42a   :  { %4509 = vmatpush.bf16.msrb.mxu1 %v8508_v38  ;;  %v8448_v3 = vor.u32 %v9983_v59, %v8447_v48  ;;  %v8543_v38 = vld [vmem:[#allocation10 + $0x188] sm:$0xf]  ;;  %v8497_v48 = vld [vmem:[#allocation10 + $0x138] sm:$0xf0] }
 0x42b   :  { %10293 = vrcp.f32 %v3641_v55  ;;  %v3685_v30 = vand.u32 2147483648, %v3641_v55  ;;  %v3683_v25 = vand.u32 2147483647, %v3641_v55  ;;  %vm3679_vm5 = vweird.f32 %v3641_v55  ;;  %v8367_v59 = vld [vmem:[#allocation10 + $0x28] sm:$0xf] }
 0x42d   :  { %v3686_v45 = vor.u32 1.1754944e-38, %v3685_v30  ;;  %vm3684_vm7 = vcmp.eq.f32.partialorder %v3683_v25, 8.507059e+37  ;;  %4495 = vmatpush.bf16.msrb.mxu0 %v8396_v61  ;;  %v8489_v25 = vld [vmem:[#allocation10 + $0x130] sm:$0xf0]  ;;  %v8431_v61 = vld [vmem:[#allocation10 + $0xa8] sm:$0xf] }
 0x42e   :  { %v3629_v49 = vpop.f32.mrf.mxu2 }
 0x42f   :  { %v3642_v15 = vpop.f32.mrf.mxu3  ;;  %v8376_v49 = vor.u32 %v9966_v27, %v8375_v39  ;;  %v8432_v39 = vor.u32 %v9979_v42, %v8431_v61  ;;  %v10007_v27 = vld [vmem:[#allocation10 + $0x194] sm:$0xf0] }
 0x430   :  { %v9994_v15 = vld [vmem:[#allocation10 + $0x12c] sm:$0xf0] }
 0x431   :  { %v10294_v34 = vpop.eup %10293  ;;  %4470 = vmatpush.bf16.msra.mxu2 %v8376_v49  ;;  %v8433_v49 = vld [vmem:[#allocation10 + $0xb8] sm:$0xf0] }
 0x432   :  { %v3675_v36 = vmul.f32 %v10294_v34, %v3641_v55  ;;  %vm3680_vm4 = vweird.f32 %v10294_v34  ;;  %v8487_v55 = vld [vmem:[#allocation10 + $0x120] sm:$0xf] }
 0x433   :  { %vm3681_vm6 = vmor %vm3679_vm5, %vm3680_vm4 }
 0x434   :  { %v3676_v56 = vsub.f32 1.0, %v3675_v36  ;;  %v8377_v36 = vld [vmem:[#allocation10 + $0x50] sm:$0xf0] }
 0x436   :  { %v3677_v6 = vmul.f32 %v10294_v34, %v3676_v56  ;;  %v8488_v56 = vor.u32 %v9994_v15, %v8487_v55  ;;  %v9977_v55 = vld [vmem:[#allocation10 + $0xac] sm:$0xf]  ;;  %v8544_v15 = vor.u32 %v10007_v27, %v8543_v38  ;;  %v8351_v38 = vld [vmem:[#allocation10 + $0x8] sm:$0xf] }
 0x437   :  { %v9957_v27 = vld [vmem:[#allocation10 + $0xc] sm:$0xf] }
 0x438   :  { %v3678_v54 = vadd.f32 %v10294_v34, %v3677_v6  ;;  %v9992_v6 = vld [vmem:[#allocation10 + $0x124] sm:$0xf] }
 0x43a   :  { %v3682_v51 = vsel %vm3681_vm6, %v10294_v34, %v3678_v54  ;;  %v9964_v34 = vld [vmem:[#allocation10 + $0x44] sm:$0xf]  ;;  %v8359_v54 = vld [vmem:[#allocation10 + $0x20] sm:$0xf] }
 0x43b   :  { %v3687_v53 = vsel %vm3684_vm7, %v3686_v45, %v3682_v51  ;;  %v8380_v30 = vor.u32 %v9964_v34, %v8377_v36  ;;  %v8492_v45 = vor.u32 %v9992_v6, %v8489_v25  ;;  %v9962_v51 = vld [vmem:[#allocation10 + $0x2c] sm:$0xf0]  ;;  %v8436_v34 = vor.u32 %v9977_v55, %v8433_v49  ;;  %v10005_v36 = vld [vmem:[#allocation10 + $0x18c] sm:$0xf]  ;;  %v8415_v25 = vld [vmem:[#allocation10 + $0x88] sm:$0xf] }
 0x43c   :  { %v3688_v1 = vmul.f32 %v11050_v16, %v3687_v53  ;;  %v8535_v16 = vld [vmem:[#allocation10 + $0x180] sm:$0xf]  ;;  %v8360_v5 = vor.u32 %v9962_v51, %v8359_v54  ;;  %v9975_v54 = vld [vmem:[#allocation10 + $0x94] sm:$0xf0] }
 0x43d   :  { %v8536_v58 = vor.u32 %v10006_v22, %v8535_v16  ;;  %v8471_v53 = vld [vmem:[#allocation10 + $0x100] sm:$0xf]  ;;  %4496 = vmatpush.bf16.msrb.mxu0 %v8380_v30  ;;  %4510 = vmatpush.bf16.msrb.mxu1 %v8492_v45  ;;  %v9958_v16 = vld [vmem:[#allocation10 + $0xc] sm:$0xf0]  ;;  %v8596_v22 = vor.u32 %v10017_v18, %v8593_v24  ;;  %v8527_v45 = vld [vmem:[#allocation10 + $0x168] sm:$0xf] }
 0x43e   :  { %3691 = vst [vmem:[%s11266_s16 + $0x10] sm:$0xff] %v3688_v1  ;;  %v9990_v1 = vld [vmem:[#allocation10 + $0x10c] sm:$0xf0]  ;;  %4471 = vmatpush.bf16.msra.mxu2 %v8360_v5  ;;  %v8344_v60 = vor.u32 %v9958_v16, %v8343_v35  ;;  %v9973_v5 = vld [vmem:[#allocation10 + $0x8c] sm:$0xf] }
 0x43f   :  { %4481 = vmatpush.bf16.msra.mxu3 %v8536_v58  ;;  %v8472_v9 = vor.u32 %v9990_v1, %v8471_v53  ;;  %v9956_v58 = vld [vmem:[#allocation10 + $0x4] sm:$0xf]  ;;  %v8416_v53 = vor.u32 %v9975_v54, %v8415_v25  ;;  %v10003_v1 = vld [vmem:[#allocation10 + $0x174] sm:$0xf0]  ;;  %v9969_v24 = vld [vmem:[#allocation10 + $0x6c] sm:$0xf] }
 0x440   :  { %v8348_v33 = vor.u32 %v9956_v58, %v8345_v40  ;;  %v8528_v14 = vor.u32 %v10003_v1, %v8527_v45  ;;  %v8401_v35 = vld [vmem:[#allocation10 + $0x78] sm:$0xf0]  ;;  %v8383_v40 = vld [vmem:[#allocation10 + $0x48] sm:$0xf]  ;;  %v3743_v55 = vld [vmem:[%s11260_s10] sm:$0x3] }
 0x441   :  { %4497 = vmatpush.bf16.msrb.mxu0 %v8364_v20  ;;  %4511 = vmatpush.bf16.msrb.mxu1 %v8476_v26  ;;  %v8529_v20 = vld [vmem:[#allocation10 + $0x178] sm:$0xf0]  ;;  %v8399_v26 = vld [vmem:[#allocation10 + $0x68] sm:$0xf]  ;;  %v3745_v25 = vperm.slane %v3743_v55, 0 }
 0x442   :  { %4472 = vmatpush.bf16.msra.mxu2 %v8344_v60  ;;  %v8532_v57 = vor.u32 %v10001_v43, %v8529_v20  ;;  %v8400_v18 = vor.u32 %v9971_v37, %v8399_v26  ;;  %v9997_v60 = vld [vmem:[#allocation10 + $0x14c] sm:$0xf]  ;;  %v8513_v58 = vld [vmem:[#allocation10 + $0x158] sm:$0xf0]  ;;  %v9019_v1 = vld [vmem:[#allocation12 + $0x348] sm:$0xf] }
 0x443   :  { %4482 = vmatpush.bf16.msra.mxu3 %v8520_v47  ;;  %v8580_v47 = vor.u32 %v10013_v7, %v8577_v31  ;;  %v9993_v7 = vld [vmem:[#allocation10 + $0x12c] sm:$0xf]  ;;  %v8991_v26 = vld [vmem:[#allocation12 + $0x310] sm:$0xf]  ;;  %v8795_v37 = vld [vmem:[#allocation12 + $0x188] sm:$0xf] }
 0x445   :  { %4556 = vmatpush.bf16.msra.mxu1 %v8596_v22  ;;  %4498 = vmatpush.bf16.msrb.mxu0 %v8348_v33  ;;  %v8404_v22 = vor.u32 %v9969_v24, %v8401_v35  ;;  %v8516_v33 = vor.u32 %v9997_v60, %v8513_v58  ;;  %v9243_v35 = vld [vmem:[#allocation12 + $0x508] sm:$0xf]  ;;  %v10233_v60 = vld [vmem:[#allocation12 + $0x6a8] sm:$0xf0] }
 0x446   :  { %4517 = vmatpush.bf16.msrb.mxu2 %v8464_v44  ;;  %v8384_v44 = vor.u32 %v9967_v46, %v8383_v40 }
 0x447   :  { %4483 = vmatpush.bf16.msra.mxu3 %v8504_v32  ;;  %v8564_v32 = vor.u32 %v10009_v28, %v8561_v41  ;;  %v9989_v28 = vld [vmem:[#allocation10 + $0x10c] sm:$0xf]  ;;  %v8481_v41 = vld [vmem:[#allocation10 + $0x118] sm:$0xf0] }
 0x448   :  { %v8484_v42 = vor.u32 %v9989_v28, %v8481_v41  ;;  %v10170_v28 = vld [vmem:[#allocation12 + $0x4b0] sm:$0xf0]  ;;  %v10107_v41 = vld [vmem:[#allocation12 + $0x2b8] sm:$0xf0] }
 0x449   :  { %4543 = vmatpush.bf16.msra.mxu0 %v8468_v11  ;;  %4557 = vmatpush.bf16.msra.mxu1 %v8580_v47  ;;  %v8388_v47 = vor.u32 %v9965_v4, %v8385_v23  ;;  %v9215_v23 = vld [vmem:[#allocation12 + $0x4d0] sm:$0xf] }
 0x44a   :  { %4518 = vmatpush.bf16.msrb.mxu2 %v8448_v3  ;;  %v8500_v3 = vor.u32 %v9993_v7, %v8497_v48  ;;  %v10177_v7 = vld [vmem:[#allocation12 + $0x4e8] sm:$0xf0] }
 0x44b   :  { %4484 = vmatpush.bf16.msra.mxu3 %v8488_v56  ;;  %v8545_v56 = vld [vmem:[#allocation10 + $0x198] sm:$0xf0] }
 0x44c   :  { %v8548_v6 = vor.u32 %v10005_v36, %v8545_v56  ;;  %v8353_v36 = vld [vmem:[#allocation10 + $0x18] sm:$0xf0]  ;;  %v3746_v56 = vperm.slane %v3743_v55, 1  ;;  %v10100_v55 = vld [vmem:[#allocation12 + $0x280] sm:$0xf0] }
 0x44d   :  { %4544 = vmatpush.bf16.msra.mxu0 %v8452_v21  ;;  %4558 = vmatpush.bf16.msra.mxu1 %v8564_v32  ;;  %v8369_v21 = vld [vmem:[#allocation10 + $0x38] sm:$0xf0]  ;;  %v8480_v32 = vor.u32 %v9991_v0, %v8479_v63  ;;  %v9216_v63 = vor.u32 %v10177_v7, %v9215_v23  ;;  %v9021_v23 = vld [vmem:[#allocation12 + $0x364] sm:$0xf0]  ;;  %v9271_v7 = vld [vmem:[#allocation12 + $0x540] sm:$0xf] }
 0x44e   :  { %4519 = vmatpush.bf16.msrb.mxu2 %v8432_v39  ;;  %v8372_v61 = vor.u32 %v9961_v50, %v8369_v21  ;;  %v9959_v39 = vld [vmem:[#allocation10 + $0x14] sm:$0xf0]  ;;  %v10058_v50 = vld [vmem:[#allocation12 + $0x130] sm:$0xf0] }
 0x44f   :  { %4485 = vmatpush.bf16.msra.mxu3 %v8472_v9  ;;  %v8417_v9 = vld [vmem:[#allocation10 + $0x98] sm:$0xf0]  ;;  %v9187_v21 = vld [vmem:[#allocation12 + $0x498] sm:$0xf] }
 0x450   :  { %v8420_v29 = vor.u32 %v9973_v5, %v8417_v9  ;;  %v10128_v9 = vld [vmem:[#allocation12 + $0x360] sm:$0xf0] }
 0x451   :  { %4545 = vmatpush.bf16.msra.mxu0 %v8436_v34  ;;  %4559 = vmatpush.bf16.msra.mxu1 %v8548_v6  ;;  %v8352_v34 = vor.u32 %v9959_v39, %v8351_v38  ;;  %v8356_v6 = vor.u32 %v9957_v27, %v8353_v36  ;;  %v9188_v38 = vor.u32 %v10170_v28, %v9187_v21  ;;  %v8907_v27 = vld [vmem:[#allocation12 + $0x268] sm:$0xf] }
 0x452   :  { %4520 = vmatpush.bf16.msrb.mxu2 %v8416_v53  ;;  %v9355_v36 = vld [vmem:[#allocation12 + $0x5e8] sm:$0xf] }
 0x453   :  { %4530 = vmatpush.bf16.msrb.mxu3 %v8592_v13  ;;  %v9999_v13 = vld [vmem:[#allocation10 + $0x154] sm:$0xf0] }
 0x454   :  { %v8512_v16 = vor.u32 %v9999_v13, %v8511_v8  ;;  %v10072_v13 = vld [vmem:[#allocation12 + $0x1a0] sm:$0xf0] }
 0x455   :  { %4546 = vmatpush.bf16.msra.mxu0 %v8420_v29  ;;  %4560 = vmatpush.bf16.msra.mxu1 %v8532_v57  ;;  %v10240_v29 = vld [vmem:[#allocation12 + $0x6e0] sm:$0xf0]  ;;  %v8796_v40 = vor.u32 %v10072_v13, %v8795_v37  ;;  %v8655_v13 = vld [vmem:[#allocation12 + $0x70] sm:$0xf] }
 0x456   :  { %4521 = vmatpush.bf16.msrb.mxu2 %v8400_v18  ;;  %v9020_v18 = vor.u32 %v10128_v9, %v9019_v1  ;;  %v8683_v1 = vld [vmem:[#allocation12 + $0xa8] sm:$0xf] }
 0x457   :  { %4531 = vmatpush.bf16.msrb.mxu3 %v8576_v52  ;;  %v8496_v52 = vor.u32 %v9995_v10, %v8495_v17 }
 0x459   :  { %4547 = vmatpush.bf16.msra.mxu0 %v8404_v22  ;;  %4561 = vmatpush.bf16.msra.mxu1 %v8516_v33  ;;  %v9439_v22 = vld [vmem:[#allocation12 + $0x690] sm:$0xf] }
 0x45a   :  { %4522 = vmatpush.bf16.msrb.mxu2 %v8384_v44  ;;  %v8767_v33 = vld [vmem:[#allocation12 + $0x150] sm:$0xf]  ;;  %v9440_v4 = vor.u32 %v10233_v60, %v9439_v22  ;;  %v10198_v22 = vld [vmem:[#allocation12 + $0x590] sm:$0xf0] }
 0x45b   :  { %4532 = vmatpush.bf16.msrb.mxu3 %v8560_v62  ;;  %v8368_v62 = vor.u32 %v9963_v19, %v8367_v59  ;;  %v8935_v19 = vld [vmem:[#allocation12 + $0x2a0] sm:$0xf]  ;;  %v9103_v60 = vld [vmem:[#allocation12 + $0x3f0] sm:$0xf] }
 0x45c   :  { %v8936_v39 = vor.u32 %v10107_v41, %v8935_v19  ;;  %v10023_v19 = vld [vmem:[#allocation12 + $0x18] sm:$0xf0] }
 0x45d   :  { %4548 = vmatpush.bf16.msra.mxu0 %v8388_v47  ;;  %4562 = vmatpush.bf16.msra.mxu1 %v8500_v3  ;;  %v10226_v47 = vld [vmem:[#allocation12 + $0x670] sm:$0xf0]  ;;  %v8739_v3 = vld [vmem:[#allocation12 + $0x118] sm:$0xf]  ;;  %v10111_v41 = vld [vmem:[#allocation12 + $0x2dc] sm:$0xf] }
 0x45e   :  { %4523 = vmatpush.bf16.msrb.mxu2 %v8368_v62 }
 0x45f   :  { %v11148_v2 = vpop.f32.mrf.mxu0  ;;  %4533 = vmatpush.bf16.msrb.mxu3 %v8544_v15 }
 0x461   :  { %4549 = vmatpush.bf16.msra.mxu0 %v8372_v61  ;;  %4563 = vmatpush.bf16.msra.mxu1 %v8484_v42  ;;  %v10219_v61 = vld [vmem:[#allocation12 + $0x638] sm:$0xf0]  ;;  %v8740_v42 = vor.u32 %v10058_v50, %v8739_v3  ;;  %v8797_v50 = vld [vmem:[#allocation12 + $0x1a4] sm:$0xf0] }
 0x462   :  { %4524 = vmatpush.bf16.msrb.mxu2 %v8352_v34  ;;  %v10051_v34 = vld [vmem:[#allocation12 + $0xf8] sm:$0xf0] }
 0x463   :  { %4534 = vmatpush.bf16.msrb.mxu3 %v8528_v14  ;;  %v9467_v14 = vld [vmem:[#allocation12 + $0x6c8] sm:$0xf] }
 0x464   :  { %v9468_v24 = vor.u32 %v10240_v29, %v9467_v14  ;;  %v9327_v29 = vld [vmem:[#allocation12 + $0x5b0] sm:$0xf] }
 0x465   :  { %v11150_v30 = vpop.f32.mrf.mxu3  ;;  %4550 = vmatpush.bf16.msra.mxu0 %v8356_v6  ;;  %v9159_v6 = vld [vmem:[#allocation12 + $0x460] sm:$0xf] }
 0x466   :  { %v4038_v54 = vadd.f32 %v11150_v30, %v3746_v56  ;;  %v10184_v30 = vld [vmem:[#allocation12 + $0x520] sm:$0xf0] }
 0x467   :  { %v4000_v51 = vpop.f32.mrf.mxu0  ;;  %4535 = vmatpush.bf16.msrb.mxu3 %v8512_v16  ;;  %v9244_v46 = vor.u32 %v10184_v30, %v9243_v35  ;;  %v10212_v56 = vld [vmem:[#allocation12 + $0x600] sm:$0xf0] }
 0x468   :  { %v3999_v51 = vadd.f32 %v11148_v2, %v3745_v25  ;;  %v10121_v2 = vld [vmem:[#allocation12 + $0x328] sm:$0xf0]  ;;  %v10163_v25 = vld [vmem:[#allocation12 + $0x478] sm:$0xf0]  ;;  %v9356_v9 = vor.u32 %v10212_v56, %v9355_v36 }
 0x469   :  { %v8992_v44 = vor.u32 %v10121_v2, %v8991_v26  ;;  %v9160_v14 = vor.u32 %v10163_v25, %v9159_v6  ;;  %v9299_v2 = vld [vmem:[#allocation12 + $0x578] sm:$0xf]  ;;  %v10097_v56 = vld [vmem:[#allocation12 + $0x26c] sm:$0xf]  ;;  %v8909_v6 = vld [vmem:[#allocation12 + $0x284] sm:$0xf0] }
 0x46a   :  { %v10237_v25 = vld [vmem:[#allocation12 + $0x6cc] sm:$0xf] }
 0x46b   :  { %4536 = vmatpush.bf16.msrb.mxu3 %v8496_v52  ;;  %v10065_v52 = vld [vmem:[#allocation12 + $0x168] sm:$0xf0] }
 0x46c   :  { %v8768_v59 = vor.u32 %v10065_v52, %v8767_v33  ;;  %v10079_v33 = vld [vmem:[#allocation12 + $0x1d8] sm:$0xf0]  ;;  %v9300_v52 = vor.u32 %v10198_v22, %v9299_v2  ;;  %v10181_v2 = vld [vmem:[#allocation12 + $0x50c] sm:$0xf] }
 0x46d   :  { %v4039_v12 = vpop.f32.mrf.mxu3  ;;  %v4011_v11 = vpop.f32.mrf.mxu1 }
 0x46e   :  { %v4012_v43 = vadd.f32 %v4011_v11, %v3999_v51  ;;  %v8963_v12 = vld [vmem:[#allocation12 + $0x2d8] sm:$0xf]  ;;  %v10114_v11 = vld [vmem:[#allocation12 + $0x2f0] sm:$0xf0]  ;;  %v8879_v51 = vld [vmem:[#allocation12 + $0x230] sm:$0xf] }
 0x46f   :  { %v4050_v31 = vpop.f32.mrf.mxu0  ;;  %4537 = vmatpush.bf16.msrb.mxu3 %v8480_v32  ;;  %v8964_v0 = vor.u32 %v10114_v11, %v8963_v12  ;;  %v9383_v32 = vld [vmem:[#allocation12 + $0x620] sm:$0xf]  ;;  %v10191_v11 = vld [vmem:[#allocation12 + $0x558] sm:$0xf0] }
 0x470   :  { %v4051_v45 = vadd.f32 %v4050_v31, %v4038_v54  ;;  %v9411_v31 = vld [vmem:[#allocation12 + $0x658] sm:$0xf]  ;;  %v8908_v54 = vor.u32 %v10100_v55, %v8907_v27  ;;  %v8823_v12 = vld [vmem:[#allocation12 + $0x1c0] sm:$0xf]  ;;  %v9272_v3 = vor.u32 %v10191_v11, %v9271_v7  ;;  %v10104_v27 = vld [vmem:[#allocation12 + $0x2a4] sm:$0xf] }
 0x471   :  { %v9412_v62 = vor.u32 %v10226_v47, %v9411_v31  ;;  %v8937_v55 = vld [vmem:[#allocation12 + $0x2bc] sm:$0xf0]  ;;  %v9217_v7 = vld [vmem:[#allocation12 + $0x4ec] sm:$0xf0] }
 0x475   :  { %v4013_v49 = vpop.f32.mrf.mxu1 }
 0x476   :  { %v9384_v49 = vor.u32 %v10219_v61, %v9383_v32  ;;  %v8965_v32 = vld [vmem:[#allocation12 + $0x2f4] sm:$0xf0]  ;;  %v10062_v61 = vld [vmem:[#allocation12 + $0x154] sm:$0xf] }
 0x477   :  { %v4052_v15 = vpop.f32.mrf.mxu0 }
 0x478   :  { %v8711_v15 = vld [vmem:[#allocation12 + $0xe0] sm:$0xf] }
 0x47d   :  { %v4063_v53 = vpop.f32.mrf.mxu1 }
 0x47e   :  { %v4064_v5 = vadd.f32 %v4063_v53, %v4051_v45  ;;  %v8712_v45 = vor.u32 %v10051_v34, %v8711_v15  ;;  %v10093_v53 = vld [vmem:[#allocation12 + $0x248] sm:$0xf0]  ;;  %v8741_v15 = vld [vmem:[#allocation12 + $0x134] sm:$0xf0]  ;;  %v8940_v34 = vor.u32 %v10104_v27, %v8937_v55  ;;  %v9161_v27 = vld [vmem:[#allocation12 + $0x47c] sm:$0xf0] }
 0x47f   :  { %v8880_v26 = vor.u32 %v10093_v53, %v8879_v51  ;;  %v9075_v51 = vld [vmem:[#allocation12 + $0x3b8] sm:$0xf]  ;;  %v10142_v53 = vld [vmem:[#allocation12 + $0x3d0] sm:$0xf0] }
 0x480   :  { %v4068_v20 = vmax.f32 %v4064_v5, 0.0  ;;  %v10044_v5 = vld [vmem:[#allocation12 + $0xc0] sm:$0xf0] }
 0x481   :  { %v4024_v57 = vpop.f32.mrf.mxu2  ;;  %v8684_v37 = vor.u32 %v10044_v5, %v8683_v1  ;;  %v9076_v5 = vor.u32 %v10142_v53, %v9075_v51  ;;  %v10146_v51 = vld [vmem:[#allocation12 + $0x3f4] sm:$0xf]  ;;  %v9105_v53 = vld [vmem:[#allocation12 + $0x40c] sm:$0xf0] }
 0x482   :  { %v4025_v8 = vadd.f32 %v4024_v57, %v4012_v43  ;;  %v11157_v16 = vpack.c.bf16 %v4068_v20, %v4068_v20  ;;  %v10205_v43 = vld [vmem:[#allocation12 + $0x5c8] sm:$0xf0]  ;;  %v9131_v20 = vld [vmem:[#allocation12 + $0x428] sm:$0xf]  ;;  %v10156_v57 = vld [vmem:[#allocation12 + $0x440] sm:$0xf0] }
 0x483   :  { %v9328_v35 = vor.u32 %v10205_v43, %v9327_v29  ;;  %v9132_v30 = vor.u32 %v10156_v57, %v9131_v20  ;;  %v10090_v43 = vld [vmem:[#allocation12 + $0x234] sm:$0xf]  ;;  %v8881_v20 = vld [vmem:[#allocation12 + $0x24c] sm:$0xf0] }
 0x484   :  { %v4067_v58 = vmax.f32 %v4025_v8, 0.0  ;;  %4486 = vmatmul.bf16.vlgmr.msra.gmra.mxu3 %v11157_v16  ;;  %4512 = vmatmul.bf16.vlgmr.msrb.gmra.mxu1 %v11157_v16  ;;  %v8851_v8 = vld [vmem:[#allocation12 + $0x1f8] sm:$0xf]  ;;  %v10230_v57 = vld [vmem:[#allocation12 + $0x694] sm:$0xf] }
 0x485   :  { %v4065_v10 = vpop.f32.mrf.mxu1  ;;  %6014 = vmatpush.bf16.msra.mxu3 %v9020_v18  ;;  %6040 = vmatpush.bf16.msrb.mxu1 %v9468_v24  ;;  %v10086_v18 = vld [vmem:[#allocation12 + $0x210] sm:$0xf0]  ;;  %v10037_v24 = vld [vmem:[#allocation12 + $0x88] sm:$0xf0] }
 0x486   :  { %v11161_v17 = vpack.c.bf16 %v4067_v58, %v4067_v58  ;;  %v8852_v58 = vor.u32 %v10086_v18, %v8851_v8  ;;  %v8627_v10 = vld [vmem:[#allocation12 + $0x38] sm:$0xf]  ;;  %v9047_v8 = vld [vmem:[#allocation12 + $0x380] sm:$0xf]  ;;  %v10135_v18 = vld [vmem:[#allocation12 + $0x398] sm:$0xf0] }
 0x488   :  { %4473 = vmatmul.bf16.vlgmr.msra.gmra.mxu2 %v11161_v17  ;;  %4499 = vmatmul.bf16.vlgmr.msrb.gmra.mxu0 %v11161_v17 }
 0x489   :  { %v4026_v48 = vpop.f32.mrf.mxu2  ;;  %6001 = vmatpush.bf16.msra.mxu2 %v8796_v40  ;;  %6027 = vmatpush.bf16.msrb.mxu0 %v9244_v46  ;;  %v8656_v40 = vor.u32 %v10037_v24, %v8655_v13  ;;  %v10125_v46 = vld [vmem:[#allocation12 + $0x34c] sm:$0xf]  ;;  %v9048_v24 = vor.u32 %v10135_v18, %v9047_v8  ;;  %v10132_v8 = vld [vmem:[#allocation12 + $0x384] sm:$0xf]  ;;  %v9049_v18 = vld [vmem:[#allocation12 + $0x39c] sm:$0xf0] }
 0x48a   :  { %6015 = vmatpush.bf16.msra.mxu3 %v8992_v44  ;;  %6041 = vmatpush.bf16.msrb.mxu1 %v9440_v4  ;;  %v10030_v44 = vld [vmem:[#allocation12 + $0x50] sm:$0xf0]  ;;  %v9024_v47 = vor.u32 %v10125_v46, %v9021_v23  ;;  %v9413_v46 = vld [vmem:[#allocation12 + $0x674] sm:$0xf0] }
 0x48b   :  { %v8628_v31 = vor.u32 %v10030_v44, %v8627_v10  ;;  %v10118_v48 = vld [vmem:[#allocation12 + $0x314] sm:$0xf] }
 0x48c   :  { %v10034_v44 = vld [vmem:[#allocation12 + $0x74] sm:$0xf] }
 0x48d   :  { %6002 = vmatpush.bf16.msra.mxu2 %v8768_v59  ;;  %6028 = vmatpush.bf16.msrb.mxu0 %v9216_v63  ;;  %v8599_v59 = vld [vmem:[#allocation12] sm:$0xf]  ;;  %v8993_v63 = vld [vmem:[#allocation12 + $0x32c] sm:$0xf0] }
 0x48e   :  { %6016 = vmatpush.bf16.msra.mxu3 %v8964_v0  ;;  %6042 = vmatpush.bf16.msrb.mxu1 %v9412_v62  ;;  %v10069_v0 = vld [vmem:[#allocation12 + $0x18c] sm:$0xf]  ;;  %v8600_v62 = vor.u32 %v10023_v19, %v8599_v59  ;;  %v8996_v21 = vor.u32 %v10118_v48, %v8993_v63  ;;  %v9385_v59 = vld [vmem:[#allocation12 + $0x63c] sm:$0xf0]  ;;  %v8629_v63 = vld [vmem:[#allocation12 + $0x54] sm:$0xf0] }
 0x48f   :  { %v8800_v28 = vor.u32 %v10069_v0, %v8797_v50  ;;  %v10167_v0 = vld [vmem:[#allocation12 + $0x49c] sm:$0xf] }
 0x491   :  { %6003 = vmatpush.bf16.msra.mxu2 %v8740_v42  ;;  %6029 = vmatpush.bf16.msrb.mxu0 %v9188_v38  ;;  %v8769_v42 = vld [vmem:[#allocation12 + $0x16c] sm:$0xf0]  ;;  %v8968_v38 = vor.u32 %v10111_v41, %v8965_v32  ;;  %v9357_v41 = vld [vmem:[#allocation12 + $0x604] sm:$0xf0] }
 0x492   :  { %6017 = vmatpush.bf16.msra.mxu3 %v8936_v39  ;;  %6043 = vmatpush.bf16.msrb.mxu1 %v9384_v49  ;;  %v8772_v39 = vor.u32 %v10062_v61, %v8769_v42  ;;  %v10055_v49 = vld [vmem:[#allocation12 + $0x11c] sm:$0xf]  ;;  %v10020_v61 = vld [vmem:[#allocation12 + $0x4] sm:$0xf]  ;;  %v8601_v42 = vld [vmem:[#allocation12 + $0x1c] sm:$0xf0] }
 0x493   :  { %v8744_v36 = vor.u32 %v10055_v49, %v8741_v15  ;;  %v10202_v49 = vld [vmem:[#allocation12 + $0x5b4] sm:$0xf]  ;;  %v9329_v15 = vld [vmem:[#allocation12 + $0x5cc] sm:$0xf0] }
 0x494   :  { %4538 = vmatmul.bf16.vlgmr.msrb.gmra.mxu3 %v11157_v16  ;;  %4564 = vmatmul.bf16.vlgmr.msra.gmra.mxu1 %v11157_v16  ;;  %v10149_v16 = vld [vmem:[#allocation12 + $0x408] sm:$0xf0] }
 0x495   :  { %6004 = vmatpush.bf16.msra.mxu2 %v8712_v45  ;;  %6030 = vmatpush.bf16.msrb.mxu0 %v9160_v14  ;;  %v9104_v4 = vor.u32 %v10149_v16, %v9103_v60  ;;  %v9469_v45 = vld [vmem:[#allocation12 + $0x6e4] sm:$0xf0]  ;;  %v8713_v14 = vld [vmem:[#allocation12 + $0xfc] sm:$0xf0] }
 0x496   :  { %6018 = vmatpush.bf16.msra.mxu3 %v8908_v54  ;;  %6044 = vmatpush.bf16.msrb.mxu1 %v9356_v9  ;;  %v8912_v54 = vor.u32 %v10097_v56, %v8909_v6  ;;  %v9472_v1 = vor.u32 %v10237_v25, %v9469_v45  ;;  %v10048_v9 = vld [vmem:[#allocation12 + $0xe4] sm:$0xf]  ;;  %v9245_v60 = vld [vmem:[#allocation12 + $0x524] sm:$0xf0]  ;;  %v10195_v25 = vld [vmem:[#allocation12 + $0x57c] sm:$0xf] }
 0x497   :  { %v8716_v29 = vor.u32 %v10048_v9, %v8713_v14  ;;  %v9248_v16 = vor.u32 %v10181_v2, %v9245_v60  ;;  %v9133_v56 = vld [vmem:[#allocation12 + $0x444] sm:$0xf0]  ;;  %v9273_v9 = vld [vmem:[#allocation12 + $0x55c] sm:$0xf0]  ;;  %v9027_v60 = vld [vmem:[#allocation12 + $0x350] sm:$0xf] }
 0x498   :  { %4525 = vmatmul.bf16.vlgmr.msrb.gmra.mxu2 %v11161_v17  ;;  %4551 = vmatmul.bf16.vlgmr.msra.gmra.mxu0 %v11161_v17  ;;  %v8824_v17 = vor.u32 %v10079_v33, %v8823_v12  ;;  %v10223_v12 = vld [vmem:[#allocation12 + $0x65c] sm:$0xf] }
 0x499   :  { %6005 = vmatpush.bf16.msra.mxu2 %v8684_v37  ;;  %6031 = vmatpush.bf16.msrb.mxu0 %v9132_v30  ;;  %v9441_v37 = vld [vmem:[#allocation12 + $0x6ac] sm:$0xf0]  ;;  %v8685_v30 = vld [vmem:[#allocation12 + $0xc4] sm:$0xf0]  ;;  %v9416_v10 = vor.u32 %v10223_v12, %v9413_v46 }
 0x49a   :  { %6019 = vmatpush.bf16.msra.mxu3 %v8880_v26  ;;  %6045 = vmatpush.bf16.msrb.mxu1 %v9328_v35  ;;  %v8884_v26 = vor.u32 %v10090_v43, %v8881_v20  ;;  %v9444_v13 = vor.u32 %v10230_v57, %v9441_v37  ;;  %v10041_v35 = vld [vmem:[#allocation12 + $0xac] sm:$0xf]  ;;  %v10139_v43 = vld [vmem:[#allocation12 + $0x3bc] sm:$0xf]  ;;  %v9077_v20 = vld [vmem:[#allocation12 + $0x3d4] sm:$0xf0] }
 0x49b   :  { %v8688_v22 = vor.u32 %v10041_v35, %v8685_v30  ;;  %v9080_v57 = vor.u32 %v10139_v43, %v9077_v20  ;;  %v8887_v43 = vld [vmem:[#allocation12 + $0x238] sm:$0xf] }
 0x49d   :  { %6006 = vmatpush.bf16.msra.mxu2 %v8656_v40  ;;  %6032 = vmatpush.bf16.msrb.mxu0 %v9104_v4  ;;  %v8853_v40 = vld [vmem:[#allocation12 + $0x214] sm:$0xf0]  ;;  %v10174_v4 = vld [vmem:[#allocation12 + $0x4d4] sm:$0xf] }
 0x49e   :  { %6020 = vmatpush.bf16.msra.mxu3 %v8852_v58  ;;  %6046 = vmatpush.bf16.msrb.mxu1 %v9300_v52  ;;  %v10083_v58 = vld [vmem:[#allocation12 + $0x1fc] sm:$0xf]  ;;  %v8657_v52 = vld [vmem:[#allocation12 + $0x8c] sm:$0xf0]  ;;  %v9220_v11 = vor.u32 %v10174_v4, %v9217_v7 }
 0x49f   :  { %v8856_v33 = vor.u32 %v10083_v58, %v8853_v40  ;;  %v8660_v23 = vor.u32 %v10034_v44, %v8657_v52  ;;  %v8999_v44 = vld [vmem:[#allocation12 + $0x318] sm:$0xf]  ;;  %v10122_v52 = vld [vmem:[#allocation12 + $0x330] sm:$0xf0]  ;;  %v8803_v7 = vld [vmem:[#allocation12 + $0x190] sm:$0xf] }
 0x4a1   :  { %6007 = vmatpush.bf16.msra.mxu2 %v8628_v31  ;;  %6033 = vmatpush.bf16.msrb.mxu0 %v9076_v5  ;;  %v8825_v31 = vld [vmem:[#allocation12 + $0x1dc] sm:$0xf0]  ;;  %v10188_v5 = vld [vmem:[#allocation12 + $0x544] sm:$0xf] }
 0x4a2   :  { %6021 = vmatpush.bf16.msra.mxu3 %v8824_v17  ;;  %6047 = vmatpush.bf16.msrb.mxu1 %v9272_v3  ;;  %v10076_v17 = vld [vmem:[#allocation12 + $0x1c4] sm:$0xf]  ;;  %v10027_v3 = vld [vmem:[#allocation12 + $0x3c] sm:$0xf]  ;;  %v9276_v14 = vor.u32 %v10188_v5, %v9273_v9 }
 0x4a3   :  { %v8828_v48 = vor.u32 %v10076_v17, %v8825_v31  ;;  %v8632_v50 = vor.u32 %v10027_v3, %v8629_v63  ;;  %v9000_v17 = vor.u32 %v10122_v52, %v8999_v44 }
 0x4a5   :  { %6008 = vmatpush.bf16.msra.mxu2 %v8600_v62  ;;  %6034 = vmatpush.bf16.msrb.mxu0 %v9048_v24  ;;  %v9189_v62 = vld [vmem:[#allocation12 + $0x4b4] sm:$0xf0] }
 0x4a6   :  { %6066 = vmatpush.bf16.msrb.mxu3 %v9024_v47  ;;  %6092 = vmatpush.bf16.msra.mxu1 %v9472_v1  ;;  %v10216_v47 = vld [vmem:[#allocation12 + $0x624] sm:$0xf]  ;;  %v9108_v1 = vor.u32 %v10146_v51, %v9105_v53  ;;  %v8719_v53 = vld [vmem:[#allocation12 + $0xe8] sm:$0xf] }
 0x4a7   :  { %v9388_v19 = vor.u32 %v10216_v47, %v9385_v59  ;;  %v10115_v59 = vld [vmem:[#allocation12 + $0x2f8] sm:$0xf0] }
 0x4a9   :  { %6053 = vmatpush.bf16.msrb.mxu2 %v8800_v28  ;;  %6079 = vmatpush.bf16.msra.mxu0 %v9248_v16  ;;  %v10209_v28 = vld [vmem:[#allocation12 + $0x5ec] sm:$0xf] }
 0x4aa   :  { %6067 = vmatpush.bf16.msrb.mxu3 %v8996_v21  ;;  %6093 = vmatpush.bf16.msra.mxu1 %v9444_v13  ;;  %v9192_v21 = vor.u32 %v10167_v0, %v9189_v62  ;;  %v9360_v32 = vor.u32 %v10209_v28, %v9357_v41  ;;  %v9052_v13 = vor.u32 %v10132_v8, %v9049_v18  ;;  %v10129_v16 = vld [vmem:[#allocation12 + $0x368] sm:$0xf0]  ;;  %v10066_v62 = vld [vmem:[#allocation12 + $0x170] sm:$0xf0]  ;;  %v8943_v41 = vld [vmem:[#allocation12 + $0x2a8] sm:$0xf] }
 0x4ad   :  { %6054 = vmatpush.bf16.msrb.mxu2 %v8772_v39  ;;  %6080 = vmatpush.bf16.msra.mxu0 %v9220_v11  ;;  %v8604_v39 = vor.u32 %v10020_v61, %v8601_v42  ;;  %v10073_v11 = vld [vmem:[#allocation12 + $0x1a8] sm:$0xf0] }
 0x4ae   :  { %6068 = vmatpush.bf16.msrb.mxu3 %v8968_v38  ;;  %6094 = vmatpush.bf16.msra.mxu1 %v9416_v10  ;;  %v10160_v38 = vld [vmem:[#allocation12 + $0x464] sm:$0xf] }
 0x4af   :  { %v9164_v55 = vor.u32 %v10160_v38, %v9161_v27  ;;  %v10059_v27 = vld [vmem:[#allocation12 + $0x138] sm:$0xf0] }
 0x4b1   :  { %6055 = vmatpush.bf16.msrb.mxu2 %v8744_v36  ;;  %6081 = vmatpush.bf16.msra.mxu0 %v9192_v21  ;;  %v10153_v36 = vld [vmem:[#allocation12 + $0x42c] sm:$0xf] }
 0x4b2   :  { %6069 = vmatpush.bf16.msrb.mxu3 %v8940_v34  ;;  %6095 = vmatpush.bf16.msra.mxu1 %v9388_v19  ;;  %v9332_v34 = vor.u32 %v10202_v49, %v9329_v15  ;;  %v9136_v6 = vor.u32 %v10153_v36, %v9133_v56  ;;  %v8804_v19 = vor.u32 %v10073_v11, %v8803_v7  ;;  %v8915_v15 = vld [vmem:[#allocation12 + $0x270] sm:$0xf]  ;;  %v10101_v56 = vld [vmem:[#allocation12 + $0x288] sm:$0xf0]  ;;  %v10038_v7 = vld [vmem:[#allocation12 + $0x90] sm:$0xf0] }
 0x4b3   :  { %v8916_v9 = vor.u32 %v10101_v56, %v8915_v15  ;;  %v9223_v11 = vld [vmem:[#allocation12 + $0x4d8] sm:$0xf] }
 0x4b4   :  { %v9001_v56 = vld [vmem:[#allocation12 + $0x334] sm:$0xf0] }
 0x4b5   :  { %6056 = vmatpush.bf16.msrb.mxu2 %v8716_v29  ;;  %6082 = vmatpush.bf16.msra.mxu0 %v9164_v55  ;;  %v11172_v29 = vld [vmem:[%s11262_s12] sm:$0xf] }
 0x4b6   :  { %6070 = vmatpush.bf16.msrb.mxu3 %v8912_v54  ;;  %6096 = vmatpush.bf16.msra.mxu1 %v9360_v32  ;;  %v9301_v54 = vld [vmem:[#allocation12 + $0x594] sm:$0xf0]  ;;  %v4138_v37 = vperm.slane %v11172_v29, 1  ;;  %v4140_v0 = vperm.slane %v11172_v29, 3  ;;  %v10108_v32 = vld [vmem:[#allocation12 + $0x2c0] sm:$0xf0] }
 0x4b7   :  { %v9304_v45 = vor.u32 %v10195_v25, %v9301_v54  ;;  %v8944_v55 = vor.u32 %v10108_v32, %v8943_v41  ;;  %v4139_v49 = vperm.slane %v11172_v29, 2  ;;  %v10241_v25 = vld [vmem:[#allocation12 + $0x6e8] sm:$0xf0]  ;;  %v8635_v41 = vld [vmem:[#allocation12 + $0x40] sm:$0xf] }
 0x4b8   :  { %v10031_v32 = vld [vmem:[#allocation12 + $0x58] sm:$0xf0] }
 0x4b9   :  { %6057 = vmatpush.bf16.msrb.mxu2 %v8688_v22  ;;  %6083 = vmatpush.bf16.msra.mxu0 %v9136_v6  ;;  %v4137_v22 = vperm.slane %v11172_v29, 0  ;;  %v9475_v6 = vld [vmem:[#allocation12 + $0x6d0] sm:$0xf]  ;;  %v8636_v15 = vor.u32 %v10031_v32, %v8635_v41  ;;  %v10091_v32 = vld [vmem:[#allocation12 + $0x23c] sm:$0xf] }
 0x4ba   :  { %6071 = vmatpush.bf16.msrb.mxu3 %v8884_v26  ;;  %6097 = vmatpush.bf16.msra.mxu1 %v9332_v34 }
 0x4bd   :  { %6058 = vmatpush.bf16.msrb.mxu2 %v8660_v23  ;;  %6084 = vmatpush.bf16.msra.mxu0 %v9108_v1  ;;  %v10052_v1 = vld [vmem:[#allocation12 + $0x100] sm:$0xf0] }
 0x4be   :  { %6072 = vmatpush.bf16.msrb.mxu3 %v8856_v33  ;;  %6098 = vmatpush.bf16.msra.mxu1 %v9304_v45  ;;  %v9028_v33 = vor.u32 %v10129_v16, %v9027_v60  ;;  %v8720_v18 = vor.u32 %v10052_v1, %v8719_v53  ;;  %v8859_v16 = vld [vmem:[#allocation12 + $0x200] sm:$0xf]  ;;  %v10070_v53 = vld [vmem:[#allocation12 + $0x194] sm:$0xf]  ;;  %v8805_v1 = vld [vmem:[#allocation12 + $0x1ac] sm:$0xf0] }
 0x4c1   :  { %6059 = vmatpush.bf16.msrb.mxu2 %v8632_v50  ;;  %6085 = vmatpush.bf16.msra.mxu0 %v9080_v57  ;;  %v8775_v50 = vld [vmem:[#allocation12 + $0x158] sm:$0xf]  ;;  %v10094_v57 = vld [vmem:[#allocation12 + $0x250] sm:$0xf0] }
 0x4c2   :  { %6073 = vmatpush.bf16.msrb.mxu3 %v8828_v48  ;;  %6099 = vmatpush.bf16.msra.mxu1 %v9276_v14  ;;  %v8971_v48 = vld [vmem:[#allocation12 + $0x2e0] sm:$0xf]  ;;  %v8776_v42 = vor.u32 %v10066_v62, %v8775_v50  ;;  %v9476_v14 = vor.u32 %v10241_v25, %v9475_v6  ;;  %v8607_v6 = vld [vmem:[#allocation12 + $0x8] sm:$0xf]  ;;  %v10024_v25 = vld [vmem:[#allocation12 + $0x20] sm:$0xf0] }
 0x4c3   :  { %v8972_v28 = vor.u32 %v10115_v59, %v8971_v48  ;;  %v8831_v59 = vld [vmem:[#allocation12 + $0x1c8] sm:$0xf] }
 0x4c5   :  { %6060 = vmatpush.bf16.msrb.mxu2 %v8604_v39  ;;  %6086 = vmatpush.bf16.msra.mxu0 %v9052_v13  ;;  %v8747_v39 = vld [vmem:[#allocation12 + $0x120] sm:$0xf]  ;;  %v8691_v13 = vld [vmem:[#allocation12 + $0xb0] sm:$0xf] }
 0x4c6   :  { %v8748_v54 = vor.u32 %v10059_v27, %v8747_v39 }
 0x501   :  { %v4513_v26 = vpop.f32.mrf.mxu1 }
 0x505   :  { %v4500_v24 = vpop.f32.mrf.mxu0 }
 0x506   :  { %v4501_v35 = vadd.f32 %v4500_v24, %v4138_v37  ;;  %v10234_v37 = vld [vmem:[#allocation12 + $0x6b0] sm:$0xf0] }
 0x507   :  { %v4487_v2 = vpop.f32.mrf.mxu3 }
 0x508   :  { %v4514_v30 = vadd.f32 %v4513_v26, %v4501_v35  ;;  %v9447_v26 = vld [vmem:[#allocation12 + $0x698] sm:$0xf]  ;;  %v10045_v35 = vld [vmem:[#allocation12 + $0xc8] sm:$0xf0] }
 0x509   :  { %v4515_v40 = vpop.f32.mrf.mxu1  ;;  %v9448_v60 = vor.u32 %v10234_v37, %v9447_v26  ;;  %v8692_v44 = vor.u32 %v10045_v35, %v8691_v13  ;;  %v8973_v26 = vld [vmem:[#allocation12 + $0x2fc] sm:$0xf0]  ;;  %v8808_v37 = vor.u32 %v10070_v53, %v8805_v1  ;;  %v8777_v35 = vld [vmem:[#allocation12 + $0x174] sm:$0xf0]  ;;  %v10224_v53 = vld [vmem:[#allocation12 + $0x664] sm:$0xf] }
 0x50a   :  { %v4570_v58 = vmax.f32 %v4514_v30, 0.0  ;;  %v9251_v30 = vld [vmem:[#allocation12 + $0x510] sm:$0xf]  ;;  %v9421_v1 = vld [vmem:[#allocation12 + $0x67c] sm:$0xf0] }
 0x50b   :  { %v4474_v12 = vpop.f32.mrf.mxu2 }
 0x50c   :  { %v11176_v46 = vpack.c.bf16 %v4570_v58, %v4570_v58  ;;  %v4475_v10 = vadd.f32 %v4474_v12, %v4137_v22  ;;  %v8888_v22 = vor.u32 %v10094_v57, %v8887_v43  ;;  %v10087_v58 = vld [vmem:[#allocation12 + $0x218] sm:$0xf0]  ;;  %v8608_v43 = vor.u32 %v10024_v25, %v8607_v6  ;;  %v10112_v57 = vld [vmem:[#allocation12 + $0x2e4] sm:$0xf] }
 0x50d   :  { %v4502_v4 = vpop.f32.mrf.mxu0 }
 0x50e   :  { %v4488_v23 = vadd.f32 %v4487_v2, %v4475_v10  ;;  %6022 = vmatmul.bf16.vlgmr.msra.gmra.mxu3 %v11176_v46  ;;  %v10185_v2 = vld [vmem:[#allocation12 + $0x528] sm:$0xf0]  ;;  %v10227_v10 = vld [vmem:[#allocation12 + $0x678] sm:$0xf0]  ;;  %v8663_v4 = vld [vmem:[#allocation12 + $0x78] sm:$0xf] }
 0x50f   :  { %6118 = vmatpush.bf16.msra.mxu3 %v9028_v33  ;;  %v4489_v47 = vpop.f32.mrf.mxu3  ;;  %v9419_v33 = vld [vmem:[#allocation12 + $0x660] sm:$0xf]  ;;  %v9252_v52 = vor.u32 %v10185_v2, %v9251_v30  ;;  %v8664_v50 = vor.u32 %v10038_v7, %v8663_v4  ;;  %v8976_v30 = vor.u32 %v10112_v57, %v8973_v26  ;;  %v9279_v7 = vld [vmem:[#allocation12 + $0x548] sm:$0xf]  ;;  %v9225_v57 = vld [vmem:[#allocation12 + $0x4f4] sm:$0xf0] }
 0x510   :  { %v4569_v31 = vmax.f32 %v4488_v23, 0.0  ;;  %v8860_v47 = vor.u32 %v10087_v58, %v8859_v16  ;;  %v9420_v48 = vor.u32 %v10227_v10, %v9419_v33  ;;  %v9307_v2 = vld [vmem:[#allocation12 + $0x580] sm:$0xf]  ;;  %v10105_v16 = vld [vmem:[#allocation12 + $0x2ac] sm:$0xf] }
 0x511   :  { %v4565_v63 = vpop.f32.mrf.mxu1  ;;  %v8945_v58 = vld [vmem:[#allocation12 + $0x2c4] sm:$0xf0]  ;;  %v10150_v33 = vld [vmem:[#allocation12 + $0x410] sm:$0xf0] }
 0x512   :  { %v11179_v3 = vpack.c.bf16 %v4569_v31, %v4569_v31  ;;  %v8948_v4 = vor.u32 %v10105_v16, %v8945_v58  ;;  %v8637_v16 = vld [vmem:[#allocation12 + $0x5c] sm:$0xf0]  ;;  %v10168_v58 = vld [vmem:[#allocation12 + $0x4a4] sm:$0xf] }
 0x513   :  { %6119 = vmatpush.bf16.msra.mxu3 %v9000_v17  ;;  %v4476_v21 = vpop.f32.mrf.mxu2  ;;  %v10178_v17 = vld [vmem:[#allocation12 + $0x4f0] sm:$0xf0] }
 0x514   :  { %6009 = vmatmul.bf16.vlgmr.msra.gmra.mxu2 %v11179_v3  ;;  %v9224_v62 = vor.u32 %v10178_v17, %v9223_v11  ;;  %v10126_v21 = vld [vmem:[#allocation12 + $0x354] sm:$0xf]  ;;  %v10192_v11 = vld [vmem:[#allocation12 + $0x560] sm:$0xf0] }
 0x515   :  { %6105 = vmatpush.bf16.msra.mxu2 %v8804_v19  ;;  %v4552_v61 = vpop.f32.mrf.mxu0  ;;  %v10080_v19 = vld [vmem:[#allocation12 + $0x1e0] sm:$0xf0]  ;;  %v10098_v17 = vld [vmem:[#allocation12 + $0x274] sm:$0xf] }
 0x516   :  { %v4553_v38 = vadd.f32 %v4552_v61, %v4140_v0  ;;  %v10220_v0 = vld [vmem:[#allocation12 + $0x640] sm:$0xf0]  ;;  %v9195_v61 = vld [vmem:[#allocation12 + $0x4a0] sm:$0xf] }
 0x517   :  { %6120 = vmatpush.bf16.msra.mxu3 %v8972_v28  ;;  %v4539_v36 = vpop.f32.mrf.mxu3  ;;  %v9029_v28 = vld [vmem:[#allocation12 + $0x36c] sm:$0xf0] }
 0x518   :  { %v4566_v34 = vadd.f32 %v4565_v63, %v4553_v38  ;;  %v9391_v63 = vld [vmem:[#allocation12 + $0x628] sm:$0xf]  ;;  %v8832_v38 = vor.u32 %v10080_v19, %v8831_v59  ;;  %v9032_v27 = vor.u32 %v10126_v21, %v9029_v28  ;;  %v9477_v59 = vld [vmem:[#allocation12 + $0x6ec] sm:$0xf0] }
 0x519   :  { %6106 = vmatpush.bf16.msra.mxu2 %v8776_v42  ;;  %v4567_v51 = vpop.f32.mrf.mxu1  ;;  %v10171_v42 = vld [vmem:[#allocation12 + $0x4b8] sm:$0xf0]  ;;  %v9392_v39 = vor.u32 %v10220_v0, %v9391_v63  ;;  %v9083_v63 = vld [vmem:[#allocation12 + $0x3c0] sm:$0xf]  ;;  %v8721_v21 = vld [vmem:[#allocation12 + $0x104] sm:$0xf0] }
 0x51a   :  { %v4572_v45 = vmax.f32 %v4566_v34, 0.0  ;;  %v9196_v34 = vor.u32 %v10171_v42, %v9195_v61  ;;  %v10143_v0 = vld [vmem:[#allocation12 + $0x3d8] sm:$0xf0]  ;;  %v8889_v42 = vld [vmem:[#allocation12 + $0x254] sm:$0xf0] }
 0x51b   :  { %6121 = vmatpush.bf16.msra.mxu3 %v8944_v55  ;;  %v4526_v5 = vpop.f32.mrf.mxu2  ;;  %v9363_v55 = vld [vmem:[#allocation12 + $0x5f0] sm:$0xf]  ;;  %v9084_v61 = vor.u32 %v10143_v0, %v9083_v63  ;;  %v8892_v6 = vor.u32 %v10091_v32, %v8889_v42  ;;  %v8811_v63 = vld [vmem:[#allocation12 + $0x198] sm:$0xf]  ;;  %v10074_v0 = vld [vmem:[#allocation12 + $0x1b0] sm:$0xf0] }
 0x51c   :  { %v11184_v20 = vpack.c.bf16 %v4572_v45, %v4572_v45  ;;  %v4527_v29 = vadd.f32 %v4526_v5, %v4139_v49  ;;  %v10213_v49 = vld [vmem:[#allocation12 + $0x608] sm:$0xf0]  ;;  %v10164_v45 = vld [vmem:[#allocation12 + $0x480] sm:$0xf0]  ;;  %v8979_v32 = vld [vmem:[#allocation12 + $0x2e8] sm:$0xf]  ;;  %v8812_v42 = vor.u32 %v10074_v0, %v8811_v63 }
 0x51d   :  { %6107 = vmatpush.bf16.msra.mxu2 %v8748_v54  ;;  %v4554_v8 = vpop.f32.mrf.mxu0  ;;  %v9167_v54 = vld [vmem:[#allocation12 + $0x468] sm:$0xf]  ;;  %v9364_v51 = vor.u32 %v10213_v49, %v9363_v55  ;;  %v10136_v49 = vld [vmem:[#allocation12 + $0x3a0] sm:$0xf0] }
 0x51e   :  { %v4540_v24 = vadd.f32 %v4539_v36, %v4527_v29  ;;  %6048 = vmatmul.bf16.vlgmr.msrb.gmra.mxu1 %v11184_v20  ;;  %6074 = vmatmul.bf16.vlgmr.msrb.gmra.mxu3 %v11176_v46  ;;  %v10119_v36 = vld [vmem:[#allocation12 + $0x31c] sm:$0xf]  ;;  %v9168_v29 = vor.u32 %v10164_v45, %v9167_v54  ;;  %v9139_v8 = vld [vmem:[#allocation12 + $0x430] sm:$0xf]  ;;  %v9055_v55 = vld [vmem:[#allocation12 + $0x388] sm:$0xf] }
 0x51f   :  { %6122 = vmatpush.bf16.msra.mxu3 %v8916_v9  ;;  %6144 = vmatpush.bf16.msrb.mxu1 %v9476_v14  ;;  %v4541_v12 = vpop.f32.mrf.mxu3  ;;  %v9004_v5 = vor.u32 %v10119_v36, %v9001_v56  ;;  %v9335_v9 = vld [vmem:[#allocation12 + $0x5b8] sm:$0xf]  ;;  %v10206_v14 = vld [vmem:[#allocation12 + $0x5d0] sm:$0xf0]  ;;  %v9253_v56 = vld [vmem:[#allocation12 + $0x52c] sm:$0xf0]  ;;  %v9056_v45 = vor.u32 %v10136_v49, %v9055_v55 }
 0x520   :  { %v4571_v40 = vmax.f32 %v4540_v24, 0.0  ;;  %v9336_v13 = vor.u32 %v10206_v14, %v9335_v9  ;;  %v10063_v24 = vld [vmem:[#allocation12 + $0x15c] sm:$0xf]  ;;  %v9111_v12 = vld [vmem:[#allocation12 + $0x3f8] sm:$0xf] }
 0x521   :  { %6108 = vmatpush.bf16.msra.mxu2 %v8720_v18  ;;  %v10157_v18 = vld [vmem:[#allocation12 + $0x448] sm:$0xf0]  ;;  %v10182_v36 = vld [vmem:[#allocation12 + $0x514] sm:$0xf]  ;;  %v10084_v54 = vld [vmem:[#allocation12 + $0x204] sm:$0xf] }
 0x522   :  { %v11188_v23 = vpack.c.bf16 %v4571_v40, %v4571_v40  ;;  %v8780_v40 = vor.u32 %v10063_v24, %v8777_v35  ;;  %v9256_v9 = vor.u32 %v10182_v36, %v9253_v56  ;;  %v10035_v14 = vld [vmem:[#allocation12 + $0x7c] sm:$0xf]  ;;  %v9393_v24 = vld [vmem:[#allocation12 + $0x644] sm:$0xf0]  ;;  %v8783_v55 = vld [vmem:[#allocation12 + $0x160] sm:$0xf] }
 0x523   :  { %6123 = vmatpush.bf16.msra.mxu3 %v8888_v22  ;;  %6145 = vmatpush.bf16.msrb.mxu1 %v9448_v60  ;;  %v4528_v31 = vpop.f32.mrf.mxu2  ;;  %v10199_v22 = vld [vmem:[#allocation12 + $0x598] sm:$0xf0]  ;;  %v9140_v60 = vor.u32 %v10157_v18, %v9139_v8  ;;  %v10077_v8 = vld [vmem:[#allocation12 + $0x1cc] sm:$0xf]  ;;  %v8833_v18 = vld [vmem:[#allocation12 + $0x1e4] sm:$0xf0] }
 0x524   :  { %6035 = vmatmul.bf16.vlgmr.msrb.gmra.mxu0 %v11188_v23  ;;  %6061 = vmatmul.bf16.vlgmr.msrb.gmra.mxu2 %v11179_v3  ;;  %v9308_v10 = vor.u32 %v10199_v22, %v9307_v2  ;;  %v9112_v31 = vor.u32 %v10150_v33, %v9111_v12  ;;  %v9035_v2 = vld [vmem:[#allocation12 + $0x358] sm:$0xf]  ;;  %v10130_v22 = vld [vmem:[#allocation12 + $0x370] sm:$0xf0]  ;;  %v8836_v12 = vor.u32 %v10077_v8, %v8833_v18  ;;  %v10067_v49 = vld [vmem:[#allocation12 + $0x178] sm:$0xf0] }
 0x525   :  { %6109 = vmatpush.bf16.msra.mxu2 %v8692_v44  ;;  %6131 = vmatpush.bf16.msrb.mxu0 %v9252_v52  ;;  %v10056_v44 = vld [vmem:[#allocation12 + $0x124] sm:$0xf]  ;;  %v8749_v52 = vld [vmem:[#allocation12 + $0x13c] sm:$0xf0]  ;;  %v10242_v8 = vld [vmem:[#allocation12 + $0x6f0] sm:$0xf0] }
 0x526   :  { %v8752_v19 = vor.u32 %v10056_v44, %v8749_v52  ;;  %v10210_v44 = vld [vmem:[#allocation12 + $0x5f4] sm:$0xf]  ;;  %v9365_v52 = vld [vmem:[#allocation12 + $0x60c] sm:$0xf0]  ;;  %v9309_v36 = vld [vmem:[#allocation12 + $0x59c] sm:$0xf0] }
 0x527   :  { %6124 = vmatpush.bf16.msra.mxu3 %v8860_v47  ;;  %6146 = vmatpush.bf16.msrb.mxu1 %v9420_v48  ;;  %v8917_v47 = vld [vmem:[#allocation12 + $0x28c] sm:$0xf0]  ;;  %v10238_v48 = vld [vmem:[#allocation12 + $0x6d4] sm:$0xf] }
 0x528   :  { %v8920_v28 = vor.u32 %v10098_v17, %v8917_v47  ;;  %v9480_v41 = vor.u32 %v10238_v48, %v9477_v59  ;;  %v10123_v17 = vld [vmem:[#allocation12 + $0x338] sm:$0xf0]  ;;  %v8609_v47 = vld [vmem:[#allocation12 + $0x24] sm:$0xf0]  ;;  %v10161_v48 = vld [vmem:[#allocation12 + $0x46c] sm:$0xf] }
 0x529   :  { %6110 = vmatpush.bf16.msra.mxu2 %v8664_v50  ;;  %6132 = vmatpush.bf16.msrb.mxu0 %v9224_v62  ;;  %v9280_v50 = vor.u32 %v10192_v11, %v9279_v7  ;;  %v10049_v62 = vld [vmem:[#allocation12 + $0xec] sm:$0xf]  ;;  %v9007_v11 = vld [vmem:[#allocation12 + $0x320] sm:$0xf]  ;;  %v9169_v59 = vld [vmem:[#allocation12 + $0x484] sm:$0xf0] }
 0x52b   :  { %6125 = vmatpush.bf16.msra.mxu3 %v8832_v38  ;;  %6147 = vmatpush.bf16.msrb.mxu1 %v9392_v39  ;;  %v10231_v38 = vld [vmem:[#allocation12 + $0x69c] sm:$0xf]  ;;  %v9449_v39 = vld [vmem:[#allocation12 + $0x6b4] sm:$0xf0] }
 0x52c   :  { %v9452_v25 = vor.u32 %v10231_v38, %v9449_v39  ;;  %v10154_v38 = vld [vmem:[#allocation12 + $0x434] sm:$0xf]  ;;  %v9141_v39 = vld [vmem:[#allocation12 + $0x44c] sm:$0xf0] }
 0x52d   :  { %6111 = vmatpush.bf16.msra.mxu2 %v8636_v15  ;;  %6133 = vmatpush.bf16.msrb.mxu0 %v9196_v34  ;;  %v10042_v15 = vld [vmem:[#allocation12 + $0xb4] sm:$0xf]  ;;  %v8693_v34 = vld [vmem:[#allocation12 + $0xcc] sm:$0xf0]  ;;  %v9144_v56 = vor.u32 %v10154_v38, %v9141_v39  ;;  %v10081_v39 = vld [vmem:[#allocation12 + $0x1e8] sm:$0xf0] }
 0x52e   :  { %6100 = vmatmul.bf16.vlgmr.msra.gmra.mxu1 %v11184_v20  ;;  %6126 = vmatmul.bf16.vlgmr.msra.gmra.mxu3 %v11176_v46 }
 0x52f   :  { %6170 = vmatpush.bf16.msrb.mxu3 %v9032_v27  ;;  %6148 = vmatpush.bf16.msrb.mxu1 %v9364_v51  ;;  %v8724_v27 = vor.u32 %v10049_v62, %v8721_v21  ;;  %v8861_v51 = vld [vmem:[#allocation12 + $0x21c] sm:$0xf0]  ;;  %v10203_v62 = vld [vmem:[#allocation12 + $0x5bc] sm:$0xf]  ;;  %v9337_v21 = vld [vmem:[#allocation12 + $0x5d4] sm:$0xf0] }
 0x530   :  { %v8864_v26 = vor.u32 %v10084_v54, %v8861_v51  ;;  %v8784_v54 = vor.u32 %v10067_v49, %v8783_v55  ;;  %v9113_v51 = vld [vmem:[#allocation12 + $0x414] sm:$0xf0]  ;;  %v10221_v55 = vld [vmem:[#allocation12 + $0x648] sm:$0xf0] }
 0x531   :  { %6112 = vmatpush.bf16.msra.mxu2 %v8608_v43  ;;  %6134 = vmatpush.bf16.msrb.mxu0 %v9168_v29  ;;  %v8665_v43 = vld [vmem:[#allocation12 + $0x94] sm:$0xf0]  ;;  %v10175_v29 = vld [vmem:[#allocation12 + $0x4dc] sm:$0xf] }
 0x532   :  { %v8668_v35 = vor.u32 %v10035_v14, %v8665_v43  ;;  %v10189_v14 = vld [vmem:[#allocation12 + $0x54c] sm:$0xf]  ;;  %v9281_v43 = vld [vmem:[#allocation12 + $0x564] sm:$0xf0] }
 0x533   :  { %6171 = vmatpush.bf16.msrb.mxu3 %v9004_v5  ;;  %6149 = vmatpush.bf16.msrb.mxu1 %v9336_v13  ;;  %v8696_v5 = vor.u32 %v10042_v15, %v8693_v34  ;;  %v10217_v13 = vld [vmem:[#allocation12 + $0x62c] sm:$0xf]  ;;  %v10196_v34 = vld [vmem:[#allocation12 + $0x584] sm:$0xf] }
 0x534   :  { %6087 = vmatmul.bf16.vlgmr.msra.gmra.mxu0 %v11188_v23  ;;  %6113 = vmatmul.bf16.vlgmr.msra.gmra.mxu2 %v11179_v3  ;;  %v9396_v33 = vor.u32 %v10217_v13, %v9393_v24  ;;  %v10140_v13 = vld [vmem:[#allocation12 + $0x3c4] sm:$0xf]  ;;  %v9085_v24 = vld [vmem:[#allocation12 + $0x3dc] sm:$0xf0] }
 0x535   :  { %6157 = vmatpush.bf16.msrb.mxu2 %v8808_v37  ;;  %6135 = vmatpush.bf16.msrb.mxu0 %v9140_v60  ;;  %v9424_v37 = vor.u32 %v10224_v53, %v9421_v1  ;;  %v10028_v60 = vld [vmem:[#allocation12 + $0x44] sm:$0xf]  ;;  %v9312_v53 = vor.u32 %v10196_v34, %v9309_v36  ;;  %v8755_v1 = vld [vmem:[#allocation12 + $0x128] sm:$0xf]  ;;  %v10127_v34 = vld [vmem:[#allocation12 + $0x35c] sm:$0xf] }
 0x536   :  { %v9037_v36 = vld [vmem:[#allocation12 + $0x374] sm:$0xf0] }
 0x537   :  { %6172 = vmatpush.bf16.msrb.mxu3 %v8976_v30  ;;  %6150 = vmatpush.bf16.msrb.mxu1 %v9308_v10  ;;  %v9228_v30 = vor.u32 %v10175_v29, %v9225_v57  ;;  %v9036_v10 = vor.u32 %v10130_v22, %v9035_v2  ;;  %v8923_v29 = vld [vmem:[#allocation12 + $0x278] sm:$0xf]  ;;  %v10053_v2 = vld [vmem:[#allocation12 + $0x108] sm:$0xf0] }
 0x539   :  { %6158 = vmatpush.bf16.msrb.mxu2 %v8780_v40  ;;  %6136 = vmatpush.bf16.msrb.mxu0 %v9112_v31  ;;  %v9197_v40 = vld [vmem:[#allocation12 + $0x4bc] sm:$0xf0]  ;;  %v10021_v31 = vld [vmem:[#allocation12 + $0xc] sm:$0xf] }
 0x53a   :  { %v9200_v7 = vor.u32 %v10168_v58, %v9197_v40  ;;  %v9088_v58 = vor.u32 %v10140_v13, %v9085_v24  ;;  %v10095_v40 = vld [vmem:[#allocation12 + $0x258] sm:$0xf0]  ;;  %v8813_v13 = vld [vmem:[#allocation12 + $0x1b4] sm:$0xf0] }
 0x53b   :  { %6173 = vmatpush.bf16.msrb.mxu3 %v8948_v4  ;;  %6151 = vmatpush.bf16.msrb.mxu1 %v9280_v50  ;;  %v8640_v4 = vor.u32 %v10028_v60, %v8637_v16  ;;  %v9008_v50 = vor.u32 %v10123_v17, %v9007_v11  ;;  %v8895_v16 = vld [vmem:[#allocation12 + $0x240] sm:$0xf]  ;;  %v9259_v11 = vld [vmem:[#allocation12 + $0x518] sm:$0xf]  ;;  %v10186_v17 = vld [vmem:[#allocation12 + $0x530] sm:$0xf0] }
 0x53c   :  { %v9260_v0 = vor.u32 %v10186_v17, %v9259_v11  ;;  %v9315_v11 = vld [vmem:[#allocation12 + $0x588] sm:$0xf]  ;;  %v10200_v17 = vld [vmem:[#allocation12 + $0x5a0] sm:$0xf0] }
 0x53d   :  { %6159 = vmatpush.bf16.msrb.mxu2 %v8752_v19  ;;  %6137 = vmatpush.bf16.msrb.mxu0 %v9084_v61  ;;  %v9368_v19 = vor.u32 %v10210_v44, %v9365_v52  ;;  %v10116_v61 = vld [vmem:[#allocation12 + $0x300] sm:$0xf0]  ;;  %v10133_v44 = vld [vmem:[#allocation12 + $0x38c] sm:$0xf]  ;;  %v9057_v52 = vld [vmem:[#allocation12 + $0x3a4] sm:$0xf0] }
 0x53e   :  { %6152 = vmatmul.bf16.vlgmr.msrb.gmra.mxu1 %v11184_v20  ;;  %v8980_v15 = vor.u32 %v10116_v61, %v8979_v32  ;;  %v10179_v32 = vld [vmem:[#allocation12 + $0x4f8] sm:$0xf0] }
 0x53f   :  { %6174 = vmatpush.bf16.msrb.mxu3 %v8920_v28  ;;  %6196 = vmatpush.bf16.msra.mxu1 %v9480_v41  ;;  %v8612_v28 = vor.u32 %v10021_v31, %v8609_v47  ;;  %v9172_v41 = vor.u32 %v10161_v48, %v9169_v59  ;;  %v8896_v31 = vor.u32 %v10095_v40, %v8895_v16  ;;  %v8867_v59 = vld [vmem:[#allocation12 + $0x208] sm:$0xf]  ;;  %v10113_v16 = vld [vmem:[#allocation12 + $0x2ec] sm:$0xf] }
 0x540   :  { %v9060_v48 = vor.u32 %v10133_v44, %v9057_v52  ;;  %v8981_v40 = vld [vmem:[#allocation12 + $0x304] sm:$0xf0]  ;;  %v8785_v44 = vld [vmem:[#allocation12 + $0x17c] sm:$0xf0] }
 0x541   :  { %6160 = vmatpush.bf16.msrb.mxu2 %v8724_v27  ;;  %6138 = vmatpush.bf16.msrb.mxu0 %v9056_v45  ;;  %v9340_v27 = vor.u32 %v10203_v62, %v9337_v21  ;;  %v10147_v45 = vld [vmem:[#allocation12 + $0x3fc] sm:$0xf]  ;;  %v10228_v62 = vld [vmem:[#allocation12 + $0x680] sm:$0xf0]  ;;  %v8671_v21 = vld [vmem:[#allocation12 + $0x80] sm:$0xf] }
 0x542   :  { %v9116_v57 = vor.u32 %v10147_v45, %v9113_v51 }
 0x543   :  { %6175 = vmatpush.bf16.msrb.mxu3 %v8892_v6  ;;  %6197 = vmatpush.bf16.msra.mxu1 %v9452_v25  ;;  %v8951_v6 = vld [vmem:[#allocation12 + $0x2b0] sm:$0xf]  ;;  %v10109_v25 = vld [vmem:[#allocation12 + $0x2c8] sm:$0xf0] }
 0x544   :  { %6139 = vmatmul.bf16.vlgmr.msrb.gmra.mxu0 %v11188_v23 }
 0x545   :  { %6161 = vmatpush.bf16.msrb.mxu2 %v8696_v5  ;;  %6183 = vmatpush.bf16.msra.mxu0 %v9256_v9  ;;  %v10060_v5 = vld [vmem:[#allocation12 + $0x140] sm:$0xf0]  ;;  %v8952_v9 = vor.u32 %v10109_v25, %v8951_v6  ;;  %v9203_v25 = vld [vmem:[#allocation12 + $0x4a8] sm:$0xf] }
 0x546   :  { %v8756_v18 = vor.u32 %v10060_v5, %v8755_v1  ;;  %v10032_v6 = vld [vmem:[#allocation12 + $0x60] sm:$0xf0]  ;;  %v9371_v1 = vld [vmem:[#allocation12 + $0x5f8] sm:$0xf]  ;;  %v10214_v5 = vld [vmem:[#allocation12 + $0x610] sm:$0xf0] }
 0x547   :  { %6176 = vmatpush.bf16.msrb.mxu3 %v8864_v26  ;;  %6198 = vmatpush.bf16.msra.mxu1 %v9424_v37  ;;  %v10102_v26 = vld [vmem:[#allocation12 + $0x290] sm:$0xf0]  ;;  %v9483_v37 = vld [vmem:[#allocation12 + $0x6d8] sm:$0xf]  ;;  %v9372_v24 = vor.u32 %v10214_v5, %v9371_v1  ;;  %v9063_v1 = vld [vmem:[#allocation12 + $0x390] sm:$0xf] }
 0x548   :  { %v8924_v22 = vor.u32 %v10102_v26, %v8923_v29  ;;  %v9484_v60 = vor.u32 %v10242_v8, %v9483_v37  ;;  %v9009_v29 = vld [vmem:[#allocation12 + $0x33c] sm:$0xf0]  ;;  %v10025_v26 = vld [vmem:[#allocation12 + $0x28] sm:$0xf0]  ;;  %v9175_v37 = vld [vmem:[#allocation12 + $0x470] sm:$0xf] }
 0x549   :  { %6162 = vmatpush.bf16.msrb.mxu2 %v8668_v35  ;;  %6184 = vmatpush.bf16.msra.mxu0 %v9228_v30  ;;  %v9284_v35 = vor.u32 %v10189_v14, %v9281_v43  ;;  %v8727_v30 = vld [vmem:[#allocation12 + $0xf0] sm:$0xf]  ;;  %v10120_v43 = vld [vmem:[#allocation12 + $0x324] sm:$0xf]  ;;  %v10165_v8 = vld [vmem:[#allocation12 + $0x488] sm:$0xf0] }
 0x54a   :  { %v10137_v5 = vld [vmem:[#allocation12 + $0x3a8] sm:$0xf0] }
 0x54b   :  { %6177 = vmatpush.bf16.msrb.mxu3 %v8836_v12  ;;  %6199 = vmatpush.bf16.msra.mxu1 %v9396_v33  ;;  %v9455_v12 = vld [vmem:[#allocation12 + $0x6a0] sm:$0xf]  ;;  %v10235_v33 = vld [vmem:[#allocation12 + $0x6b8] sm:$0xf0] }
 0x54c   :  { %v9456_v47 = vor.u32 %v10235_v33, %v9455_v12  ;;  %v9147_v12 = vld [vmem:[#allocation12 + $0x438] sm:$0xf]  ;;  %v10158_v33 = vld [vmem:[#allocation12 + $0x450] sm:$0xf0] }
 0x54d   :  { %6163 = vmatpush.bf16.msrb.mxu2 %v8640_v4  ;;  %6185 = vmatpush.bf16.msra.mxu0 %v9200_v7  ;;  %v8699_v4 = vld [vmem:[#allocation12 + $0xb8] sm:$0xf]  ;;  %v10046_v7 = vld [vmem:[#allocation12 + $0xd0] sm:$0xf0] }
 0x54e   :  { %6178 = vmatmul.bf16.vlgmr.msrb.gmra.mxu3 %v11176_v46  ;;  %v8700_v63 = vor.u32 %v10046_v7, %v8699_v4  ;;  %v8984_v4 = vor.u32 %v10113_v16, %v8981_v40  ;;  %v9148_v7 = vor.u32 %v10158_v33, %v9147_v12  ;;  %v9233_v16 = vld [vmem:[#allocation12 + $0x4fc] sm:$0xf0]  ;;  %v10078_v40 = vld [vmem:[#allocation12 + $0x1d4] sm:$0xf] }
 0x54f   :  { %6222 = vmatpush.bf16.msra.mxu3 %v9036_v10  ;;  %6200 = vmatpush.bf16.msra.mxu1 %v9368_v19  ;;  %v8728_v10 = vor.u32 %v10053_v2, %v8727_v30  ;;  %v10088_v19 = vld [vmem:[#allocation12 + $0x220] sm:$0xf0]  ;;  %v9176_v2 = vor.u32 %v10165_v8, %v9175_v37  ;;  %v9064_v37 = vor.u32 %v10137_v5, %v9063_v1 }
 0x550   :  { %v8868_v61 = vor.u32 %v10088_v19, %v8867_v59  ;;  %v9119_v59 = vld [vmem:[#allocation12 + $0x400] sm:$0xf]  ;;  %v10151_v19 = vld [vmem:[#allocation12 + $0x418] sm:$0xf0]  ;;  %v10068_v1 = vld [vmem:[#allocation12 + $0x180] sm:$0xf0] }
 0x551   :  { %6164 = vmatpush.bf16.msrb.mxu2 %v8612_v28  ;;  %6186 = vmatpush.bf16.msra.mxu0 %v9172_v41  ;;  %v10039_v28 = vld [vmem:[#allocation12 + $0x98] sm:$0xf0]  ;;  %v9231_v41 = vld [vmem:[#allocation12 + $0x4e0] sm:$0xf] }
 0x552   :  { %v8672_v49 = vor.u32 %v10039_v28, %v8671_v21  ;;  %v9120_v28 = vor.u32 %v10151_v19, %v9119_v59 }
 0x553   :  { %6223 = vmatpush.bf16.msra.mxu3 %v9008_v50  ;;  %6201 = vmatpush.bf16.msra.mxu1 %v9340_v27  ;;  %v9427_v50 = vld [vmem:[#allocation12 + $0x668] sm:$0xf]  ;;  %v9399_v27 = vld [vmem:[#allocation12 + $0x630] sm:$0xf] }
 0x554   :  { %6165 = vmatmul.bf16.vlgmr.msrb.gmra.mxu2 %v11179_v3  ;;  %v9428_v38 = vor.u32 %v10228_v62, %v9427_v50  ;;  %v9400_v51 = vor.u32 %v10221_v55, %v9399_v27  ;;  %v9316_v50 = vor.u32 %v10200_v17, %v9315_v11  ;;  %v9287_v62 = vld [vmem:[#allocation12 + $0x550] sm:$0xf]  ;;  %v9091_v27 = vld [vmem:[#allocation12 + $0x3c8] sm:$0xf]  ;;  %v10144_v55 = vld [vmem:[#allocation12 + $0x3e0] sm:$0xf0] }
 0x555   :  { %6209 = vmatpush.bf16.msra.mxu2 %v8812_v42  ;;  %6187 = vmatpush.bf16.msra.mxu0 %v9144_v56  ;;  %v8839_v42 = vld [vmem:[#allocation12 + $0x1d0] sm:$0xf]  ;;  %v8643_v56 = vld [vmem:[#allocation12 + $0x48] sm:$0xf]  ;;  %v10131_v11 = vld [vmem:[#allocation12 + $0x378] sm:$0xf0] }
 0x556   :  { %v8840_v45 = vor.u32 %v10081_v39, %v8839_v42  ;;  %v9485_v39 = vld [vmem:[#allocation12 + $0x6f4] sm:$0xf0]  ;;  %v10029_v17 = vld [vmem:[#allocation12 + $0x4c] sm:$0xf] }
 0x557   :  { %6224 = vmatpush.bf16.msra.mxu3 %v8980_v15  ;;  %6202 = vmatpush.bf16.msra.mxu1 %v9312_v53  ;;  %v9232_v15 = vor.u32 %v10179_v32, %v9231_v41  ;;  %v9040_v53 = vor.u32 %v10127_v34, %v9037_v36  ;;  %v10193_v41 = vld [vmem:[#allocation12 + $0x568] sm:$0xf0]  ;;  %v10099_v32 = vld [vmem:[#allocation12 + $0x27c] sm:$0xf] }
 0x558   :  { %v9288_v34 = vor.u32 %v10193_v41, %v9287_v62  ;;  %v10124_v41 = vld [vmem:[#allocation12 + $0x340] sm:$0xf0] }
 0x559   :  { %6210 = vmatpush.bf16.msra.mxu2 %v8784_v54  ;;  %6188 = vmatpush.bf16.msra.mxu0 %v9116_v57  ;;  %v10172_v54 = vld [vmem:[#allocation12 + $0x4c0] sm:$0xf0]  ;;  %v8615_v57 = vld [vmem:[#allocation12 + $0x10] sm:$0xf] }
 0x55a   :  { %v9204_v14 = vor.u32 %v10172_v54, %v9203_v25  ;;  %v8616_v30 = vor.u32 %v10025_v26, %v8615_v57  ;;  %v8897_v25 = vld [vmem:[#allocation12 + $0x25c] sm:$0xf0]  ;;  %v9092_v54 = vor.u32 %v10144_v55, %v9091_v27  ;;  %v10075_v27 = vld [vmem:[#allocation12 + $0x1b8] sm:$0xf0] }
 0x55b   :  { %6225 = vmatpush.bf16.msra.mxu3 %v8952_v9  ;;  %6203 = vmatpush.bf16.msra.mxu1 %v9284_v35  ;;  %v8644_v9 = vor.u32 %v10032_v6, %v8643_v56  ;;  %v9012_v35 = vor.u32 %v10120_v43, %v9009_v29  ;;  %v10092_v6 = vld [vmem:[#allocation12 + $0x244] sm:$0xf]  ;;  %v10183_v43 = vld [vmem:[#allocation12 + $0x51c] sm:$0xf]  ;;  %v9261_v29 = vld [vmem:[#allocation12 + $0x534] sm:$0xf0] }
 0x55c   :  { %v8900_v57 = vor.u32 %v10092_v6, %v8897_v25  ;;  %v8987_v6 = vld [vmem:[#allocation12 + $0x2f0] sm:$0xf] }
 0x55d   :  { %6211 = vmatpush.bf16.msra.mxu2 %v8756_v18  ;;  %6189 = vmatpush.bf16.msra.mxu0 %v9088_v58  ;;  %v10071_v18 = vld [vmem:[#allocation12 + $0x19c] sm:$0xf] }
 0x55e   :  { %6204 = vmatmul.bf16.vlgmr.msra.gmra.mxu1 %v11184_v20  ;;  %v8816_v58 = vor.u32 %v10071_v18, %v8813_v13  ;;  %v10085_v18 = vld [vmem:[#allocation12 + $0x20c] sm:$0xf]  ;;  %v8869_v13 = vld [vmem:[#allocation12 + $0x224] sm:$0xf0] }
 0x55f   :  { %6226 = vmatpush.bf16.msra.mxu3 %v8924_v22  ;;  %6248 = vmatpush.bf16.msrb.mxu1 %v9484_v60  ;;  %v9343_v22 = vld [vmem:[#allocation12 + $0x5c0] sm:$0xf]  ;;  %v10207_v60 = vld [vmem:[#allocation12 + $0x5d8] sm:$0xf0] }
 0x560   :  { %v9344_v52 = vor.u32 %v10207_v60, %v9343_v22  ;;  %v8673_v22 = vld [vmem:[#allocation12 + $0x9c] sm:$0xf0]  ;;  %v10176_v60 = vld [vmem:[#allocation12 + $0x4e4] sm:$0xf] }
 0x561   :  { %6212 = vmatpush.bf16.msra.mxu2 %v8728_v10  ;;  %6190 = vmatpush.bf16.msra.mxu0 %v9060_v48  ;;  %v10064_v10 = vld [vmem:[#allocation12 + $0x164] sm:$0xf]  ;;  %v8953_v48 = vld [vmem:[#allocation12 + $0x2cc] sm:$0xf0] }
 0x563   :  { %6227 = vmatpush.bf16.msra.mxu3 %v8896_v31  ;;  %6249 = vmatpush.bf16.msrb.mxu1 %v9456_v47  ;;  %v10106_v31 = vld [vmem:[#allocation12 + $0x2b4] sm:$0xf]  ;;  %v8788_v47 = vor.u32 %v10064_v10, %v8785_v44  ;;  %v8841_v10 = vld [vmem:[#allocation12 + $0x1ec] sm:$0xf0] }
 0x564   :  { %6191 = vmatmul.bf16.vlgmr.msra.gmra.mxu0 %v11188_v23  ;;  %v8956_v21 = vor.u32 %v10106_v31, %v8953_v48  ;;  %v10218_v44 = vld [vmem:[#allocation12 + $0x634] sm:$0xf]  ;;  %v8645_v31 = vld [vmem:[#allocation12 + $0x64] sm:$0xf0]  ;;  %v8844_v59 = vor.u32 %v10078_v40, %v8841_v10  ;;  %v10141_v10 = vld [vmem:[#allocation12 + $0x3cc] sm:$0xf] }
 0x565   :  { %6213 = vmatpush.bf16.msra.mxu2 %v8700_v63  ;;  %6235 = vmatpush.bf16.msrb.mxu0 %v9260_v0  ;;  %v10057_v63 = vld [vmem:[#allocation12 + $0x12c] sm:$0xf]  ;;  %v8757_v0 = vld [vmem:[#allocation12 + $0x144] sm:$0xf0]  ;;  %v8648_v62 = vor.u32 %v10029_v17, %v8645_v31 }
 0x566   :  { %v8760_v42 = vor.u32 %v10057_v63, %v8757_v0  ;;  %v9205_v48 = vld [vmem:[#allocation12 + $0x4c4] sm:$0xf0]  ;;  %v10211_v0 = vld [vmem:[#allocation12 + $0x5fc] sm:$0xf] }
 0x567   :  { %6228 = vmatpush.bf16.msra.mxu3 %v8868_v61  ;;  %6250 = vmatpush.bf16.msrb.mxu1 %v9428_v38  ;;  %v8925_v61 = vld [vmem:[#allocation12 + $0x294] sm:$0xf0]  ;;  %v10239_v38 = vld [vmem:[#allocation12 + $0x6dc] sm:$0xf] }
 0x568   :  { %v8928_v36 = vor.u32 %v10099_v32, %v8925_v61  ;;  %v9488_v56 = vor.u32 %v10239_v38, %v9485_v39  ;;  %v10022_v32 = vld [vmem:[#allocation12 + $0x14] sm:$0xf]  ;;  %v8617_v61 = vld [vmem:[#allocation12 + $0x2c] sm:$0xf0]  ;;  %v8819_v39 = vld [vmem:[#allocation12 + $0x1a0] sm:$0xf] }
 0x569   :  { %6214 = vmatpush.bf16.msra.mxu2 %v8672_v49  ;;  %6236 = vmatpush.bf16.msrb.mxu0 %v9232_v15  ;;  %v10050_v49 = vld [vmem:[#allocation12 + $0xf4] sm:$0xf]  ;;  %v8729_v15 = vld [vmem:[#allocation12 + $0x10c] sm:$0xf0]  ;;  %v8820_v25 = vor.u32 %v10075_v27, %v8819_v39 }
 0x56a   :  { %v9177_v38 = vld [vmem:[#allocation12 + $0x48c] sm:$0xf0] }
 0x56b   :  { %6229 = vmatpush.bf16.msra.mxu3 %v8840_v45  ;;  %6251 = vmatpush.bf16.msrb.mxu1 %v9400_v51  ;;  %v8732_v45 = vor.u32 %v10050_v49, %v8729_v15  ;;  %v10232_v51 = vld [vmem:[#allocation12 + $0x6a4] sm:$0xf]  ;;  %v8620_v15 = vor.u32 %v10022_v32, %v8617_v61  ;;  %v10187_v32 = vld [vmem:[#allocation12 + $0x538] sm:$0xf0] }
 0x56d   :  { %6215 = vmatpush.bf16.msra.mxu2 %v8644_v9  ;;  %6237 = vmatpush.bf16.msrb.mxu0 %v9204_v14  ;;  %v10043_v9 = vld [vmem:[#allocation12 + $0xbc] sm:$0xf]  ;;  %v8701_v14 = vld [vmem:[#allocation12 + $0xd4] sm:$0xf0] }
 0x56e   :  { %6230 = vmatmul.bf16.vlgmr.msra.gmra.mxu3 %v11176_v46  ;;  %v8704_v8 = vor.u32 %v10043_v9, %v8701_v14 }
 0x56f   :  { %6274 = vmatpush.bf16.msrb.mxu3 %v9040_v53  ;;  %6252 = vmatpush.bf16.msrb.mxu1 %v9372_v24  ;;  %v9457_v53 = vld [vmem:[#allocation12 + $0x6bc] sm:$0xf0]  ;;  %v10225_v24 = vld [vmem:[#allocation12 + $0x66c] sm:$0xf] }
 0x570   :  { %v9460_v26 = vor.u32 %v10232_v51, %v9457_v53  ;;  %v9149_v51 = vld [vmem:[#allocation12 + $0x454] sm:$0xf0]  ;;  %v8791_v53 = vld [vmem:[#allocation12 + $0x168] sm:$0xf] }
 0x571   :  { %6216 = vmatpush.bf16.msra.mxu2 %v8616_v30  ;;  %6238 = vmatpush.bf16.msrb.mxu0 %v9176_v2  ;;  %v9429_v30 = vld [vmem:[#allocation12 + $0x684] sm:$0xf0]  ;;  %v10036_v2 = vld [vmem:[#allocation12 + $0x84] sm:$0xf] }
 0x572   :  { %v9432_v12 = vor.u32 %v10225_v24, %v9429_v30  ;;  %v8676_v33 = vor.u32 %v10036_v2, %v8673_v22  ;;  %v10061_v24 = vld [vmem:[#allocation12 + $0x148] sm:$0xf0]  ;;  %v10190_v30 = vld [vmem:[#allocation12 + $0x554] sm:$0xf] }
 0x573   :  { %6275 = vmatpush.bf16.msrb.mxu3 %v9012_v35  ;;  %6253 = vmatpush.bf16.msrb.mxu1 %v9344_v52  ;;  %v9264_v35 = vor.u32 %v10183_v43, %v9261_v29  ;;  %v9401_v52 = vld [vmem:[#allocation12 + $0x64c] sm:$0xf0]  ;;  %v10197_v43 = vld [vmem:[#allocation12 + $0x58c] sm:$0xf]  ;;  %v9317_v29 = vld [vmem:[#allocation12 + $0x5a4] sm:$0xf0] }
 0x574   :  { %6217 = vmatmul.bf16.vlgmr.msra.gmra.mxu2 %v11179_v3  ;;  %v9404_v19 = vor.u32 %v10218_v44, %v9401_v52  ;;  %v9093_v44 = vld [vmem:[#allocation12 + $0x3e4] sm:$0xf0]  ;;  %v8735_v52 = vld [vmem:[#allocation12 + $0xf8] sm:$0xf] }
 0x575   :  { %6261 = vmatpush.bf16.msrb.mxu2 %v8816_v58  ;;  %6239 = vmatpush.bf16.msrb.mxu0 %v9148_v7  ;;  %v8872_v58 = vor.u32 %v10085_v18, %v8869_v13  ;;  %v9043_v7 = vld [vmem:[#allocation12 + $0x360] sm:$0xf]  ;;  %v8763_v13 = vld [vmem:[#allocation12 + $0x130] sm:$0xf] }
 0x576   :  { %v9044_v63 = vor.u32 %v10131_v11, %v9043_v7  ;;  %v9121_v18 = vld [vmem:[#allocation12 + $0x41c] sm:$0xf0]  ;;  %v8764_v40 = vor.u32 %v10061_v24, %v8763_v13  ;;  %v9211_v24 = vld [vmem:[#allocation12 + $0x4b0] sm:$0xf] }
 0x577   :  { %6276 = vmatpush.bf16.msrb.mxu3 %v8984_v4  ;;  %6254 = vmatpush.bf16.msrb.mxu1 %v9316_v50  ;;  %v9236_v4 = vor.u32 %v10176_v60, %v9233_v16  ;;  %v9373_v50 = vld [vmem:[#allocation12 + $0x614] sm:$0xf0]  ;;  %v9289_v60 = vld [vmem:[#allocation12 + $0x56c] sm:$0xf0]  ;;  %v8931_v16 = vld [vmem:[#allocation12 + $0x280] sm:$0xf] }
 0x578   :  { %v9376_v55 = vor.u32 %v10211_v0, %v9373_v50  ;;  %v9292_v7 = vor.u32 %v10190_v30, %v9289_v60  ;;  %v10236_v0 = vld [vmem:[#allocation12 + $0x6c0] sm:$0xf0]  ;;  %v10134_v50 = vld [vmem:[#allocation12 + $0x394] sm:$0xf]  ;;  %v9379_v60 = vld [vmem:[#allocation12 + $0x600] sm:$0xf] }
 0x579   :  { %6262 = vmatpush.bf16.msrb.mxu2 %v8788_v47  ;;  %6240 = vmatpush.bf16.msrb.mxu0 %v9120_v28  ;;  %v10169_v47 = vld [vmem:[#allocation12 + $0x4ac] sm:$0xf]  ;;  %v9015_v28 = vld [vmem:[#allocation12 + $0x328] sm:$0xf] }
 0x57a   :  { %v9016_v49 = vor.u32 %v10124_v41, %v9015_v28  ;;  %v10047_v28 = vld [vmem:[#allocation12 + $0xd8] sm:$0xf0]  ;;  %v9267_v41 = vld [vmem:[#allocation12 + $0x520] sm:$0xf] }
 0x57b   :  { %6277 = vmatpush.bf16.msrb.mxu3 %v8956_v21  ;;  %6255 = vmatpush.bf16.msrb.mxu1 %v9288_v34  ;;  %v9208_v21 = vor.u32 %v10169_v47, %v9205_v48  ;;  %v8903_v47 = vld [vmem:[#allocation12 + $0x248] sm:$0xf]  ;;  %v10096_v48 = vld [vmem:[#allocation12 + $0x260] sm:$0xf0] }
 0x57c   :  { %v8904_v61 = vor.u32 %v10096_v48, %v8903_v47 }
 0x57d   :  { %6263 = vmatpush.bf16.msrb.mxu2 %v8760_v42  ;;  %6241 = vmatpush.bf16.msrb.mxu0 %v9092_v54  ;;  %v10162_v42 = vld [vmem:[#allocation12 + $0x474] sm:$0xf]  ;;  %v10117_v54 = vld [vmem:[#allocation12 + $0x308] sm:$0xf0] }
 0x57e   :  { %6256 = vmatmul.bf16.vlgmr.msrb.gmra.mxu1 %v11184_v20  ;;  %v9180_v34 = vor.u32 %v10162_v42, %v9177_v38  ;;  %v8988_v9 = vor.u32 %v10117_v54, %v8987_v6  ;;  %v11213_v38 = vld [vmem:[%s11264_s14] sm:$0xff]  ;;  %v8679_v6 = vld [vmem:[#allocation12 + $0x88] sm:$0xf] }
 0x57f   :  { %6278 = vmatpush.bf16.msrb.mxu3 %v8928_v36  ;;  %6300 = vmatpush.bf16.msra.mxu1 %v9488_v56  ;;  %v10204_v36 = vld [vmem:[#allocation12 + $0x5c4] sm:$0xf]  ;;  %v9345_v56 = vld [vmem:[#allocation12 + $0x5dc] sm:$0xf0]  ;;  %v4835_v54 = vperm.slane %v11213_v38, 0 }
 0x580   :  { %v9348_v5 = vor.u32 %v10204_v36, %v9345_v56  ;;  %v9268_v36 = vor.u32 %v10187_v32, %v9267_v41  ;;  %v10229_v56 = vld [vmem:[#allocation12 + $0x688] sm:$0xf0]  ;;  %v9323_v32 = vld [vmem:[#allocation12 + $0x590] sm:$0xf] }
 0x581   :  { %6264 = vmatpush.bf16.msrb.mxu2 %v8732_v45  ;;  %6242 = vmatpush.bf16.msrb.mxu0 %v9064_v37  ;;  %v10155_v45 = vld [vmem:[#allocation12 + $0x43c] sm:$0xf]  ;;  %v10110_v37 = vld [vmem:[#allocation12 + $0x2d0] sm:$0xf0] }
 0x582   :  { %v9152_v14 = vor.u32 %v10155_v45, %v9149_v51  ;;  %v9239_v45 = vld [vmem:[#allocation12 + $0x4e8] sm:$0xf]  ;;  %v10180_v51 = vld [vmem:[#allocation12 + $0x500] sm:$0xf0] }
 0x583   :  { %6279 = vmatpush.bf16.msrb.mxu3 %v8900_v57  ;;  %6301 = vmatpush.bf16.msra.mxu1 %v9460_v26  ;;  %v8959_v57 = vld [vmem:[#allocation12 + $0x2b8] sm:$0xf]  ;;  %v8792_v26 = vor.u32 %v10068_v1, %v8791_v53 }
 0x584   :  { %6243 = vmatmul.bf16.vlgmr.msrb.gmra.mxu0 %v11188_v23  ;;  %v8960_v2 = vor.u32 %v10110_v37, %v8959_v57  ;;  %v10222_v37 = vld [vmem:[#allocation12 + $0x650] sm:$0xf0] }
 0x585   :  { %6265 = vmatpush.bf16.msrb.mxu2 %v8704_v8  ;;  %6287 = vmatpush.bf16.msra.mxu0 %v9264_v35  ;;  %v10148_v8 = vld [vmem:[#allocation12 + $0x404] sm:$0xf]  ;;  %v9320_v35 = vor.u32 %v10197_v43, %v9317_v29  ;;  %v10082_v43 = vld [vmem:[#allocation12 + $0x1f0] sm:$0xf0]  ;;  %v9407_v29 = vld [vmem:[#allocation12 + $0x638] sm:$0xf] }
 0x586   :  { %v9124_v22 = vor.u32 %v10148_v8, %v9121_v18  ;;  %v8651_v8 = vld [vmem:[#allocation12 + $0x50] sm:$0xf]  ;;  %v10033_v18 = vld [vmem:[#allocation12 + $0x68] sm:$0xf0] }
 0x587   :  { %6280 = vmatpush.bf16.msrb.mxu3 %v8872_v58  ;;  %6302 = vmatpush.bf16.msra.mxu1 %v9432_v12  ;;  %v10103_v58 = vld [vmem:[#allocation12 + $0x298] sm:$0xf0]  ;;  %v9491_v12 = vld [vmem:[#allocation12 + $0x6e0] sm:$0xf] }
 0x588   :  { %v8932_v17 = vor.u32 %v10103_v58, %v8931_v16 }
 0x589   :  { %6266 = vmatpush.bf16.msrb.mxu2 %v8676_v33  ;;  %6288 = vmatpush.bf16.msra.mxu0 %v9236_v4  ;;  %v10243_v33 = vld [vmem:[#allocation12 + $0x6f8] sm:$0xf0]  ;;  %v10054_v4 = vld [vmem:[#allocation12 + $0x110] sm:$0xf0] }
 0x58a   :  { %v9492_v31 = vor.u32 %v10243_v33, %v9491_v12  ;;  %v8623_v12 = vld [vmem:[#allocation12 + $0x18] sm:$0xf]  ;;  %v10026_v33 = vld [vmem:[#allocation12 + $0x30] sm:$0xf0] }
 0x58b   :  { %6281 = vmatpush.bf16.msrb.mxu3 %v8844_v59  ;;  %6303 = vmatpush.bf16.msra.mxu1 %v9404_v19  ;;  %v9096_v59 = vor.u32 %v10141_v10, %v9093_v44  ;;  %v8736_v19 = vor.u32 %v10054_v4, %v8735_v52  ;;  %v9183_v44 = vld [vmem:[#allocation12 + $0x478] sm:$0xf]  ;;  %v10166_v52 = vld [vmem:[#allocation12 + $0x490] sm:$0xf0]  ;;  %v8624_v47 = vor.u32 %v10026_v33, %v8623_v12 }
 0x58d   :  { %6267 = vmatpush.bf16.msrb.mxu2 %v8648_v62  ;;  %6289 = vmatpush.bf16.msra.mxu0 %v9208_v21  ;;  %v9065_v62 = vld [vmem:[#allocation12 + $0x3ac] sm:$0xf0]  ;;  %v8707_v21 = vld [vmem:[#allocation12 + $0xc0] sm:$0xf] }
 0x58e   :  { %6282 = vmatmul.bf16.vlgmr.msrb.gmra.mxu3 %v11176_v46  ;;  %v9068_v39 = vor.u32 %v10134_v50, %v9065_v62  ;;  %v8708_v27 = vor.u32 %v10047_v28, %v8707_v21  ;;  %v9155_v50 = vld [vmem:[#allocation12 + $0x440] sm:$0xf] }
 0x58f   :  { %6326 = vmatpush.bf16.msra.mxu3 %v9044_v63  ;;  %6304 = vmatpush.bf16.msra.mxu1 %v9376_v55  ;;  %v9463_v63 = vld [vmem:[#allocation12 + $0x6a8] sm:$0xf]  ;;  %v8875_v55 = vld [vmem:[#allocation12 + $0x210] sm:$0xf] }
 0x590   :  { %v9464_v42 = vor.u32 %v10236_v0, %v9463_v63  ;;  %v10208_v63 = vld [vmem:[#allocation12 + $0x5e0] sm:$0xf0] }
 0x591   :  { %6268 = vmatpush.bf16.msrb.mxu2 %v8620_v15  ;;  %6290 = vmatpush.bf16.msra.mxu0 %v9180_v34  ;;  %v11208_v11 = vpop.f32.mrf.mxu3  ;;  %v9435_v15 = vld [vmem:[#allocation12 + $0x670] sm:$0xf] }
 0x593   :  { %6327 = vmatpush.bf16.msra.mxu3 %v9016_v49  ;;  %6305 = vmatpush.bf16.msra.mxu1 %v9348_v5  ;;  %v10089_v49 = vld [vmem:[#allocation12 + $0x228] sm:$0xf0]  ;;  %v9436_v5 = vor.u32 %v10229_v56, %v9435_v15  ;;  %v10194_v56 = vld [vmem:[#allocation12 + $0x570] sm:$0xf0] }
 0x594   :  { %6269 = vmatmul.bf16.vlgmr.msrb.gmra.mxu2 %v11179_v3  ;;  %v8876_v1 = vor.u32 %v10089_v49, %v8875_v55 }
 0x595   :  { %6313 = vmatpush.bf16.msra.mxu2 %v8820_v25  ;;  %6291 = vmatpush.bf16.msra.mxu0 %v9152_v14  ;;  %v10040_v25 = vld [vmem:[#allocation12 + $0xa0] sm:$0xf0]  ;;  %v8847_v14 = vld [vmem:[#allocation12 + $0x1d8] sm:$0xf] }
 0x596   :  { %v8848_v30 = vor.u32 %v10082_v43, %v8847_v14  ;;  %v10138_v14 = vld [vmem:[#allocation12 + $0x3b0] sm:$0xf0] }
 0x597   :  { %6328 = vmatpush.bf16.msra.mxu3 %v8988_v9  ;;  %6306 = vmatpush.bf16.msra.mxu1 %v9320_v35  ;;  %v6010_v34 = vpop.f32.mrf.mxu2  ;;  %v8680_v9 = vor.u32 %v10040_v25, %v8679_v6  ;;  %v10173_v35 = vld [vmem:[#allocation12 + $0x4c8] sm:$0xf0]  ;;  %v9099_v25 = vld [vmem:[#allocation12 + $0x3d0] sm:$0xf] }
 0x598   :  { %v6011_v13 = vadd.f32 %v6010_v34, %v4835_v54  ;;  %v9212_v58 = vor.u32 %v10173_v35, %v9211_v24  ;;  %v10145_v54 = vld [vmem:[#allocation12 + $0x3e8] sm:$0xf0] }
 0x599   :  { %6314 = vmatpush.bf16.msra.mxu2 %v8792_v26  ;;  %6292 = vmatpush.bf16.msra.mxu0 %v9124_v22  ;;  %v6025_v53 = vpop.f32.mrf.mxu3  ;;  %v9240_v26 = vor.u32 %v10180_v51, %v9239_v45  ;;  %v8652_v22 = vor.u32 %v10033_v18, %v8651_v8 }
 0x59a   :  { %v6024_v10 = vadd.f32 %v11208_v11, %v6011_v13  ;;  %v10159_v11 = vld [vmem:[#allocation12 + $0x458] sm:$0xf0] }
 0x59b   :  { %6329 = vmatpush.bf16.msra.mxu3 %v8960_v2  ;;  %6307 = vmatpush.bf16.msra.mxu1 %v9292_v7  ;;  %v6049_v57 = vpop.f32.mrf.mxu1  ;;  %v9408_v2 = vor.u32 %v10222_v37, %v9407_v29  ;;  %v9156_v41 = vor.u32 %v10159_v11, %v9155_v50 }
 0x59d   :  { %6315 = vmatpush.bf16.msra.mxu2 %v8764_v40  ;;  %6293 = vmatpush.bf16.msra.mxu0 %v9096_v59  ;;  %v10215_v40 = vld [vmem:[#allocation12 + $0x618] sm:$0xf0]  ;;  %v9184_v59 = vor.u32 %v10166_v52, %v9183_v44 }
 0x59e   :  { %6308 = vmatmul.bf16.vlgmr.msra.gmra.mxu1 %v11184_v20 }
 0x59f   :  { %6330 = vmatpush.bf16.msra.mxu3 %v8932_v17  ;;  %6352 = vmatpush.bf16.msrb.mxu1 %v9492_v31  ;;  %v6012_v16 = vpop.f32.mrf.mxu2  ;;  %v9380_v31 = vor.u32 %v10215_v40, %v9379_v60 }
 0x5a1   :  { %6316 = vmatpush.bf16.msra.mxu2 %v8736_v19  ;;  %6294 = vmatpush.bf16.msra.mxu0 %v9068_v39  ;;  %v6036_v4 = vpop.f32.mrf.mxu0  ;;  %v6075_v7 = vpop.f32.mrf.mxu3  ;;  %v9351_v19 = vld [vmem:[#allocation12 + $0x5c8] sm:$0xf] }
 0x5a2   :  { %v6037_v17 = vadd.f32 %v6036_v4, %v6024_v10  ;;  %v9352_v21 = vor.u32 %v10208_v63, %v9351_v19  ;;  %v9127_v39 = vld [vmem:[#allocation12 + $0x408] sm:$0xf] }
 0x5a3   :  { %6331 = vmatpush.bf16.msra.mxu3 %v8904_v61  ;;  %6353 = vmatpush.bf16.msrb.mxu1 %v9464_v42  ;;  %v6051_v48 = vpop.f32.mrf.mxu1  ;;  %v10201_v61 = vld [vmem:[#allocation12 + $0x5a8] sm:$0xf0]  ;;  %v4836_v42 = vperm.slane %v11213_v38, 1 }
 0x5a4   :  { %6295 = vmatmul.bf16.vlgmr.msra.gmra.mxu0 %v11188_v23  ;;  %v6050_v0 = vadd.f32 %v6049_v57, %v6037_v17  ;;  %v9324_v49 = vor.u32 %v10201_v61, %v9323_v32 }
 0x5a5   :  { %6317 = vmatpush.bf16.msra.mxu2 %v8708_v27  ;;  %6339 = vmatpush.bf16.msrb.mxu0 %v9268_v36  ;;  %v10152_v27 = vld [vmem:[#allocation12 + $0x420] sm:$0xf0]  ;;  %v9295_v36 = vld [vmem:[#allocation12 + $0x558] sm:$0xf] }
 0x5a6   :  { %v9493_v62 = vmul.f32 -1.442695, %v6050_v0  ;;  %v9128_v34 = vor.u32 %v10152_v27, %v9127_v39  ;;  %v9296_v51 = vor.u32 %v10194_v56, %v9295_v36 }
 0x5a7   :  { %6332 = vmatpush.bf16.msra.mxu3 %v8876_v1  ;;  %6354 = vmatpush.bf16.msrb.mxu1 %v9436_v5  ;;  %v6062_v28 = vpop.f32.mrf.mxu2  ;;  %v9100_v5 = vor.u32 %v10145_v54, %v9099_v25 }
 0x5a8   :  { %10295 = vpow2.f32 %v9493_v62  ;;  %v6063_v6 = vadd.f32 %v6062_v28, %v4836_v42 }
 0x5a9   :  { %6318 = vmatpush.bf16.msra.mxu2 %v8680_v9  ;;  %6340 = vmatpush.bf16.msrb.mxu0 %v9240_v26  ;;  %v6038_v55 = vpop.f32.mrf.mxu0  ;;  %v9071_v9 = vld [vmem:[#allocation12 + $0x398] sm:$0xf] }
 0x5aa   :  { %v9072_v37 = vor.u32 %v10138_v14, %v9071_v9 }
 0x5ab   :  { %6333 = vmatpush.bf16.msra.mxu3 %v8848_v30  ;;  %6355 = vmatpush.bf16.msrb.mxu1 %v9408_v2  ;;  %v6101_v15 = vpop.f32.mrf.mxu1  ;;  %v4837_v30 = vperm.slane %v11213_v38, 2 }
 0x5ad   :  { %6319 = vmatpush.bf16.msra.mxu2 %v8652_v22  ;;  %6341 = vmatpush.bf16.msrb.mxu0 %v9212_v58 }
 0x5ae   :  { %6334 = vmatmul.bf16.vlgmr.msra.gmra.mxu3 %v11176_v46  ;;  %v6077_v46 = vpop.f32.mrf.mxu3  ;;  %v10296_v45 = vpop.eup %10295 }
 0x5af   :  { %6356 = vmatpush.bf16.msrb.mxu1 %v9380_v31  ;;  %v6386_v53 = vadd.f32 1.0, %v10296_v45  ;;  %v6064_v1 = vpop.f32.mrf.mxu2 }
 0x5b1   :  { %6320 = vmatpush.bf16.msra.mxu2 %v8624_v47  ;;  %6342 = vmatpush.bf16.msrb.mxu0 %v9184_v59  ;;  %10297 = vrcp.f32 %v6386_v53  ;;  %v6088_v43 = vpop.f32.mrf.mxu0  ;;  %v6404_v16 = vand.u32 2147483648, %v6386_v53  ;;  %v6402_v12 = vand.u32 2147483647, %v6386_v53  ;;  %vm6398_vm9 = vweird.f32 %v6386_v53 }
 0x5b3   :  { %6357 = vmatpush.bf16.msrb.mxu1 %v9352_v21  ;;  %v6103_v26 = vpop.f32.mrf.mxu1  ;;  %v6405_v44 = vor.u32 1.1754944e-38, %v6404_v16  ;;  %vm6403_vm11 = vcmp.eq.f32.partialorder %v6402_v12, 8.507059e+37 }
 0x5b4   :  { %6321 = vmatmul.bf16.vlgmr.msra.gmra.mxu2 %v11179_v3  ;;  %v6076_v3 = vadd.f32 %v6075_v7, %v6063_v6 }
 0x5b5   :  { %6343 = vmatpush.bf16.msrb.mxu0 %v9156_v41 }
 0x5b6   :  { %v6127_v29 = vpop.f32.mrf.mxu3  ;;  %v6089_v57 = vadd.f32 %v6088_v43, %v6076_v3 }
 0x5b7   :  { %6358 = vmatpush.bf16.msrb.mxu1 %v9324_v49  ;;  %v10298_v13 = vpop.eup %10297  ;;  %v6114_v35 = vpop.f32.mrf.mxu2  ;;  %v4838_v49 = vperm.slane %v11213_v38, 3 }
 0x5b8   :  { %v6102_v8 = vadd.f32 %v6101_v15, %v6089_v57  ;;  %v6394_v24 = vmul.f32 %v10298_v13, %v6386_v53  ;;  %vm6399_vm8 = vweird.f32 %v10298_v13  ;;  %v6115_v33 = vadd.f32 %v6114_v35, %v4837_v30 }
 0x5b9   :  { %6344 = vmatpush.bf16.msrb.mxu0 %v9128_v34  ;;  %v6090_v2 = vpop.f32.mrf.mxu0  ;;  %vm6400_vm10 = vmor %vm6398_vm9, %vm6399_vm8  ;;  %v4839_v30 = vperm.slane %v11213_v38, 4 }
 0x5ba   :  { %v9494_v18 = vmul.f32 -1.442695, %v6102_v8  ;;  %v6395_v60 = vsub.f32 1.0, %v6394_v24  ;;  %v6128_v31 = vadd.f32 %v6127_v29, %v6115_v33 }
 0x5bb   :  { %6359 = vmatpush.bf16.msrb.mxu1 %v9296_v51  ;;  %v6153_v58 = vpop.f32.mrf.mxu1 }
 0x5bc   :  { %10299 = vpow2.f32 %v9494_v18  ;;  %v6396_v40 = vmul.f32 %v10298_v13, %v6395_v60 }
 0x5bd   :  { %6345 = vmatpush.bf16.msrb.mxu0 %v9100_v5 }
 0x5be   :  { %6360 = vmatmul.bf16.vlgmr.msrb.gmra.mxu1 %v11184_v20  ;;  %v6129_v22 = vpop.f32.mrf.mxu3  ;;  %v6397_v10 = vadd.f32 %v10298_v13, %v6396_v40 }
 0x5bf   :  { %v6116_v7 = vpop.f32.mrf.mxu2 }
 0x5c0   :  { %v6401_v4 = vsel %vm6400_vm10, %v10298_v13, %v6397_v10 }
 0x5c1   :  { %6346 = vmatpush.bf16.msrb.mxu0 %v9072_v37  ;;  %v6406_v17 = vsel %vm6403_vm11, %v6405_v44, %v6401_v4 }
 0x5c2   :  { %v10300_v20 = vpop.eup %10299  ;;  %6498 = vst [vmem:[%s11329_s29] sm:$0xff] %v6406_v17 }
 0x5c3   :  { %v6387_v52 = vadd.f32 1.0, %v10300_v20  ;;  %v6155_v48 = vpop.f32.mrf.mxu1 }
 0x5c4   :  { %6347 = vmatmul.bf16.vlgmr.msrb.gmra.mxu0 %v11188_v23  ;;  %v6140_v23 = vpop.f32.mrf.mxu0 }
 0x5c5   :  { %10301 = vrcp.f32 %v6387_v52  ;;  %v6141_v47 = vadd.f32 %v6140_v23, %v6128_v31  ;;  %v6419_v62 = vand.u32 2147483648, %v6387_v52  ;;  %v6417_v28 = vand.u32 2147483647, %v6387_v52 }
 0x5c6   :  { %vm6413_vm13 = vweird.f32 %v6387_v52 }
 0x5c7   :  { %v6154_v59 = vadd.f32 %v6153_v58, %v6141_v47  ;;  %v6420_v42 = vor.u32 1.1754944e-38, %v6419_v62  ;;  %vm6418_vm15 = vcmp.eq.f32.partialorder %v6417_v28, 8.507059e+37  ;;  %v4840_v62 = vperm.slane %v11213_v38, 5 }
 0x5c9   :  { %v9495_v63 = vmul.f32 -1.442695, %v6154_v59 }
 0x5cb   :  { %v10302_v19 = vpop.eup %10301  ;;  %10303 = vpow2.f32 %v9495_v63 }
 0x5cc   :  { %v6409_v0 = vmul.f32 %v10302_v19, %v6387_v52  ;;  %v6142_v11 = vpop.f32.mrf.mxu0  ;;  %vm6414_vm12 = vweird.f32 %v10302_v19 }
 0x5cd   :  { %vm6415_vm14 = vmor %vm6413_vm13, %vm6414_vm12 }
 0x5ce   :  { %v6410_v50 = vsub.f32 1.0, %v6409_v0 }
 0x5d0   :  { %v6411_v21 = vmul.f32 %v10302_v19, %v6410_v50 }
 0x5d1   :  { %v6179_v32 = vpop.f32.mrf.mxu3  ;;  %v10304_v61 = vpop.eup %10303 }
 0x5d2   :  { %v6412_v41 = vadd.f32 %v10302_v19, %v6411_v21  ;;  %v6388_v27 = vadd.f32 1.0, %v10304_v61 }
 0x5d4   :  { %v6416_v39 = vsel %vm6415_vm14, %v10302_v19, %v6412_v41  ;;  %10305 = vrcp.f32 %v6388_v27  ;;  %v6434_v54 = vand.u32 2147483648, %v6388_v27  ;;  %v6432_v53 = vand.u32 2147483647, %v6388_v27 }
 0x5d5   :  { %v6421_v55 = vsel %vm6418_vm15, %v6420_v42, %v6416_v39  ;;  %vm6428_vm1 = vweird.f32 %v6388_v27 }
 0x5d6   :  { %6499 = vst [vmem:[%s11329_s29 + $0x8] sm:$0xff] %v6421_v55  ;;  %v6435_v14 = vor.u32 1.1754944e-38, %v6434_v54  ;;  %vm6433_vm3 = vcmp.eq.f32.partialorder %v6432_v53, 8.507059e+37 }
 0x5d7   :  { %v6166_v46 = vpop.f32.mrf.mxu2 }
 0x5d8   :  { %v6167_v6 = vadd.f32 %v6166_v46, %v4838_v49 }
 0x5d9   :  { %v6181_v15 = vpop.f32.mrf.mxu3 }
 0x5da   :  { %v10306_v34 = vpop.eup %10305  ;;  %v6180_v1 = vadd.f32 %v6179_v32, %v6167_v6 }
 0x5db   :  { %v6205_v36 = vpop.f32.mrf.mxu1  ;;  %v6424_v56 = vmul.f32 %v10306_v34, %v6388_v27  ;;  %vm6429_vm0 = vweird.f32 %v10306_v34 }
 0x5dc   :  { %vm6430_vm2 = vmor %vm6428_vm1, %vm6429_vm0 }
 0x5dd   :  { %v6425_v25 = vsub.f32 1.0, %v6424_v56 }
 0x5df   :  { %v6168_v45 = vpop.f32.mrf.mxu2  ;;  %v6426_v51 = vmul.f32 %v10306_v34, %v6425_v25 }
 0x5e1   :  { %v6192_v5 = vpop.f32.mrf.mxu0  ;;  %v6427_v3 = vadd.f32 %v10306_v34, %v6426_v51 }
 0x5e2   :  { %v6193_v9 = vadd.f32 %v6192_v5, %v6180_v1 }
 0x5e3   :  { %v6207_v43 = vpop.f32.mrf.mxu1  ;;  %v6431_v29 = vsel %vm6430_vm2, %v10306_v34, %v6427_v3 }
 0x5e4   :  { %v6206_v57 = vadd.f32 %v6205_v36, %v6193_v9  ;;  %v6436_v26 = vsel %vm6433_vm3, %v6435_v14, %v6431_v29  ;;  %v4841_v14 = vperm.slane %v11213_v38, 6 }
 0x5e5   :  { %6500 = vst [vmem:[%s11329_s29 + $0x10] sm:$0xff] %v6436_v26 }
 0x5e6   :  { %v9496_v37 = vmul.f32 -1.442695, %v6206_v57 }
 0x5e8   :  { %10307 = vpow2.f32 %v9496_v37 }
 0x5e9   :  { %v6194_v8 = vpop.f32.mrf.mxu0 }
 0x5ee   :  { %v10308_v18 = vpop.eup %10307 }
 0x5ef   :  { %v6389_v24 = vadd.f32 1.0, %v10308_v18 }
 0x5f1   :  { %v6231_v13 = vpop.f32.mrf.mxu3  ;;  %10309 = vrcp.f32 %v6389_v24  ;;  %v6449_v12 = vand.u32 2147483648, %v6389_v24  ;;  %v6447_v20 = vand.u32 2147483647, %v6389_v24  ;;  %vm6443_vm5 = vweird.f32 %v6389_v24 }
 0x5f3   :  { %v6450_v4 = vor.u32 1.1754944e-38, %v6449_v12  ;;  %vm6448_vm7 = vcmp.eq.f32.partialorder %v6447_v20, 8.507059e+37 }
 0x5f7   :  { %v6218_v35 = vpop.f32.mrf.mxu2  ;;  %v10310_v22 = vpop.eup %10309 }
 0x5f8   :  { %v6439_v60 = vmul.f32 %v10310_v22, %v6389_v24  ;;  %v6219_v40 = vadd.f32 %v6218_v35, %v4839_v30  ;;  %vm6444_vm4 = vweird.f32 %v10310_v22 }
 0x5f9   :  { %v6233_v2 = vpop.f32.mrf.mxu3  ;;  %vm6445_vm6 = vmor %vm6443_vm5, %vm6444_vm4 }
 0x5fa   :  { %v6440_v58 = vsub.f32 1.0, %v6439_v60  ;;  %v6232_v52 = vadd.f32 %v6231_v13, %v6219_v40 }
 0x5fb   :  { %v6257_v16 = vpop.f32.mrf.mxu1 }
 0x5fc   :  { %v6441_v33 = vmul.f32 %v10310_v22, %v6440_v58 }
 0x5fe   :  { %v6442_v44 = vadd.f32 %v10310_v22, %v6441_v33 }
 0x5ff   :  { %v6220_v10 = vpop.f32.mrf.mxu2 }
 0x600   :  { %v6446_v17 = vsel %vm6445_vm6, %v10310_v22, %v6442_v44 }
 0x601   :  { %v6244_v7 = vpop.f32.mrf.mxu0  ;;  %v6451_v23 = vsel %vm6448_vm7, %v6450_v4, %v6446_v17 }
 0x602   :  { %v6245_v31 = vadd.f32 %v6244_v7, %v6232_v52  ;;  %6501 = vst [vmem:[%s11329_s29 + $0x18] sm:$0xff] %v6451_v23 }
 0x603   :  { %v6259_v47 = vpop.f32.mrf.mxu1 }
 0x604   :  { %v6258_v48 = vadd.f32 %v6257_v16, %v6245_v31 }
 0x606   :  { %v9497_v59 = vmul.f32 -1.442695, %v6258_v48 }
 0x608   :  { %10311 = vpow2.f32 %v9497_v59 }
 0x609   :  { %v6246_v19 = vpop.f32.mrf.mxu0 }
 0x60e   :  { %v10312_v63 = vpop.eup %10311 }
 0x60f   :  { %v6390_v50 = vadd.f32 1.0, %v10312_v63 }
 0x611   :  { %v6283_v0 = vpop.f32.mrf.mxu3  ;;  %10313 = vrcp.f32 %v6390_v50  ;;  %v6464_v39 = vand.u32 2147483648, %v6390_v50  ;;  %v6462_v55 = vand.u32 2147483647, %v6390_v50  ;;  %vm6458_vm9 = vweird.f32 %v6390_v50 }
 0x613   :  { %v6465_v34 = vor.u32 1.1754944e-38, %v6464_v39  ;;  %vm6463_vm11 = vcmp.eq.f32.partialorder %v6462_v55, 8.507059e+37 }
 0x617   :  { %v6270_v11 = vpop.f32.mrf.mxu2  ;;  %v10314_v28 = vpop.eup %10313 }
 0x618   :  { %v6454_v41 = vmul.f32 %v10314_v28, %v6390_v50  ;;  %v6271_v42 = vadd.f32 %v6270_v11, %v4840_v62  ;;  %vm6459_vm8 = vweird.f32 %v10314_v28 }
 0x619   :  { %v6285_v21 = vpop.f32.mrf.mxu3  ;;  %vm6460_vm10 = vmor %vm6458_vm9, %vm6459_vm8 }
 0x61a   :  { %v6455_v61 = vsub.f32 1.0, %v6454_v41  ;;  %v6284_v15 = vadd.f32 %v6283_v0, %v6271_v42 }
 0x61b   :  { %v6309_v32 = vpop.f32.mrf.mxu1 }
 0x61c   :  { %v6456_v27 = vmul.f32 %v10314_v28, %v6455_v61 }
 0x61e   :  { %v6457_v49 = vadd.f32 %v10314_v28, %v6456_v27 }
 0x61f   :  { %v6272_v46 = vpop.f32.mrf.mxu2 }
 0x620   :  { %v6461_v56 = vsel %vm6460_vm10, %v10314_v28, %v6457_v49 }
 0x621   :  { %v6296_v36 = vpop.f32.mrf.mxu0  ;;  %v6466_v25 = vsel %vm6463_vm11, %v6465_v34, %v6461_v56 }
 0x622   :  { %v6297_v6 = vadd.f32 %v6296_v36, %v6284_v15  ;;  %6502 = vst [vmem:[%s11329_s29 + $0x20] sm:$0xff] %v6466_v25 }
 0x623   :  { %v6311_v54 = vpop.f32.mrf.mxu1 }
 0x624   :  { %v6310_v45 = vadd.f32 %v6309_v32, %v6297_v6 }
 0x626   :  { %v9498_v51 = vmul.f32 -1.442695, %v6310_v45 }
 0x628   :  { %10315 = vpow2.f32 %v9498_v51 }
 0x629   :  { %v6298_v53 = vpop.f32.mrf.mxu0 }
 0x62e   :  { %v10316_v1 = vpop.eup %10315 }
 0x62f   :  { %v6391_v3 = vadd.f32 1.0, %v10316_v1 }
 0x631   :  { %v6335_v5 = vpop.f32.mrf.mxu3  ;;  %10317 = vrcp.f32 %v6391_v3  ;;  %v6479_v18 = vand.u32 2147483648, %v6391_v3  ;;  %v6477_v35 = vand.u32 2147483647, %v6391_v3  ;;  %vm6473_vm13 = vweird.f32 %v6391_v3 }
 0x633   :  { %v6480_v60 = vor.u32 1.1754944e-38, %v6479_v18  ;;  %vm6478_vm15 = vcmp.eq.f32.partialorder %v6477_v35, 8.507059e+37 }
 0x637   :  { %v6322_v9 = vpop.f32.mrf.mxu2  ;;  %v10318_v29 = vpop.eup %10317 }
 0x638   :  { %v6469_v57 = vmul.f32 %v10318_v29, %v6391_v3  ;;  %v6323_v26 = vadd.f32 %v6322_v9, %v4841_v14  ;;  %vm6474_vm12 = vweird.f32 %v10318_v29 }
 0x639   :  { %v6337_v43 = vpop.f32.mrf.mxu3  ;;  %vm6475_vm14 = vmor %vm6473_vm13, %vm6474_vm12 }
 0x63a   :  { %v6470_v8 = vsub.f32 1.0, %v6469_v57  ;;  %v6336_v30 = vadd.f32 %v6335_v5, %v6323_v26 }
 0x63b   :  { %v6361_v37 = vpop.f32.mrf.mxu1 }
 0x63c   :  { %v6471_v24 = vmul.f32 %v10318_v29, %v6470_v8 }
 0x63e   :  { %v6472_v2 = vadd.f32 %v10318_v29, %v6471_v24 }
 0x63f   :  { %v6324_v13 = vpop.f32.mrf.mxu2 }
 0x640   :  { %v6476_v58 = vsel %vm6475_vm14, %v10318_v29, %v6472_v2 }
 0x641   :  { %v6348_v22 = vpop.f32.mrf.mxu0  ;;  %v6481_v38 = vsel %vm6478_vm15, %v6480_v60, %v6476_v58 }
 0x642   :  { %v6349_v16 = vadd.f32 %v6348_v22, %v6336_v30  ;;  %6503 = vst [vmem:[%s11329_s29 + $0x28] sm:$0xff] %v6481_v38 }
 0x643   :  { %v6363_v12 = vpop.f32.mrf.mxu1 }
 0x644   :  { %v6362_v40 = vadd.f32 %v6361_v37, %v6349_v16 }
 0x646   :  { %v9499_v33 = vmul.f32 -1.442695, %v6362_v40 }
 0x648   :  { %10319 = vpow2.f32 %v9499_v33 }
 0x649   :  { %v6350_v20 = vpop.f32.mrf.mxu0 }
 0x64e   :  { %v10320_v10 = vpop.eup %10319 }
 0x64f   :  { %v6392_v44 = vadd.f32 1.0, %v10320_v10 }
 0x651   :  { %10321 = vrcp.f32 %v6392_v44  ;;  %v6494_v17 = vand.u32 2147483648, %v6392_v44  ;;  %v6492_v23 = vand.u32 2147483647, %v6392_v44  ;;  %vm6488_vm1 = vweird.f32 %v6392_v44 }
 0x653   :  { %v6495_v48 = vor.u32 1.1754944e-38, %v6494_v17  ;;  %vm6493_vm3 = vcmp.eq.f32.partialorder %v6492_v23, 8.507059e+37 }
 0x657   :  { %v10322_v52 = vpop.eup %10321 }
 0x658   :  { %v6484_v4 = vmul.f32 %v10322_v52, %v6392_v44  ;;  %vm6489_vm0 = vweird.f32 %v10322_v52 }
 0x659   :  { %vm6490_vm2 = vmor %vm6488_vm1, %vm6489_vm0 }
 0x65a   :  { %v6485_v7 = vsub.f32 1.0, %v6484_v4 }
 0x65c   :  { %v6486_v31 = vmul.f32 %v10322_v52, %v6485_v7 }
 0x65e   :  { %v6487_v47 = vadd.f32 %v10322_v52, %v6486_v31 }
 0x660   :  { %v6491_v59 = vsel %vm6490_vm2, %v10322_v52, %v6487_v47 }
 0x661   :  { %v6496_v19 = vsel %vm6493_vm3, %v6495_v48, %v6491_v59 }
 0x662   :  { %6504 = vst [vmem:[%s11329_s29 + $0x30] sm:$0xff] %v6496_v19 }
 0x663   :  { %6513 = vsyncpa [#allocation3], 1 }
 0x664   :  { %6514 = vsyncpa [#allocation5], 1 }
 0x665   :  { %6515 = vsyncpa [#allocation8], 1 }
 0x666   :  { %6516 = vsyncpa [#allocation11], 1 }

</bundles_post_ra>
